<compile_context>
chip_gen: v7x
topology: tpu7x:2x2x1
jax: 0.10.0
libtpu: 0.0.40
codegen_flags: <defaults>
</compile_context>

<pallas_src>
import jax
import jax.numpy as jnp
import numpy as np
from jax.experimental import pallas as pl
from jax.experimental.pallas import tpu as pltpu


def _round_up(x, m):
    return (x + m - 1) // m * m


def dkvmn_kernel(q_emb_ref, x_emb_ref,
                 wq_ref, bp1_ref, wp1r_ref, wp2_ref, bp2_ref,
                 wx_ref, bx_ref,
                 p_ref):
    Bb, L, H = q_emb_ref.shape
    C = wq_ref.shape[1] - H

    qf = q_emb_ref[...].reshape(Bb * L, H)
    xf = x_emb_ref[...].reshape(Bb * L, H)

    # ---- fused q-side projection: [wk | wp1_q] --------------------------------
    qproj = jnp.dot(qf, wq_ref[...], preferred_element_type=jnp.float32)  # [BL, C+H]
    logits = qproj[:, :C]
    QW = (qproj[:, C:] + bp1_ref[...]).reshape(Bb, L, H)

    # stable softmax over concepts; divide moved to EUP via approximate recip
    logits = logits - jnp.max(logits, axis=-1, keepdims=True)
    expl = jnp.exp(logits)
    inv = pl.reciprocal(jnp.sum(expl, axis=-1, keepdims=True), approx=True)
    K = (expl * inv).reshape(Bb, L, C)

    # ---- fused x-side projection: [we | wa] -----------------------------------
    xproj = jnp.dot(xf, wx_ref[...], preferred_element_type=jnp.float32) + bx_ref[...]
    E = jax.nn.sigmoid(xproj[:, :H]).reshape(Bb, L, H)
    A = jnp.tanh(xproj[:, H:]).reshape(Bb, L, H)

    # ---- hoist per-step erase/add outer products out of the recurrence --------
    K4 = K[:, :, :, None]                                   # [Bb, L, C, 1]
    mult = 1.0 - K4 * E[:, :, None, :]                      # [Bb, L, C, H]
    addv = K4 * A[:, :, None, :]                            # [Bb, L, C, H]

    wp1r = wp1r_ref[...]                                    # [H, H]
    wp2_row = wp2_ref[...]                                  # [1, H]
    bp2 = bp2_ref[...]                                      # [1, 1]

    memory = jnp.zeros((Bb, C, H), jnp.float32)
    pts = []
    for t in range(L):                                      # L small & static -> unrolled
        Kt = K[:, t, :]                                     # [Bb, C]
        Rt = jnp.sum(Kt[:, :, None] * memory, axis=1)       # [Bb, H]
        h = jnp.tanh(QW[:, t, :] +
                     jnp.dot(Rt, wp1r, preferred_element_type=jnp.float32))
        pt = jax.nn.sigmoid(jnp.sum(h * wp2_row, axis=1, keepdims=True) + bp2)  # [Bb,1]
        pts.append(pt)
        memory = memory * mult[:, t] + addv[:, t]           # 2 VPU ops on the serial path

    # ---- single lane-dense store ------------------------------------------------
    P = jnp.concatenate(pts, axis=1)                        # [Bb, L]
    L_pad = p_ref.shape[1]
    if L_pad > L:
        P = jnp.concatenate([P, jnp.zeros((Bb, L_pad - L), jnp.float32)], axis=1)
    p_ref[...] = P.astype(p_ref.dtype)


def dkvmn_forward(X, Q, params, *, batch_block=8):
    # Embedding lookups (gather) are glue in plain JAX.
    q_emb = params['q_embedding'][Q].astype(jnp.float32)    # [B, L, H]
    x_emb = params['x_embedding'][X].astype(jnp.float32)    # [B, L, H]
    B, L = X.shape
    H = q_emb.shape[-1]
    C = params['wk'].shape[1]

    Bb = batch_block
    B_pad = _round_up(B, Bb)
    L_pad = _round_up(L, 128)        # lane-dense, unmasked output store

    if B_pad > B:
        pad = ((0, B_pad - B), (0, 0), (0, 0))
        q_emb = jnp.pad(q_emb, pad)
        x_emb = jnp.pad(x_emb, pad)

    # Host-side weight fusion: one q-side and one x-side matmul inside the kernel.
    wq = jnp.concatenate([params['wk'], params['wp1'][:H, :]], axis=1)   # [H, C+H]
    wp1r = params['wp1'][H:, :]                                          # [H, H]
    bp1 = params['bp1'].reshape(1, H)
    wp2 = params['wp2'].reshape(1, H)                                    # row for lane-sum
    bp2 = params['bp2'].reshape(1, 1)
    wx = jnp.concatenate([params['we'], params['wa']], axis=1)           # [H, 2H]
    bx = jnp.concatenate([params['be'], params['ba']]).reshape(1, 2 * H)

    def w_spec(shape):
        return pl.BlockSpec(shape, lambda i: (0,) * len(shape))

    out = pl.pallas_call(
        dkvmn_kernel,
        out_shape=jax.ShapeDtypeStruct((B_pad, L_pad), jnp.float32),
        grid=(B_pad // Bb,),
        in_specs=[
            pl.BlockSpec((Bb, L, H), lambda i: (i, 0, 0)),   # q_emb batch tile
            pl.BlockSpec((Bb, L, H), lambda i: (i, 0, 0)),   # x_emb batch tile
            w_spec(wq.shape), w_spec(bp1.shape), w_spec(wp1r.shape),
            w_spec(wp2.shape), w_spec(bp2.shape),
            w_spec(wx.shape), w_spec(bx.shape),
        ],
        out_specs=pl.BlockSpec((Bb, L_pad), lambda i: (i, 0)),
        compiler_params=pltpu.CompilerParams(
            dimension_semantics=("parallel",)),
    )(q_emb, x_emb, wq, bp1, wp1r, wp2, bp2, wx, bx)

    return out[:B, :L]


def dkvmn_ref(X, Q, params):
    """Pure-JAX reference mirroring the PyTorch forward."""
    q = params['q_embedding'][Q].astype(jnp.float32)
    x = params['x_embedding'][X].astype(jnp.float32)
    K = jax.nn.softmax(q @ params['wk'], axis=-1)
    E = jax.nn.sigmoid(x @ params['we'] + params['be'])
    A = jnp.tanh(x @ params['wa'] + params['ba'])
    B, L = X.shape
    C = params['wk'].shape[1]
    memory = jnp.zeros((B, C, q.shape[-1]), jnp.float32)
    Ps = []
    for t in range(L):
        Kt = K[:, t, :]
        Rt = jnp.sum(Kt[:, :, None] * memory, axis=1)
        cat = jnp.concatenate([q[:, t, :], Rt], axis=1)
        h = jnp.tanh(cat @ params['wp1'] + params['bp1'])
        pt = jax.nn.sigmoid(h @ params['wp2'] + params['bp2'])      # [B, 1]
        memory = (memory * (1.0 - Kt[:, :, None] * E[:, t, None, :])
                  + Kt[:, :, None] * A[:, t, None, :])
        Ps.append(pt)
    return jnp.concatenate(Ps, axis=1)


def init_params(q_num, hidden_num, concept_num, key):
    ks = jax.random.split(key, 9)
    H, C = hidden_num, concept_num
    return {
        'q_embedding': jax.random.normal(ks[0], (q_num, H), jnp.float32) * 0.5,
        'x_embedding': jax.random.normal(ks[1], (2 * q_num, H), jnp.float32) * 0.5,
        'wk':  jax.random.normal(ks[2], (H, C), jnp.float32) / np.sqrt(H),
        'wp1': jax.random.normal(ks[3], (2 * H, H), jnp.float32) / np.sqrt(2 * H),
        'bp1': jax.random.normal(ks[4], (H,), jnp.float32) * 0.1,
        'wp2': jax.random.normal(ks[5], (H, 1), jnp.float32) / np.sqrt(H),
        'bp2': jax.random.normal(ks[6], (1,), jnp.float32) * 0.1,
        'we':  jax.random.normal(ks[7], (H, H), jnp.float32) / np.sqrt(H),
        'be':  jnp.zeros((H,), jnp.float32),
        'wa':  jax.random.normal(ks[8], (H, H), jnp.float32) / np.sqrt(H),
        'ba':  jnp.zeros((H,), jnp.float32),
    }


if __name__ == "__main__":
    q_num, hidden_num, concept_num = 20, 32, 16
    B, L = 2, 8

    key = jax.random.PRNGKey(0)
    kp, kx, kq = jax.random.split(key, 3)
    params = init_params(q_num, hidden_num, concept_num, kp)

    X = jax.random.randint(kx, (B, L), 0, 2 * q_num, dtype=jnp.int32)
    Q = jax.random.randint(kq, (B, L), 0, q_num, dtype=jnp.int32)

    P = dkvmn_forward(X, Q, params)
    P = jax.block_until_ready(P)

    P_ref = jax.block_until_ready(dkvmn_ref(X, Q, params))
    # Looser tolerance than the exact-divide version: the softmax denominator
    # uses the EUP approximate reciprocal, which propagates through the
    # recurrence.  Real bugs show up as O(0.1-1) deviations; this still catches them.
    np.testing.assert_allclose(np.asarray(P), np.asarray(P_ref), rtol=2e-2, atol=2e-2)

    print("KERNEL_OK")
</pallas_src>

<mosaic_0001>
module attributes {stable_mosaic.version = 11 : i64} {
  func.func @dkvmn_kernel(%arg0: i32, %arg1: memref<8x8x32xf32, #tpu.memory_space<vmem>>, %arg2: memref<8x8x32xf32, #tpu.memory_space<vmem>>, %arg3: memref<32x48xf32, #tpu.memory_space<vmem>>, %arg4: memref<1x32xf32, #tpu.memory_space<vmem>>, %arg5: memref<32x32xf32, #tpu.memory_space<vmem>>, %arg6: memref<1x32xf32, #tpu.memory_space<vmem>>, %arg7: memref<1x1xf32, #tpu.memory_space<vmem>>, %arg8: memref<32x64xf32, #tpu.memory_space<vmem>>, %arg9: memref<1x64xf32, #tpu.memory_space<vmem>>, %arg10: memref<8x128xf32, #tpu.memory_space<vmem>>) attributes {dimension_semantics = [#tpu.dimension_semantics<parallel>], iteration_bounds = array<i64: 1>, scalar_prefetch = 0 : i64, scratch_operands = 0 : i64, tpu.core_type = #tpu.core_type<tc>, window_params = [{transform_indices = @transform_0, window_bounds = array<i64: 8, 8, 32>}, {transform_indices = @transform_1, window_bounds = array<i64: 8, 8, 32>}, {pipeline_mode = #tpu.pipeline_mode<synchronous>, transform_indices = @transform_2, window_bounds = array<i64: 32, 48>}, {pipeline_mode = #tpu.pipeline_mode<synchronous>, transform_indices = @transform_3, window_bounds = array<i64: 1, 32>}, {pipeline_mode = #tpu.pipeline_mode<synchronous>, transform_indices = @transform_4, window_bounds = array<i64: 32, 32>}, {pipeline_mode = #tpu.pipeline_mode<synchronous>, transform_indices = @transform_5, window_bounds = array<i64: 1, 32>}, {pipeline_mode = #tpu.pipeline_mode<synchronous>, transform_indices = @transform_6, window_bounds = array<i64: 1, 1>}, {pipeline_mode = #tpu.pipeline_mode<synchronous>, transform_indices = @transform_7, window_bounds = array<i64: 32, 64>}, {pipeline_mode = #tpu.pipeline_mode<synchronous>, transform_indices = @transform_8, window_bounds = array<i64: 1, 64>}, {transform_indices = @transform_9, window_bounds = array<i64: 8, 128>}]} {
    %c0 = arith.constant 0 : index
    %c0_0 = arith.constant 0 : index
    %c0_1 = arith.constant 0 : index
    %0 = vector.load %arg1[%c0, %c0_0, %c0_1] : memref<8x8x32xf32, #tpu.memory_space<vmem>>, vector<8x8x32xf32>
    %1 = vector.shape_cast %0 : vector<8x8x32xf32> to vector<64x32xf32>
    %c0_2 = arith.constant 0 : index
    %c0_3 = arith.constant 0 : index
    %c0_4 = arith.constant 0 : index
    %2 = vector.load %arg2[%c0_2, %c0_3, %c0_4] : memref<8x8x32xf32, #tpu.memory_space<vmem>>, vector<8x8x32xf32>
    %3 = vector.shape_cast %2 : vector<8x8x32xf32> to vector<64x32xf32>
    %c0_5 = arith.constant 0 : index
    %c0_6 = arith.constant 0 : index
    %4 = vector.load %arg3[%c0_5, %c0_6] : memref<32x48xf32, #tpu.memory_space<vmem>>, vector<32x48xf32>
    %cst = arith.constant dense<0.000000e+00> : vector<64x48xf32>
    %5 = tpu.matmul %1, %4, %cst {dimension_numbers = #tpu.dot_dimension_numbers<[1], [0], [0], [1], [0, 0, 1, 1], [], []>} : vector<64x32xf32>, vector<32x48xf32>, vector<64x48xf32> -> vector<64x48xf32>
    %6 = vector.extract_strided_slice %5 {offsets = [0, 0], sizes = [64, 16], strides = [1, 1]} : vector<64x48xf32> to vector<64x16xf32>
    %7 = vector.extract_strided_slice %5 {offsets = [0, 16], sizes = [64, 32], strides = [1, 1]} : vector<64x48xf32> to vector<64x32xf32>
    %c0_7 = arith.constant 0 : index
    %c0_8 = arith.constant 0 : index
    %8 = vector.load %arg4[%c0_7, %c0_8] : memref<1x32xf32, #tpu.memory_space<vmem>>, vector<1x32xf32>
    %9 = vector.broadcast %8 : vector<1x32xf32> to vector<64x32xf32>
    %10 = arith.addf %7, %9 : vector<64x32xf32>
    %11 = vector.shape_cast %10 : vector<64x32xf32> to vector<8x8x32xf32>
    %cst_9 = arith.constant dense<0xFF800000> : vector<64xf32>
    %12 = vector.multi_reduction <maximumf>, %6, %cst_9 [1] : vector<64x16xf32> to vector<64xf32>
    %13 = vector.shape_cast %12 : vector<64xf32> to vector<64x1xf32>
    %14 = vector.broadcast %13 : vector<64x1xf32> to vector<64x16xf32>
    %15 = arith.subf %6, %14 : vector<64x16xf32>
    %16 = math.exp %15 : vector<64x16xf32>
    %cst_10 = arith.constant dense<0.000000e+00> : vector<64xf32>
    %17 = vector.multi_reduction <add>, %16, %cst_10 [1] : vector<64x16xf32> to vector<64xf32>
    %18 = vector.shape_cast %17 : vector<64xf32> to vector<64x1xf32>
    %19 = tpu.reciprocal %18 {approx = true} : vector<64x1xf32> -> vector<64x1xf32>
    %20 = vector.broadcast %19 : vector<64x1xf32> to vector<64x16xf32>
    %21 = arith.mulf %16, %20 : vector<64x16xf32>
    %22 = vector.shape_cast %21 : vector<64x16xf32> to vector<8x8x16xf32>
    %c0_11 = arith.constant 0 : index
    %c0_12 = arith.constant 0 : index
    %23 = vector.load %arg8[%c0_11, %c0_12] : memref<32x64xf32, #tpu.memory_space<vmem>>, vector<32x64xf32>
    %cst_13 = arith.constant dense<0.000000e+00> : vector<64x64xf32>
    %24 = tpu.matmul %3, %23, %cst_13 {dimension_numbers = #tpu.dot_dimension_numbers<[1], [0], [0], [1], [0, 0, 1, 1], [], []>} : vector<64x32xf32>, vector<32x64xf32>, vector<64x64xf32> -> vector<64x64xf32>
    %c0_14 = arith.constant 0 : index
    %c0_15 = arith.constant 0 : index
    %25 = vector.load %arg9[%c0_14, %c0_15] : memref<1x64xf32, #tpu.memory_space<vmem>>, vector<1x64xf32>
    %26 = vector.broadcast %25 : vector<1x64xf32> to vector<64x64xf32>
    %27 = arith.addf %24, %26 : vector<64x64xf32>
    %28 = vector.extract_strided_slice %27 {offsets = [0, 0], sizes = [64, 32], strides = [1, 1]} : vector<64x64xf32> to vector<64x32xf32>
    %29 = arith.negf %28 : vector<64x32xf32>
    %30 = math.exp %29 : vector<64x32xf32>
    %cst_16 = arith.constant 1.000000e+00 : f32
    %31 = vector.broadcast %cst_16 : f32 to vector<64x32xf32>
    %32 = arith.addf %31, %30 : vector<64x32xf32>
    %33 = arith.divf %31, %32 : vector<64x32xf32>
    %34 = vector.shape_cast %33 : vector<64x32xf32> to vector<8x8x32xf32>
    %35 = vector.extract_strided_slice %27 {offsets = [0, 32], sizes = [64, 32], strides = [1, 1]} : vector<64x64xf32> to vector<64x32xf32>
    %36 = math.tanh %35 : vector<64x32xf32>
    %37 = vector.shape_cast %36 : vector<64x32xf32> to vector<8x8x32xf32>
    %38 = vector.shape_cast %22 : vector<8x8x16xf32> to vector<8x8x16x1xf32>
    %39 = vector.shape_cast %34 : vector<8x8x32xf32> to vector<8x8x1x32xf32>
    %40 = vector.broadcast %38 : vector<8x8x16x1xf32> to vector<8x8x16x32xf32>
    %41 = vector.broadcast %39 : vector<8x8x1x32xf32> to vector<8x8x16x32xf32>
    %42 = arith.mulf %40, %41 : vector<8x8x16x32xf32>
    %cst_17 = arith.constant 1.000000e+00 : f32
    %43 = vector.broadcast %cst_17 : f32 to vector<8x8x16x32xf32>
    %44 = arith.subf %43, %42 : vector<8x8x16x32xf32>
    %45 = vector.shape_cast %37 : vector<8x8x32xf32> to vector<8x8x1x32xf32>
    %46 = vector.broadcast %38 : vector<8x8x16x1xf32> to vector<8x8x16x32xf32>
    %47 = vector.broadcast %45 : vector<8x8x1x32xf32> to vector<8x8x16x32xf32>
    %48 = arith.mulf %46, %47 : vector<8x8x16x32xf32>
    %c0_18 = arith.constant 0 : index
    %c0_19 = arith.constant 0 : index
    %49 = vector.load %arg5[%c0_18, %c0_19] : memref<32x32xf32, #tpu.memory_space<vmem>>, vector<32x32xf32>
    %c0_20 = arith.constant 0 : index
    %c0_21 = arith.constant 0 : index
    %50 = vector.load %arg6[%c0_20, %c0_21] : memref<1x32xf32, #tpu.memory_space<vmem>>, vector<1x32xf32>
    %c0_22 = arith.constant 0 : index
    %c0_23 = arith.constant 0 : index
    %51 = vector.load %arg7[%c0_22, %c0_23] : memref<1x1xf32, #tpu.memory_space<vmem>>, vector<1x1xf32>
    %cst_24 = arith.constant 0.000000e+00 : f32
    %52 = vector.broadcast %cst_24 : f32 to vector<8x16x32xf32>
    %53 = vector.extract_strided_slice %22 {offsets = [0, 0, 0], sizes = [8, 1, 16], strides = [1, 1, 1]} : vector<8x8x16xf32> to vector<8x1x16xf32>
    %54 = vector.shape_cast %53 : vector<8x1x16xf32> to vector<8x16xf32>
    %55 = vector.shape_cast %54 : vector<8x16xf32> to vector<8x16x1xf32>
    %56 = vector.broadcast %55 : vector<8x16x1xf32> to vector<8x16x32xf32>
    %57 = arith.mulf %56, %52 : vector<8x16x32xf32>
    %cst_25 = arith.constant dense<0.000000e+00> : vector<8x32xf32>
    %58 = vector.multi_reduction <add>, %57, %cst_25 [1] : vector<8x16x32xf32> to vector<8x32xf32>
    %59 = vector.extract_strided_slice %11 {offsets = [0, 0, 0], sizes = [8, 1, 32], strides = [1, 1, 1]} : vector<8x8x32xf32> to vector<8x1x32xf32>
    %60 = vector.shape_cast %59 : vector<8x1x32xf32> to vector<8x32xf32>
    %cst_26 = arith.constant dense<0.000000e+00> : vector<8x32xf32>
    %61 = tpu.matmul %58, %49, %cst_26 {dimension_numbers = #tpu.dot_dimension_numbers<[1], [0], [0], [1], [0, 0, 1, 1], [], []>} : vector<8x32xf32>, vector<32x32xf32>, vector<8x32xf32> -> vector<8x32xf32>
    %62 = arith.addf %60, %61 : vector<8x32xf32>
    %63 = math.tanh %62 : vector<8x32xf32>
    %64 = vector.broadcast %50 : vector<1x32xf32> to vector<8x32xf32>
    %65 = arith.mulf %63, %64 : vector<8x32xf32>
    %cst_27 = arith.constant dense<0.000000e+00> : vector<8xf32>
    %66 = vector.multi_reduction <add>, %65, %cst_27 [1] : vector<8x32xf32> to vector<8xf32>
    %67 = vector.shape_cast %66 : vector<8xf32> to vector<8x1xf32>
    %68 = vector.broadcast %51 : vector<1x1xf32> to vector<8x1xf32>
    %69 = arith.addf %67, %68 : vector<8x1xf32>
    %70 = arith.negf %69 : vector<8x1xf32>
    %71 = math.exp %70 : vector<8x1xf32>
    %cst_28 = arith.constant 1.000000e+00 : f32
    %72 = vector.broadcast %cst_28 : f32 to vector<8x1xf32>
    %73 = arith.addf %72, %71 : vector<8x1xf32>
    %74 = arith.divf %72, %73 : vector<8x1xf32>
    %75 = vector.extract_strided_slice %44 {offsets = [0, 0, 0, 0], sizes = [8, 1, 16, 32], strides = [1, 1, 1, 1]} : vector<8x8x16x32xf32> to vector<8x1x16x32xf32>
    %76 = vector.shape_cast %75 : vector<8x1x16x32xf32> to vector<8x16x32xf32>
    %77 = arith.mulf %52, %76 : vector<8x16x32xf32>
    %78 = vector.extract_strided_slice %48 {offsets = [0, 0, 0, 0], sizes = [8, 1, 16, 32], strides = [1, 1, 1, 1]} : vector<8x8x16x32xf32> to vector<8x1x16x32xf32>
    %79 = vector.shape_cast %78 : vector<8x1x16x32xf32> to vector<8x16x32xf32>
    %80 = arith.addf %77, %79 : vector<8x16x32xf32>
    %81 = vector.extract_strided_slice %22 {offsets = [0, 1, 0], sizes = [8, 1, 16], strides = [1, 1, 1]} : vector<8x8x16xf32> to vector<8x1x16xf32>
    %82 = vector.shape_cast %81 : vector<8x1x16xf32> to vector<8x16xf32>
    %83 = vector.shape_cast %82 : vector<8x16xf32> to vector<8x16x1xf32>
    %84 = vector.broadcast %83 : vector<8x16x1xf32> to vector<8x16x32xf32>
    %85 = arith.mulf %84, %80 : vector<8x16x32xf32>
    %cst_29 = arith.constant dense<0.000000e+00> : vector<8x32xf32>
    %86 = vector.multi_reduction <add>, %85, %cst_29 [1] : vector<8x16x32xf32> to vector<8x32xf32>
    %87 = vector.extract_strided_slice %11 {offsets = [0, 1, 0], sizes = [8, 1, 32], strides = [1, 1, 1]} : vector<8x8x32xf32> to vector<8x1x32xf32>
    %88 = vector.shape_cast %87 : vector<8x1x32xf32> to vector<8x32xf32>
    %cst_30 = arith.constant dense<0.000000e+00> : vector<8x32xf32>
    %89 = tpu.matmul %86, %49, %cst_30 {dimension_numbers = #tpu.dot_dimension_numbers<[1], [0], [0], [1], [0, 0, 1, 1], [], []>} : vector<8x32xf32>, vector<32x32xf32>, vector<8x32xf32> -> vector<8x32xf32>
    %90 = arith.addf %88, %89 : vector<8x32xf32>
    %91 = math.tanh %90 : vector<8x32xf32>
    %92 = vector.broadcast %50 : vector<1x32xf32> to vector<8x32xf32>
    %93 = arith.mulf %91, %92 : vector<8x32xf32>
    %cst_31 = arith.constant dense<0.000000e+00> : vector<8xf32>
    %94 = vector.multi_reduction <add>, %93, %cst_31 [1] : vector<8x32xf32> to vector<8xf32>
    %95 = vector.shape_cast %94 : vector<8xf32> to vector<8x1xf32>
    %96 = vector.broadcast %51 : vector<1x1xf32> to vector<8x1xf32>
    %97 = arith.addf %95, %96 : vector<8x1xf32>
    %98 = arith.negf %97 : vector<8x1xf32>
    %99 = math.exp %98 : vector<8x1xf32>
    %cst_32 = arith.constant 1.000000e+00 : f32
    %100 = vector.broadcast %cst_32 : f32 to vector<8x1xf32>
    %101 = arith.addf %100, %99 : vector<8x1xf32>
    %102 = arith.divf %100, %101 : vector<8x1xf32>
    %103 = vector.extract_strided_slice %44 {offsets = [0, 1, 0, 0], sizes = [8, 1, 16, 32], strides = [1, 1, 1, 1]} : vector<8x8x16x32xf32> to vector<8x1x16x32xf32>
    %104 = vector.shape_cast %103 : vector<8x1x16x32xf32> to vector<8x16x32xf32>
    %105 = arith.mulf %80, %104 : vector<8x16x32xf32>
    %106 = vector.extract_strided_slice %48 {offsets = [0, 1, 0, 0], sizes = [8, 1, 16, 32], strides = [1, 1, 1, 1]} : vector<8x8x16x32xf32> to vector<8x1x16x32xf32>
    %107 = vector.shape_cast %106 : vector<8x1x16x32xf32> to vector<8x16x32xf32>
    %108 = arith.addf %105, %107 : vector<8x16x32xf32>
    %109 = vector.extract_strided_slice %22 {offsets = [0, 2, 0], sizes = [8, 1, 16], strides = [1, 1, 1]} : vector<8x8x16xf32> to vector<8x1x16xf32>
    %110 = vector.shape_cast %109 : vector<8x1x16xf32> to vector<8x16xf32>
    %111 = vector.shape_cast %110 : vector<8x16xf32> to vector<8x16x1xf32>
    %112 = vector.broadcast %111 : vector<8x16x1xf32> to vector<8x16x32xf32>
    %113 = arith.mulf %112, %108 : vector<8x16x32xf32>
    %cst_33 = arith.constant dense<0.000000e+00> : vector<8x32xf32>
    %114 = vector.multi_reduction <add>, %113, %cst_33 [1] : vector<8x16x32xf32> to vector<8x32xf32>
    %115 = vector.extract_strided_slice %11 {offsets = [0, 2, 0], sizes = [8, 1, 32], strides = [1, 1, 1]} : vector<8x8x32xf32> to vector<8x1x32xf32>
    %116 = vector.shape_cast %115 : vector<8x1x32xf32> to vector<8x32xf32>
    %cst_34 = arith.constant dense<0.000000e+00> : vector<8x32xf32>
    %117 = tpu.matmul %114, %49, %cst_34 {dimension_numbers = #tpu.dot_dimension_numbers<[1], [0], [0], [1], [0, 0, 1, 1], [], []>} : vector<8x32xf32>, vector<32x32xf32>, vector<8x32xf32> -> vector<8x32xf32>
    %118 = arith.addf %116, %117 : vector<8x32xf32>
    %119 = math.tanh %118 : vector<8x32xf32>
    %120 = vector.broadcast %50 : vector<1x32xf32> to vector<8x32xf32>
    %121 = arith.mulf %119, %120 : vector<8x32xf32>
    %cst_35 = arith.constant dense<0.000000e+00> : vector<8xf32>
    %122 = vector.multi_reduction <add>, %121, %cst_35 [1] : vector<8x32xf32> to vector<8xf32>
    %123 = vector.shape_cast %122 : vector<8xf32> to vector<8x1xf32>
    %124 = vector.broadcast %51 : vector<1x1xf32> to vector<8x1xf32>
    %125 = arith.addf %123, %124 : vector<8x1xf32>
    %126 = arith.negf %125 : vector<8x1xf32>
    %127 = math.exp %126 : vector<8x1xf32>
    %cst_36 = arith.constant 1.000000e+00 : f32
    %128 = vector.broadcast %cst_36 : f32 to vector<8x1xf32>
    %129 = arith.addf %128, %127 : vector<8x1xf32>
    %130 = arith.divf %128, %129 : vector<8x1xf32>
    %131 = vector.extract_strided_slice %44 {offsets = [0, 2, 0, 0], sizes = [8, 1, 16, 32], strides = [1, 1, 1, 1]} : vector<8x8x16x32xf32> to vector<8x1x16x32xf32>
    %132 = vector.shape_cast %131 : vector<8x1x16x32xf32> to vector<8x16x32xf32>
    %133 = arith.mulf %108, %132 : vector<8x16x32xf32>
    %134 = vector.extract_strided_slice %48 {offsets = [0, 2, 0, 0], sizes = [8, 1, 16, 32], strides = [1, 1, 1, 1]} : vector<8x8x16x32xf32> to vector<8x1x16x32xf32>
    %135 = vector.shape_cast %134 : vector<8x1x16x32xf32> to vector<8x16x32xf32>
    %136 = arith.addf %133, %135 : vector<8x16x32xf32>
    %137 = vector.extract_strided_slice %22 {offsets = [0, 3, 0], sizes = [8, 1, 16], strides = [1, 1, 1]} : vector<8x8x16xf32> to vector<8x1x16xf32>
    %138 = vector.shape_cast %137 : vector<8x1x16xf32> to vector<8x16xf32>
    %139 = vector.shape_cast %138 : vector<8x16xf32> to vector<8x16x1xf32>
    %140 = vector.broadcast %139 : vector<8x16x1xf32> to vector<8x16x32xf32>
    %141 = arith.mulf %140, %136 : vector<8x16x32xf32>
    %cst_37 = arith.constant dense<0.000000e+00> : vector<8x32xf32>
    %142 = vector.multi_reduction <add>, %141, %cst_37 [1] : vector<8x16x32xf32> to vector<8x32xf32>
    %143 = vector.extract_strided_slice %11 {offsets = [0, 3, 0], sizes = [8, 1, 32], strides = [1, 1, 1]} : vector<8x8x32xf32> to vector<8x1x32xf32>
    %144 = vector.shape_cast %143 : vector<8x1x32xf32> to vector<8x32xf32>
    %cst_38 = arith.constant dense<0.000000e+00> : vector<8x32xf32>
    %145 = tpu.matmul %142, %49, %cst_38 {dimension_numbers = #tpu.dot_dimension_numbers<[1], [0], [0], [1], [0, 0, 1, 1], [], []>} : vector<8x32xf32>, vector<32x32xf32>, vector<8x32xf32> -> vector<8x32xf32>
    %146 = arith.addf %144, %145 : vector<8x32xf32>
    %147 = math.tanh %146 : vector<8x32xf32>
    %148 = vector.broadcast %50 : vector<1x32xf32> to vector<8x32xf32>
    %149 = arith.mulf %147, %148 : vector<8x32xf32>
    %cst_39 = arith.constant dense<0.000000e+00> : vector<8xf32>
    %150 = vector.multi_reduction <add>, %149, %cst_39 [1] : vector<8x32xf32> to vector<8xf32>
    %151 = vector.shape_cast %150 : vector<8xf32> to vector<8x1xf32>
    %152 = vector.broadcast %51 : vector<1x1xf32> to vector<8x1xf32>
    %153 = arith.addf %151, %152 : vector<8x1xf32>
    %154 = arith.negf %153 : vector<8x1xf32>
    %155 = math.exp %154 : vector<8x1xf32>
    %cst_40 = arith.constant 1.000000e+00 : f32
    %156 = vector.broadcast %cst_40 : f32 to vector<8x1xf32>
    %157 = arith.addf %156, %155 : vector<8x1xf32>
    %158 = arith.divf %156, %157 : vector<8x1xf32>
    %159 = vector.extract_strided_slice %44 {offsets = [0, 3, 0, 0], sizes = [8, 1, 16, 32], strides = [1, 1, 1, 1]} : vector<8x8x16x32xf32> to vector<8x1x16x32xf32>
    %160 = vector.shape_cast %159 : vector<8x1x16x32xf32> to vector<8x16x32xf32>
    %161 = arith.mulf %136, %160 : vector<8x16x32xf32>
    %162 = vector.extract_strided_slice %48 {offsets = [0, 3, 0, 0], sizes = [8, 1, 16, 32], strides = [1, 1, 1, 1]} : vector<8x8x16x32xf32> to vector<8x1x16x32xf32>
    %163 = vector.shape_cast %162 : vector<8x1x16x32xf32> to vector<8x16x32xf32>
    %164 = arith.addf %161, %163 : vector<8x16x32xf32>
    %165 = vector.extract_strided_slice %22 {offsets = [0, 4, 0], sizes = [8, 1, 16], strides = [1, 1, 1]} : vector<8x8x16xf32> to vector<8x1x16xf32>
    %166 = vector.shape_cast %165 : vector<8x1x16xf32> to vector<8x16xf32>
    %167 = vector.shape_cast %166 : vector<8x16xf32> to vector<8x16x1xf32>
    %168 = vector.broadcast %167 : vector<8x16x1xf32> to vector<8x16x32xf32>
    %169 = arith.mulf %168, %164 : vector<8x16x32xf32>
    %cst_41 = arith.constant dense<0.000000e+00> : vector<8x32xf32>
    %170 = vector.multi_reduction <add>, %169, %cst_41 [1] : vector<8x16x32xf32> to vector<8x32xf32>
    %171 = vector.extract_strided_slice %11 {offsets = [0, 4, 0], sizes = [8, 1, 32], strides = [1, 1, 1]} : vector<8x8x32xf32> to vector<8x1x32xf32>
    %172 = vector.shape_cast %171 : vector<8x1x32xf32> to vector<8x32xf32>
    %cst_42 = arith.constant dense<0.000000e+00> : vector<8x32xf32>
    %173 = tpu.matmul %170, %49, %cst_42 {dimension_numbers = #tpu.dot_dimension_numbers<[1], [0], [0], [1], [0, 0, 1, 1], [], []>} : vector<8x32xf32>, vector<32x32xf32>, vector<8x32xf32> -> vector<8x32xf32>
    %174 = arith.addf %172, %173 : vector<8x32xf32>
    %175 = math.tanh %174 : vector<8x32xf32>
    %176 = vector.broadcast %50 : vector<1x32xf32> to vector<8x32xf32>
    %177 = arith.mulf %175, %176 : vector<8x32xf32>
    %cst_43 = arith.constant dense<0.000000e+00> : vector<8xf32>
    %178 = vector.multi_reduction <add>, %177, %cst_43 [1] : vector<8x32xf32> to vector<8xf32>
    %179 = vector.shape_cast %178 : vector<8xf32> to vector<8x1xf32>
    %180 = vector.broadcast %51 : vector<1x1xf32> to vector<8x1xf32>
    %181 = arith.addf %179, %180 : vector<8x1xf32>
    %182 = arith.negf %181 : vector<8x1xf32>
    %183 = math.exp %182 : vector<8x1xf32>
    %cst_44 = arith.constant 1.000000e+00 : f32
    %184 = vector.broadcast %cst_44 : f32 to vector<8x1xf32>
    %185 = arith.addf %184, %183 : vector<8x1xf32>
    %186 = arith.divf %184, %185 : vector<8x1xf32>
    %187 = vector.extract_strided_slice %44 {offsets = [0, 4, 0, 0], sizes = [8, 1, 16, 32], strides = [1, 1, 1, 1]} : vector<8x8x16x32xf32> to vector<8x1x16x32xf32>
    %188 = vector.shape_cast %187 : vector<8x1x16x32xf32> to vector<8x16x32xf32>
    %189 = arith.mulf %164, %188 : vector<8x16x32xf32>
    %190 = vector.extract_strided_slice %48 {offsets = [0, 4, 0, 0], sizes = [8, 1, 16, 32], strides = [1, 1, 1, 1]} : vector<8x8x16x32xf32> to vector<8x1x16x32xf32>
    %191 = vector.shape_cast %190 : vector<8x1x16x32xf32> to vector<8x16x32xf32>
    %192 = arith.addf %189, %191 : vector<8x16x32xf32>
    %193 = vector.extract_strided_slice %22 {offsets = [0, 5, 0], sizes = [8, 1, 16], strides = [1, 1, 1]} : vector<8x8x16xf32> to vector<8x1x16xf32>
    %194 = vector.shape_cast %193 : vector<8x1x16xf32> to vector<8x16xf32>
    %195 = vector.shape_cast %194 : vector<8x16xf32> to vector<8x16x1xf32>
    %196 = vector.broadcast %195 : vector<8x16x1xf32> to vector<8x16x32xf32>
    %197 = arith.mulf %196, %192 : vector<8x16x32xf32>
    %cst_45 = arith.constant dense<0.000000e+00> : vector<8x32xf32>
    %198 = vector.multi_reduction <add>, %197, %cst_45 [1] : vector<8x16x32xf32> to vector<8x32xf32>
    %199 = vector.extract_strided_slice %11 {offsets = [0, 5, 0], sizes = [8, 1, 32], strides = [1, 1, 1]} : vector<8x8x32xf32> to vector<8x1x32xf32>
    %200 = vector.shape_cast %199 : vector<8x1x32xf32> to vector<8x32xf32>
    %cst_46 = arith.constant dense<0.000000e+00> : vector<8x32xf32>
    %201 = tpu.matmul %198, %49, %cst_46 {dimension_numbers = #tpu.dot_dimension_numbers<[1], [0], [0], [1], [0, 0, 1, 1], [], []>} : vector<8x32xf32>, vector<32x32xf32>, vector<8x32xf32> -> vector<8x32xf32>
    %202 = arith.addf %200, %201 : vector<8x32xf32>
    %203 = math.tanh %202 : vector<8x32xf32>
    %204 = vector.broadcast %50 : vector<1x32xf32> to vector<8x32xf32>
    %205 = arith.mulf %203, %204 : vector<8x32xf32>
    %cst_47 = arith.constant dense<0.000000e+00> : vector<8xf32>
    %206 = vector.multi_reduction <add>, %205, %cst_47 [1] : vector<8x32xf32> to vector<8xf32>
    %207 = vector.shape_cast %206 : vector<8xf32> to vector<8x1xf32>
    %208 = vector.broadcast %51 : vector<1x1xf32> to vector<8x1xf32>
    %209 = arith.addf %207, %208 : vector<8x1xf32>
    %210 = arith.negf %209 : vector<8x1xf32>
    %211 = math.exp %210 : vector<8x1xf32>
    %cst_48 = arith.constant 1.000000e+00 : f32
    %212 = vector.broadcast %cst_48 : f32 to vector<8x1xf32>
    %213 = arith.addf %212, %211 : vector<8x1xf32>
    %214 = arith.divf %212, %213 : vector<8x1xf32>
    %215 = vector.extract_strided_slice %44 {offsets = [0, 5, 0, 0], sizes = [8, 1, 16, 32], strides = [1, 1, 1, 1]} : vector<8x8x16x32xf32> to vector<8x1x16x32xf32>
    %216 = vector.shape_cast %215 : vector<8x1x16x32xf32> to vector<8x16x32xf32>
    %217 = arith.mulf %192, %216 : vector<8x16x32xf32>
    %218 = vector.extract_strided_slice %48 {offsets = [0, 5, 0, 0], sizes = [8, 1, 16, 32], strides = [1, 1, 1, 1]} : vector<8x8x16x32xf32> to vector<8x1x16x32xf32>
    %219 = vector.shape_cast %218 : vector<8x1x16x32xf32> to vector<8x16x32xf32>
    %220 = arith.addf %217, %219 : vector<8x16x32xf32>
    %221 = vector.extract_strided_slice %22 {offsets = [0, 6, 0], sizes = [8, 1, 16], strides = [1, 1, 1]} : vector<8x8x16xf32> to vector<8x1x16xf32>
    %222 = vector.shape_cast %221 : vector<8x1x16xf32> to vector<8x16xf32>
    %223 = vector.shape_cast %222 : vector<8x16xf32> to vector<8x16x1xf32>
    %224 = vector.broadcast %223 : vector<8x16x1xf32> to vector<8x16x32xf32>
    %225 = arith.mulf %224, %220 : vector<8x16x32xf32>
    %cst_49 = arith.constant dense<0.000000e+00> : vector<8x32xf32>
    %226 = vector.multi_reduction <add>, %225, %cst_49 [1] : vector<8x16x32xf32> to vector<8x32xf32>
    %227 = vector.extract_strided_slice %11 {offsets = [0, 6, 0], sizes = [8, 1, 32], strides = [1, 1, 1]} : vector<8x8x32xf32> to vector<8x1x32xf32>
    %228 = vector.shape_cast %227 : vector<8x1x32xf32> to vector<8x32xf32>
    %cst_50 = arith.constant dense<0.000000e+00> : vector<8x32xf32>
    %229 = tpu.matmul %226, %49, %cst_50 {dimension_numbers = #tpu.dot_dimension_numbers<[1], [0], [0], [1], [0, 0, 1, 1], [], []>} : vector<8x32xf32>, vector<32x32xf32>, vector<8x32xf32> -> vector<8x32xf32>
    %230 = arith.addf %228, %229 : vector<8x32xf32>
    %231 = math.tanh %230 : vector<8x32xf32>
    %232 = vector.broadcast %50 : vector<1x32xf32> to vector<8x32xf32>
    %233 = arith.mulf %231, %232 : vector<8x32xf32>
    %cst_51 = arith.constant dense<0.000000e+00> : vector<8xf32>
    %234 = vector.multi_reduction <add>, %233, %cst_51 [1] : vector<8x32xf32> to vector<8xf32>
    %235 = vector.shape_cast %234 : vector<8xf32> to vector<8x1xf32>
    %236 = vector.broadcast %51 : vector<1x1xf32> to vector<8x1xf32>
    %237 = arith.addf %235, %236 : vector<8x1xf32>
    %238 = arith.negf %237 : vector<8x1xf32>
    %239 = math.exp %238 : vector<8x1xf32>
    %cst_52 = arith.constant 1.000000e+00 : f32
    %240 = vector.broadcast %cst_52 : f32 to vector<8x1xf32>
    %241 = arith.addf %240, %239 : vector<8x1xf32>
    %242 = arith.divf %240, %241 : vector<8x1xf32>
    %243 = vector.extract_strided_slice %44 {offsets = [0, 6, 0, 0], sizes = [8, 1, 16, 32], strides = [1, 1, 1, 1]} : vector<8x8x16x32xf32> to vector<8x1x16x32xf32>
    %244 = vector.shape_cast %243 : vector<8x1x16x32xf32> to vector<8x16x32xf32>
    %245 = arith.mulf %220, %244 : vector<8x16x32xf32>
    %246 = vector.extract_strided_slice %48 {offsets = [0, 6, 0, 0], sizes = [8, 1, 16, 32], strides = [1, 1, 1, 1]} : vector<8x8x16x32xf32> to vector<8x1x16x32xf32>
    %247 = vector.shape_cast %246 : vector<8x1x16x32xf32> to vector<8x16x32xf32>
    %248 = arith.addf %245, %247 : vector<8x16x32xf32>
    %249 = vector.extract_strided_slice %22 {offsets = [0, 7, 0], sizes = [8, 1, 16], strides = [1, 1, 1]} : vector<8x8x16xf32> to vector<8x1x16xf32>
    %250 = vector.shape_cast %249 : vector<8x1x16xf32> to vector<8x16xf32>
    %251 = vector.shape_cast %250 : vector<8x16xf32> to vector<8x16x1xf32>
    %252 = vector.broadcast %251 : vector<8x16x1xf32> to vector<8x16x32xf32>
    %253 = arith.mulf %252, %248 : vector<8x16x32xf32>
    %cst_53 = arith.constant dense<0.000000e+00> : vector<8x32xf32>
    %254 = vector.multi_reduction <add>, %253, %cst_53 [1] : vector<8x16x32xf32> to vector<8x32xf32>
    %255 = vector.extract_strided_slice %11 {offsets = [0, 7, 0], sizes = [8, 1, 32], strides = [1, 1, 1]} : vector<8x8x32xf32> to vector<8x1x32xf32>
    %256 = vector.shape_cast %255 : vector<8x1x32xf32> to vector<8x32xf32>
    %cst_54 = arith.constant dense<0.000000e+00> : vector<8x32xf32>
    %257 = tpu.matmul %254, %49, %cst_54 {dimension_numbers = #tpu.dot_dimension_numbers<[1], [0], [0], [1], [0, 0, 1, 1], [], []>} : vector<8x32xf32>, vector<32x32xf32>, vector<8x32xf32> -> vector<8x32xf32>
    %258 = arith.addf %256, %257 : vector<8x32xf32>
    %259 = math.tanh %258 : vector<8x32xf32>
    %260 = vector.broadcast %50 : vector<1x32xf32> to vector<8x32xf32>
    %261 = arith.mulf %259, %260 : vector<8x32xf32>
    %cst_55 = arith.constant dense<0.000000e+00> : vector<8xf32>
    %262 = vector.multi_reduction <add>, %261, %cst_55 [1] : vector<8x32xf32> to vector<8xf32>
    %263 = vector.shape_cast %262 : vector<8xf32> to vector<8x1xf32>
    %264 = vector.broadcast %51 : vector<1x1xf32> to vector<8x1xf32>
    %265 = arith.addf %263, %264 : vector<8x1xf32>
    %266 = arith.negf %265 : vector<8x1xf32>
    %267 = math.exp %266 : vector<8x1xf32>
    %cst_56 = arith.constant 1.000000e+00 : f32
    %268 = vector.broadcast %cst_56 : f32 to vector<8x1xf32>
    %269 = arith.addf %268, %267 : vector<8x1xf32>
    %270 = arith.divf %268, %269 : vector<8x1xf32>
    %271 = tpu.concatenate %74, %102, %130, %158, %186, %214, %242, %270 in 1 : vector<8x1xf32>, vector<8x1xf32>, vector<8x1xf32>, vector<8x1xf32>, vector<8x1xf32>, vector<8x1xf32>, vector<8x1xf32>, vector<8x1xf32> -> vector<8x8xf32>
    %cst_57 = arith.constant 0.000000e+00 : f32
    %272 = vector.broadcast %cst_57 : f32 to vector<8x120xf32>
    %273 = tpu.concatenate %271, %272 in 1 : vector<8x8xf32>, vector<8x120xf32> -> vector<8x128xf32>
    %c0_58 = arith.constant 0 : index
    %c0_59 = arith.constant 0 : index
    %274 = vector.load %arg10[%c0_58, %c0_59] : memref<8x128xf32, #tpu.memory_space<vmem>>, vector<8x128xf32>
    tpu.vector_store %arg10[%c0_58, %c0_59], %273 {strides = array<i32>} : memref<8x128xf32, #tpu.memory_space<vmem>>, vector<8x128xf32>,
    return
  }
  func.func @transform_0(%arg0: i32) -> (i32, i32, i32) {
    %c0_i32 = arith.constant 0 : i32
    %c0_i32_0 = arith.constant 0 : i32
    %c0_i32_1 = arith.constant 0 : i32
    return %arg0, %c0_i32, %c0_i32_0 : i32, i32, i32
  }
  func.func @transform_1(%arg0: i32) -> (i32, i32, i32) {
    %c0_i32 = arith.constant 0 : i32
    %c0_i32_0 = arith.constant 0 : i32
    %c0_i32_1 = arith.constant 0 : i32
    return %arg0, %c0_i32, %c0_i32_0 : i32, i32, i32
  }
  func.func @transform_2(%arg0: i32) -> (i32, i32) {
    %c0_i32 = arith.constant 0 : i32
    %c0_i32_0 = arith.constant 0 : i32
    %c0_i32_1 = arith.constant 0 : i32
    return %c0_i32, %c0_i32_0 : i32, i32
  }
  func.func @transform_3(%arg0: i32) -> (i32, i32) {
    %c0_i32 = arith.constant 0 : i32
    %c0_i32_0 = arith.constant 0 : i32
    %c0_i32_1 = arith.constant 0 : i32
    return %c0_i32, %c0_i32_0 : i32, i32
  }
  func.func @transform_4(%arg0: i32) -> (i32, i32) {
    %c0_i32 = arith.constant 0 : i32
    %c0_i32_0 = arith.constant 0 : i32
    %c0_i32_1 = arith.constant 0 : i32
    return %c0_i32, %c0_i32_0 : i32, i32
  }
  func.func @transform_5(%arg0: i32) -> (i32, i32) {
    %c0_i32 = arith.constant 0 : i32
    %c0_i32_0 = arith.constant 0 : i32
    %c0_i32_1 = arith.constant 0 : i32
    return %c0_i32, %c0_i32_0 : i32, i32
  }
  func.func @transform_6(%arg0: i32) -> (i32, i32) {
    %c0_i32 = arith.constant 0 : i32
    %c0_i32_0 = arith.constant 0 : i32
    %c0_i32_1 = arith.constant 0 : i32
    return %c0_i32, %c0_i32_0 : i32, i32
  }
  func.func @transform_7(%arg0: i32) -> (i32, i32) {
    %c0_i32 = arith.constant 0 : i32
    %c0_i32_0 = arith.constant 0 : i32
    %c0_i32_1 = arith.constant 0 : i32
    return %c0_i32, %c0_i32_0 : i32, i32
  }
  func.func @transform_8(%arg0: i32) -> (i32, i32) {
    %c0_i32 = arith.constant 0 : i32
    %c0_i32_0 = arith.constant 0 : i32
    %c0_i32_1 = arith.constant 0 : i32
    return %c0_i32, %c0_i32_0 : i32, i32
  }
  func.func @transform_9(%arg0: i32) -> (i32, i32) {
    %c0_i32 = arith.constant 0 : i32
    %c0_i32_0 = arith.constant 0 : i32
    return %arg0, %c0_i32 : i32, i32
  }
}

</mosaic_0001>

<bundles_post_ra>
// kernel: tpu_custom_call.1
= control target key start
LH: loop header
LB: loop body
LE: loop exit
PB: predicated region body
PF: predicated region fallthrough
CT: control target
= control target key end

     0   :  { %s10355_s0 = inlined_call_operand.hbm [shape: f32[8,8,32], index: 0, kind: input, shape index: {}]   ;;  %s10356_s1 = inlined_call_operand.hbm [shape: f32[8,8,32], index: 1, kind: input, shape index: {}]   ;;  %s10357_s2 = inlined_call_operand.hbm [shape: f32[32,48], index: 2, kind: input, shape index: {}]   ;;  %s10358_s3 = inlined_call_operand.vmem [shape: f32[1,32], index: 3, kind: input, shape index: {}]   ;;  %s10359_s4 = inlined_call_operand.hbm [shape: f32[32,32], index: 4, kind: input, shape index: {}]   ;;  %s10360_s5 = inlined_call_operand.vmem [shape: f32[1,32], index: 5, kind: input, shape index: {}]   ;;  %s10361_s6 = inlined_call_operand.<no memory space> [shape: f32[1,1], index: 6, kind: input, shape index: {}]   ;;  %s10362_s7 = inlined_call_operand.hbm [shape: f32[32,64], index: 7, kind: input, shape index: {}]   ;;  %s10363_s8 = inlined_call_operand.vmem [shape: f32[1,64], index: 8, kind: input, shape index: {}]   ;;  %s10364_s9 = inlined_call_operand.hbm [shape: f32[8,128], index: 9, kind: output, shape index: {}]  }
   0x1   :  { %v14_v0 = vstv %s10361_s6 }
   0x2   :  { %15 = vst [vmem:[#allocation2] sm:$0x1] %v14_v0 }
   0x3   :  { %16 = vsyncpa [#allocation4], 0 }
   0x4   :  { %17 = vsyncpa [#allocation7], 0 }
   0x5   :  { %18 = vsyncpa [#allocation10], 0 }
   0x6   :  { %19 = vsyncpa [#allocation5], 0  ;;  %s6683_s11 = smov [#allocation6]   ;;  %s6684_s13 = smov [#allocation9]  }
   0x7   :  { %s37_s12 = sshll.u32 %s6683_s11, 4  ;;  %s63_s14 = sshll.u32 %s6684_s13, 4  ;;  %s38_s12 = int_to_ptr.vmem [resolvable:$true] %s37_s12  ;;  %s6758_s14 = int_to_ptr.vmem [resolvable:$true] %s63_s14 }
   0x8   :  { %s6543_s17 = scalar_lea.hbm %s10356_s1, 1024 }
   0x9   :  { %p6544_p0 = scmp.ne.s32.totalorder %s10356_s1, %s6543_s17  ;;  %p6547_p1 = scmp.lt.u32.totalorder %s6543_s17, %s10356_s1 }
   0xb   :  { %p6549_p2 = pnand %p6547_p1, %p6544_p0 }
   0xd   :  { %6552 = shalt.err (!%p6549_p2)
}
   0xe   :  { %s6553_s21 = scalar_lea.vmem %s38_s12, 1024  ;;  %p6558_p4 = scmp.lt.s32.totalorder %s38_s12, %s38_s12 }
   0xf   :  { %p6554_p3 = scmp.ne.s32.totalorder %s38_s12, %s6553_s21  ;;  %p6559_p5 = scmp.lt.s32.totalorder %s6553_s21, %s6553_s21 }
  0x11   :  { %p6560_p6 = por %p6559_p5, %p6558_p4 }
  0x13   :  { %p6561_p7 = pnand %p6560_p6, %p6554_p3 }
  0x15   :  { %6564 = shalt.err (!%p6561_p7)
}
  0x16   :  { %s6685_s22 = smov 128   ;;  %s6686_s23 = smov 8  }
  0x17   :  { %43 = dma.hbm_to_vmem [thread:$0]  %s10356_s1, 1024, %s38_s12, [#allocation7], %s6685_s22, %s6685_s22, %s6686_s23  }
  0x18   :  { %s6565_s28 = scalar_lea.hbm %s10359_s4, 512 }
  0x19   :  { %p6566_p8 = scmp.ne.s32.totalorder %s10359_s4, %s6565_s28  ;;  %p6569_p9 = scmp.lt.u32.totalorder %s6565_s28, %s10359_s4 }
  0x1b   :  { %p6571_p10 = pnand %p6569_p9, %p6566_p8 }
  0x1d   :  { %6574 = shalt.err (!%p6571_p10)
}
  0x1e   :  { %s6575_s13 = scalar_lea.vmem %s6758_s14, 512  ;;  %p6580_p12 = scmp.lt.s32.totalorder %s6758_s14, %s6758_s14 }
  0x1f   :  { %p6576_p11 = scmp.ne.s32.totalorder %s6758_s14, %s6575_s13  ;;  %p6581_p13 = scmp.lt.s32.totalorder %s6575_s13, %s6575_s13 }
  0x21   :  { %p6582_p0 = por %p6581_p13, %p6580_p12 }
  0x23   :  { %p6583_p1 = pnand %p6582_p0, %p6576_p11 }
  0x25   :  { %6586 = shalt.err (!%p6583_p1)
}
  0x26   :  { %69 = dma.hbm_to_vmem [thread:$0]  %s10359_s4, 512, %s6758_s14, [#allocation10], %s6685_s22, %s6685_s22, %s6686_s23  }
  0x27   :  { %s6687_s15 = smov [#allocation3]   ;;  %s6688_s17 = smov [#allocation8]  }
  0x28   :  { %s25_s16 = sshll.u32 %s6687_s15, 4  ;;  %s49_s18 = sshll.u32 %s6688_s17, 4  ;;  %s26_s16 = int_to_ptr.vmem [resolvable:$true] %s25_s16  ;;  %s6795_s18 = int_to_ptr.vmem [resolvable:$true] %s49_s18 }
  0x29   :  { %s6587_s20 = scalar_lea.hbm %s10355_s0, 1024 }
  0x2a   :  { %p6588_p2 = scmp.ne.s32.totalorder %s10355_s0, %s6587_s20  ;;  %p6591_p3 = scmp.lt.u32.totalorder %s6587_s20, %s10355_s0 }
  0x2c   :  { %p6593_p4 = pnand %p6591_p3, %p6588_p2 }
  0x2e   :  { %6596 = shalt.err (!%p6593_p4)
}
  0x2f   :  { %s6597_s4 = scalar_lea.vmem %s26_s16, 1024  ;;  %p6602_p6 = scmp.lt.s32.totalorder %s26_s16, %s26_s16 }
  0x30   :  { %p6598_p5 = scmp.ne.s32.totalorder %s26_s16, %s6597_s4  ;;  %p6603_p7 = scmp.lt.s32.totalorder %s6597_s4, %s6597_s4 }
  0x32   :  { %p6604_p8 = por %p6603_p7, %p6602_p6 }
  0x34   :  { %p6605_p9 = pnand %p6604_p8, %p6598_p5 }
  0x36   :  { %6608 = shalt.err (!%p6605_p9)
}
  0x37   :  { %31 = dma.hbm_to_vmem [thread:$0]  %s10355_s0, 1024, %s26_s16, [#allocation4], %s6685_s22, %s6685_s22, %s6686_s23  }
  0x38   :  { %s6609_s30 = scalar_lea.hbm %s10357_s2, 512 }
  0x39   :  { %p6610_p10 = scmp.ne.s32.totalorder %s10357_s2, %s6609_s30  ;;  %p6613_p11 = scmp.lt.u32.totalorder %s6609_s30, %s10357_s2 }
  0x3b   :  { %p6615_p12 = pnand %p6613_p11, %p6610_p10 }
  0x3d   :  { %6618 = shalt.err (!%p6615_p12)
}
  0x3e   :  { %s6619_s12 = scalar_lea.vmem %s6795_s18, 512  ;;  %p6624_p0 = scmp.lt.s32.totalorder %s6795_s18, %s6795_s18 }
  0x3f   :  { %p6620_p13 = scmp.ne.s32.totalorder %s6795_s18, %s6619_s12  ;;  %p6625_p1 = scmp.lt.s32.totalorder %s6619_s12, %s6619_s12 }
  0x41   :  { %p6626_p2 = por %p6625_p1, %p6624_p0 }
  0x43   :  { %p6627_p3 = pnand %p6626_p2, %p6620_p13 }
  0x45   :  { %6630 = shalt.err (!%p6627_p3)
}
  0x46   :  { %55 = dma.hbm_to_vmem [thread:$0]  %s10357_s2, 512, %s6795_s18, [#allocation7], %s6685_s22, %s6685_s22, %s6686_s23  }
  0x47   :  { %s6689_s16 = smov [#allocation11]   ;;  %s6631_s20 = scalar_lea.hbm %s10362_s7, 512 }
  0x48   :  { %s79_s17 = sshll.u32 %s6689_s16, 4  ;;  %p6632_p4 = scmp.ne.s32.totalorder %s10362_s7, %s6631_s20  ;;  %s80_s17 = int_to_ptr.vmem [resolvable:$true] %s79_s17 }
  0x49   :  { %p6635_p5 = scmp.lt.u32.totalorder %s6631_s20, %s10362_s7 }
  0x4b   :  { %p6637_p6 = pnand %p6635_p5, %p6632_p4 }
  0x4d   :  { %6640 = shalt.err (!%p6637_p6)
}
  0x4e   :  { %s6641_s4 = scalar_lea.vmem %s80_s17, 512  ;;  %p6646_p8 = scmp.lt.s32.totalorder %s80_s17, %s80_s17 }
  0x4f   :  { %p6642_p7 = scmp.ne.s32.totalorder %s80_s17, %s6641_s4  ;;  %p6647_p9 = scmp.lt.s32.totalorder %s6641_s4, %s6641_s4 }
  0x51   :  { %p6648_p10 = por %p6647_p9, %p6646_p8 }
  0x53   :  { %p6649_p11 = pnand %p6648_p10, %p6642_p7 }
  0x55   :  { %6652 = shalt.err (!%p6649_p11)
}
  0x56   :  { %85 = dma.hbm_to_vmem [thread:$0]  %s10362_s7, 512, %s80_s17, [#allocation10], %s6685_s22, %s6685_s22, %s6686_s23  }
  0x57   :  { %6675 = dma.done.wait [#allocation4], 1024  }
  0x58   :  { %6676 = vsyncadd [#allocation4], 4294966272 }
  0x59   :  { %6677 = dma.done.wait [#allocation7], 1536  }
  0x5a   :  { %6678 = vsyncadd [#allocation7], 4294965760 }
  0x5b   :  { %6679 = dma.done.wait [#allocation10], 1024  }
  0x5c   :  { %6680 = vsyncadd [#allocation10], 4294966272  ;;  %vm123_vm0 = vcmask 261120   ;;  %v119_v1 = vld [vmem:[#allocation8] sm:$0xff]  ;;  %v120_v2 = vld [vmem:[#allocation8 + $0x8] sm:$0xff]  ;;  %s6690_s27 = smov 16  }
  0x5d   :  { %v121_v3 = vld [vmem:[#allocation8 + $0x10] sm:$0xff]  ;;  %v6188_v4 = vpack.c.bf16 %v120_v2, %v119_v1  ;;  %v122_v5 = vld [vmem:[#allocation8 + $0x18] sm:$0xff]  ;;  %v103_v6 = vld [vmem:[#allocation3] sm:$0xff]  ;;  %vm270_vm1 = vcmask 130048   ;;  %vm6693_vm2 = vmmov 0   ;;  %s6695_s28 = smov 96  }
  0x5e   :  { %v6192_v7 = vpack.c.bf16 %v122_v5, %v121_v3  ;;  %6068 = vmatprep.mubr.msk.f32.mxu0 %vm123_vm0, %v103_v6  ;;  %v5953_v8 = vld [vmem:[%s10358_s3] ss:$0 sm:$0xff]  ;;  %v104_v10 = vld [vmem:[#allocation3 + $0x8] sm:$0xff]  ;;  %v105_v11 = vld [vmem:[#allocation3 + $0x10] sm:$0xff]  ;;  %vm2937_vm3 = vcmask 1041409   ;;  %vm2939_vm4 = vcmask 1042434  }
  0x5f   :  { %6189 = vmatprep.subr.bf16.mxu0 %v6188_v4  ;;  %v5972_v9 = vld [vmem:[%s10360_s5] ss:$0 sm:$0xff]  ;;  %259 = vrot.lane.b32.xlu0 %v5953_v8, %s6690_s27  ;;  %v107_v13 = vld [vmem:[#allocation3 + $0x20] sm:$0xff]  ;;  %v108_v14 = vld [vmem:[#allocation3 + $0x28] sm:$0xff]  ;;  %vm2941_vm5 = vcmask 1043459   ;;  %vm2943_vm6 = vcmask 1044484  }
  0x60   :  { %6191 = vmatpush3.bf16.msra.mxu0 %v6188_v4  ;;  %3076 = vrot.lane.b32.xlu1 %v5972_v9, %s6690_s27  ;;  %v106_v12 = vld [vmem:[#allocation3 + $0x18] sm:$0xff]  ;;  %v109_v15 = vld [vmem:[#allocation3 + $0x30] sm:$0xff]  ;;  %v359_v33 = vld [vmem:[#allocation11] sm:$0xff]  ;;  %vm2945_vm7 = vcmask 1045509   ;;  %vm2947_vm8 = vcmask 1046534   ;;  %vm2949_vm9 = vcmask 1047559  }
  0x61   :  { %6193 = vmatprep.subr.bf16.mxu0 %v6192_v7  ;;  %v110_v16 = vld [vmem:[#allocation3 + $0x38] sm:$0xff]  ;;  %v360_v34 = vld [vmem:[#allocation11 + $0x8] sm:$0xff]  ;;  %v361_v36 = vld [vmem:[#allocation11 + $0x10] sm:$0xff]  ;;  %vm3482_vm10 = vcmask 261121   ;;  %vm3486_vm11 = vcmask 253952   ;;  %vm3862_vm12 = vcmask 254976  }
  0x62   :  { %v6196_v35 = vpack.c.bf16 %v360_v34, %v359_v33  ;;  %v362_v37 = vld [vmem:[#allocation11 + $0x18] sm:$0xff]  ;;  %v111_v39 = vld [vmem:[#allocation6] sm:$0xff]  ;;  %v112_v40 = vld [vmem:[#allocation6 + $0x8] sm:$0xff]  ;;  %vm3858_vm13 = vcmask 261122   ;;  %vm4238_vm14 = vcmask 256000   ;;  %vm4234_vm15 = vcmask 261123  }
  0x63   :  { %v6200_v38 = vpack.c.bf16 %v362_v37, %v361_v36  ;;  %v113_v41 = vld [vmem:[#allocation6 + $0x10] sm:$0xff]  ;;  %6088 = vmatprep.mubr.msk.f32.mxu1 %vm123_vm0, %v111_v39  ;;  %v114_v42 = vld [vmem:[#allocation6 + $0x18] sm:$0xff]  ;;  %v555_v36 = vlaneseq  ;;  %s6697_s10 = smov 1   ;;  %s6698_s11 = smov 2  }
  0x64   :  { %6195 = vmatpush3.bf16.msra.mxu0 %v6192_v7  ;;  %6197 = vmatprep.subr.bf16.mxu1 %v6196_v35  ;;  %s6699_s13 = smov 3   ;;  %s6700_s1 = smov 4  }
  0x65   :  { %6199 = vmatpush3.bf16.msra.mxu1 %v6196_v35  ;;  %v6945_v37 = vshrl.u32 %v555_v36, 7  ;;  %s6701_s12 = smov 5   ;;  %s6702_s0 = smov 6  }
  0x66   :  { %6201 = vmatprep.subr.bf16.mxu1 %v6200_v38  ;;  %s6703_s15 = smov 7   ;;  %s6704_s16 = smov [#allocation12]  }
  0x67   :  { %6069 = vmatmul.mubr.msk.f32.vlgmr.msra.gmra.mrb[0].mxu0 %vm123_vm0, %v104_v10  ;;  %v6948_v39 = vsub.s32 0, %v6945_v37  ;;  %s5934_s17 = sshll.u32 %s6704_s16, 4  ;;  %s5935_s17 = int_to_ptr.vmem [resolvable:$true] %s5934_s17 }
  0x68   :  { %6071 = vmatprep.mubr.msk.f32.mxu0 %vm123_vm0, %v105_v11  ;;  %s6653_s19 = scalar_lea.vmem %s5935_s17, 128  ;;  %p6658_p13 = scmp.lt.s32.totalorder %s5935_s17, %s5935_s17 }
  0x69   :  { %6203 = vmatpush3.bf16.msra.mxu1 %v6200_v38  ;;  %p6654_p12 = scmp.ne.s32.totalorder %s5935_s17, %s6653_s19  ;;  %p6659_p0 = scmp.lt.s32.totalorder %s6653_s19, %s6653_s19 }
  0x6b   :  { %6072 = vmatmul.mubr.msk.f32.gmra.mrb[2].mxu0 %vm123_vm0, %v106_v12  ;;  %p6660_p1 = por %p6659_p0, %p6658_p13 }
  0x6c   :  { %6074 = vmatprep.mubr.msk.f32.mxu0 %vm123_vm0, %v107_v13  ;;  %6089 = vmatmul.mubr.msk.f32.vlgmr.msra.gmra.mrb[0].mxu1 %vm123_vm0, %v112_v40 }
  0x6d   :  { %6091 = vmatprep.mubr.msk.f32.mxu1 %vm123_vm0, %v113_v41  ;;  %p6661_p2 = pnand %p6660_p1, %p6654_p12 }
  0x6f   :  { %6075 = vmatmul.mubr.msk.f32.gmra.mrb[4].mxu0 %vm123_vm0, %v108_v14 }
  0x70   :  { %6077 = vmatprep.mubr.msk.f32.mxu0 %vm123_vm0, %v109_v15  ;;  %6092 = vmatmul.mubr.msk.f32.gmra.mrb[2].mxu1 %vm123_vm0, %v114_v42 }
  0x73   :  { %6078 = vmatmul.mubr.msk.f32.gmra.mrb[6].mxu0 %vm123_vm0, %v110_v16 }
  0xd1   :  { %v6901_v44 = vpop.permute.xlu0 %259 }
  0xd2   :  { %v6899_v43 = vpop.permute.xlu1 %3076  ;;  %10734 = vst [vmem:[#allocation26_spill] sm:$0xff] %v6901_v44 }
  0xd3   :  { %10733 = vst [vmem:[#allocation25_spill] sm:$0xff] %v6899_v43 }
 0x13a   :  { %v6863_v17 = vpop.f32.mrb[0].mxu0 }
 0x13b   :  { %10725 = vst [vmem:[#allocation17_spill] sm:$0xff] %v6863_v17  ;;  %v6865_v18 = vpop.f32.mrb[1].mxu0  ;;  %v274_v19 = vsel %vm270_vm1, %v6863_v17, -inf }
 0x13c   :  { %10726 = vst [vmem:[#allocation18_spill] sm:$0xff] %v6865_v18  ;;  %275 = vmax.xlane.f32.xlu1 %v274_v19  ;;  %v271_v20 = vsel %vm270_vm1, %v6865_v18, -inf }
 0x13d   :  { %272 = vmax.xlane.f32.xlu0 %v271_v20 }
 0x13e   :  { %v6871_v21 = vpop.f32.mrb[2].mxu0 }
 0x13f   :  { %10727 = vst [vmem:[#allocation19_spill] sm:$0xff] %v6871_v21  ;;  %v280_v22 = vsel %vm270_vm1, %v6871_v21, -inf  ;;  %v6875_v23 = vpop.f32.mrb[3].mxu0  ;;  %v6941_v33 = vpop.f32.mrb[0].mxu1 }
 0x140   :  { %10728 = vst [vmem:[#allocation20_spill] sm:$0xff] %v6875_v23  ;;  %281 = vmax.xlane.f32.xlu1 %v280_v22  ;;  %v277_v24 = vsel %vm270_vm1, %v6875_v23, -inf  ;;  %v6943_v34 = vpop.f32.mrb[1].mxu1 }
 0x142   :  { %v6879_v25 = vpop.f32.mrb[4].mxu0 }
 0x143   :  { %10729 = vst [vmem:[#allocation21_spill] sm:$0xff] %v6879_v25  ;;  %v6881_v26 = vpop.f32.mrb[5].mxu0  ;;  %v286_v27 = vsel %vm270_vm1, %v6879_v25, -inf }
 0x144   :  { %10730 = vst [vmem:[#allocation22_spill] sm:$0xff] %v6881_v26  ;;  %278 = vmax.xlane.f32.xlu1 %v277_v24  ;;  %v283_v30 = vsel %vm270_vm1, %v6881_v26, -inf }
 0x146   :  { %v6885_v28 = vpop.f32.mrb[6].mxu0 }
 0x147   :  { %10731 = vst [vmem:[#allocation23_spill] sm:$0xff] %v6885_v28  ;;  %v6887_v29 = vpop.f32.mrb[7].mxu0  ;;  %v292_v31 = vsel %vm270_vm1, %v6885_v28, -inf }
 0x148   :  { %10732 = vst [vmem:[#allocation24_spill] sm:$0xff] %v6887_v29  ;;  %287 = vmax.xlane.f32.xlu1 %v286_v27  ;;  %v289_v32 = vsel %vm270_vm1, %v6887_v29, -inf  ;;  %v115_v27 = vld [vmem:[#allocation6 + $0x20] sm:$0xff] }
 0x149   :  { %6094 = vmatprep.mubr.msk.f32.mxu1 %vm123_vm0, %v115_v27 }
 0x14c   :  { %284 = vmax.xlane.f32.xlu1 %v283_v30  ;;  %v116_v30 = vld [vmem:[#allocation6 + $0x28] sm:$0xff] }
 0x14d   :  { %6095 = vmatmul.mubr.msk.f32.gmra.mrb[4].mxu1 %vm123_vm0, %v116_v30 }
 0x150   :  { %293 = vmax.xlane.f32.xlu1 %v292_v31  ;;  %v117_v31 = vld [vmem:[#allocation6 + $0x30] sm:$0xff] }
 0x151   :  { %6097 = vmatprep.mubr.msk.f32.mxu1 %vm123_vm0, %v117_v31 }
 0x154   :  { %290 = vmax.xlane.f32.xlu1 %v289_v32  ;;  %v118_v32 = vld [vmem:[#allocation6 + $0x38] sm:$0xff] }
 0x155   :  { %6098 = vmatmul.mubr.msk.f32.gmra.mrb[6].mxu1 %vm123_vm0, %v118_v32 }
 0x1c9   :  { %v276_v45 = vpop.xlane.xlu1 %275 }
 0x1ca   :  { %v296_v46 = vsub.f32 %v6863_v17, %v276_v45  ;;  %v273_v47 = vpop.xlane.xlu0 %272 }
 0x1cb   :  { %v295_v48 = vsub.f32 %v6865_v18, %v273_v47 }
 0x1cc   :  { %v305_v49 = vmul.f32 1.442695, %v296_v46  ;;  %v6952_v46 = vsub.s32 1, %v6945_v37 }
 0x1cd   :  { %v303_v50 = vmul.f32 1.442695, %v295_v48  ;;  %v282_v51 = vpop.xlane.xlu1 %281  ;;  %v6956_v48 = vsub.s32 2, %v6945_v37 }
 0x1ce   :  { %6274 = vpow2.f32 %v305_v49  ;;  %v298_v52 = vsub.f32 %v6871_v21, %v282_v51  ;;  %v6962_v51 = vsub.s32 3, %v6945_v37 }
 0x1cf   :  { %6276 = vpow2.f32 %v303_v50 }
 0x1d0   :  { %v309_v53 = vmul.f32 1.442695, %v298_v52 }
 0x1d1   :  { %v279_v54 = vpop.xlane.xlu1 %278 }
 0x1d2   :  { %v297_v55 = vsub.f32 %v6875_v23, %v279_v54  ;;  %6278 = vpow2.f32 %v309_v53  ;;  %v6966_v54 = vsub.s32 4, %v6945_v37 }
 0x1d4   :  { %v307_v56 = vmul.f32 1.442695, %v297_v55 }
 0x1d5   :  { %v288_v57 = vpop.xlane.xlu1 %287 }
 0x1d6   :  { %6280 = vpow2.f32 %v307_v56  ;;  %v300_v58 = vsub.f32 %v6879_v25, %v288_v57  ;;  %v6970_v56 = vsub.s32 5, %v6945_v37  ;;  %v6972_v57 = vpop.f32.mrb[2].mxu1 }
 0x1d8   :  { %v6275_v59 = vpop.eup %6274  ;;  %v313_v60 = vmul.f32 1.442695, %v300_v58 }
 0x1d9   :  { %v285_v61 = vpop.xlane.xlu1 %284  ;;  %v322_v62 = vsel %vm270_vm1, %v6275_v59, 0.0  ;;  %v6909_v63 = vpop.eup %6276 }
 0x1da   :  { %6282 = vpow2.f32 %v313_v60  ;;  %v299_v0 = vsub.f32 %v6881_v26, %v285_v61  ;;  %323 = vadd.xlane.f32.xlu1 %v322_v62  ;;  %v319_v3 = vsel %vm270_vm1, %v6909_v63, 0.0  ;;  %v6980_v62 = vsub.s32 7, %v6945_v37 }
 0x1dc   :  { %v311_v1 = vmul.f32 1.442695, %v299_v0  ;;  %v6914_v4 = vpop.eup %6278 }
 0x1dd   :  { %v294_v2 = vpop.xlane.xlu1 %293  ;;  %v328_v10 = vsel %vm270_vm1, %v6914_v4, 0.0 }
 0x1de   :  { %6284 = vpow2.f32 %v311_v1  ;;  %v302_v5 = vsub.f32 %v6885_v28, %v294_v2  ;;  %320 = vadd.xlane.f32.xlu1 %v319_v3 }
 0x1e0   :  { %v6917_v6 = vpop.eup %6280  ;;  %v317_v7 = vmul.f32 1.442695, %v302_v5 }
 0x1e1   :  { %v291_v8 = vpop.xlane.xlu1 %290  ;;  %v325_v9 = vsel %vm270_vm1, %v6917_v6, 0.0 }
 0x1e2   :  { %6286 = vpow2.f32 %v317_v7  ;;  %v301_v11 = vsub.f32 %v6887_v29, %v291_v8  ;;  %326 = vadd.xlane.f32.xlu0 %v325_v9  ;;  %329 = vadd.xlane.f32.xlu1 %v328_v10 }
 0x1e4   :  { %v6924_v12 = vpop.eup %6282  ;;  %v315_v13 = vmul.f32 1.442695, %v301_v11  ;;  %v6995_v11 = vpop.f32.mrb[3].mxu1 }
 0x1e5   :  { %v334_v14 = vsel %vm270_vm1, %v6924_v12, 0.0 }
 0x1e6   :  { %6288 = vpow2.f32 %v315_v13  ;;  %335 = vadd.xlane.f32.xlu1 %v334_v14 }
 0x1e8   :  { %v6928_v15 = vpop.eup %6284 }
 0x1e9   :  { %v331_v16 = vsel %vm270_vm1, %v6928_v15, 0.0 }
 0x1ea   :  { %332 = vadd.xlane.f32.xlu0 %v331_v16 }
 0x1ec   :  { %v6287_v19 = vpop.eup %6286 }
 0x1ed   :  { %v340_v20 = vsel %vm270_vm1, %v6287_v19, 0.0 }
 0x1ee   :  { %341 = vadd.xlane.f32.xlu1 %v340_v20 }
 0x1f0   :  { %v6933_v22 = vpop.eup %6288 }
 0x1f1   :  { %v337_v24 = vsel %vm270_vm1, %v6933_v22, 0.0  ;;  %vm4610_vm1 = vcmask 261124  }
 0x1f2   :  { %338 = vadd.xlane.f32.xlu0 %v337_v24 }
 0x267   :  { %v324_v35 = vpop.xlane.xlu1 %323 }
 0x268   :  { %6290 = vrcp.f32 %v324_v35  ;;  %v7006_v35 = vpop.f32.mrb[4].mxu1 }
 0x26b   :  { %v321_v38 = vpop.xlane.xlu1 %320 }
 0x26f   :  { %v330_v42 = vpop.xlane.xlu1 %329  ;;  %v327_v31 = vpop.xlane.xlu0 %326 }
 0x272   :  { %v6291_v40 = vpop.eup %6290 }
 0x273   :  { %v352_v41 = vmul.f32 %v6291_v40, %v6275_v59  ;;  %v6958_v49 = vpop.xlane.xlu1 %335  ;;  %v6976_v59 = vsub.s32 6, %v6945_v37 }
 0x275   :  { %v635_v45 = vrot.slane %v352_v41, %v6948_v39  ;;  %v646_v47 = vrot.slane %v352_v41, %v6952_v46  ;;  %v657_v50 = vrot.slane %v352_v41, %v6956_v48  ;;  %v668_v53 = vrot.slane %v352_v41, %v6962_v51 }
 0x276   :  { %v679_v55 = vrot.slane %v352_v41, %v6966_v54  ;;  %v690_v58 = vrot.slane %v352_v41, %v6970_v56  ;;  %v701_v61 = vrot.slane %v352_v41, %v6976_v59  ;;  %v5494_v3 = vrot.slane %v352_v41, %v6980_v62 }
 0x277   :  { %641 = vbcast.lane.b32.xlu0 %v635_v45, 264  ;;  %637 = vbcast.lane.b32.xlu1 %v635_v45, 256 }
 0x27b   :  { %652 = vbcast.lane.b32.xlu0 %v646_v47, 264  ;;  %648 = vbcast.lane.b32.xlu1 %v646_v47, 256  ;;  %v342_v52 = vpop.xlane.xlu1 %341 }
 0x27c   :  { %6292 = vrcp.f32 %v342_v52  ;;  %v333_v52 = vpop.xlane.xlu0 %332 }
 0x27d   :  { %6294 = vrcp.f32 %v321_v38 }
 0x27e   :  { %6296 = vrcp.f32 %v330_v42 }
 0x27f   :  { %663 = vbcast.lane.b32.xlu0 %v657_v50, 264  ;;  %659 = vbcast.lane.b32.xlu1 %v657_v50, 256  ;;  %6298 = vrcp.f32 %v327_v31 }
 0x280   :  { %6300 = vrcp.f32 %v6958_v49 }
 0x281   :  { %6302 = vrcp.f32 %v333_v52 }
 0x283   :  { %674 = vbcast.lane.b32.xlu0 %v668_v53, 264  ;;  %670 = vbcast.lane.b32.xlu1 %v668_v53, 256 }
 0x286   :  { %v6293_v60 = vpop.eup %6292 }
 0x287   :  { %685 = vbcast.lane.b32.xlu0 %v679_v55, 264  ;;  %681 = vbcast.lane.b32.xlu1 %v679_v55, 256  ;;  %v6295_v0 = vpop.eup %6294  ;;  %v6982_v1 = vmul.f32 %v6293_v60, %v6287_v19 }
 0x288   :  { %v351_v2 = vmul.f32 %v6295_v0, %v6909_v63  ;;  %v6297_v16 = vpop.eup %6296 }
 0x289   :  { %v6988_v5 = vrot.slane %v6982_v1, %v6980_v62  ;;  %v354_v19 = vmul.f32 %v6297_v16, %v6914_v4  ;;  %v6299_v40 = vpop.eup %6298 }
 0x28a   :  { %v558_v7 = vrot.slane %v351_v2, %v6948_v39  ;;  %v569_v8 = vrot.slane %v351_v2, %v6952_v46  ;;  %v580_v9 = vrot.slane %v351_v2, %v6956_v48  ;;  %v591_v63 = vrot.slane %v351_v2, %v6962_v51 }
 0x28b   :  { %696 = vbcast.lane.b32.xlu0 %v690_v58, 264  ;;  %692 = vbcast.lane.b32.xlu1 %v690_v58, 256  ;;  %10735 = vst [vmem:[#allocation27_spill] sm:$0xff] %v6988_v5  ;;  %v602_v10 = vrot.slane %v351_v2, %v6966_v54  ;;  %v613_v13 = vrot.slane %v351_v2, %v6970_v56  ;;  %v7020_v58 = vpop.f32.mrb[5].mxu1 }
 0x28c   :  { %v624_v14 = vrot.slane %v351_v2, %v6976_v59  ;;  %v5483_v20 = vrot.slane %v351_v2, %v6980_v62  ;;  %v789_v24 = vrot.slane %v354_v19, %v6948_v39  ;;  %v800_v27 = vrot.slane %v354_v19, %v6952_v46 }
 0x28d   :  { %v811_v30 = vrot.slane %v354_v19, %v6956_v48  ;;  %v822_v32 = vrot.slane %v354_v19, %v6962_v51  ;;  %v833_v4 = vrot.slane %v354_v19, %v6966_v54  ;;  %v844_v36 = vrot.slane %v354_v19, %v6970_v56 }
 0x28e   :  { %v855_v38 = vrot.slane %v354_v19, %v6976_v59  ;;  %v353_v41 = vmul.f32 %v6299_v40, %v6917_v6  ;;  %v5516_v42 = vrot.slane %v354_v19, %v6980_v62  ;;  %v7017_v6 = vpop.xlane.xlu0 %338 }
 0x28f   :  { %707 = vbcast.lane.b32.xlu0 %v701_v61, 264  ;;  %703 = vbcast.lane.b32.xlu1 %v701_v61, 256 }
 0x290   :  { %v712_v45 = vrot.slane %v353_v41, %v6948_v39  ;;  %v723_v47 = vrot.slane %v353_v41, %v6952_v46  ;;  %v734_v50 = vrot.slane %v353_v41, %v6956_v48  ;;  %v745_v53 = vrot.slane %v353_v41, %v6962_v51 }
 0x291   :  { %v756_v55 = vrot.slane %v353_v41, %v6966_v54  ;;  %v767_v0 = vrot.slane %v353_v41, %v6970_v56  ;;  %v778_v49 = vrot.slane %v353_v41, %v6976_v59 }
 0x293   :  { %5496 = vbcast.lane.b32.xlu0 %v5494_v3, 256  ;;  %5500 = vbcast.lane.b32.xlu1 %v5494_v3, 264 }
 0x297   :  { %564 = vbcast.lane.b32.xlu1 %v558_v7, 264  ;;  %560 = vbcast.lane.b32.xlu0 %v558_v7, 256  ;;  %v6301_v7 = vpop.eup %6300 }
 0x29b   :  { %571 = vbcast.lane.b32.xlu1 %v569_v8, 256  ;;  %575 = vbcast.lane.b32.xlu0 %v569_v8, 264  ;;  %v356_v8 = vmul.f32 %v6301_v7, %v6924_v12 }
 0x29d   :  { %v943_v16 = vrot.slane %v356_v8, %v6948_v39  ;;  %v954_v12 = vrot.slane %v356_v8, %v6952_v46  ;;  %v965_v31 = vrot.slane %v356_v8, %v6956_v48 }
 0x29f   :  { %582 = vbcast.lane.b32.xlu1 %v580_v9, 256  ;;  %586 = vbcast.lane.b32.xlu0 %v580_v9, 264 }
 0x2a3   :  { %593 = vbcast.lane.b32.xlu1 %v591_v63, 256  ;;  %597 = vbcast.lane.b32.xlu0 %v591_v63, 264 }
 0x2a7   :  { %604 = vbcast.lane.b32.xlu1 %v602_v10, 256  ;;  %608 = vbcast.lane.b32.xlu0 %v602_v10, 264  ;;  %v5505_v10 = vrot.slane %v353_v41, %v6980_v62 }
 0x2ab   :  { %615 = vbcast.lane.b32.xlu1 %v613_v13, 256  ;;  %619 = vbcast.lane.b32.xlu0 %v613_v13, 264 }
 0x2af   :  { %626 = vbcast.lane.b32.xlu1 %v624_v14, 256  ;;  %630 = vbcast.lane.b32.xlu0 %v624_v14, 264 }
 0x2b3   :  { %5489 = vbcast.lane.b32.xlu1 %v5483_v20, 264  ;;  %5485 = vbcast.lane.b32.xlu0 %v5483_v20, 256 }
 0x2b7   :  { %795 = vbcast.lane.b32.xlu0 %v789_v24, 264  ;;  %791 = vbcast.lane.b32.xlu1 %v789_v24, 256  ;;  %v7051_v24 = vld [vmem:[%s10363_s8] ss:$0 sm:$0xff] }
 0x2b8   :  { %v461_v7 = vadd.f32 %v7051_v24, %v6943_v34 }
 0x2bb   :  { %806 = vbcast.lane.b32.xlu0 %v800_v27, 264  ;;  %802 = vbcast.lane.b32.xlu1 %v800_v27, 256 }
 0x2bf   :  { %817 = vbcast.lane.b32.xlu0 %v811_v30, 264  ;;  %813 = vbcast.lane.b32.xlu1 %v811_v30, 256 }
 0x2c3   :  { %828 = vbcast.lane.b32.xlu0 %v822_v32, 264  ;;  %824 = vbcast.lane.b32.xlu1 %v822_v32, 256  ;;  %v466_v32 = vadd.f32 %v6941_v33, %v7051_v24 }
 0x2c5   :  { %v5964_v40 = vmul.f32 -1.442695, %v466_v32 }
 0x2c7   :  { %839 = vbcast.lane.b32.xlu0 %v833_v4, 264  ;;  %835 = vbcast.lane.b32.xlu1 %v833_v4, 256  ;;  %6304 = vpow2.f32 %v5964_v40  ;;  %v5963_v40 = vmul.f32 -1.442695, %v461_v7 }
 0x2c9   :  { %6306 = vpow2.f32 %v5963_v40 }
 0x2cb   :  { %850 = vbcast.lane.b32.xlu0 %v844_v36, 264  ;;  %846 = vbcast.lane.b32.xlu1 %v844_v36, 256 }
 0x2cf   :  { %861 = vbcast.lane.b32.xlu0 %v855_v38, 264  ;;  %857 = vbcast.lane.b32.xlu1 %v855_v38, 256  ;;  %v976_v38 = vrot.slane %v356_v8, %v6962_v51 }
 0x2d3   :  { %5518 = vbcast.lane.b32.xlu0 %v5516_v42, 256  ;;  %5522 = vbcast.lane.b32.xlu1 %v5516_v42, 264 }
 0x2d7   :  { %718 = vbcast.lane.b32.xlu0 %v712_v45, 264  ;;  %714 = vbcast.lane.b32.xlu1 %v712_v45, 256  ;;  %v987_v45 = vrot.slane %v356_v8, %v6966_v54 }
 0x2db   :  { %729 = vbcast.lane.b32.xlu0 %v723_v47, 264  ;;  %725 = vbcast.lane.b32.xlu1 %v723_v47, 256  ;;  %v7070_v47 = vpop.f32.mrb[6].mxu1 }
 0x2dc   :  { %v7124_v26 = vpop.f32.mrb[7].mxu1 }
 0x2dd   :  { %10762 = vst [vmem:[#allocation54_spill] sm:$0xff] %v7124_v26 }
 0x2df   :  { %740 = vbcast.lane.b32.xlu0 %v734_v50, 264  ;;  %736 = vbcast.lane.b32.xlu1 %v734_v50, 256 }
 0x2e3   :  { %751 = vbcast.lane.b32.xlu0 %v745_v53, 264  ;;  %747 = vbcast.lane.b32.xlu1 %v745_v53, 256  ;;  %v998_v53 = vrot.slane %v356_v8, %v6970_v56 }
 0x2e7   :  { %762 = vbcast.lane.b32.xlu0 %v756_v55, 264  ;;  %758 = vbcast.lane.b32.xlu1 %v756_v55, 256 }
 0x2e9   :  { %v7022_v60 = vpop.permute.xlu0 %641  ;;  %v7024_v61 = vpop.permute.xlu1 %637 }
 0x2eb   :  { %773 = vbcast.lane.b32.xlu0 %v767_v0, 264  ;;  %769 = vbcast.lane.b32.xlu1 %v767_v0, 256  ;;  %v1009_v0 = vrot.slane %v356_v8, %v6976_v59 }
 0x2ed   :  { %v7027_v2 = vpop.permute.xlu0 %652  ;;  %v7029_v3 = vpop.permute.xlu1 %648 }
 0x2ee   :  { %10736 = vst [vmem:[#allocation28_spill] sm:$0xff] %v7027_v2  ;;  %10737 = vst [vmem:[#allocation29_spill] sm:$0xff] %v7029_v3 }
 0x2ef   :  { %784 = vbcast.lane.b32.xlu0 %v778_v49, 264  ;;  %780 = vbcast.lane.b32.xlu1 %v778_v49, 256  ;;  %v6303_v49 = vpop.eup %6302 }
 0x2f1   :  { %v7033_v9 = vpop.permute.xlu0 %663  ;;  %v7035_v63 = vpop.permute.xlu1 %659 }
 0x2f2   :  { %10738 = vst [vmem:[#allocation30_spill] sm:$0xff] %v7033_v9  ;;  %10739 = vst [vmem:[#allocation31_spill] sm:$0xff] %v7035_v63 }
 0x2f3   :  { %5507 = vbcast.lane.b32.xlu0 %v5505_v10, 256  ;;  %5511 = vbcast.lane.b32.xlu1 %v5505_v10, 264  ;;  %v7085_v10 = vmul.f32 %v6303_v49, %v6928_v15  ;;  %v6691_v49 = vmov 1966171168  }
 0x2f5   :  { %v7038_v13 = vpop.permute.xlu0 %674  ;;  %v7040_v14 = vpop.permute.xlu1 %670  ;;  %v866_v34 = vrot.slane %v7085_v10, %v6948_v39  ;;  %v910_v17 = vrot.slane %v7085_v10, %v6966_v54  ;;  %v921_v5 = vrot.slane %v7085_v10, %v6970_v56 }
 0x2f6   :  { %10740 = vst [vmem:[#allocation32_spill] sm:$0xff] %v7038_v13  ;;  %10741 = vst [vmem:[#allocation33_spill] sm:$0xff] %v7040_v14 }
 0x2f7   :  { %949 = vbcast.lane.b32.xlu0 %v943_v16, 264  ;;  %945 = vbcast.lane.b32.xlu1 %v943_v16, 256 }
 0x2f9   :  { %v7043_v19 = vpop.permute.xlu0 %685  ;;  %v7045_v20 = vpop.permute.xlu1 %681 }
 0x2fa   :  { %10742 = vst [vmem:[#allocation34_spill] sm:$0xff] %v7043_v19  ;;  %10743 = vst [vmem:[#allocation35_spill] sm:$0xff] %v7045_v20 }
 0x2fb   :  { %960 = vbcast.lane.b32.xlu0 %v954_v12, 264  ;;  %956 = vbcast.lane.b32.xlu1 %v954_v12, 256 }
 0x2fd   :  { %v7053_v27 = vpop.permute.xlu0 %696  ;;  %v7055_v30 = vpop.permute.xlu1 %692 }
 0x2fe   :  { %10744 = vst [vmem:[#allocation36_spill] sm:$0xff] %v7053_v27  ;;  %10745 = vst [vmem:[#allocation37_spill] sm:$0xff] %v7055_v30 }
 0x2ff   :  { %971 = vbcast.lane.b32.xlu0 %v965_v31, 264  ;;  %967 = vbcast.lane.b32.xlu1 %v965_v31, 256  ;;  %v5538_v31 = vrot.slane %v356_v8, %v6980_v62  ;;  %v877_v8 = vrot.slane %v7085_v10, %v6952_v46 }
 0x301   :  { %v7060_v4 = vpop.permute.xlu0 %707  ;;  %v7062_v36 = vpop.permute.xlu1 %703 }
 0x302   :  { %10746 = vst [vmem:[#allocation38_spill] sm:$0xff] %v7060_v4  ;;  %10747 = vst [vmem:[#allocation39_spill] sm:$0xff] %v7062_v36 }
 0x303   :  { %982 = vbcast.lane.b32.xlu0 %v976_v38, 264  ;;  %978 = vbcast.lane.b32.xlu1 %v976_v38, 256  ;;  %v6305_v38 = vpop.eup %6304 }
 0x304   :  { %v6307_v29 = vpop.eup %6306 }
 0x305   :  { %v7065_v41 = vpop.permute.xlu0 %5496  ;;  %v7067_v42 = vpop.permute.xlu1 %5500  ;;  %v523_v18 = vadd.f32 1.0, %v6307_v29 }
 0x306   :  { %10748 = vst [vmem:[#allocation40_spill] sm:$0xff] %v7065_v41  ;;  %10749 = vst [vmem:[#allocation41_spill] sm:$0xff] %v7067_v42 }
 0x307   :  { %993 = vbcast.lane.b32.xlu0 %v987_v45, 264  ;;  %989 = vbcast.lane.b32.xlu1 %v987_v45, 256  ;;  %v524_v45 = vadd.f32 1.0, %v6305_v38  ;;  %v7106_v38 = vadd.f32 %v6972_v57, %v7051_v24  ;;  %v899_v57 = vrot.slane %v7085_v10, %v6962_v51 }
 0x309   :  { %v7072_v33 = vpop.permute.xlu0 %560  ;;  %v7074_v50 = vpop.permute.xlu1 %564  ;;  %6308 = vrcp.f32 %v524_v45  ;;  %v888_v45 = vrot.slane %v7085_v10, %v6956_v48 }
 0x30a   :  { %6310 = vtanh.f32 %v466_v32 }
 0x30b   :  { %1004 = vbcast.lane.b32.xlu0 %v998_v53, 264  ;;  %1000 = vbcast.lane.b32.xlu1 %v998_v53, 256 }
 0x30d   :  { %v7077_v52 = vpop.permute.xlu0 %575  ;;  %v7079_v55 = vpop.permute.xlu1 %571 }
 0x30e   :  { %10750 = vst [vmem:[#allocation42_spill] sm:$0xff] %v7077_v52  ;;  %10751 = vst [vmem:[#allocation43_spill] sm:$0xff] %v7079_v55 }
 0x30f   :  { %1015 = vbcast.lane.b32.xlu0 %v1009_v0, 264  ;;  %1011 = vbcast.lane.b32.xlu1 %v1009_v0, 256 }
 0x311   :  { %v7087_v16 = vpop.permute.xlu0 %586  ;;  %v7089_v12 = vpop.permute.xlu1 %582 }
 0x312   :  { %10752 = vst [vmem:[#allocation44_spill] sm:$0xff] %v7087_v16  ;;  %10753 = vst [vmem:[#allocation45_spill] sm:$0xff] %v7089_v12 }
 0x313   :  { %5540 = vbcast.lane.b32.xlu0 %v5538_v31, 256  ;;  %5544 = vbcast.lane.b32.xlu1 %v5538_v31, 264  ;;  %v1181_v31 = vunpack.c.l.s4 %v6691_v49  ;;  %v5966_v49 = vmul.f32 -1.442695, %v7106_v38  ;;  %v6309_v21 = vpop.eup %6308 }
 0x315   :  { %v7092_v53 = vpop.permute.xlu0 %597  ;;  %v7094_v43 = vpop.permute.xlu1 %593  ;;  %v1182_v28 = vunpack.c.0.s8 %v1181_v31  ;;  %6312 = vpow2.f32 %v5966_v49 }
 0x316   :  { %10754 = vst [vmem:[#allocation46_spill] sm:$0xff] %v7092_v53  ;;  %10755 = vst [vmem:[#allocation47_spill] sm:$0xff] %v7094_v43  ;;  %v6311_v31 = vpop.eup %6310  ;;  %6314 = vtanh.f32 %v461_v7 }
 0x317   :  { %872 = vbcast.lane.b32.xlu0 %v866_v34, 264  ;;  %868 = vbcast.lane.b32.xlu1 %v866_v34, 256  ;;  %v7122_v25 = vsub.s32 %v1182_v28, %v6945_v37  ;;  %6316 = vrcp.f32 %v523_v18  ;;  %v7136_v37 = vadd.f32 %v7051_v24, %v6995_v11 }
 0x318   :  { %6318 = vrcp.f32 %v7017_v6 }
 0x319   :  { %v7098_v15 = vpop.permute.xlu0 %608  ;;  %v7100_v0 = vpop.permute.xlu1 %604  ;;  %v1234_v44 = vrot.slane %v6309_v21, %v7122_v25  ;;  %v2130_v28 = vrot.slane %v6311_v31, %v7122_v25  ;;  %v5965_v42 = vmul.f32 -1.442695, %v7136_v37 }
 0x31a   :  { %10756 = vst [vmem:[#allocation48_spill] sm:$0xff] %v7098_v15  ;;  %10757 = vst [vmem:[#allocation49_spill] sm:$0xff] %v7100_v0 }
 0x31b   :  { %883 = vbcast.lane.b32.xlu0 %v877_v8, 264  ;;  %879 = vbcast.lane.b32.xlu1 %v877_v8, 256  ;;  %v1242_v29 = vcombine.high %v1234_v44, %v1234_v44  ;;  %v2138_v7 = vcombine.high %v2130_v28, %v2130_v28  ;;  %6320 = vpow2.f32 %v5965_v42 }
 0x31c   :  { %6322 = vtanh.f32 %v7106_v38 }
 0x31d   :  { %v7108_v40 = vpop.permute.xlu0 %619  ;;  %v7110_v34 = vpop.permute.xlu1 %615  ;;  %v1264_v18 = vrot.slane %v1242_v29, %v7122_v25 }
 0x31e   :  { %10758 = vst [vmem:[#allocation50_spill] sm:$0xff] %v7108_v40  ;;  %10759 = vst [vmem:[#allocation51_spill] sm:$0xff] %v7110_v34 }
 0x31f   :  { %894 = vbcast.lane.b32.xlu0 %v888_v45, 264  ;;  %890 = vbcast.lane.b32.xlu1 %v888_v45, 256 }
 0x321   :  { %v7115_v32 = vpop.permute.xlu0 %630  ;;  %v7117_v8 = vpop.permute.xlu1 %626 }
 0x322   :  { %10760 = vst [vmem:[#allocation52_spill] sm:$0xff] %v7115_v32  ;;  %10761 = vst [vmem:[#allocation53_spill] sm:$0xff] %v7117_v8  ;;  %v932_v8 = vrot.slane %v7085_v10, %v6976_v59  ;;  %v6313_v32 = vpop.eup %6312 }
 0x323   :  { %905 = vbcast.lane.b32.xlu0 %v899_v57, 264  ;;  %901 = vbcast.lane.b32.xlu1 %v899_v57, 256  ;;  %v526_v15 = vadd.f32 1.0, %v6313_v32 }
 0x325   :  { %v7126_v45 = vpop.permute.xlu0 %5485  ;;  %v7128_v23 = vpop.permute.xlu1 %5489  ;;  %6324 = vrcp.f32 %v526_v15 }
 0x326   :  { %10763 = vst [vmem:[#allocation55_spill] sm:$0xff] %v7126_v45  ;;  %10764 = vst [vmem:[#allocation56_spill] sm:$0xff] %v7128_v23  ;;  %v1227_v23 = vcombine.high %v6309_v21, %v6309_v21  ;;  %v2123_v45 = vcombine.high %v6311_v31, %v6311_v31  ;;  %v2160_v21 = vrot.slane %v2138_v7, %v7122_v25  ;;  %v7157_v31 = vpop.eup %6314  ;;  %6326 = vtanh.f32 %v7136_v37 }
 0x327   :  { %916 = vbcast.lane.b32.xlu0 %v910_v17, 264  ;;  %912 = vbcast.lane.b32.xlu1 %v910_v17, 256  ;;  %v2146_v17 = vrot.slane %v2130_v28, %v7122_v25  ;;  %v2075_v53 = vcombine.high %v7157_v31, %v7157_v31 }
 0x328   :  { %v1241_v28 = vrot.slane %v1227_v23, %v7122_v25  ;;  %v2137_v6 = vrot.slane %v2123_v45, %v7122_v25  ;;  %v5527_v23 = vrot.slane %v7085_v10, %v6980_v62  ;;  %v2170_v45 = vcombine.high %v2160_v21, %v2160_v21 }
 0x329   :  { %v7138_v49 = vpop.permute.xlu0 %795  ;;  %v7140_v57 = vpop.permute.xlu1 %791  ;;  %v7160_v29 = vrot.slane %v2146_v17, %v6948_v39  ;;  %v2168_v43 = vcombine.high %v2146_v17, %v2146_v17 }
 0x32a   :  { %10765 = vst [vmem:[#allocation57_spill] sm:$0xff] %v7138_v49  ;;  %10766 = vst [vmem:[#allocation58_spill] sm:$0xff] %v7140_v57  ;;  %v1243_v7 = vcombine.high %v1241_v28, %v1241_v28  ;;  %v1274_v57 = vcombine.high %v1264_v18, %v1264_v18  ;;  %v1257_v42 = vrot.slane %v1241_v28, %v7122_v25 }
 0x32b   :  { %927 = vbcast.lane.b32.xlu0 %v921_v5, 264  ;;  %923 = vbcast.lane.b32.xlu1 %v921_v5, 256  ;;  %v1250_v5 = vrot.slane %v1234_v44, %v7122_v25  ;;  %v2153_v49 = vrot.slane %v2137_v6, %v7122_v25 }
 0x32c   :  { %v1271_v32 = vrot.slane %v1243_v7, %v7122_v25 }
 0x32d   :  { %v7147_v11 = vpop.permute.xlu0 %806  ;;  %v7149_v41 = vpop.permute.xlu1 %802  ;;  %v1272_v34 = vcombine.high %v1250_v5, %v1250_v5  ;;  %v7178_v0 = vrot.slane %v1250_v5, %v6948_v39  ;;  %v1273_v5 = vcombine.high %v1257_v42, %v1257_v42  ;;  %v2169_v7 = vcombine.high %v2153_v49, %v2153_v49 }
 0x32e   :  { %10767 = vst [vmem:[#allocation59_spill] sm:$0xff] %v7147_v11  ;;  %10768 = vst [vmem:[#allocation60_spill] sm:$0xff] %v7149_v41  ;;  %v7163_v41 = vrot.slane %v1264_v18, %v6948_v39  ;;  %v7165_v11 = vpop.eup %6316 }
 0x32f   :  { %938 = vbcast.lane.b32.xlu0 %v932_v8, 264  ;;  %934 = vbcast.lane.b32.xlu1 %v932_v8, 256  ;;  %v7175_v8 = vrot.slane %v2160_v21, %v6948_v39  ;;  %v1186_v10 = vrot.slane %v7165_v11, %v7122_v25  ;;  %v1097_v21 = vrot.slane %v6982_v1, %v6948_v39  ;;  %v6319_v38 = vpop.eup %6318 }
 0x330   :  { %v357_v12 = vmul.f32 %v6319_v38, %v6933_v22  ;;  %v1119_v22 = vrot.slane %v6982_v1, %v6956_v48 }
 0x331   :  { %v7168_v44 = vpop.permute.xlu0 %817  ;;  %v7170_v40 = vpop.permute.xlu1 %813  ;;  %v1194_v28 = vcombine.high %v1186_v10, %v1186_v10 }
 0x332   :  { %10769 = vst [vmem:[#allocation61_spill] sm:$0xff] %v7168_v44  ;;  %10770 = vst [vmem:[#allocation62_spill] sm:$0xff] %v7170_v40  ;;  %v2139_v44 = vcombine.high %v2137_v6, %v2137_v6  ;;  %v2082_v40 = vrot.slane %v7157_v31, %v7122_v25  ;;  %v7197_v6 = vrot.slane %v1272_v34, %v6948_v39 }
 0x333   :  { %5529 = vbcast.lane.b32.xlu0 %v5527_v23, 256  ;;  %5533 = vbcast.lane.b32.xlu1 %v5527_v23, 264  ;;  %v7210_v31 = vrot.slane %v2170_v45, %v6948_v39  ;;  %v7213_v34 = vrot.slane %v1257_v42, %v6948_v39  ;;  %v1216_v45 = vrot.slane %v1194_v28, %v7122_v25 }
 0x334   :  { %v2090_v23 = vcombine.high %v2082_v40, %v2082_v40  ;;  %v2167_v15 = vrot.slane %v2139_v44, %v7122_v25  ;;  %v7207_v16 = vrot.slane %v2082_v40, %v7122_v25  ;;  %v7225_v44 = vrot.slane %v1271_v32, %v6948_v39 }
 0x335   :  { %v7188_v17 = vpop.permute.xlu0 %828  ;;  %v7190_v18 = vpop.permute.xlu1 %824  ;;  %v7228_v40 = vrot.slane %v1273_v5, %v6948_v39  ;;  %v7240_v32 = vadd.f32 %v7006_v35, %v7051_v24  ;;  %v1130_v35 = vrot.slane %v6982_v1, %v6962_v51 }
 0x336   :  { %10771 = vst [vmem:[#allocation63_spill] sm:$0xff] %v7188_v17  ;;  %10772 = vst [vmem:[#allocation64_spill] sm:$0xff] %v7190_v18  ;;  %v7200_v17 = vrot.slane %v2168_v43, %v6948_v39  ;;  %v7203_v18 = vrot.slane %v1274_v57, %v6948_v39  ;;  %v1108_v57 = vrot.slane %v6982_v1, %v6952_v46 }
 0x337   :  { %1103 = vbcast.lane.b32.xlu0 %v1097_v21, 264  ;;  %1099 = vbcast.lane.b32.xlu1 %v1097_v21, 256  ;;  %v7216_v21 = vrot.slane %v2153_v49, %v6948_v39  ;;  %10775 = vst [vmem:[#allocation67_spill] sm:$0xff] %v7225_v44  ;;  %10776 = vst [vmem:[#allocation68_spill] sm:$0xff] %v7228_v40  ;;  %v7232_v42 = vrot.slane %v2090_v23, %v7122_v25  ;;  %v6321_v49 = vpop.eup %6320  ;;  %v5968_v52 = vmul.f32 -1.442695, %v7240_v32 }
 0x338   :  { %v7243_v5 = vrot.slane %v2167_v15, %v6948_v39  ;;  %v7247_v28 = vrot.slane %v7207_v16, %v6948_v39  ;;  %v1202_v23 = vrot.slane %v1186_v10, %v7122_v25  ;;  %v1141_v15 = vrot.slane %v6982_v1, %v6966_v54  ;;  %v6323_v55 = vpop.eup %6322 }
 0x339   :  { %v7218_v26 = vpop.permute.xlu0 %839  ;;  %v7220_v43 = vpop.permute.xlu1 %835  ;;  %v7266_v10 = vrot.slane %v6982_v1, %v6976_v59  ;;  %v2226_v27 = vrot.slane %v6323_v55, %v7122_v25  ;;  %v2219_v37 = vcombine.high %v6323_v55, %v6323_v55 }
 0x33a   :  { %10773 = vst [vmem:[#allocation65_spill] sm:$0xff] %v7218_v26  ;;  %10774 = vst [vmem:[#allocation66_spill] sm:$0xff] %v7220_v43  ;;  %v7236_v26 = vrot.slane %v2169_v7, %v6948_v39  ;;  %v7269_v43 = vrot.slane %v1216_v45, %v6948_v39  ;;  %v6325_v36 = vpop.eup %6324  ;;  %v1224_v40 = vcombine.high %v1202_v23, %v1202_v23 }
 0x33b   :  { %1114 = vbcast.lane.b32.xlu0 %v1108_v57, 264  ;;  %1110 = vbcast.lane.b32.xlu1 %v1108_v57, 256  ;;  %10778 = vst [vmem:[#allocation70_spill] sm:$0xff] %v7243_v5  ;;  %10779 = vst [vmem:[#allocation71_spill] sm:$0xff] %v7247_v28  ;;  %v7262_v57 = vrot.slane %v6982_v1, %v6970_v56  ;;  %v525_v28 = vadd.f32 1.0, %v6321_v49  ;;  %v7282_v1 = vrot.slane %v357_v12, %v6952_v46 }
 0x33c   :  { %10777 = vst [vmem:[#allocation69_spill] sm:$0xff] %v7236_v26  ;;  %10782 = vst [vmem:[#allocation74_spill] sm:$0xff] %v7269_v43  ;;  %v7279_v26 = vrot.slane %v357_v12, %v6948_v39  ;;  %v7285_v43 = vrot.slane %v357_v12, %v6956_v48  ;;  %v7292_v49 = vrot.slane %v357_v12, %v6966_v54 }
 0x33d   :  { %v7252_v7 = vpop.permute.xlu0 %850  ;;  %v7254_v38 = vpop.permute.xlu1 %846  ;;  %v2120_v46 = vcombine.high %v7207_v16, %v7207_v16  ;;  %6328 = vrcp.f32 %v525_v28  ;;  %v1330_v16 = vrot.slane %v6325_v36, %v7122_v25  ;;  %v7319_v28 = vrot.slane %v1224_v40, %v6948_v39 }
 0x33e   :  { %10780 = vst [vmem:[#allocation72_spill] sm:$0xff] %v7252_v7  ;;  %10781 = vst [vmem:[#allocation73_spill] sm:$0xff] %v7254_v38  ;;  %v7273_v38 = vrot.slane %v7232_v42, %v6948_v39  ;;  %v1179_v7 = vcombine.high %v7165_v11, %v7165_v11  ;;  %v7289_v11 = vrot.slane %v357_v12, %v6962_v51  ;;  %6330 = vpow2.f32 %v5968_v52 }
 0x33f   :  { %1125 = vbcast.lane.b32.xlu0 %v1119_v22, 264  ;;  %1121 = vbcast.lane.b32.xlu1 %v1119_v22, 256  ;;  %v7295_v22 = vrot.slane %v357_v12, %v6970_v56  ;;  %v1226_v51 = vcombine.high %v1216_v45, %v1216_v45  ;;  %v2122_v56 = vcombine.high %v7232_v42, %v7232_v42  ;;  %6332 = vtanh.f32 %v7240_v32 }
 0x340   :  { %10783 = vst [vmem:[#allocation75_spill] sm:$0xff] %v7273_v38  ;;  %v2089_v38 = vrot.slane %v2075_v53, %v7122_v25  ;;  %v7305_v53 = vrot.slane %v357_v12, %v6976_v59  ;;  %v1193_v54 = vrot.slane %v1179_v7, %v7122_v25  ;;  %v7313_v59 = vrot.slane %v357_v12, %v6980_v62 }
 0x341   :  { %v7300_v48 = vpop.permute.xlu0 %861  ;;  %v7302_v4 = vpop.permute.xlu1 %857  ;;  %v7316_v45 = vrot.slane %v1202_v23, %v6948_v39  ;;  %v1338_v7 = vcombine.high %v1330_v16, %v1330_v16  ;;  %v7327_v52 = vrot.slane %v2120_v46, %v6948_v39  ;;  %v7330_v62 = vrot.slane %v1226_v51, %v6948_v39 }
 0x342   :  { %10784 = vst [vmem:[#allocation76_spill] sm:$0xff] %v7300_v48  ;;  %10785 = vst [vmem:[#allocation77_spill] sm:$0xff] %v7302_v4  ;;  %v2091_v5 = vcombine.high %v2089_v38, %v2089_v38  ;;  %v1195_v4 = vcombine.high %v1193_v54, %v1193_v54  ;;  %v2105_v42 = vrot.slane %v2089_v38, %v7122_v25  ;;  %v2860_v32 = vmul.f32 0.0, %v7022_v60 }
 0x343   :  { %1136 = vbcast.lane.b32.xlu0 %v1130_v35, 264  ;;  %1132 = vbcast.lane.b32.xlu1 %v1130_v35, 256  ;;  %v2234_v48 = vcombine.high %v2226_v27, %v2226_v27  ;;  %10788 = vst [vmem:[#allocation80_spill] sm:$0xff] %v7327_v52  ;;  %10789 = vst [vmem:[#allocation81_spill] sm:$0xff] %v7330_v62  ;;  %v1209_v55 = vrot.slane %v1193_v54, %v7122_v25 }
 0x344   :  { %v2119_v12 = vrot.slane %v2091_v5, %v7122_v25  ;;  %v7335_v40 = vrot.slane %v2122_v56, %v6948_v39  ;;  %v2121_v23 = vcombine.high %v2105_v42, %v2105_v42  ;;  %v1323_v38 = vcombine.high %v6325_v36, %v6325_v36 }
 0x345   :  { %v7322_v44 = vpop.permute.xlu0 %5518  ;;  %v7324_v30 = vpop.permute.xlu1 %5522  ;;  %v1223_v35 = vrot.slane %v1195_v4, %v7122_v25  ;;  %v2242_v46 = vrot.slane %v2226_v27, %v7122_v25  ;;  %v7341_v51 = vrot.slane %v2105_v42, %v6948_v39  ;;  %v1360_v54 = vrot.slane %v1338_v7, %v7122_v25 }
 0x346   :  { %10786 = vst [vmem:[#allocation78_spill] sm:$0xff] %v7322_v44  ;;  %10787 = vst [vmem:[#allocation79_spill] sm:$0xff] %v7324_v30  ;;  %v1225_v30 = vcombine.high %v1209_v55, %v1209_v55  ;;  %v1346_v44 = vrot.slane %v1330_v16, %v7122_v25  ;;  %v2256_v5 = vrot.slane %v2234_v48, %v7122_v25  ;;  %v7356_v42 = vpop.eup %6326 }
 0x347   :  { %10790 = vst [vmem:[#allocation82_spill] sm:$0xff] %v7335_v40  ;;  %1147 = vbcast.lane.b32.xlu0 %v1141_v15, 264  ;;  %1143 = vbcast.lane.b32.xlu1 %v1141_v15, 256  ;;  %10791 = vst [vmem:[#allocation83_spill] sm:$0xff] %v7341_v51  ;;  %v2233_v56 = vrot.slane %v2219_v37, %v7122_v25  ;;  %v7351_v4 = vrot.slane %v1209_v55, %v6948_v39  ;;  %v7361_v37 = vpop.eup %6328 }
 0x348   :  { %v7354_v27 = vrot.slane %v2119_v12, %v6948_v39  ;;  %v1368_v15 = vcombine.high %v1346_v44, %v1346_v44  ;;  %v2264_v16 = vcombine.high %v2242_v46, %v2242_v46  ;;  %v1370_v51 = vcombine.high %v1360_v54, %v1360_v54 }
 0x349   :  { %v7346_v40 = vpop.permute.xlu0 %718  ;;  %v7348_v36 = vpop.permute.xlu1 %714  ;;  %10794 = vst [vmem:[#allocation86_spill] sm:$0xff] %v7351_v4  ;;  %v2266_v7 = vcombine.high %v2256_v5, %v2256_v5  ;;  %v1337_v48 = vrot.slane %v1323_v38, %v7122_v25  ;;  %v7364_v55 = vrot.slane %v1223_v35, %v6948_v39  ;;  %v7367_v12 = vrot.slane %v1225_v30, %v6948_v39 }
 0x34a   :  { %10792 = vst [vmem:[#allocation84_spill] sm:$0xff] %v7346_v40  ;;  %10793 = vst [vmem:[#allocation85_spill] sm:$0xff] %v7348_v36  ;;  %v7370_v36 = vrot.slane %v2121_v23, %v6948_v39  ;;  %v7373_v40 = vrot.slane %v2242_v46, %v6948_v39  ;;  %v2249_v38 = vrot.slane %v2233_v56, %v7122_v25 }
 0x34b   :  { %10795 = vst [vmem:[#allocation87_spill] sm:$0xff] %v7354_v27  ;;  %1158 = vbcast.lane.b32.xlu0 %v7262_v57, 264  ;;  %1154 = vbcast.lane.b32.xlu1 %v7262_v57, 256  ;;  %v6331_v27 = vpop.eup %6330  ;;  %v1339_v4 = vcombine.high %v1337_v48, %v1337_v48  ;;  %v2235_v62 = vcombine.high %v2233_v56, %v2233_v56 }
 0x34c   :  { %10796 = vst [vmem:[#allocation88_spill] sm:$0xff] %v7370_v36  ;;  %10797 = vst [vmem:[#allocation89_spill] sm:$0xff] %v7373_v40  ;;  %v7381_v35 = vrot.slane %v1346_v44, %v6948_v39  ;;  %v2171_v30 = vcombine.high %v7356_v42, %v7356_v42  ;;  %v7386_v23 = vrot.slane %v1360_v54, %v6948_v39  ;;  %v528_v54 = vadd.f32 1.0, %v6331_v27 }
 0x34d   :  { %v7376_v57 = vpop.permute.xlu0 %729  ;;  %v7378_v52 = vpop.permute.xlu1 %725  ;;  %v7389_v46 = vrot.slane %v2256_v5, %v6948_v39  ;;  %v7392_v40 = vrot.slane %v1368_v15, %v6948_v39  ;;  %v7395_v56 = vrot.slane %v2264_v16, %v6948_v39  ;;  %v7401_v44 = vrot.slane %v2266_v7, %v6948_v39 }
 0x34e   :  { %10798 = vst [vmem:[#allocation90_spill] sm:$0xff] %v7376_v57  ;;  %10799 = vst [vmem:[#allocation91_spill] sm:$0xff] %v7378_v52  ;;  %v7398_v57 = vrot.slane %v1370_v51, %v6948_v39  ;;  %v2178_v5 = vrot.slane %v7356_v42, %v7122_v25  ;;  %v1282_v15 = vrot.slane %v7361_v37, %v7122_v25  ;;  %v2859_v27 = vmul.f32 0.0, %v7024_v61 }
 0x34f   :  { %10800 = vst [vmem:[#allocation92_spill] sm:$0xff] %v7386_v23  ;;  %10801 = vst [vmem:[#allocation93_spill] sm:$0xff] %v7389_v46  ;;  %1169 = vbcast.lane.b32.xlu0 %v7266_v10, 264  ;;  %1165 = vbcast.lane.b32.xlu1 %v7266_v10, 256  ;;  %v1353_v16 = vrot.slane %v1337_v48, %v7122_v25  ;;  %v7412_v51 = vrot.slane %v2249_v38, %v6948_v39  ;;  %6334 = vrcp.f32 %v528_v54  ;;  %v10437_v54 = vmov 0.0|0.0   ;;  %v2854_v23 = vld [vmem:[#allocation9 + $0x18] sm:$0xff] }
 0x350   :  { %10802 = vst [vmem:[#allocation94_spill] sm:$0xff] %v7392_v40  ;;  %10803 = vst [vmem:[#allocation95_spill] sm:$0xff] %v7395_v56  ;;  %v1367_v7 = vrot.slane %v1339_v4, %v7122_v25  ;;  %v2263_v52 = vrot.slane %v2235_v62, %v7122_v25  ;;  %v1290_v42 = vcombine.high %v1282_v15, %v1282_v15  ;;  %6204 = vmatprep.subr.bf16.mxu0 %v10437_v54 }
 0x351   :  { %10804 = vst [vmem:[#allocation96_spill] sm:$0xff] %v7398_v57  ;;  %10805 = vst [vmem:[#allocation97_spill] sm:$0xff] %v7401_v44  ;;  %v7416_v44 = vpop.permute.xlu0 %740  ;;  %v7418_v10 = vpop.permute.xlu1 %736  ;;  %v7424_v57 = vadd.f32 %v7051_v24, %v7020_v58  ;;  %v1369_v48 = vcombine.high %v1353_v16, %v1353_v16  ;;  %v2265_v56 = vcombine.high %v2249_v38, %v2249_v38  ;;  %6210 = vmatprep.subr.bf16.mxu1 %v10437_v54 }
 0x352   :  { %10806 = vst [vmem:[#allocation98_spill] sm:$0xff] %v7412_v51  ;;  %10807 = vst [vmem:[#allocation99_spill] sm:$0xff] %v7416_v44  ;;  %v2186_v51 = vcombine.high %v2178_v5, %v2178_v5  ;;  %v7429_v62 = vrot.slane %v2178_v5, %v7122_v25  ;;  %v1275_v4 = vcombine.high %v7361_v37, %v7361_v37  ;;  %v2852_v44 = vld [vmem:[#allocation9 + $0x8] sm:$0xff]  ;;  %v2853_v37 = vld [vmem:[#allocation9 + $0x10] sm:$0xff] }
 0x353   :  { %10808 = vst [vmem:[#allocation100_spill] sm:$0xff] %v7418_v10  ;;  %1026 = vbcast.lane.b32.xlu0 %v7279_v26, 264  ;;  %1022 = vbcast.lane.b32.xlu1 %v7279_v26, 256  ;;  %v2851_v10 = vld [vmem:[#allocation9] sm:$0xff]  ;;  %v7434_v40 = vrot.slane %v1353_v16, %v6948_v39  ;;  %v7437_v58 = vrot.slane %v2263_v52, %v6948_v39 }
 0x354   :  { %v1298_v38 = vrot.slane %v1282_v15, %v7122_v25  ;;  %v7445_v5 = vpack.c.bf16 %v2852_v44, %v2851_v10  ;;  %v2880_v36 = vadd.f32 %v2860_v32, %v2859_v27  ;;  %v7448_v16 = vrot.slane %v1367_v7, %v6948_v39 }
 0x355   :  { %10809 = vst [vmem:[#allocation101_spill] sm:$0xff] %v7437_v58  ;;  %v7440_v46 = vpop.permute.xlu0 %751  ;;  %v7442_v26 = vpop.permute.xlu1 %747  ;;  %v1312_v52 = vrot.slane %v1290_v42, %v7122_v25  ;;  %v5967_v58 = vmul.f32 -1.442695, %v7424_v57  ;;  %v7454_v15 = vrot.slane %v1369_v48, %v6948_v39  ;;  %v2185_v44 = vrot.slane %v2171_v30, %v7122_v25 }
 0x356   :  { %10810 = vst [vmem:[#allocation102_spill] sm:$0xff] %v7440_v46  ;;  %10811 = vst [vmem:[#allocation103_spill] sm:$0xff] %v7442_v26  ;;  %v2208_v26 = vrot.slane %v2186_v51, %v7122_v25  ;;  %v7461_v7 = vrot.slane %v2265_v56, %v6948_v39  ;;  %v7465_v10 = vrot.slane %v7429_v62, %v6948_v39  ;;  %6206 = vmatpush3.bf16.msra.mxu0 %v7445_v5  ;;  %v7480_v56 = vpop.eup %6332 }
 0x357   :  { %10812 = vst [vmem:[#allocation104_spill] sm:$0xff] %v7445_v5  ;;  %1037 = vbcast.lane.b32.xlu0 %v7282_v1, 264  ;;  %1033 = vbcast.lane.b32.xlu1 %v7282_v1, 256  ;;  %v1289_v32 = vrot.slane %v1275_v4, %v7122_v25  ;;  %v7469_v27 = vpack.c.bf16 %v2854_v23, %v2853_v37  ;;  %v2881_v4 = vrot.slane %v2880_v36, 4  ;;  %6336 = vpow2.f32 %v5967_v58 }
 0x358   :  { %10813 = vst [vmem:[#allocation105_spill] sm:$0xff] %v7465_v10  ;;  %v1320_v51 = vcombine.high %v1298_v38, %v1298_v38  ;;  %v2187_v1 = vcombine.high %v2185_v44, %v2185_v44  ;;  %6207 = vmatprep.subr.bf16.mxu0 %v10437_v54  ;;  %v7477_v30 = vrot.slane %v1298_v38, %v6948_v39  ;;  %v10443_v37 = vmov 0.0  }
 0x359   :  { %10814 = vst [vmem:[#allocation106_spill] sm:$0xff] %v7469_v27  ;;  %v7471_v42 = vpop.permute.xlu0 %762  ;;  %v7473_v48 = vpop.permute.xlu1 %758  ;;  %6212 = vmatpush3.bf16.msra.mxu1 %v7445_v5  ;;  %v7483_v46 = vrot.slane %v1312_v52, %v6948_v39  ;;  %v1291_v23 = vcombine.high %v1289_v32, %v1289_v32  ;;  %6108 = vmatprep.mubr.msk.f32.mxu0 %vm6693_vm2, %v10443_v37  ;;  %v10819_v37 = vmov 0.0|0.0   ;;  %6338 = vtanh.f32 %v7424_v57 }
 0x35a   :  { %10815 = vst [vmem:[#allocation107_spill] sm:$0xff] %v7471_v42  ;;  %10816 = vst [vmem:[#allocation108_spill] sm:$0xff] %v7473_v48  ;;  %v7490_v38 = vrot.slane %v2208_v26, %v6948_v39  ;;  %v2216_v5 = vcombine.high %v7429_v62, %v7429_v62  ;;  %v1322_v48 = vcombine.high %v1312_v52, %v1312_v52  ;;  %6209 = vmatpush3.bf16.msra.mxu0 %v7469_v27 }
 0x35b   :  { %10817 = vst [vmem:[#allocation109_spill] sm:$0xff] %v7483_v46  ;;  %1048 = vbcast.lane.b32.xlu0 %v7285_v43, 264  ;;  %1044 = vbcast.lane.b32.xlu1 %v7285_v43, 256  ;;  %v2218_v58 = vcombine.high %v2208_v26, %v2208_v26  ;;  %v2201_v42 = vrot.slane %v2185_v44, %v7122_v25  ;;  %v7513_v26 = vpop.eup %6334 }
 0x35c   :  { %10818 = vst [vmem:[#allocation110_spill] sm:$0xff] %v7490_v38  ;;  %6213 = vmatprep.subr.bf16.mxu1 %v10819_v37  ;;  %v7500_v54 = vrot.slane %v1320_v51, %v6948_v39  ;;  %v1305_v38 = vrot.slane %v1289_v32, %v7122_v25  ;;  %v2215_v10 = vrot.slane %v2187_v1, %v7122_v25 }
 0x35d   :  { %v7504_v62 = vpop.permute.xlu0 %773  ;;  %v7506_v46 = vpop.permute.xlu1 %769  ;;  %v7510_v43 = vrot.slane %v7480_v56, %v7122_v25  ;;  %6215 = vmatpush3.bf16.msra.mxu1 %v7469_v27  ;;  %v2882_v52 = vadd.f32 %v2881_v4, %v2880_v36  ;;  %v1319_v44 = vrot.slane %v1291_v23, %v7122_v25  ;;  %v2217_v51 = vcombine.high %v2201_v42, %v2201_v42 }
 0x35e   :  { %10820 = vst [vmem:[#allocation111_spill] sm:$0xff] %v7504_v62  ;;  %10821 = vst [vmem:[#allocation112_spill] sm:$0xff] %v7506_v46  ;;  %6216 = vmatprep.subr.bf16.mxu0 %v10819_v37  ;;  %v7519_v32 = vrot.slane %v2216_v5, %v6948_v39  ;;  %v1321_v1 = vcombine.high %v1305_v38, %v1305_v38  ;;  %v1857_v27 = vmul.f32 %v7178_v0, %v7024_v61  ;;  %v10822_v23 = vmov 0.0  }
 0x35f   :  { %1059 = vbcast.lane.b32.xlu0 %v7289_v11, 264  ;;  %1055 = vbcast.lane.b32.xlu1 %v7289_v11, 256  ;;  %v7526_v36 = vrot.slane %v1322_v48, %v6948_v39  ;;  %v7529_v4 = vrot.slane %v2218_v58, %v6948_v39  ;;  %v1858_v57 = vmul.f32 %v7178_v0, %v7022_v60 }
 0x360   :  { %6119 = vmatprep.mubr.msk.f32.mxu1 %vm6693_vm2, %v10822_v23  ;;  %6222 = vmatprep.subr.bf16.mxu1 %v10819_v37  ;;  %v7537_v11 = vrot.slane %v1305_v38, %v6948_v39  ;;  %v7540_v5 = vrot.slane %v2201_v42, %v6948_v39  ;;  %v7548_v58 = vrot.slane %v7510_v43, %v7122_v25  ;;  %v2883_v23 = vrot.slane %v2882_v52, 2 }
 0x361   :  { %v7542_v46 = vpop.permute.xlu0 %784  ;;  %v7544_v48 = vpop.permute.xlu1 %780  ;;  %v1426_v0 = vrot.slane %v7513_v26, %v7122_v25  ;;  %v7553_v37 = vrot.slane %v1319_v44, %v6948_v39  ;;  %v7556_v38 = vrot.slane %v2215_v10, %v6948_v39  ;;  %v7559_v42 = vrot.slane %v2217_v51, %v6948_v39 }
 0x362   :  { %10823 = vst [vmem:[#allocation113_spill] sm:$0xff] %v7542_v46  ;;  %10824 = vst [vmem:[#allocation114_spill] sm:$0xff] %v7544_v48  ;;  %v7563_v46 = vmul.f32 %v7160_v29, %v7022_v60  ;;  %v7567_v48 = vmul.f32 %v7160_v29, %v7024_v61  ;;  %v7570_v62 = vrot.slane %v1321_v1, %v6948_v39  ;;  %v1969_v10 = vsub.f32 1.0, %v1857_v27  ;;  %v6337_v44 = vpop.eup %6336 }
 0x363   :  { %10825 = vst [vmem:[#allocation115_spill] sm:$0xff] %v7553_v37  ;;  %10826 = vst [vmem:[#allocation116_spill] sm:$0xff] %v7556_v38  ;;  %1070 = vbcast.lane.b32.xlu0 %v7292_v49, 264  ;;  %1066 = vbcast.lane.b32.xlu1 %v7292_v49, 256  ;;  %v7576_v51 = vmul.f32 %v7163_v41, %v7027_v2  ;;  %v7580_v60 = vmul.f32 %v7163_v41, %v7029_v3  ;;  %v1970_v61 = vsub.f32 1.0, %v1858_v57 }
 0x364   :  { %10827 = vst [vmem:[#allocation117_spill] sm:$0xff] %v7559_v42  ;;  %10828 = vst [vmem:[#allocation118_spill] sm:$0xff] %v7570_v62  ;;  %v1434_v42 = vcombine.high %v1426_v0, %v1426_v0  ;;  %v7584_v29 = vmul.f32 %v7175_v8, %v7027_v2  ;;  %v7588_v1 = vmul.f32 %v7175_v8, %v7029_v3  ;;  %v527_v3 = vadd.f32 1.0, %v6337_v44 }
 0x365   :  { %10829 = vst [vmem:[#allocation119_spill] sm:$0xff] %v7576_v51  ;;  %10830 = vst [vmem:[#allocation120_spill] sm:$0xff] %v7580_v60  ;;  %v7590_v49 = vpop.permute.xlu0 %5507  ;;  %v7592_v27 = vpop.permute.xlu1 %5511  ;;  %v7596_v62 = vrot.slane %v7548_v58, %v6948_v39  ;;  %v1442_v41 = vrot.slane %v1426_v0, %v7122_v25  ;;  %v2884_v38 = vadd.f32 %v2883_v23, %v2882_v52  ;;  %v7613_v52 = vmul.f32 0.0, %v1969_v10 }
 0x366   :  { %10831 = vst [vmem:[#allocation121_spill] sm:$0xff] %v7590_v49  ;;  %10832 = vst [vmem:[#allocation122_spill] sm:$0xff] %v7592_v27  ;;  %v7601_v57 = vmul.f32 %v7197_v6, %v7033_v9  ;;  %v7605_v2 = vmul.f32 %v7197_v6, %v7035_v63  ;;  %v2330_v8 = vcombine.high %v7510_v43, %v7510_v43  ;;  %v2857_v27 = vmul.f32 0.0, %v7072_v33  ;;  %v7615_v23 = vpop.eup %6338 }
 0x367   :  { %10833 = vst [vmem:[#allocation123_spill] sm:$0xff] %v7596_v62  ;;  %v2858_v49 = vmul.f32 0.0, %v7074_v50  ;;  %1081 = vbcast.lane.b32.xlu0 %v7295_v22, 264  ;;  %1077 = vbcast.lane.b32.xlu1 %v7295_v22, 256  ;;  %10836 = vst [vmem:[#allocation126_spill] sm:$0xff] %v7613_v52  ;;  %v1456_v0 = vrot.slane %v1434_v42, %v7122_v25  ;;  %v7618_v6 = vmul.f32 0.0, %v1970_v61  ;;  %6340 = vrcp.f32 %v527_v3 }
 0x368   :  { %10834 = vst [vmem:[#allocation124_spill] sm:$0xff] %v7601_v57  ;;  %10835 = vst [vmem:[#allocation125_spill] sm:$0xff] %v7605_v2  ;;  %v7624_v37 = vmul.f32 %v7200_v17, %v7033_v9  ;;  %v7628_v44 = vmul.f32 %v7200_v17, %v7035_v63  ;;  %v7637_v61 = vrot.slane %v1442_v41, %v6948_v39  ;;  %v2885_v62 = vrot.slane %v2884_v38, 1 }
 0x369   :  { %10837 = vst [vmem:[#allocation127_spill] sm:$0xff] %v7618_v6  ;;  %v7632_v10 = vpop.permute.xlu0 %949  ;;  %v7634_v42 = vpop.permute.xlu1 %945  ;;  %v2352_v43 = vrot.slane %v2330_v8, %v7122_v25  ;;  %v2873_v60 = vadd.f32 %v2858_v49, %v2857_v27  ;;  %v1464_v17 = vcombine.high %v1442_v41, %v1442_v41  ;;  %v1419_v22 = vcombine.high %v7513_v26, %v7513_v26  ;;  %v10850_v6 = vld [vmem:[#allocation37_spill] sm:$0xff] }
 0x36a   :  { %v7648_v63 = vmul.f32 %v7203_v18, %v7038_v13  ;;  %v7652_v8 = vmul.f32 %v7210_v31, %v7038_v13  ;;  %v7655_v51 = vrot.slane %v1456_v0, %v6948_v39  ;;  %v7659_v3 = vadd.f32 %v7070_v47, %v7051_v24 }
 0x36b   :  { %1092 = vbcast.lane.b32.xlu0 %v7305_v53, 264  ;;  %1088 = vbcast.lane.b32.xlu1 %v7305_v53, 256  ;;  %v7663_v53 = vmul.f32 %v7203_v18, %v7040_v14  ;;  %v7667_v26 = vmul.f32 %v7210_v31, %v7040_v14  ;;  %v2360_v41 = vcombine.high %v7548_v58, %v7548_v58  ;;  %v2874_v57 = vrot.slane %v2873_v60, 4 }
 0x36c   :  { %10838 = vst [vmem:[#allocation128_spill] sm:$0xff] %v7648_v63  ;;  %v10842_v24 = vcombine.high %v7480_v56, %v7480_v56  ;;  %v7679_v9 = vadd.f32 %v2885_v62, %v2884_v38  ;;  %v7682_v18 = vrot.slane %v2352_v43, %v6948_v39  ;;  %v1466_v13 = vcombine.high %v1456_v0, %v1456_v0 }
 0x36d   :  { %10839 = vst [vmem:[#allocation129_spill] sm:$0xff] %v7663_v53  ;;  %v7669_v49 = vpop.permute.xlu0 %960  ;;  %v7671_v27 = vpop.permute.xlu1 %956  ;;  %v2362_v31 = vcombine.high %v2352_v43, %v2352_v43  ;;  %v7686_v14 = vmul.f32 %v7213_v34, %v7043_v19  ;;  %v7691_v58 = vrot.slane %v1464_v17, %v6948_v39  ;;  %v1433_v56 = vrot.slane %v1419_v22, %v7122_v25 }
 0x36e   :  { %10840 = vst [vmem:[#allocation130_spill] sm:$0xff] %v7669_v49  ;;  %10841 = vst [vmem:[#allocation131_spill] sm:$0xff] %v7671_v27  ;;  %v2329_v47 = vrot.slane %v10842_v24, %v7122_v25  ;;  %v7696_v62 = vmul.f32 %v7216_v21, %v7043_v19  ;;  %v7700_v38 = vmul.f32 %v7213_v34, %v7045_v20  ;;  %v5970_v43 = vmul.f32 -1.442695, %v7659_v3  ;;  %v10851_v34 = vld [vmem:[#allocation67_spill] sm:$0xff] }
 0x36f   :  { %10843 = vst [vmem:[#allocation132_spill] sm:$0xff] %v7682_v18  ;;  %10844 = vst [vmem:[#allocation133_spill] sm:$0xff] %v7686_v14  ;;  %5551 = vbcast.lane.b32.xlu0 %v7313_v59, 256  ;;  %5555 = vbcast.lane.b32.xlu1 %v7313_v59, 264  ;;  %v7704_v0 = vmul.f32 %v7216_v21, %v7045_v20  ;;  %v7708_v59 = vrot.slane %v2360_v41, %v6948_v39  ;;  %v10865_v14 = vld [vmem:[#allocation39_spill] sm:$0xff] }
 0x370   :  { %10845 = vst [vmem:[#allocation134_spill] sm:$0xff] %v7691_v58  ;;  %10846 = vst [vmem:[#allocation135_spill] sm:$0xff] %v7700_v38  ;;  %v2345_v24 = vrot.slane %v2329_v47, %v7122_v25  ;;  %v1435_v19 = vcombine.high %v1433_v56, %v1433_v56  ;;  %v2331_v2 = vcombine.high %v2329_v47, %v2329_v47  ;;  %6342 = vpow2.f32 %v5970_v43  ;;  %v10863_v38 = vld [vmem:[#allocation68_spill] sm:$0xff] }
 0x371   :  { %10847 = vst [vmem:[#allocation136_spill] sm:$0xff] %v7708_v59  ;;  %v7710_v17 = vpop.permute.xlu0 %971  ;;  %v7712_v22 = vpop.permute.xlu1 %967  ;;  %v7717_v52 = vmul.f32 %v10851_v34, %v10850_v6  ;;  %v7720_v21 = vrot.slane %v1466_v13, %v6948_v39  ;;  %v7723_v20 = vrot.slane %v2362_v31, %v6948_v39  ;;  %v10855_v59 = vld [vmem:[#allocation36_spill] sm:$0xff]  ;;  %v2875_v58 = vadd.f32 %v2874_v57, %v2873_v60  ;;  %v10857_v31 = vld [vmem:[#allocation70_spill] sm:$0xff] }
 0x372   :  { %10848 = vst [vmem:[#allocation137_spill] sm:$0xff] %v7710_v17  ;;  %10849 = vst [vmem:[#allocation138_spill] sm:$0xff] %v7712_v22  ;;  %v7728_v17 = vmul.f32 %v10851_v34, %v10855_v59  ;;  %v1449_v13 = vrot.slane %v1433_v56, %v7122_v25  ;;  %v7742_v57 = vpop.eup %6340  ;;  %v7753_v47 = vrot.slane %v2345_v24, %v6948_v39  ;;  %6344 = vtanh.f32 %v7659_v3 }
 0x373   :  { %10852 = vst [vmem:[#allocation67_spill] sm:$0xff] %v7717_v52  ;;  %10853 = vst [vmem:[#allocation139_spill] sm:$0xff] %v7720_v21  ;;  %3164 = vrot.lane.b32.xlu0 %v7567_v48, %s6695_s28  ;;  %3166 = vrot.lane.b32.xlu1 %v7563_v46, %s6695_s28  ;;  %v7746_v48 = vmul.f32 %v10857_v31, %v10850_v6  ;;  %v1463_v41 = vrot.slane %v1435_v19, %v7122_v25 }
 0x374   :  { %10854 = vst [vmem:[#allocation140_spill] sm:$0xff] %v7723_v20  ;;  %10856 = vst [vmem:[#allocation141_spill] sm:$0xff] %v7728_v17  ;;  %v7738_v20 = vmul.f32 %v10857_v31, %v10855_v59  ;;  %v2359_v43 = vrot.slane %v2331_v2, %v7122_v25  ;;  %v1465_v34 = vcombine.high %v1449_v13, %v1449_v13  ;;  %v2876_v31 = vrot.slane %v2875_v58, 2 }
 0x375   :  { %v7748_v46 = vpop.permute.xlu0 %982  ;;  %v7750_v56 = vpop.permute.xlu1 %978  ;;  %10860 = vst [vmem:[#allocation143_spill] sm:$0xff] %v7753_v47  ;;  %v2361_v59 = vcombine.high %v2345_v24, %v2345_v24  ;;  %v2274_v60 = vrot.slane %v7615_v23, %v7122_v25  ;;  %v7765_v6 = vrot.slane %v1449_v13, %v6948_v39  ;;  %v1843_v2 = vmul.f32 %v7316_v45, %v7072_v33  ;;  %v10862_v24 = vld [vmem:[#allocation38_spill] sm:$0xff]  ;;  %v10867_v13 = vld [vmem:[#allocation69_spill] sm:$0xff] }
 0x376   :  { %10858 = vst [vmem:[#allocation70_spill] sm:$0xff] %v7748_v46  ;;  %10859 = vst [vmem:[#allocation142_spill] sm:$0xff] %v7750_v56  ;;  %v7772_v63 = vmul.f32 %v10863_v38, %v10862_v24  ;;  %v7776_v52 = vmul.f32 %v10863_v38, %v10865_v14  ;;  %v7784_v19 = vmul.f32 %v10867_v13, %v10862_v24 }
 0x377   :  { %3540 = vrot.lane.b32.xlu0 %v7588_v1, %s6695_s28  ;;  %3542 = vrot.lane.b32.xlu1 %v7584_v29, %s6695_s28  ;;  %10861 = vst [vmem:[#allocation144_spill] sm:$0xff] %v7765_v6  ;;  %v1378_v1 = vrot.slane %v7742_v57, %v7122_v25  ;;  %v1844_v29 = vmul.f32 %v7316_v45, %v7074_v50 }
 0x378   :  { %10864 = vst [vmem:[#allocation68_spill] sm:$0xff] %v7772_v63  ;;  %10866 = vst [vmem:[#allocation145_spill] sm:$0xff] %v7776_v52  ;;  %v7788_v17 = vmul.f32 %v10867_v13, %v10865_v14  ;;  %v7795_v38 = vrot.slane %v1463_v41, %v6948_v39  ;;  %v7798_v6 = vrot.slane %v2359_v43, %v6948_v39  ;;  %v1955_v43 = vsub.f32 1.0, %v1843_v2  ;;  %v10875_v14 = vld [vmem:[#allocation74_spill] sm:$0xff] }
 0x379   :  { %v7790_v53 = vpop.permute.xlu0 %993  ;;  %v7792_v47 = vpop.permute.xlu1 %989  ;;  %v7801_v45 = vrot.slane %v1465_v34, %v6948_v39  ;;  %v7804_v24 = vrot.slane %v2274_v60, %v7122_v25  ;;  %v1386_v56 = vcombine.high %v1378_v1, %v1378_v1  ;;  %v2282_v21 = vcombine.high %v2274_v60, %v2274_v60  ;;  %v10874_v34 = vld [vmem:[#allocation42_spill] sm:$0xff] }
 0x37a   :  { %10868 = vst [vmem:[#allocation69_spill] sm:$0xff] %v7790_v53  ;;  %10869 = vst [vmem:[#allocation146_spill] sm:$0xff] %v7792_v47  ;;  %v2877_v13 = vadd.f32 %v2876_v31, %v2875_v58  ;;  %v7811_v41 = vrot.slane %v2361_v59, %v6948_v39  ;;  %v1956_v60 = vsub.f32 1.0, %v1844_v29 }
 0x37b   :  { %10870 = vst [vmem:[#allocation147_spill] sm:$0xff] %v7795_v38  ;;  %10871 = vst [vmem:[#allocation148_spill] sm:$0xff] %v7798_v6  ;;  %3916 = vrot.lane.b32.xlu0 %v7628_v44, %s6695_s28  ;;  %3918 = vrot.lane.b32.xlu1 %v7624_v37, %s6695_s28  ;;  %v7816_v6 = vmul.f32 %v10875_v14, %v10874_v34  ;;  %v10879_v37 = vld [vmem:[#allocation71_spill] sm:$0xff]  ;;  %v6343_v38 = vpop.eup %6342 }
 0x37c   :  { %10872 = vst [vmem:[#allocation149_spill] sm:$0xff] %v7801_v45  ;;  %10873 = vst [vmem:[#allocation150_spill] sm:$0xff] %v7811_v41  ;;  %v10877_v45 = vld [vmem:[#allocation43_spill] sm:$0xff]  ;;  %v7825_v31 = vmul.f32 %v10879_v37, %v7072_v33  ;;  %v7829_v3 = vmul.f32 %v10879_v37, %v7074_v50  ;;  %v1394_v41 = vrot.slane %v1378_v1, %v7122_v25  ;;  %v2878_v52 = vrot.slane %v2877_v13, 1  ;;  %v10884_v1 = vld [vmem:[#allocation45_spill] sm:$0xff] }
 0x37d   :  { %10876 = vst [vmem:[#allocation74_spill] sm:$0xff] %v7816_v6  ;;  %v7820_v58 = vmul.f32 %v10875_v14, %v10877_v45  ;;  %v7831_v59 = vpop.permute.xlu0 %1004  ;;  %v7833_v2 = vpop.permute.xlu1 %1000  ;;  %v10882_v44 = vld [vmem:[#allocation75_spill] sm:$0xff]  ;;  %v7843_v33 = vrot.slane %v7804_v24, %v6948_v39  ;;  %v1408_v50 = vrot.slane %v1386_v56, %v7122_v25  ;;  %v2304_v37 = vrot.slane %v2282_v21, %v7122_v25  ;;  %v10887_v56 = vld [vmem:[#allocation54_spill] sm:$0xff] }
 0x37e   :  { %10880 = vst [vmem:[#allocation71_spill] sm:$0xff] %v7831_v59  ;;  %10881 = vst [vmem:[#allocation152_spill] sm:$0xff] %v7833_v2  ;;  %v7839_v29 = vmul.f32 %v10882_v44, %v10874_v34  ;;  %v7849_v2 = vmul.f32 %v10882_v44, %v10877_v45  ;;  %v7853_v14 = vmul.f32 %v7319_v28, %v10884_v1  ;;  %v7859_v34 = vmul.f32 0.0, %v1955_v43  ;;  %v6542_v21 = vld [vmem:[%s10363_s8] ss:$0 sm:$0xff]  ;;  %v10889_v59 = vld [vmem:[#allocation44_spill] sm:$0xff] }
 0x37f   :  { %10878 = vst [vmem:[#allocation151_spill] sm:$0xff] %v7820_v58  ;;  %10883 = vst [vmem:[#allocation75_spill] sm:$0xff] %v7843_v33  ;;  %4292 = vrot.lane.b32.xlu0 %v7667_v26, %s6695_s28  ;;  %4294 = vrot.lane.b32.xlu1 %v7652_v8, %s6695_s28  ;;  %v7865_v63 = vadd.f32 %v6542_v21, %v10887_v56  ;;  %v7867_v44 = vmul.f32 0.0, %v1956_v60  ;;  %v7873_v26 = vmul.f32 %v7319_v28, %v10889_v59  ;;  %v10891_v8 = vld [vmem:[#allocation80_spill] sm:$0xff]  ;;  %v10895_v33 = vld [vmem:[#allocation46_spill] sm:$0xff]  ;;  %s6696_s8 = smov 112  }
 0x380   :  { %10885 = vst [vmem:[#allocation153_spill] sm:$0xff] %v7853_v14  ;;  %10886 = vst [vmem:[#allocation154_spill] sm:$0xff] %v7859_v34  ;;  %v7877_v43 = vmul.f32 %v10891_v8, %v10889_v59  ;;  %v530_v21 = vadd.f32 1.0, %v6343_v38  ;;  %v7884_v60 = vrot.slane %v1394_v41, %v6948_v39  ;;  %v7888_v56 = vmul.f32 %v10891_v8, %v10884_v1  ;;  %v10896_v45 = vld [vmem:[#allocation81_spill] sm:$0xff]  ;;  %v10900_v38 = vld [vmem:[#allocation82_spill] sm:$0xff] }
 0x381   :  { %10888 = vst [vmem:[#allocation54_spill] sm:$0xff] %v7867_v44  ;;  %10890 = vst [vmem:[#allocation155_spill] sm:$0xff] %v7873_v26  ;;  %v7879_v34 = vpop.permute.xlu0 %1015  ;;  %v7881_v53 = vpop.permute.xlu1 %1011  ;;  %v7892_v28 = vmul.f32 %v10896_v45, %v10895_v33  ;;  %v7895_v6 = vrot.slane %v1408_v50, %v6948_v39  ;;  %v7898_v59 = vrot.slane %v2304_v37, %v6948_v39 }
 0x382   :  { %10892 = vst [vmem:[#allocation80_spill] sm:$0xff] %v7879_v34  ;;  %10893 = vst [vmem:[#allocation156_spill] sm:$0xff] %v7881_v53  ;;  %v2879_v58 = vadd.f32 %v2878_v52, %v2877_v13  ;;  %v7902_v44 = vmul.f32 %v10900_v38, %v10895_v33  ;;  %v1416_v8 = vcombine.high %v1394_v41, %v1394_v41  ;;  %v10901_v53 = vld [vmem:[#allocation57_spill] sm:$0xff]  ;;  %v5969_v13 = vmul.f32 -1.442695, %v7865_v63  ;;  %v7914_v33 = vpop.eup %6344 }
 0x383   :  { %10894 = vst [vmem:[#allocation157_spill] sm:$0xff] %v7884_v60  ;;  %10897 = vst [vmem:[#allocation81_spill] sm:$0xff] %v7892_v28  ;;  %4668 = vrot.lane.b32.xlu0 %v7704_v0, %s6695_s28  ;;  %4670 = vrot.lane.b32.xlu1 %v7696_v62, %s6695_s28  ;;  %v2864_v34 = vmul.f32 0.0, %v10901_v53  ;;  %v1371_v52 = vcombine.high %v7742_v57, %v7742_v57  ;;  %6346 = vrcp.f32 %v530_v21  ;;  %v10928_v28 = vld [vmem:[#allocation53_spill] sm:$0xff] }
 0x384   :  { %10898 = vst [vmem:[#allocation158_spill] sm:$0xff] %v7895_v6  ;;  %10899 = vst [vmem:[#allocation159_spill] sm:$0xff] %v7898_v59  ;;  %v10902_v6 = vld [vmem:[#allocation58_spill] sm:$0xff]  ;;  %v10903_v59 = vld [vmem:[#allocation47_spill] sm:$0xff]  ;;  %v2312_v41 = vcombine.high %v7804_v24, %v7804_v24  ;;  %v10907_v57 = vcombine.high %v7615_v23, %v7615_v23  ;;  %v1418_v46 = vcombine.high %v1408_v50, %v1408_v50  ;;  %6348 = vpow2.f32 %v5969_v13 }
 0x385   :  { %v2863_v60 = vmul.f32 0.0, %v10902_v6  ;;  %v7918_v0 = vmul.f32 %v10896_v45, %v10903_v59  ;;  %v7920_v47 = vpop.permute.xlu0 %5540  ;;  %v7922_v62 = vpop.permute.xlu1 %5544  ;;  %v7932_v14 = vmul.f32 %v10900_v38, %v10903_v59  ;;  %v7938_v21 = vsel %vm2937_vm3, %v7679_v9, %v2879_v58  ;;  %v10909_v24 = vld [vmem:[#allocation86_spill] sm:$0xff] }
 0x386   :  { %10905 = vst [vmem:[#allocation57_spill] sm:$0xff] %v7920_v47  ;;  %10906 = vst [vmem:[#allocation58_spill] sm:$0xff] %v7922_v62  ;;  %v2281_v1 = vrot.slane %v10907_v57, %v7122_v25  ;;  %v2314_v47 = vcombine.high %v2304_v37, %v2304_v37  ;;  %v10908_v62 = vld [vmem:[#allocation49_spill] sm:$0xff]  ;;  %v7949_v23 = vrot.slane %v1416_v8, %v6948_v39  ;;  %v10912_v37 = vld [vmem:[#allocation48_spill] sm:$0xff]  ;;  %6350 = vtanh.f32 %v7865_v63 }
 0x387   :  { %10904 = vst [vmem:[#allocation82_spill] sm:$0xff] %v7918_v0  ;;  %v7942_v22 = vmul.f32 %v10909_v24, %v10908_v62  ;;  %5044 = vrot.lane.b32.xlu0 %v7746_v48, %s6695_s28  ;;  %5046 = vrot.lane.b32.xlu1 %v7738_v20, %s6695_s28  ;;  %v7954_v38 = vmul.f32 %v10909_v24, %v10912_v37  ;;  %v10914_v57 = vld [vmem:[#allocation83_spill] sm:$0xff] }
 0x388   :  { %10911 = vst [vmem:[#allocation160_spill] sm:$0xff] %v7949_v23  ;;  %v2894_v9 = vadd.f32 %v2864_v34, %v2863_v60  ;;  %v1385_v58 = vrot.slane %v1371_v52, %v7122_v25  ;;  %v7959_v45 = vmul.f32 %v10914_v57, %v10912_v37  ;;  %v7963_v20 = vmul.f32 %v10914_v57, %v10908_v62  ;;  %v10918_v37 = vld [vmem:[#allocation51_spill] sm:$0xff] }
 0x389   :  { %10910 = vst [vmem:[#allocation86_spill] sm:$0xff] %v7942_v22  ;;  %10913 = vst [vmem:[#allocation161_spill] sm:$0xff] %v7954_v38  ;;  %v7965_v48 = vpop.permute.xlu0 %872  ;;  %v7967_v8 = vpop.permute.xlu1 %868  ;;  %v7970_v50 = vrot.slane %v2312_v41, %v6948_v39  ;;  %v2297_v34 = vrot.slane %v2281_v1, %v7122_v25  ;;  %v7974_v60 = vrot.slane %v1418_v46, %v6948_v39 }
 0x38a   :  { %v7977_v52 = vrot.slane %v2314_v47, %v6948_v39  ;;  %v1387_v13 = vcombine.high %v1385_v58, %v1385_v58  ;;  %v2283_v24 = vcombine.high %v2281_v1, %v2281_v1  ;;  %v7981_v57 = vmul.f32 %v7364_v55, %v10918_v37  ;;  %v10920_v47 = vld [vmem:[#allocation50_spill] sm:$0xff] }
 0x38b   :  { %10915 = vst [vmem:[#allocation83_spill] sm:$0xff] %v7970_v50  ;;  %10916 = vst [vmem:[#allocation162_spill] sm:$0xff] %v7974_v60  ;;  %5420 = vrot.lane.b32.xlu0 %v7788_v17, %s6695_s28  ;;  %5422 = vrot.lane.b32.xlu1 %v7784_v19, %s6695_s28  ;;  %v7992_v59 = vmul.f32 %v7364_v55, %v10920_v47  ;;  %v2895_v1 = vrot.slane %v2894_v9, 4  ;;  %v1401_v26 = vrot.slane %v1385_v58, %v7122_v25  ;;  %v10922_v17 = vld [vmem:[#allocation87_spill] sm:$0xff]  ;;  %v10931_v60 = vld [vmem:[#allocation88_spill] sm:$0xff] }
 0x38c   :  { %10917 = vst [vmem:[#allocation163_spill] sm:$0xff] %v7977_v52  ;;  %10919 = vst [vmem:[#allocation164_spill] sm:$0xff] %v7981_v57  ;;  %v7998_v50 = vmul.f32 %v10922_v17, %v10920_v47  ;;  %v8002_v19 = vmul.f32 %v10922_v17, %v10918_v37  ;;  %v8009_v55 = vrot.slane %v2297_v34, %v6948_v39  ;;  %v10926_v17 = vld [vmem:[#allocation52_spill] sm:$0xff] }
 0x38d   :  { %10921 = vst [vmem:[#allocation165_spill] sm:$0xff] %v7992_v59  ;;  %v8004_v46 = vpop.permute.xlu0 %883  ;;  %v8006_v62 = vpop.permute.xlu1 %879  ;;  %v2418_v58 = vrot.slane %v7914_v33, %v7122_v25  ;;  %v1415_v52 = vrot.slane %v1387_v13, %v7122_v25  ;;  %v2311_v41 = vrot.slane %v2283_v24, %v7122_v25  ;;  %v1417_v47 = vcombine.high %v1401_v26, %v1401_v26 }
 0x38e   :  { %10923 = vst [vmem:[#allocation87_spill] sm:$0xff] %v8004_v46  ;;  %10924 = vst [vmem:[#allocation166_spill] sm:$0xff] %v8006_v62  ;;  %v2313_v38 = vcombine.high %v2297_v34, %v2297_v34  ;;  %v8015_v22 = vpop.eup %6346  ;;  %v8019_v37 = vmul.f32 %v7367_v12, %v10926_v17  ;;  %v8023_v0 = vmul.f32 %v7367_v12, %v10928_v28 }
 0x38f   :  { %10925 = vst [vmem:[#allocation167_spill] sm:$0xff] %v8009_v55  ;;  %3160 = vrot.lane.b32.xlu0 %v7825_v31, %s6695_s28  ;;  %3162 = vrot.lane.b32.xlu1 %v7829_v3, %s6695_s28  ;;  %v2896_v13 = vadd.f32 %v2895_v1, %v2894_v9  ;;  %v8032_v24 = vrot.slane %v1401_v26, %v6948_v39  ;;  %v6349_v1 = vpop.eup %6348 }
 0x390   :  { %10927 = vst [vmem:[#allocation168_spill] sm:$0xff] %v8019_v37  ;;  %10929 = vst [vmem:[#allocation169_spill] sm:$0xff] %v8023_v0  ;;  %v1885_v12 = vmul.f32 %v7381_v35, %v10902_v6  ;;  %v8039_v23 = vmul.f32 %v10931_v60, %v10926_v17  ;;  %v8043_v31 = vmul.f32 %v10931_v60, %v10928_v28  ;;  %v10937_v28 = vld [vmem:[#allocation89_spill] sm:$0xff]  ;;  %v10942_v0 = vld [vmem:[#allocation59_spill] sm:$0xff]  ;;  %v8124_v46 = vpop.eup %6350 }
 0x391   :  { %10930 = vst [vmem:[#allocation170_spill] sm:$0xff] %v8032_v24  ;;  %v8045_v63 = vpop.permute.xlu0 %894  ;;  %v8047_v3 = vpop.permute.xlu1 %890  ;;  %v8050_v26 = vrot.slane %v2418_v58, %v7122_v25  ;;  %v1886_v9 = vmul.f32 %v7381_v35, %v10901_v53  ;;  %v8055_v55 = vrot.slane %v1415_v52, %v6948_v39  ;;  %v8058_v34 = vrot.slane %v2311_v41, %v6948_v39  ;;  %v10943_v41 = vld [vmem:[#allocation92_spill] sm:$0xff] }
 0x392   :  { %10932 = vst [vmem:[#allocation88_spill] sm:$0xff] %v8045_v63  ;;  %10933 = vst [vmem:[#allocation171_spill] sm:$0xff] %v8047_v3  ;;  %v8061_v60 = vrot.slane %v1417_v47, %v6948_v39  ;;  %v1522_v17 = vrot.slane %v8015_v22, %v7122_v25  ;;  %v8067_v59 = vmul.f32 %v10937_v28, %v10901_v53  ;;  %v2897_v57 = vrot.slane %v2896_v13, 2  ;;  %v10952_v63 = vld [vmem:[#allocation85_spill] sm:$0xff] }
 0x393   :  { %10934 = vst [vmem:[#allocation172_spill] sm:$0xff] %v8055_v55  ;;  %10935 = vst [vmem:[#allocation173_spill] sm:$0xff] %v8058_v34  ;;  %3536 = vrot.lane.b32.xlu0 %v7849_v2, %s6695_s28  ;;  %3538 = vrot.lane.b32.xlu1 %v7839_v29, %s6695_s28  ;;  %v8074_v35 = vrot.slane %v2313_v38, %v6948_v39  ;;  %v8080_v47 = vmul.f32 %v10937_v28, %v10902_v6  ;;  %v1997_v34 = vsub.f32 1.0, %v1885_v12  ;;  %v10945_v6 = vld [vmem:[#allocation93_spill] sm:$0xff]  ;;  %v10946_v12 = vld [vmem:[#allocation60_spill] sm:$0xff] }
 0x394   :  { %10936 = vst [vmem:[#allocation174_spill] sm:$0xff] %v8061_v60  ;;  %v1530_v53 = vcombine.high %v1522_v17, %v1522_v17  ;;  %v529_v55 = vadd.f32 1.0, %v6349_v1  ;;  %v8088_v29 = vrot.slane %v8050_v26, %v6948_v39  ;;  %v2426_v38 = vcombine.high %v2418_v58, %v2418_v58  ;;  %v10948_v58 = vld [vmem:[#allocation62_spill] sm:$0xff] }
 0x395   :  { %10938 = vst [vmem:[#allocation89_spill] sm:$0xff] %v8074_v35  ;;  %v8082_v60 = vpop.permute.xlu0 %905  ;;  %v8084_v2 = vpop.permute.xlu1 %901  ;;  %v1998_v52 = vsub.f32 1.0, %v1886_v9  ;;  %v8092_v37 = vmul.f32 %v10943_v41, %v10942_v0  ;;  %v8096_v28 = vmul.f32 %v10945_v6, %v10942_v0  ;;  %v8100_v35 = vmul.f32 %v10943_v41, %v10946_v12  ;;  %v10949_v9 = vld [vmem:[#allocation94_spill] sm:$0xff] }
 0x396   :  { %10939 = vst [vmem:[#allocation175_spill] sm:$0xff] %v8082_v60  ;;  %10940 = vst [vmem:[#allocation176_spill] sm:$0xff] %v8084_v2  ;;  %v1538_v1 = vrot.slane %v1522_v17, %v7122_v25  ;;  %v8105_v24 = vmul.f32 %v10945_v6, %v10946_v12  ;;  %v10951_v2 = vld [vmem:[#allocation84_spill] sm:$0xff]  ;;  %v2861_v3 = vmul.f32 0.0, %v10952_v63  ;;  %v2898_v41 = vadd.f32 %v2897_v57, %v2896_v13  ;;  %v10953_v17 = vld [vmem:[#allocation61_spill] sm:$0xff] }
 0x397   :  { %10941 = vst [vmem:[#allocation177_spill] sm:$0xff] %v8088_v29  ;;  %10944 = vst [vmem:[#allocation92_spill] sm:$0xff] %v8092_v37  ;;  %v8109_v29 = vmul.f32 %v10949_v9, %v10948_v58  ;;  %v2862_v60 = vmul.f32 0.0, %v10951_v2  ;;  %3912 = vrot.lane.b32.xlu0 %v7888_v56, %s6695_s28  ;;  %3914 = vrot.lane.b32.xlu1 %v7877_v43, %s6695_s28  ;;  %v8119_v0 = vmul.f32 %v10949_v9, %v10953_v17  ;;  %v10962_v37 = vld [vmem:[#allocation64_spill] sm:$0xff] }
 0x398   :  { %10947 = vst [vmem:[#allocation93_spill] sm:$0xff] %v8100_v35  ;;  %v1552_v6 = vrot.slane %v1530_v53, %v7122_v25  ;;  %v8122_v12 = vmul.f32 0.0, %v1997_v34  ;;  %6352 = vrcp.f32 %v529_v55  ;;  %v2448_v56 = vrot.slane %v2426_v38, %v7122_v25  ;;  %v10963_v35 = vld [vmem:[#allocation96_spill] sm:$0xff] }
 0x399   :  { %10950 = vst [vmem:[#allocation94_spill] sm:$0xff] %v8109_v29  ;;  %10954 = vst [vmem:[#allocation84_spill] sm:$0xff] %v8119_v0  ;;  %v8126_v62 = vpop.permute.xlu0 %916  ;;  %v8128_v18 = vpop.permute.xlu1 %912  ;;  %v1515_v43 = vcombine.high %v8015_v22, %v8015_v22  ;;  %v8133_v57 = vmul.f32 0.0, %v1998_v52  ;;  %v8140_v9 = vrot.slane %v1538_v1, %v6948_v39  ;;  %v2887_v22 = vadd.f32 %v2862_v60, %v2861_v3  ;;  %v10968_v29 = vld [vmem:[#allocation63_spill] sm:$0xff] }
 0x39a   :  { %10955 = vst [vmem:[#allocation85_spill] sm:$0xff] %v8122_v12  ;;  %10956 = vst [vmem:[#allocation178_spill] sm:$0xff] %v8126_v62  ;;  %v10960_v12 = vld [vmem:[#allocation95_spill] sm:$0xff]  ;;  %v2899_v53 = vrot.slane %v2898_v41, 1  ;;  %v8156_v34 = vrot.slane %v1552_v6, %v6948_v39  ;;  %v1560_v13 = vcombine.high %v1538_v1, %v1538_v1  ;;  %v8175_v1 = vmul.f32 %v10963_v35, %v10968_v29 }
 0x39b   :  { %10957 = vst [vmem:[#allocation179_spill] sm:$0xff] %v8128_v18  ;;  %10958 = vst [vmem:[#allocation180_spill] sm:$0xff] %v8133_v57  ;;  %v8144_v55 = vmul.f32 %v10960_v12, %v10953_v17  ;;  %v8148_v38 = vmul.f32 %v10960_v12, %v10948_v58  ;;  %4288 = vrot.lane.b32.xlu0 %v7932_v14, %s6695_s28  ;;  %4290 = vrot.lane.b32.xlu1 %v7902_v44, %s6695_s28  ;;  %v10970_v17 = vld [vmem:[#allocation97_spill] sm:$0xff] }
 0x39c   :  { %10959 = vst [vmem:[#allocation181_spill] sm:$0xff] %v8140_v9  ;;  %10961 = vst [vmem:[#allocation95_spill] sm:$0xff] %v8156_v34  ;;  %v8161_v12 = vmul.f32 %v10963_v35, %v10962_v37  ;;  %v8168_v14 = vrot.slane %v2448_v56, %v6948_v39  ;;  %v2456_v44 = vcombine.high %v8050_v26, %v8050_v26  ;;  %v10972_v26 = vld [vmem:[#allocation66_spill] sm:$0xff]  ;;  %v2888_v35 = vrot.slane %v2887_v22, 4 }
 0x39d   :  { %v8163_v3 = vpop.permute.xlu0 %927  ;;  %v8165_v60 = vpop.permute.xlu1 %923  ;;  %v1529_v52 = vrot.slane %v1515_v43, %v7122_v25  ;;  %10969 = vst [vmem:[#allocation185_spill] sm:$0xff] %v8175_v1  ;;  %v8179_v0 = vmul.f32 %v10970_v17, %v10968_v29  ;;  %v1562_v58 = vcombine.high %v1552_v6, %v1552_v6  ;;  %v10971_v57 = vcombine.high %v7914_v33, %v7914_v33  ;;  %v10974_v33 = vld [vmem:[#allocation65_spill] sm:$0xff]  ;;  %v10991_v1 = vld [vmem:[#allocation76_spill] sm:$0xff] }
 0x39e   :  { %10964 = vst [vmem:[#allocation96_spill] sm:$0xff] %v8161_v12  ;;  %10965 = vst [vmem:[#allocation182_spill] sm:$0xff] %v8163_v3  ;;  %v8191_v43 = vmul.f32 %v7434_v40, %v10972_v26  ;;  %v2458_v6 = vcombine.high %v2448_v56, %v2448_v56  ;;  %v8197_v29 = vadd.f32 %v2899_v53, %v2898_v41  ;;  %v10977_v3 = vld [vmem:[#allocation98_spill] sm:$0xff] }
 0x39f   :  { %10966 = vst [vmem:[#allocation183_spill] sm:$0xff] %v8165_v60  ;;  %10967 = vst [vmem:[#allocation184_spill] sm:$0xff] %v8168_v14  ;;  %v2425_v34 = vrot.slane %v10971_v57, %v7122_v25  ;;  %v8187_v14 = vmul.f32 %v10970_v17, %v10962_v37  ;;  %4664 = vrot.lane.b32.xlu0 %v7963_v20, %s6695_s28  ;;  %4666 = vrot.lane.b32.xlu1 %v7959_v45, %s6695_s28 }
 0x3a0   :  { %10973 = vst [vmem:[#allocation97_spill] sm:$0xff] %v8191_v43  ;;  %v8201_v57 = vmul.f32 %v7434_v40, %v10974_v33  ;;  %v8204_v17 = vrot.slane %v1560_v13, %v6948_v39  ;;  %v1531_v37 = vcombine.high %v1529_v52, %v1529_v52  ;;  %v8208_v9 = vmul.f32 %v10977_v3, %v10974_v33 }
 0x3a1   :  { %v8210_v60 = vpop.permute.xlu0 %938  ;;  %v8212_v20 = vpop.permute.xlu1 %934  ;;  %v8215_v45 = vrot.slane %v2456_v44, %v6948_v39  ;;  %v1545_v41 = vrot.slane %v1529_v52, %v7122_v25  ;;  %v8221_v56 = vmul.f32 %v10977_v3, %v10972_v26  ;;  %v8224_v13 = vrot.slane %v1562_v58, %v6948_v39  ;;  %v10982_v44 = vld [vmem:[#allocation72_spill] sm:$0xff] }
 0x3a2   :  { %10975 = vst [vmem:[#allocation186_spill] sm:$0xff] %v8201_v57  ;;  %10976 = vst [vmem:[#allocation187_spill] sm:$0xff] %v8204_v17  ;;  %v2441_v53 = vrot.slane %v2425_v34, %v7122_v25  ;;  %v2427_v33 = vcombine.high %v2425_v34, %v2425_v34  ;;  %v8227_v17 = vpop.eup %6352  ;;  %v8234_v52 = vrot.slane %v2458_v6, %v6948_v39  ;;  %v10984_v34 = vld [vmem:[#allocation73_spill] sm:$0xff] }
 0x3a3   :  { %10978 = vst [vmem:[#allocation98_spill] sm:$0xff] %v8210_v60  ;;  %10979 = vst [vmem:[#allocation188_spill] sm:$0xff] %v8212_v20  ;;  %v2889_v20 = vadd.f32 %v2888_v35, %v2887_v22  ;;  %5040 = vrot.lane.b32.xlu0 %v8002_v19, %s6695_s28  ;;  %5042 = vrot.lane.b32.xlu1 %v7998_v50, %s6695_s28  ;;  %v8240_v40 = vmul.f32 %v7448_v16, %v10982_v44  ;;  %v10986_v50 = vld [vmem:[#allocation101_spill] sm:$0xff] }
 0x3a4   :  { %10980 = vst [vmem:[#allocation189_spill] sm:$0xff] %v8215_v45  ;;  %10981 = vst [vmem:[#allocation190_spill] sm:$0xff] %v8234_v52  ;;  %v8244_v22 = vmul.f32 %v7448_v16, %v10984_v34  ;;  %v1559_v19 = vrot.slane %v1531_v37, %v7122_v25  ;;  %v8250_v6 = vmul.f32 %v10986_v50, %v10982_v44 }
 0x3a5   :  { %10983 = vst [vmem:[#allocation191_spill] sm:$0xff] %v8240_v40  ;;  %v8254_v3 = vmul.f32 %v10986_v50, %v10984_v34  ;;  %v8256_v58 = vpop.permute.xlu0 %5529  ;;  %v8258_v43 = vpop.permute.xlu1 %5533  ;;  %v8261_v26 = vrot.slane %v1545_v41, %v6948_v39  ;;  %v2370_v16 = vrot.slane %v8124_v46, %v7122_v25  ;;  %v8266_v37 = vrot.slane %v2441_v53, %v6948_v39 }
 0x3a6   :  { %10985 = vst [vmem:[#allocation192_spill] sm:$0xff] %v8244_v22  ;;  %10987 = vst [vmem:[#allocation101_spill] sm:$0xff] %v8256_v58  ;;  %v2455_v35 = vrot.slane %v2427_v33, %v7122_v25  ;;  %v1561_v44 = vcombine.high %v1545_v41, %v1545_v41  ;;  %v1474_v50 = vrot.slane %v8227_v17, %v7122_v25  ;;  %v2890_v34 = vrot.slane %v2889_v20, 2  ;;  %v10993_v41 = vld [vmem:[#allocation77_spill] sm:$0xff] }
 0x3a7   :  { %10988 = vst [vmem:[#allocation193_spill] sm:$0xff] %v8258_v43  ;;  %10989 = vst [vmem:[#allocation194_spill] sm:$0xff] %v8261_v26  ;;  %5416 = vrot.lane.b32.xlu0 %v8043_v31, %s6695_s28  ;;  %5418 = vrot.lane.b32.xlu1 %v8039_v23, %s6695_s28  ;;  %v2457_v43 = vcombine.high %v2441_v53, %v2441_v53  ;;  %v1871_v58 = vmul.f32 %v7477_v30, %v10952_v63 }
 0x3a8   :  { %10990 = vst [vmem:[#allocation195_spill] sm:$0xff] %v8266_v37  ;;  %v1872_v57 = vmul.f32 %v7477_v30, %v10951_v2  ;;  %v8281_v33 = vmul.f32 %v7454_v15, %v10991_v1  ;;  %v8285_v12 = vmul.f32 %v7454_v15, %v10993_v41  ;;  %v8288_v31 = vrot.slane %v1559_v19, %v6948_v39 }
 0x3a9   :  { %v8293_v53 = vmul.f32 %v7461_v7, %v10991_v1  ;;  %v8295_v37 = vpop.permute.xlu0 %1103  ;;  %v8297_v30 = vpop.permute.xlu1 %1099  ;;  %v8300_v26 = vrot.slane %v2370_v16, %v7122_v25  ;;  %v1482_v52 = vcombine.high %v1474_v50, %v1474_v50  ;;  %v8305_v19 = vmul.f32 %v7461_v7, %v10993_v41  ;;  %v10998_v7 = vld [vmem:[#allocation91_spill] sm:$0xff]  ;;  %v10999_v41 = vld [vmem:[#allocation109_spill] sm:$0xff] }
 0x3aa   :  { %10992 = vst [vmem:[#allocation196_spill] sm:$0xff] %v8281_v33  ;;  %10994 = vst [vmem:[#allocation197_spill] sm:$0xff] %v8285_v12  ;;  %v8308_v23 = vrot.slane %v2455_v35, %v6948_v39  ;;  %v2378_v22 = vcombine.high %v2370_v16, %v2370_v16  ;;  %v1490_v1 = vrot.slane %v1474_v50, %v7122_v25  ;;  %v1983_v15 = vsub.f32 1.0, %v1871_v58 }
 0x3ab   :  { %10995 = vst [vmem:[#allocation198_spill] sm:$0xff] %v8288_v31  ;;  %v2891_v31 = vadd.f32 %v2890_v34, %v2889_v20  ;;  %3172 = vrot.lane.b32.xlu0 %v8080_v47, %s6695_s28  ;;  %3174 = vrot.lane.b32.xlu1 %v8067_v59, %s6695_s28  ;;  %v8316_v45 = vrot.slane %v1561_v44, %v6948_v39  ;;  %v1984_v40 = vsub.f32 1.0, %v1872_v57  ;;  %v11002_v34 = vld [vmem:[#allocation105_spill] sm:$0xff]  ;;  %v11003_v44 = vld [vmem:[#allocation90_spill] sm:$0xff] }
 0x3ac   :  { %10996 = vst [vmem:[#allocation199_spill] sm:$0xff] %v8308_v23  ;;  %v8320_v35 = vmul.f32 %v10999_v41, %v10998_v7  ;;  %v8323_v16 = vrot.slane %v2457_v43, %v6948_v39  ;;  %v8329_v59 = vmul.f32 %v11002_v34, %v10951_v2  ;;  %v8333_v58 = vmul.f32 %v10999_v41, %v11003_v44  ;;  %v11008_v2 = vld [vmem:[#allocation110_spill] sm:$0xff] }
 0x3ad   :  { %10997 = vst [vmem:[#allocation200_spill] sm:$0xff] %v8316_v45  ;;  %v8335_v57 = vpop.permute.xlu0 %1114  ;;  %v8337_v50 = vpop.permute.xlu1 %1110  ;;  %v8341_v43 = vrot.slane %v8300_v26, %v6948_v39  ;;  %v1504_v20 = vrot.slane %v1482_v52, %v7122_v25  ;;  %v8346_v47 = vmul.f32 %v11002_v34, %v10952_v63  ;;  %v8350_v33 = vmul.f32 %v11008_v2, %v11003_v44 }
 0x3ae   :  { %11000 = vst [vmem:[#allocation109_spill] sm:$0xff] %v8320_v35  ;;  %11001 = vst [vmem:[#allocation201_spill] sm:$0xff] %v8323_v16  ;;  %v2400_v41 = vrot.slane %v2378_v22, %v7122_v25  ;;  %v8354_v12 = vrot.slane %v1490_v1, %v6948_v39  ;;  %v2892_v16 = vrot.slane %v2891_v31, 1  ;;  %v8358_v45 = vmul.f32 %v11008_v2, %v10998_v7 }
 0x3af   :  { %11004 = vst [vmem:[#allocation105_spill] sm:$0xff] %v8333_v58  ;;  %11005 = vst [vmem:[#allocation202_spill] sm:$0xff] %v8335_v57  ;;  %3548 = vrot.lane.b32.xlu0 %v8105_v24, %s6695_s28  ;;  %3550 = vrot.lane.b32.xlu1 %v8096_v28, %s6695_s28  ;;  %v8364_v63 = vmul.f32 0.0, %v1983_v15  ;;  %v8366_v52 = vmul.f32 0.0, %v1984_v40  ;;  %v2868_v22 = vmul.f32 0.0, %v7632_v10  ;;  %v2867_v34 = vmul.f32 0.0, %v7634_v42 }
 0x3b0   :  { %11006 = vst [vmem:[#allocation203_spill] sm:$0xff] %v8337_v50  ;;  %11007 = vst [vmem:[#allocation204_spill] sm:$0xff] %v8341_v43  ;;  %v1467_v44 = vcombine.high %v8227_v17, %v8227_v17  ;;  %v8378_v28 = vrot.slane %v1504_v20, %v6948_v39  ;;  %v1512_v15 = vcombine.high %v1490_v1, %v1490_v1  ;;  %v11017_v17 = vld [vmem:[#allocation100_spill] sm:$0xff]  ;;  %v2866_v1 = vmul.f32 0.0, %v7965_v48 }
 0x3b1   :  { %11009 = vst [vmem:[#allocation110_spill] sm:$0xff] %v8354_v12  ;;  %11010 = vst [vmem:[#allocation205_spill] sm:$0xff] %v8364_v63  ;;  %v8373_v7 = vpop.permute.xlu0 %1125  ;;  %v8375_v24 = vpop.permute.xlu1 %1121  ;;  %v2408_v40 = vcombine.high %v8300_v26, %v8300_v26  ;;  %v11015_v63 = vld [vmem:[#allocation99_spill] sm:$0xff]  ;;  %v8389_v2 = vmul.f32 %v7500_v54, %v11017_v17  ;;  %v8392_v35 = vrot.slane %v2400_v41, %v6948_v39 }
 0x3b2   :  { %11011 = vst [vmem:[#allocation206_spill] sm:$0xff] %v8366_v52  ;;  %11012 = vst [vmem:[#allocation207_spill] sm:$0xff] %v8373_v7  ;;  %v8385_v43 = vmul.f32 %v7500_v54, %v11015_v63  ;;  %v1514_v12 = vcombine.high %v1504_v20, %v1504_v20  ;;  %v2893_v23 = vadd.f32 %v2892_v16, %v2891_v31 }
 0x3b3   :  { %11013 = vst [vmem:[#allocation208_spill] sm:$0xff] %v8375_v24  ;;  %11014 = vst [vmem:[#allocation209_spill] sm:$0xff] %v8378_v28  ;;  %v2865_v28 = vmul.f32 0.0, %v7967_v8  ;;  %3924 = vrot.lane.b32.xlu0 %v8148_v38, %s6695_s28  ;;  %3926 = vrot.lane.b32.xlu1 %v8144_v55, %s6695_s28  ;;  %v2410_v26 = vcombine.high %v2400_v41, %v2400_v41  ;;  %v8402_v54 = vmul.f32 %v7519_v32, %v11015_v63  ;;  %v11021_v38 = vld [vmem:[#allocation102_spill] sm:$0xff] }
 0x3b4   :  { %11016 = vst [vmem:[#allocation210_spill] sm:$0xff] %v8385_v43  ;;  %11018 = vst [vmem:[#allocation211_spill] sm:$0xff] %v8389_v2  ;;  %v2908_v52 = vadd.f32 %v2868_v22, %v2867_v34  ;;  %v1481_v58 = vrot.slane %v1467_v44, %v7122_v25  ;;  %v11020_v31 = vcombine.high %v8124_v46, %v8124_v46  ;;  %v2872_v2 = vmul.f32 0.0, %v8295_v37  ;;  %v11048_v43 = vld [vmem:[#allocation114_spill] sm:$0xff] }
 0x3b5   :  { %11019 = vst [vmem:[#allocation212_spill] sm:$0xff] %v8392_v35  ;;  %v8411_v20 = vmul.f32 %v7519_v32, %v11017_v17  ;;  %v8415_v55 = vmul.f32 %v7526_v36, %v11021_v38  ;;  %v8417_v41 = vpop.permute.xlu0 %1136  ;;  %v8419_v63 = vpop.permute.xlu1 %1132  ;;  %v8422_v22 = vrot.slane %v1512_v15, %v6948_v39  ;;  %v8425_v44 = vrot.slane %v2408_v40, %v6948_v39  ;;  %v11027_v32 = vld [vmem:[#allocation103_spill] sm:$0xff] }
 0x3b6   :  { %v2377_v16 = vrot.slane %v11020_v31, %v7122_v25  ;;  %11023 = vst [vmem:[#allocation214_spill] sm:$0xff] %v8417_v41  ;;  %11024 = vst [vmem:[#allocation215_spill] sm:$0xff] %v8419_v63  ;;  %v8429_v46 = vmul.f32 %v7529_v4, %v11021_v38  ;;  %v8433_v34 = vmul.f32 %v7526_v36, %v11027_v32 }
 0x3b7   :  { %11022 = vst [vmem:[#allocation213_spill] sm:$0xff] %v8415_v55  ;;  %11025 = vst [vmem:[#allocation216_spill] sm:$0xff] %v8422_v22  ;;  %v8437_v31 = vmul.f32 %v7529_v4, %v11027_v32  ;;  %v8440_v17 = vrot.slane %v1514_v12, %v6948_v39  ;;  %v2940_v15 = vsel %vm2939_vm4, %v2893_v23, %v7938_v21  ;;  %4300 = vrot.lane.b32.xlu0 %v8187_v14, %s6695_s28  ;;  %v11031_v4 = vld [vmem:[#allocation107_spill] sm:$0xff]  ;;  %v11033_v23 = vld [vmem:[#allocation108_spill] sm:$0xff] }
 0x3b8   :  { %11026 = vst [vmem:[#allocation217_spill] sm:$0xff] %v8425_v44  ;;  %11028 = vst [vmem:[#allocation218_spill] sm:$0xff] %v8433_v34  ;;  %v2901_v40 = vadd.f32 %v2866_v1, %v2865_v28  ;;  %4302 = vrot.lane.b32.xlu1 %v8179_v0, %s6695_s28  ;;  %v8449_v36 = vrot.slane %v2410_v26, %v6948_v39  ;;  %v8454_v32 = vmul.f32 %v7537_v11, %v11031_v4 }
 0x3b9   :  { %11029 = vst [vmem:[#allocation219_spill] sm:$0xff] %v8440_v17  ;;  %v2909_v12 = vrot.slane %v2908_v52, 4  ;;  %v1497_v17 = vrot.slane %v1481_v58, %v7122_v25  ;;  %v2393_v21 = vrot.slane %v2377_v16, %v7122_v25  ;;  %v8460_v14 = vmul.f32 %v7540_v5, %v11031_v4  ;;  %v8470_v1 = vpop.permute.xlu0 %1147  ;;  %v8472_v26 = vpop.permute.xlu1 %1143 }
 0x3ba   :  { %11030 = vst [vmem:[#allocation220_spill] sm:$0xff] %v8449_v36  ;;  %11032 = vst [vmem:[#allocation221_spill] sm:$0xff] %v8454_v32  ;;  %v8464_v0 = vmul.f32 %v7537_v11, %v11033_v23  ;;  %v8468_v28 = vmul.f32 %v7540_v5, %v11033_v23  ;;  %v1483_v38 = vcombine.high %v1481_v58, %v1481_v58  ;;  %v2871_v36 = vmul.f32 0.0, %v8297_v30 }
 0x3bb   :  { %11035 = vst [vmem:[#allocation223_spill] sm:$0xff] %v8470_v1  ;;  %11036 = vst [vmem:[#allocation224_spill] sm:$0xff] %v8472_v26  ;;  %v2379_v44 = vcombine.high %v2377_v16, %v2377_v16  ;;  %v1513_v4 = vcombine.high %v1497_v17, %v1497_v17  ;;  %v2902_v22 = vrot.slane %v2901_v40, 4  ;;  %4676 = vrot.lane.b32.xlu0 %v8221_v56, %s6695_s28  ;;  %v11039_v56 = vld [vmem:[#allocation111_spill] sm:$0xff] }
 0x3bc   :  { %11034 = vst [vmem:[#allocation222_spill] sm:$0xff] %v8464_v0  ;;  %4678 = vrot.lane.b32.xlu1 %v8208_v9, %s6695_s28  ;;  %v8482_v11 = vsel %vm2941_vm5, %v8197_v29, %v2940_v15  ;;  %v2910_v23 = vadd.f32 %v2909_v12, %v2908_v52  ;;  %v8487_v35 = vrot.slane %v1497_v17, %v6948_v39  ;;  %v11040_v1 = vld [vmem:[#allocation115_spill] sm:$0xff]  ;;  %v11042_v9 = vld [vmem:[#allocation116_spill] sm:$0xff] }
 0x3bd   :  { %v8490_v16 = vrot.slane %v2393_v21, %v6948_v39  ;;  %v2409_v26 = vcombine.high %v2393_v21, %v2393_v21  ;;  %v8494_v41 = vmul.f32 %v11040_v1, %v11039_v56  ;;  %v8498_v29 = vmul.f32 %v11042_v9, %v11039_v56  ;;  %v11043_v15 = vld [vmem:[#allocation112_spill] sm:$0xff]  ;;  %v8504_v52 = vpop.permute.xlu0 %1158  ;;  %v8506_v17 = vpop.permute.xlu1 %1154 }
 0x3be   :  { %11037 = vst [vmem:[#allocation225_spill] sm:$0xff] %v8487_v35  ;;  %v8502_v5 = vmul.f32 %v11040_v1, %v11043_v15  ;;  %11045 = vst [vmem:[#allocation227_spill] sm:$0xff] %v8504_v52  ;;  %v1511_v12 = vrot.slane %v1483_v38, %v7122_v25  ;;  %v8511_v21 = vmul.f32 %v11042_v9, %v11043_v15  ;;  %v11081_v0 = vld [vmem:[#allocation144_spill] sm:$0xff] }
 0x3bf   :  { %11038 = vst [vmem:[#allocation226_spill] sm:$0xff] %v8490_v16  ;;  %11041 = vst [vmem:[#allocation115_spill] sm:$0xff] %v8494_v41  ;;  %v2922_v58 = vadd.f32 %v2872_v2, %v2871_v36  ;;  %v2407_v34 = vrot.slane %v2379_v44, %v7122_v25  ;;  %v8515_v56 = vrot.slane %v1513_v4, %v6948_v39  ;;  %v11049_v16 = vld [vmem:[#allocation118_spill] sm:$0xff]  ;;  %5052 = vrot.lane.b32.xlu0 %v8254_v3, %s6695_s28  ;;  %v11051_v25 = vld [vmem:[#allocation113_spill] sm:$0xff] }
 0x3c0   :  { %11044 = vst [vmem:[#allocation116_spill] sm:$0xff] %v8502_v5  ;;  %11046 = vst [vmem:[#allocation228_spill] sm:$0xff] %v8506_v17  ;;  %v8519_v1 = vmul.f32 %v11049_v16, %v11048_v43  ;;  %v2903_v35 = vadd.f32 %v2902_v22, %v2901_v40  ;;  %5054 = vrot.lane.b32.xlu1 %v8250_v6, %s6695_s28  ;;  %v1913_v2 = vmul.f32 %v7637_v61, %v7634_v42 }
 0x3c1   :  { %11047 = vst [vmem:[#allocation229_spill] sm:$0xff] %v8515_v56  ;;  %v8530_v44 = vmul.f32 %v11049_v16, %v11051_v25  ;;  %v2911_v36 = vrot.slane %v2910_v23, 2  ;;  %v8533_v4 = vrot.slane %v2409_v26, %v6948_v39  ;;  %v1914_v22 = vmul.f32 %v7637_v61, %v7632_v10  ;;  %v8537_v3 = vpop.permute.xlu0 %1169  ;;  %v8539_v40 = vpop.permute.xlu1 %1165  ;;  %v11057_v56 = vld [vmem:[#allocation117_spill] sm:$0xff]  ;;  %v11065_v16 = vld [vmem:[#allocation134_spill] sm:$0xff] }
 0x3c2   :  { %11050 = vst [vmem:[#allocation118_spill] sm:$0xff] %v8519_v1  ;;  %11054 = vst [vmem:[#allocation232_spill] sm:$0xff] %v8537_v3  ;;  %v8542_v6 = vrot.slane %v1511_v12, %v6948_v39  ;;  %v8549_v26 = vmul.f32 %v11057_v56, %v11051_v25  ;;  %v2923_v15 = vrot.slane %v2922_v58, 4  ;;  %v8552_v61 = vrot.slane %v2407_v34, %v6948_v39  ;;  %v11067_v1 = vld [vmem:[#allocation137_spill] sm:$0xff] }
 0x3c3   :  { %11052 = vst [vmem:[#allocation230_spill] sm:$0xff] %v8530_v44  ;;  %11053 = vst [vmem:[#allocation231_spill] sm:$0xff] %v8533_v4  ;;  %v8557_v12 = vmul.f32 %v11057_v56, %v11048_v43  ;;  %v2904_v4 = vrot.slane %v2903_v35, 2  ;;  %5428 = vrot.lane.b32.xlu0 %v8305_v19, %s6695_s28  ;;  %v2025_v38 = vsub.f32 1.0, %v1913_v2  ;;  %v2912_v9 = vadd.f32 %v2911_v36, %v2910_v23  ;;  %v11060_v56 = vld [vmem:[#allocation123_spill] sm:$0xff]  ;;  %v11062_v23 = vld [vmem:[#allocation132_spill] sm:$0xff] }
 0x3c4   :  { %11055 = vst [vmem:[#allocation233_spill] sm:$0xff] %v8539_v40  ;;  %11056 = vst [vmem:[#allocation234_spill] sm:$0xff] %v8542_v6  ;;  %5430 = vrot.lane.b32.xlu1 %v8293_v53, %s6695_s28  ;;  %v8566_v39 = vmul.f32 %v7655_v51, %v7671_v27  ;;  %v2026_v55 = vsub.f32 1.0, %v1914_v22  ;;  %v8571_v25 = vmul.f32 %v11060_v56, %v7632_v10  ;;  %v11064_v22 = vld [vmem:[#allocation138_spill] sm:$0xff] }
 0x3c5   :  { %11058 = vst [vmem:[#allocation117_spill] sm:$0xff] %v8552_v61  ;;  %v8575_v19 = vmul.f32 %v11060_v56, %v7634_v42  ;;  %v8579_v53 = vmul.f32 %v7655_v51, %v7669_v49  ;;  %v8583_v2 = vmul.f32 %v11062_v23, %v7669_v49  ;;  %v8585_v36 = vpop.permute.xlu0 %1026  ;;  %v8587_v34 = vpop.permute.xlu1 %1022  ;;  %v8591_v10 = vmul.f32 %v11065_v16, %v11064_v22 }
 0x3c6   :  { %11059 = vst [vmem:[#allocation235_spill] sm:$0xff] %v8566_v39  ;;  %11063 = vst [vmem:[#allocation132_spill] sm:$0xff] %v8585_v36  ;;  %v2924_v44 = vadd.f32 %v2923_v15, %v2922_v58  ;;  %v2870_v42 = vmul.f32 0.0, %v8585_v36  ;;  %v2869_v56 = vmul.f32 0.0, %v8587_v34  ;;  %v8597_v51 = vmul.f32 %v11062_v23, %v7671_v27  ;;  %v11071_v27 = vld [vmem:[#allocation136_spill] sm:$0xff] }
 0x3c7   :  { %11061 = vst [vmem:[#allocation123_spill] sm:$0xff] %v8579_v53  ;;  %11066 = vst [vmem:[#allocation134_spill] sm:$0xff] %v8591_v10  ;;  %v8601_v49 = vmul.f32 %v11065_v16, %v11067_v1  ;;  %v2905_v43 = vadd.f32 %v2904_v4, %v2903_v35  ;;  %3168 = vrot.lane.b32.xlu0 %v8346_v47, %s6695_s28  ;;  %v8607_v58 = vmul.f32 0.0, %v2025_v38  ;;  %v2913_v15 = vrot.slane %v2912_v9, 1  ;;  %v11072_v35 = vld [vmem:[#allocation70_spill] sm:$0xff]  ;;  %v11073_v4 = vld [vmem:[#allocation139_spill] sm:$0xff] }
 0x3c8   :  { %3170 = vrot.lane.b32.xlu1 %v8329_v59, %s6695_s28  ;;  %v2915_v41 = vadd.f32 %v2870_v42, %v2869_v56  ;;  %v8609_v5 = vmul.f32 0.0, %v2026_v55  ;;  %v8614_v16 = vmul.f32 %v11071_v27, %v11067_v1  ;;  %v8618_v32 = vmul.f32 %v11073_v4, %v11072_v35  ;;  %v11075_v47 = vld [vmem:[#allocation142_spill] sm:$0xff]  ;;  %v11085_v53 = vld [vmem:[#allocation71_spill] sm:$0xff] }
 0x3c9   :  { %11068 = vst [vmem:[#allocation236_spill] sm:$0xff] %v8601_v49  ;;  %11069 = vst [vmem:[#allocation237_spill] sm:$0xff] %v8607_v58  ;;  %v8622_v59 = vmul.f32 %v11073_v4, %v11075_v47  ;;  %v8624_v38 = vpop.permute.xlu0 %1037  ;;  %v8626_v42 = vpop.permute.xlu1 %1033  ;;  %v8631_v56 = vmul.f32 %v11071_v27, %v11064_v22  ;;  %v2925_v23 = vrot.slane %v2924_v44, 2  ;;  %v11080_v4 = vld [vmem:[#allocation146_spill] sm:$0xff]  ;;  %v2906_v6 = vrot.slane %v2905_v43, 1  ;;  %v11092_v49 = vld [vmem:[#allocation157_spill] sm:$0xff] }
 0x3ca   :  { %11070 = vst [vmem:[#allocation238_spill] sm:$0xff] %v8609_v5  ;;  %11074 = vst [vmem:[#allocation136_spill] sm:$0xff] %v8618_v32  ;;  %v2916_v1 = vrot.slane %v2915_v41, 4  ;;  %v11079_v5 = vld [vmem:[#allocation140_spill] sm:$0xff]  ;;  %v8640_v61 = vmul.f32 %v11081_v0, %v11080_v4  ;;  %v2914_v55 = vadd.f32 %v2913_v15, %v2912_v9  ;;  %v1899_v36 = vmul.f32 %v11092_v49, %v7967_v8 }
 0x3cb   :  { %11076 = vst [vmem:[#allocation139_spill] sm:$0xff] %v8622_v59  ;;  %11077 = vst [vmem:[#allocation239_spill] sm:$0xff] %v8624_v38  ;;  %v8636_v58 = vmul.f32 %v11079_v5, %v11072_v35  ;;  %3544 = vrot.lane.b32.xlu0 %v8358_v45, %s6695_s28  ;;  %v8649_v39 = vmul.f32 %v11079_v5, %v11075_v47  ;;  %v11083_v35 = vld [vmem:[#allocation69_spill] sm:$0xff]  ;;  %v11088_v38 = vld [vmem:[#allocation152_spill] sm:$0xff]  ;;  %v2926_v15 = vadd.f32 %v2925_v23, %v2924_v44 }
 0x3cc   :  { %11078 = vst [vmem:[#allocation240_spill] sm:$0xff] %v8626_v42  ;;  %11082 = vst [vmem:[#allocation140_spill] sm:$0xff] %v8640_v61  ;;  %3546 = vrot.lane.b32.xlu1 %v8350_v33, %s6695_s28  ;;  %v8653_v10 = vmul.f32 %v11081_v0, %v11083_v35  ;;  %v2917_v22 = vadd.f32 %v2916_v1, %v2915_v41  ;;  %v11086_v42 = vld [vmem:[#allocation147_spill] sm:$0xff]  ;;  %v1900_v44 = vmul.f32 %v11092_v49, %v7965_v48  ;;  %v11093_v23 = vld [vmem:[#allocation80_spill] sm:$0xff] }
 0x3cd   :  { %v8657_v45 = vmul.f32 %v11086_v42, %v11085_v53  ;;  %v8661_v33 = vmul.f32 %v11086_v42, %v11088_v38  ;;  %v8663_v27 = vpop.permute.xlu0 %1048  ;;  %v8665_v9 = vpop.permute.xlu1 %1044  ;;  %v11091_v41 = vld [vmem:[#allocation143_spill] sm:$0xff]  ;;  %v11094_v5 = vld [vmem:[#allocation149_spill] sm:$0xff]  ;;  %v11096_v32 = vld [vmem:[#allocation156_spill] sm:$0xff] }
 0x3ce   :  { %11084 = vst [vmem:[#allocation144_spill] sm:$0xff] %v8653_v10  ;;  %11090 = vst [vmem:[#allocation242_spill] sm:$0xff] %v8663_v27  ;;  %v8671_v1 = vmul.f32 %v11091_v41, %v11083_v35  ;;  %v2918_v47 = vrot.slane %v2917_v22, 2  ;;  %v8677_v42 = vmul.f32 %v11091_v41, %v11080_v4  ;;  %v2907_v27 = vadd.f32 %v2906_v6, %v2905_v43 }
 0x3cf   :  { %11087 = vst [vmem:[#allocation147_spill] sm:$0xff] %v8657_v45  ;;  %11089 = vst [vmem:[#allocation241_spill] sm:$0xff] %v8661_v33  ;;  %3920 = vrot.lane.b32.xlu0 %v8411_v20, %s6695_s28  ;;  %v8688_v35 = vmul.f32 %v11094_v5, %v11093_v23  ;;  %v8692_v41 = vmul.f32 %v11094_v5, %v11096_v32  ;;  %v11098_v20 = vld [vmem:[#allocation148_spill] sm:$0xff]  ;;  %v2927_v6 = vrot.slane %v2926_v15, 1  ;;  %v2012_v61 = vsub.f32 1.0, %v1900_v44  ;;  %v11107_v33 = vld [vmem:[#allocation75_spill] sm:$0xff] }
 0x3d0   :  { %3922 = vrot.lane.b32.xlu1 %v8402_v54, %s6695_s28  ;;  %v2919_v43 = vadd.f32 %v2918_v47, %v2917_v22  ;;  %v8697_v4 = vmul.f32 %v11098_v20, %v11085_v53  ;;  %v8701_v54 = vmul.f32 %v11098_v20, %v11088_v38  ;;  %v11101_v22 = vld [vmem:[#allocation150_spill] sm:$0xff]  ;;  %v2011_v53 = vsub.f32 1.0, %v1899_v36  ;;  %v11111_v44 = vld [vmem:[#allocation171_spill] sm:$0xff] }
 0x3d1   :  { %11095 = vst [vmem:[#allocation143_spill] sm:$0xff] %v8688_v35  ;;  %11097 = vst [vmem:[#allocation157_spill] sm:$0xff] %v8692_v41  ;;  %v8703_v49 = vpop.permute.xlu0 %1059  ;;  %v8705_v0 = vpop.permute.xlu1 %1055  ;;  %v8711_v47 = vmul.f32 %v11101_v22, %v11093_v23  ;;  %v8715_v59 = vmul.f32 %v11101_v22, %v11096_v32  ;;  %v11102_v20 = vld [vmem:[#allocation166_spill] sm:$0xff]  ;;  %v2944_v5 = vsel %vm2943_vm6, %v2907_v27, %v8482_v11  ;;  %v11105_v23 = vld [vmem:[#allocation87_spill] sm:$0xff] }
 0x3d2   :  { %11099 = vst [vmem:[#allocation149_spill] sm:$0xff] %v8703_v49  ;;  %11100 = vst [vmem:[#allocation148_spill] sm:$0xff] %v8705_v0  ;;  %v2920_v10 = vrot.slane %v2919_v43, 1  ;;  %v11103_v38 = vld [vmem:[#allocation158_spill] sm:$0xff]  ;;  %v8735_v0 = vmul.f32 %v11107_v33, %v7965_v48  ;;  %v2928_v45 = vadd.f32 %v2927_v6, %v2926_v15  ;;  %v11115_v32 = vld [vmem:[#allocation88_spill] sm:$0xff] }
 0x3d3   :  { %v8719_v49 = vmul.f32 %v11103_v38, %v11102_v20  ;;  %4296 = vrot.lane.b32.xlu0 %v8437_v31, %s6695_s28  ;;  %v8729_v36 = vmul.f32 %v11103_v38, %v11105_v23  ;;  %v11108_v31 = vld [vmem:[#allocation159_spill] sm:$0xff]  ;;  %v11135_v41 = vld [vmem:[#allocation182_spill] sm:$0xff] }
 0x3d4   :  { %4298 = vrot.lane.b32.xlu1 %v8429_v46, %s6695_s28  ;;  %v2921_v22 = vadd.f32 %v2920_v10, %v2919_v43  ;;  %v8739_v46 = vmul.f32 %v11107_v33, %v7967_v8  ;;  %v8743_v11 = vmul.f32 %v11108_v31, %v11105_v23  ;;  %v8747_v38 = vmul.f32 %v11108_v31, %v11102_v20  ;;  %v11112_v43 = vld [vmem:[#allocation160_spill] sm:$0xff]  ;;  %v11118_v6 = vld [vmem:[#allocation175_spill] sm:$0xff] }
 0x3d5   :  { %11104 = vst [vmem:[#allocation150_spill] sm:$0xff] %v8719_v49  ;;  %11106 = vst [vmem:[#allocation158_spill] sm:$0xff] %v8729_v36  ;;  %v8749_v10 = vpop.permute.xlu0 %1070  ;;  %v8751_v27 = vpop.permute.xlu1 %1066  ;;  %v8755_v48 = vmul.f32 %v11112_v43, %v11111_v44  ;;  %v2946_v8 = vsel %vm2945_vm7, %v2914_v55, %v2944_v5  ;;  %v8758_v33 = vmul.f32 0.0, %v2011_v53  ;;  %v8762_v23 = vmul.f32 %v11112_v43, %v11115_v32  ;;  %v11119_v55 = vld [vmem:[#allocation162_spill] sm:$0xff]  ;;  %v11121_v5 = vld [vmem:[#allocation176_spill] sm:$0xff] }
 0x3d6   :  { %11109 = vst [vmem:[#allocation75_spill] sm:$0xff] %v8749_v10  ;;  %11110 = vst [vmem:[#allocation159_spill] sm:$0xff] %v8751_v27  ;;  %v2948_v31 = vsel %vm2947_vm8, %v2921_v22, %v2946_v8  ;;  %v8769_v20 = vmul.f32 0.0, %v2012_v61  ;;  %v8774_v53 = vmul.f32 %v11119_v55, %v11118_v6  ;;  %v8778_v43 = vmul.f32 %v11119_v55, %v11121_v5  ;;  %v11124_v22 = vld [vmem:[#allocation170_spill] sm:$0xff]  ;;  %v11133_v49 = vld [vmem:[#allocation181_spill] sm:$0xff] }
 0x3d7   :  { %11113 = vst [vmem:[#allocation160_spill] sm:$0xff] %v8755_v48  ;;  %11114 = vst [vmem:[#allocation243_spill] sm:$0xff] %v8758_v33  ;;  %4672 = vrot.lane.b32.xlu0 %v8468_v28, %s6695_s28  ;;  %v2950_v33 = vsel %vm2949_vm9, %v2928_v45, %v2948_v31  ;;  %v8792_v8 = vmul.f32 %v11124_v22, %v8126_v62  ;;  %v8796_v55 = vmul.f32 %v11124_v22, %v8128_v18  ;;  %v11129_v28 = vld [vmem:[#allocation163_spill] sm:$0xff]  ;;  %v11140_v36 = vld [vmem:[#allocation174_spill] sm:$0xff] }
 0x3d8   :  { %11116 = vst [vmem:[#allocation244_spill] sm:$0xff] %v8762_v23  ;;  %4674 = vrot.lane.b32.xlu1 %v8460_v14, %s6695_s28  ;;  %11117 = vst [vmem:[#allocation245_spill] sm:$0xff] %v8769_v20  ;;  %v11123_v14 = vld [vmem:[#allocation83_spill] sm:$0xff]  ;;  %6109 = vmatmul.mubr.msk.f32.vlgmr.msra.gmra.mrb[8].mxu0 %vm123_vm0, %v2950_v33  ;;  %v8805_v15 = vmul.f32 %v11129_v28, %v11118_v6  ;;  %v1941_v22 = vmul.f32 %v11133_v49, %v8297_v30  ;;  %v11134_v20 = vld [vmem:[#allocation104_spill] sm:$0xff] }
 0x3d9   :  { %11120 = vst [vmem:[#allocation162_spill] sm:$0xff] %v8774_v53  ;;  %11122 = vst [vmem:[#allocation246_spill] sm:$0xff] %v8778_v43  ;;  %v8784_v35 = vmul.f32 %v11123_v14, %v11115_v32  ;;  %v8788_v61 = vmul.f32 %v11123_v14, %v11111_v44  ;;  %v8799_v45 = vpop.permute.xlu0 %1081  ;;  %v8801_v31 = vpop.permute.xlu1 %1077  ;;  %v11130_v14 = vld [vmem:[#allocation183_spill] sm:$0xff]  ;;  %v11131_v32 = vld [vmem:[#allocation172_spill] sm:$0xff]  ;;  %6218 = vmatpush3.bf16.msra.mxu0 %v11134_v20  ;;  %v8817_v33 = vmul.f32 %v11129_v28, %v11121_v5  ;;  %v11138_v5 = vmov 0.0|0.0  }
 0x3da   :  { %11125 = vst [vmem:[#allocation83_spill] sm:$0xff] %v8792_v8  ;;  %11126 = vst [vmem:[#allocation170_spill] sm:$0xff] %v8796_v55  ;;  %v8809_v44 = vmul.f32 %v11131_v32, %v11130_v14  ;;  %v1942_v6 = vmul.f32 %v11133_v49, %v8295_v37  ;;  %v11137_v20 = vld [vmem:[#allocation167_spill] sm:$0xff]  ;;  %6219 = vmatprep.subr.bf16.mxu0 %v11138_v5  ;;  %v8845_v49 = vmul.f32 %v11140_v36, %v8210_v60  ;;  %v11142_v23 = vld [vmem:[#allocation188_spill] sm:$0xff] }
 0x3db   :  { %11127 = vst [vmem:[#allocation247_spill] sm:$0xff] %v8799_v45  ;;  %11128 = vst [vmem:[#allocation248_spill] sm:$0xff] %v8801_v31  ;;  %v8821_v31 = vmul.f32 %v11131_v32, %v11135_v41  ;;  %5048 = vrot.lane.b32.xlu0 %v8511_v21, %s6695_s28  ;;  %v8832_v48 = vmul.f32 %v11137_v20, %v8126_v62  ;;  %v8836_v28 = vmul.f32 %v11137_v20, %v8128_v18  ;;  %v11146_v18 = vld [vmem:[#allocation173_spill] sm:$0xff]  ;;  %v11147_v10 = vld [vmem:[#allocation106_spill] sm:$0xff] }
 0x3dc   :  { %11132 = vst [vmem:[#allocation163_spill] sm:$0xff] %v8809_v44  ;;  %5050 = vrot.lane.b32.xlu1 %v8498_v29, %s6695_s28  ;;  %v11139_v29 = vmov 0.0   ;;  %11141 = vst [vmem:[#allocation181_spill] sm:$0xff] %v8845_v49  ;;  %v8849_v62 = vmul.f32 %v11140_v36, %v11142_v23  ;;  %v8859_v53 = vmul.f32 %v11146_v18, %v11135_v41  ;;  %v2053_v36 = vsub.f32 1.0, %v1941_v22  ;;  %v11151_v22 = vld [vmem:[#allocation89_spill] sm:$0xff]  ;;  %v11213_v55 = vld [vmem:[#allocation212_spill] sm:$0xff] }
 0x3dd   :  { %11136 = vst [vmem:[#allocation172_spill] sm:$0xff] %v8821_v31  ;;  %6130 = vmatprep.mubr.msk.f32.mxu0 %vm6693_vm2, %v11139_v29  ;;  %v8851_v45 = vpop.permute.xlu0 %1092  ;;  %v8853_v20 = vpop.permute.xlu1 %1088  ;;  %v8863_v29 = vmul.f32 %v11146_v18, %v11130_v14  ;;  %6221 = vmatpush3.bf16.msra.mxu0 %v11147_v10  ;;  %v2054_v43 = vsub.f32 1.0, %v1942_v6  ;;  %v8882_v32 = vmul.f32 %v11151_v22, %v8210_v60 }
 0x3de   :  { %11143 = vst [vmem:[#allocation167_spill] sm:$0xff] %v8849_v62  ;;  %11144 = vst [vmem:[#allocation174_spill] sm:$0xff] %v8851_v45  ;;  %v11148_v45 = vld [vmem:[#allocation95_spill] sm:$0xff]  ;;  %v8886_v10 = vmul.f32 %v11151_v22, %v11142_v23  ;;  %6228 = vmatprep.subr.bf16.mxu0 %v11138_v5  ;;  %v11164_v5 = vld [vmem:[#allocation189_spill] sm:$0xff] }
 0x3df   :  { %11145 = vst [vmem:[#allocation249_spill] sm:$0xff] %v8853_v20  ;;  %v8869_v20 = vmul.f32 %v11148_v45, %v8335_v57  ;;  %v8873_v21 = vmul.f32 %v11148_v45, %v8337_v50  ;;  %5424 = vrot.lane.b32.xlu0 %v8557_v12, %s6695_s28  ;;  %v11152_v45 = vld [vmem:[#allocation187_spill] sm:$0xff]  ;;  %v8933_v31 = vmul.f32 0.0, %v2054_v43 }
 0x3e0   :  { %5426 = vrot.lane.b32.xlu1 %v8549_v26, %s6695_s28  ;;  %v8890_v41 = vmul.f32 %v11152_v45, %v8373_v7  ;;  %v8894_v12 = vmul.f32 %v11152_v45, %v8375_v24  ;;  %v11155_v26 = vld [vmem:[#allocation177_spill] sm:$0xff]  ;;  %v11158_v45 = vld [vmem:[#allocation184_spill] sm:$0xff]  ;;  %v11166_v23 = vld [vmem:[#allocation223_spill] sm:$0xff] }
 0x3e1   :  { %11149 = vst [vmem:[#allocation173_spill] sm:$0xff] %v8869_v20  ;;  %11150 = vst [vmem:[#allocation95_spill] sm:$0xff] %v8873_v21  ;;  %v8899_v6 = vmul.f32 %v11155_v26, %v8295_v37  ;;  %v8903_v18 = vmul.f32 %v11155_v26, %v8297_v30  ;;  %v8905_v22 = vpop.permute.xlu0 %5551  ;;  %v8907_v60 = vpop.permute.xlu1 %5555  ;;  %v8913_v44 = vmul.f32 %v11158_v45, %v8335_v57  ;;  %v8923_v26 = vmul.f32 0.0, %v2053_v36  ;;  %v11167_v20 = vld [vmem:[#allocation194_spill] sm:$0xff]  ;;  %v11169_v21 = vld [vmem:[#allocation224_spill] sm:$0xff] }
 0x3e2   :  { %11153 = vst [vmem:[#allocation89_spill] sm:$0xff] %v8890_v41  ;;  %11154 = vst [vmem:[#allocation187_spill] sm:$0xff] %v8894_v12  ;;  %v8917_v37 = vmul.f32 %v11158_v45, %v8337_v50  ;;  %v8921_v30 = vmul.f32 %v8224_v13, %v8419_v63  ;;  %v8939_v36 = vmul.f32 %v11164_v5, %v8373_v7  ;;  %v11173_v50 = vld [vmem:[#allocation127_spill] sm:$0xff] }
 0x3e3   :  { %11156 = vst [vmem:[#allocation177_spill] sm:$0xff] %v8905_v22  ;;  %11157 = vst [vmem:[#allocation250_spill] sm:$0xff] %v8907_v60  ;;  %v11161_v22 = vld [vmem:[#allocation214_spill] sm:$0xff]  ;;  %3180 = vrot.lane.b32.xlu0 %v8575_v19, %s6695_s28  ;;  %v8957_v7 = vmul.f32 %v11167_v20, %v11166_v23  ;;  %v11171_v19 = vld [vmem:[#allocation195_spill] sm:$0xff] }
 0x3e4   :  { %11159 = vst [vmem:[#allocation184_spill] sm:$0xff] %v8921_v30  ;;  %11160 = vst [vmem:[#allocation251_spill] sm:$0xff] %v8923_v26  ;;  %v8927_v60 = vmul.f32 %v8224_v13, %v11161_v22  ;;  %3182 = vrot.lane.b32.xlu1 %v8571_v25, %s6695_s28  ;;  %v8943_v13 = vmul.f32 %v11164_v5, %v8375_v24  ;;  %v11165_v25 = vld [vmem:[#allocation190_spill] sm:$0xff]  ;;  %v8961_v5 = vmul.f32 %v11167_v20, %v11169_v21  ;;  %v11181_v30 = vld [vmem:[#allocation119_spill] sm:$0xff] }
 0x3e5   :  { %11163 = vst [vmem:[#allocation253_spill] sm:$0xff] %v8933_v31  ;;  %v8949_v43 = vmul.f32 %v11165_v25, %v11161_v22  ;;  %v8953_v45 = vmul.f32 %v11165_v25, %v8419_v63  ;;  %11168 = vst [vmem:[#allocation189_spill] sm:$0xff] %v8957_v7  ;;  %v3165_v24 = vpop.permute.xlu0 %3164  ;;  %v3167_v57 = vpop.permute.xlu1 %3166  ;;  %v8965_v41 = vmul.f32 %v11171_v19, %v11166_v23  ;;  %v11172_v22 = vld [vmem:[#allocation126_spill] sm:$0xff]  ;;  %v11179_v25 = vld [vmem:[#allocation120_spill] sm:$0xff]  ;;  %v11182_v62 = vsub.f32 1.0, %v11181_v30 }
 0x3e6   :  { %11162 = vst [vmem:[#allocation252_spill] sm:$0xff] %v8927_v60  ;;  %11170 = vst [vmem:[#allocation190_spill] sm:$0xff] %v8961_v5  ;;  %v3210_v12 = vadd.f32 %v3165_v24, %v11172_v22  ;;  %v3211_v31 = vadd.f32 %v3167_v57, %v11173_v50  ;;  %v8972_v63 = vmul.f32 %v11171_v19, %v11169_v21  ;;  %v11174_v26 = vld [vmem:[#allocation198_spill] sm:$0xff]  ;;  %v11177_v50 = vld [vmem:[#allocation29_spill] sm:$0xff]  ;;  %v11180_v23 = vsub.f32 1.0, %v11179_v25 }
 0x3e7   :  { %v8976_v20 = vmul.f32 %v11174_v26, %v8504_v52  ;;  %v8980_v49 = vmul.f32 %v11174_v26, %v8506_v17  ;;  %3556 = vrot.lane.b32.xlu0 %v8597_v51, %s6695_s28  ;;  %v11178_v22 = vld [vmem:[#allocation28_spill] sm:$0xff]  ;;  %v11183_v26 = vld [vmem:[#allocation199_spill] sm:$0xff]  ;;  %v11193_v5 = vld [vmem:[#allocation201_spill] sm:$0xff] }
 0x3e8   :  { %3558 = vrot.lane.b32.xlu1 %v8583_v2, %s6695_s28  ;;  %v3226_v24 = vmul.f32 %v3210_v12, %v11177_v50  ;;  %v3227_v19 = vmul.f32 %v3211_v31, %v11178_v22  ;;  %v3506_v21 = vmul.f32 %v3210_v12, %v11180_v23  ;;  %v3507_v14 = vmul.f32 %v3211_v31, %v11182_v62  ;;  %v11184_v31 = vld [vmem:[#allocation200_spill] sm:$0xff]  ;;  %v11189_v22 = vld [vmem:[#allocation125_spill] sm:$0xff] }
 0x3e9   :  { %11175 = vst [vmem:[#allocation194_spill] sm:$0xff] %v8976_v20  ;;  %11176 = vst [vmem:[#allocation195_spill] sm:$0xff] %v8980_v49  ;;  %v8995_v8 = vmul.f32 %v11183_v26, %v8504_v52  ;;  %v8999_v51 = vmul.f32 %v11183_v26, %v8506_v17  ;;  %v3541_v2 = vpop.permute.xlu0 %3540  ;;  %v3543_v57 = vpop.permute.xlu1 %3542  ;;  %v9007_v30 = vmul.f32 %v11184_v31, %v8537_v3  ;;  %v11190_v50 = vsub.f32 1.0, %v11189_v22  ;;  %v11191_v17 = vld [vmem:[#allocation124_spill] sm:$0xff] }
 0x3ea   :  { %v3249_v25 = vsel %vm123_vm0, %v3226_v24, 0.0  ;;  %v3250_v23 = vsel %vm123_vm0, %v3227_v19, 0.0  ;;  %v3586_v12 = vadd.f32 %v3541_v2, %v3506_v21  ;;  %v3587_v62 = vadd.f32 %v3543_v57, %v3507_v14  ;;  %v11187_v21 = vld [vmem:[#allocation31_spill] sm:$0xff]  ;;  %v11188_v57 = vld [vmem:[#allocation30_spill] sm:$0xff] }
 0x3eb   :  { %11185 = vst [vmem:[#allocation126_spill] sm:$0xff] %v9007_v30  ;;  %v9011_v26 = vmul.f32 %v11184_v31, %v8539_v40  ;;  %3932 = vrot.lane.b32.xlu0 %v8631_v56, %s6695_s28  ;;  %v11192_v31 = vsub.f32 1.0, %v11191_v17  ;;  %v9027_v56 = vmul.f32 %v11193_v5, %v8537_v3  ;;  %v3251_v24 = vadd.f32 %v3250_v23, %v3249_v25  ;;  %v11195_v23 = vld [vmem:[#allocation132_spill] sm:$0xff]  ;;  %v11196_v3 = vld [vmem:[#allocation33_spill] sm:$0xff] }
 0x3ec   :  { %3934 = vrot.lane.b32.xlu1 %v8614_v16, %s6695_s28  ;;  %v3602_v14 = vmul.f32 %v3586_v12, %v11187_v21  ;;  %v3603_v2 = vmul.f32 %v3587_v62, %v11188_v57  ;;  %v3882_v52 = vmul.f32 %v3586_v12, %v11190_v50  ;;  %v9031_v16 = vmul.f32 %v11193_v5, %v8539_v40  ;;  %v11194_v21 = vld [vmem:[#allocation110_spill] sm:$0xff]  ;;  %v11197_v40 = vld [vmem:[#allocation32_spill] sm:$0xff] }
 0x3ed   :  { %11186 = vst [vmem:[#allocation127_spill] sm:$0xff] %v9011_v26  ;;  %v3883_v7 = vmul.f32 %v3587_v62, %v11192_v31  ;;  %v3917_v19 = vpop.permute.xlu0 %3916  ;;  %v3919_v20 = vpop.permute.xlu1 %3918  ;;  %v1927_v57 = vmul.f32 %v11194_v21, %v8587_v34  ;;  %v1928_v31 = vmul.f32 %v11194_v21, %v11195_v23  ;;  %v3252_v5 = vrot.slane %v3251_v24, 4 }
 0x3ee   :  { %v3625_v22 = vsel %vm123_vm0, %v3602_v14, 0.0  ;;  %v3626_v50 = vsel %vm123_vm0, %v3603_v2, 0.0  ;;  %v3962_v17 = vadd.f32 %v3917_v19, %v3882_v52  ;;  %v11198_v52 = vld [vmem:[#allocation129_spill] sm:$0xff]  ;;  %v11200_v19 = vld [vmem:[#allocation128_spill] sm:$0xff] }
 0x3ef   :  { %v3963_v12 = vadd.f32 %v3919_v20, %v3883_v7  ;;  %v3627_v62 = vadd.f32 %v3626_v50, %v3625_v22  ;;  %4308 = vrot.lane.b32.xlu0 %v8649_v39, %s6695_s28  ;;  %v11199_v7 = vsub.f32 1.0, %v11198_v52  ;;  %v11201_v22 = vsub.f32 1.0, %v11200_v19  ;;  %v11202_v50 = vld [vmem:[#allocation204_spill] sm:$0xff]  ;;  %v11204_v19 = vld [vmem:[#allocation239_spill] sm:$0xff] }
 0x3f0   :  { %4310 = vrot.lane.b32.xlu1 %v8636_v58, %s6695_s28  ;;  %v3978_v14 = vmul.f32 %v3962_v17, %v11196_v3  ;;  %v9053_v58 = vmul.f32 %v11202_v50, %v11195_v23  ;;  %v9057_v25 = vmul.f32 %v11202_v50, %v8587_v34  ;;  %v2039_v3 = vsub.f32 1.0, %v1927_v57  ;;  %v11207_v57 = vld [vmem:[#allocation35_spill] sm:$0xff] }
 0x3f1   :  { %v3979_v2 = vmul.f32 %v3963_v12, %v11197_v40  ;;  %v4258_v20 = vmul.f32 %v3962_v17, %v11199_v7  ;;  %v4259_v39 = vmul.f32 %v3963_v12, %v11201_v22  ;;  %v4293_v21 = vpop.permute.xlu0 %4292  ;;  %v4295_v30 = vpop.permute.xlu1 %4294  ;;  %v11205_v12 = vld [vmem:[#allocation209_spill] sm:$0xff]  ;;  %v3628_v23 = vrot.slane %v3627_v62, 4 }
 0x3f2   :  { %11203 = vst [vmem:[#allocation198_spill] sm:$0xff] %v9053_v58  ;;  %v4001_v40 = vsel %vm123_vm0, %v3978_v14, 0.0  ;;  %v9063_v22 = vmul.f32 %v11205_v12, %v11204_v19  ;;  %v2040_v34 = vsub.f32 1.0, %v1928_v31  ;;  %v11208_v14 = vld [vmem:[#allocation34_spill] sm:$0xff] }
 0x3f3   :  { %v4002_v52 = vsel %vm123_vm0, %v3979_v2, 0.0  ;;  %v4338_v17 = vadd.f32 %v4293_v21, %v4258_v20  ;;  %v4339_v7 = vadd.f32 %v4295_v30, %v4259_v39  ;;  %4684 = vrot.lane.b32.xlu0 %v8677_v42, %s6695_s28  ;;  %v11209_v2 = vld [vmem:[#allocation135_spill] sm:$0xff]  ;;  %v11211_v39 = vld [vmem:[#allocation133_spill] sm:$0xff] }
 0x3f4   :  { %11206 = vst [vmem:[#allocation29_spill] sm:$0xff] %v9063_v22  ;;  %v4003_v26 = vadd.f32 %v4002_v52, %v4001_v40  ;;  %4686 = vrot.lane.b32.xlu1 %v8671_v1, %s6695_s28  ;;  %v11210_v20 = vsub.f32 1.0, %v11209_v2  ;;  %v11212_v21 = vsub.f32 1.0, %v11211_v39  ;;  %v9077_v40 = vmul.f32 %v11213_v55, %v11204_v19  ;;  %v11215_v52 = vld [vmem:[#allocation240_spill] sm:$0xff] }
 0x3f5   :  { %v4354_v50 = vmul.f32 %v4338_v17, %v11207_v57  ;;  %v4355_v49 = vmul.f32 %v4339_v7, %v11208_v14  ;;  %v9081_v42 = vmul.f32 %v11205_v12, %v11215_v52  ;;  %v3253_v1 = vadd.f32 %v3252_v5, %v3251_v24  ;;  %v4669_v58 = vpop.permute.xlu0 %4668  ;;  %v4671_v57 = vpop.permute.xlu1 %4670  ;;  %v11218_v24 = vld [vmem:[#allocation37_spill] sm:$0xff]  ;;  %v11219_v19 = vld [vmem:[#allocation36_spill] sm:$0xff] }
 0x3f6   :  { %v4634_v30 = vmul.f32 %v4338_v17, %v11210_v20  ;;  %v4635_v60 = vmul.f32 %v4339_v7, %v11212_v21  ;;  %11214 = vst [vmem:[#allocation28_spill] sm:$0xff] %v9077_v40  ;;  %v4004_v31 = vrot.slane %v4003_v26, 4  ;;  %v9087_v7 = vmul.f32 %v11213_v55, %v11215_v52 }
 0x3f7   :  { %11216 = vst [vmem:[#allocation120_spill] sm:$0xff] %v9081_v42  ;;  %v4377_v14 = vsel %vm123_vm0, %v4354_v50, 0.0  ;;  %v4378_v2 = vsel %vm123_vm0, %v4355_v49, 0.0  ;;  %v3629_v39 = vadd.f32 %v3628_v23, %v3627_v62  ;;  %5060 = vrot.lane.b32.xlu0 %v8701_v54, %s6695_s28  ;;  %v9091_v12 = vmul.f32 0.0, %v2039_v3  ;;  %v11220_v49 = vld [vmem:[#allocation67_spill] sm:$0xff]  ;;  %v11222_v50 = vld [vmem:[#allocation141_spill] sm:$0xff] }
 0x3f8   :  { %v4714_v17 = vadd.f32 %v4669_v58, %v4634_v30  ;;  %v4715_v20 = vadd.f32 %v4671_v57, %v4635_v60  ;;  %v4379_v21 = vadd.f32 %v4378_v2, %v4377_v14  ;;  %5062 = vrot.lane.b32.xlu1 %v8697_v4, %s6695_s28  ;;  %v11221_v60 = vsub.f32 1.0, %v11220_v49 }
 0x3f9   :  { %11217 = vst [vmem:[#allocation119_spill] sm:$0xff] %v9091_v12  ;;  %v11223_v55 = vsub.f32 1.0, %v11222_v50  ;;  %v3254_v62 = vrot.slane %v3253_v1, 2  ;;  %v4005_v23 = vadd.f32 %v4004_v31, %v4003_v26  ;;  %v5045_v14 = vpop.permute.xlu0 %5044  ;;  %v5047_v54 = vpop.permute.xlu1 %5046  ;;  %v9101_v3 = vmul.f32 0.0, %v2040_v34  ;;  %v11225_v26 = vld [vmem:[#allocation39_spill] sm:$0xff]  ;;  %v11227_v34 = vld [vmem:[#allocation145_spill] sm:$0xff] }
 0x3fa   :  { %v4730_v5 = vmul.f32 %v4714_v17, %v11218_v24  ;;  %v4731_v40 = vmul.f32 %v4715_v20, %v11219_v19  ;;  %v5010_v58 = vmul.f32 %v4714_v17, %v11221_v60  ;;  %v4380_v57 = vrot.slane %v4379_v21, 4 }
 0x3fb   :  { %v5011_v30 = vmul.f32 %v4715_v20, %v11223_v55  ;;  %11224 = vst [vmem:[#allocation199_spill] sm:$0xff] %v9101_v3  ;;  %v3630_v4 = vrot.slane %v3629_v39, 2  ;;  %5436 = vrot.lane.b32.xlu0 %v8715_v59, %s6695_s28  ;;  %v11226_v20 = vld [vmem:[#allocation38_spill] sm:$0xff] }
 0x3fc   :  { %v4753_v2 = vsel %vm123_vm0, %v4730_v5, 0.0  ;;  %v4754_v19 = vsel %vm123_vm0, %v4731_v40, 0.0  ;;  %v5090_v24 = vadd.f32 %v5045_v14, %v5010_v58  ;;  %v4381_v12 = vadd.f32 %v4380_v57, %v4379_v21  ;;  %5438 = vrot.lane.b32.xlu1 %v8711_v47, %s6695_s28  ;;  %v11229_v58 = vld [vmem:[#allocation68_spill] sm:$0xff] }
 0x3fd   :  { %v5091_v52 = vadd.f32 %v5047_v54, %v5011_v30  ;;  %v4755_v49 = vadd.f32 %v4754_v19, %v4753_v2  ;;  %v11228_v5 = vsub.f32 1.0, %v11227_v34  ;;  %v11230_v50 = vsub.f32 1.0, %v11229_v58  ;;  %v5421_v14 = vpop.permute.xlu0 %5420  ;;  %v5423_v59 = vpop.permute.xlu1 %5422  ;;  %v11237_v54 = vld [vmem:[#allocation54_spill] sm:$0xff] }
 0x3fe   :  { %v5106_v31 = vmul.f32 %v5090_v24, %v11225_v26  ;;  %v3255_v21 = vadd.f32 %v3254_v62, %v3253_v1  ;;  %v4006_v30 = vrot.slane %v4005_v23, 2  ;;  %v3631_v47 = vadd.f32 %v3630_v4, %v3629_v39  ;;  %v11232_v1 = vld [vmem:[#allocation216_spill] sm:$0xff] }
 0x3ff   :  { %v5107_v60 = vmul.f32 %v5091_v52, %v11226_v20  ;;  %v5386_v40 = vmul.f32 %v5090_v24, %v11228_v5  ;;  %v5387_v55 = vmul.f32 %v5091_v52, %v11230_v50  ;;  %v4756_v57 = vrot.slane %v4755_v49, 4  ;;  %3176 = vrot.lane.b32.xlu0 %v8739_v46, %s6695_s28  ;;  %v11231_v52 = vld [vmem:[#allocation242_spill] sm:$0xff]  ;;  %v11233_v5 = vld [vmem:[#allocation217_spill] sm:$0xff] }
 0x400   :  { %v5129_v2 = vsel %vm123_vm0, %v5106_v31, 0.0  ;;  %v4382_v17 = vrot.slane %v4381_v12, 2  ;;  %v9123_v62 = vmul.f32 %v11232_v1, %v11231_v52  ;;  %v9127_v58 = vmul.f32 %v11233_v5, %v11231_v52  ;;  %v11234_v31 = vld [vmem:[#allocation40_spill] sm:$0xff]  ;;  %3178 = vrot.lane.b32.xlu1 %v8735_v0, %s6695_s28 }
 0x401   :  { %v5130_v19 = vsel %vm123_vm0, %v5107_v60, 0.0  ;;  %v5466_v26 = vadd.f32 %v5421_v14, %v5386_v40  ;;  %v5467_v20 = vadd.f32 %v5423_v59, %v5387_v55  ;;  %v4757_v34 = vadd.f32 %v4756_v57, %v4755_v49  ;;  %v11235_v60 = vld [vmem:[#allocation41_spill] sm:$0xff]  ;;  %v3161_v46 = vpop.permute.xlu0 %3160  ;;  %v3163_v57 = vpop.permute.xlu1 %3162 }
 0x402   :  { %v5131_v24 = vadd.f32 %v5130_v19, %v5129_v2  ;;  %v3256_v39 = vrot.slane %v3255_v21, 1  ;;  %v4007_v4 = vadd.f32 %v4006_v30, %v4005_v23  ;;  %v11236_v2 = vld [vmem:[#allocation154_spill] sm:$0xff]  ;;  %v3209_v52 = vadd.f32 %v3163_v57, %v11237_v54  ;;  %v11238_v23 = vld [vmem:[#allocation43_spill] sm:$0xff] }
 0x403   :  { %v5570_v50 = vmul.f32 %v11234_v31, %v5466_v26  ;;  %v5571_v40 = vmul.f32 %v11235_v60, %v5467_v20  ;;  %v4758_v49 = vrot.slane %v4757_v34, 2  ;;  %v3208_v19 = vadd.f32 %v3161_v46, %v11236_v2  ;;  %3552 = vrot.lane.b32.xlu0 %v8747_v38, %s6695_s28  ;;  %v11239_v60 = vld [vmem:[#allocation42_spill] sm:$0xff] }
 0x404   :  { %v5132_v55 = vrot.slane %v5131_v24, 4  ;;  %v9139_v26 = vmul.f32 %v11232_v1, %v8665_v9  ;;  %v3632_v20 = vrot.slane %v3631_v47, 1  ;;  %v4383_v0 = vadd.f32 %v4382_v17, %v4381_v12  ;;  %3554 = vrot.lane.b32.xlu1 %v8743_v11, %s6695_s28  ;;  %v11242_v57 = vld [vmem:[#allocation74_spill] sm:$0xff] }
 0x405   :  { %v5593_v14 = vsel %vm123_vm0, %v5570_v50, 0.0  ;;  %v5594_v59 = vsel %vm123_vm0, %v5571_v40, 0.0  ;;  %v3224_v30 = vmul.f32 %v3208_v19, %v11238_v23  ;;  %v3225_v50 = vmul.f32 %v3209_v52, %v11239_v60  ;;  %v11240_v40 = vld [vmem:[#allocation151_spill] sm:$0xff]  ;;  %v3539_v38 = vpop.permute.xlu1 %3538 }
 0x406   :  { %v5133_v31 = vadd.f32 %v5132_v55, %v5131_v24  ;;  %v11241_v46 = vsub.f32 1.0, %v11240_v40  ;;  %v11243_v2 = vsub.f32 1.0, %v11242_v57  ;;  %v9151_v22 = vadd.f32 %v3256_v39, %v3255_v21  ;;  %v3537_v55 = vpop.permute.xlu0 %3536  ;;  %v11244_v21 = vld [vmem:[#allocation45_spill] sm:$0xff] }
 0x407   :  { %v4008_v12 = vrot.slane %v4007_v4, 1  ;;  %v4759_v17 = vadd.f32 %v4758_v49, %v4757_v34  ;;  %v5595_v24 = vadd.f32 %v5594_v59, %v5593_v14  ;;  %v3240_v23 = vsel %vm123_vm0, %v3224_v30, 0.0  ;;  %3928 = vrot.lane.b32.xlu0 %v8788_v61, %s6695_s28  ;;  %v11245_v34 = vld [vmem:[#allocation44_spill] sm:$0xff]  ;;  %v11246_v49 = vld [vmem:[#allocation153_spill] sm:$0xff]  ;;  %v11248_v30 = vld [vmem:[#allocation155_spill] sm:$0xff] }
 0x408   :  { %v3504_v54 = vmul.f32 %v3208_v19, %v11241_v46  ;;  %v3505_v1 = vmul.f32 %v3209_v52, %v11243_v2  ;;  %v3241_v60 = vsel %vm123_vm0, %v3225_v50, 0.0  ;;  %v9155_v11 = vadd.f32 %v3632_v20, %v3631_v47  ;;  %3930 = vrot.lane.b32.xlu1 %v8784_v35, %s6695_s28 }
 0x409   :  { %v4384_v40 = vrot.slane %v4383_v0, 1  ;;  %v5134_v19 = vrot.slane %v5133_v31, 2  ;;  %v3242_v46 = vadd.f32 %v3241_v60, %v3240_v23  ;;  %v11247_v14 = vsub.f32 1.0, %v11246_v49  ;;  %v3915_v61 = vpop.permute.xlu1 %3914 }
 0x40a   :  { %v3584_v42 = vadd.f32 %v3537_v55, %v3504_v54  ;;  %v3585_v3 = vadd.f32 %v3539_v38, %v3505_v1  ;;  %v11249_v50 = vsub.f32 1.0, %v11248_v30  ;;  %v9167_v20 = vadd.f32 %v4008_v12, %v4007_v4  ;;  %v3913_v1 = vpop.permute.xlu0 %3912  ;;  %v11251_v12 = vld [vmem:[#allocation46_spill] sm:$0xff] }
 0x40b   :  { %v4760_v54 = vrot.slane %v4759_v17, 1  ;;  %v5596_v57 = vrot.slane %v5595_v24, 4  ;;  %v3243_v2 = vrot.slane %v3242_v46, 4  ;;  %v9171_v35 = vadd.f32 %v4384_v40, %v4383_v0  ;;  %4304 = vrot.lane.b32.xlu0 %v8817_v33, %s6695_s28 }
 0x40c   :  { %v3600_v52 = vmul.f32 %v3584_v42, %v11244_v21  ;;  %v3601_v39 = vmul.f32 %v3585_v3, %v11245_v34  ;;  %v3880_v59 = vmul.f32 %v3584_v42, %v11247_v14  ;;  %v3881_v47 = vmul.f32 %v3585_v3, %v11249_v50  ;;  %v11250_v3 = vld [vmem:[#allocation47_spill] sm:$0xff]  ;;  %4306 = vrot.lane.b32.xlu1 %v8805_v15, %s6695_s28 }
 0x40d   :  { %v9173_v21 = vadd.f32 %v5134_v19, %v5133_v31  ;;  %v3244_v42 = vadd.f32 %v3243_v2, %v3242_v46  ;;  %v9185_v31 = vadd.f32 %v4760_v54, %v4759_v17  ;;  %v9187_v19 = vadd.f32 %v5596_v57, %v5595_v24  ;;  %v4291_v50 = vpop.permute.xlu1 %4290  ;;  %v11256_v17 = vld [vmem:[#allocation49_spill] sm:$0xff]  ;;  %v11257_v54 = vld [vmem:[#allocation48_spill] sm:$0xff] }
 0x40e   :  { %v3616_v55 = vsel %vm123_vm0, %v3600_v52, 0.0  ;;  %v3617_v38 = vsel %vm123_vm0, %v3601_v39, 0.0  ;;  %v3960_v23 = vadd.f32 %v3913_v1, %v3880_v59  ;;  %v3961_v60 = vadd.f32 %v3915_v61, %v3881_v47  ;;  %v11252_v52 = vld [vmem:[#allocation82_spill] sm:$0xff]  ;;  %v11254_v59 = vld [vmem:[#allocation81_spill] sm:$0xff]  ;;  %v4289_v33 = vpop.permute.xlu0 %4288 }
 0x40f   :  { %v3618_v34 = vadd.f32 %v3617_v38, %v3616_v55  ;;  %v11253_v39 = vsub.f32 1.0, %v11252_v52  ;;  %v11255_v0 = vsub.f32 1.0, %v11254_v59  ;;  %v3245_v46 = vrot.slane %v3244_v42, 2  ;;  %4680 = vrot.lane.b32.xlu0 %v8836_v28, %s6695_s28 }
 0x410   :  { %v3976_v4 = vmul.f32 %v3960_v23, %v11250_v3  ;;  %v3977_v49 = vmul.f32 %v3961_v60, %v11251_v12  ;;  %v5136_v61 = vrot.slane %v9173_v21, 1  ;;  %4682 = vrot.lane.b32.xlu1 %v8832_v48, %s6695_s28  ;;  %v11260_v12 = vld [vmem:[#allocation161_spill] sm:$0xff] }
 0x411   :  { %v4256_v14 = vmul.f32 %v3960_v23, %v11253_v39  ;;  %v4257_v40 = vmul.f32 %v3961_v60, %v11255_v0  ;;  %v3619_v30 = vrot.slane %v3618_v34, 4  ;;  %v3246_v55 = vadd.f32 %v3245_v46, %v3244_v42  ;;  %v11258_v60 = vld [vmem:[#allocation86_spill] sm:$0xff]  ;;  %v4667_v28 = vpop.permute.xlu1 %4666 }
 0x412   :  { %v3992_v47 = vsel %vm123_vm0, %v3976_v4, 0.0  ;;  %v3993_v2 = vsel %vm123_vm0, %v3977_v49, 0.0  ;;  %v11259_v3 = vsub.f32 1.0, %v11258_v60  ;;  %v11261_v49 = vsub.f32 1.0, %v11260_v12  ;;  %v4665_v59 = vpop.permute.xlu0 %4664 }
 0x413   :  { %v4336_v1 = vadd.f32 %v4289_v33, %v4256_v14  ;;  %v4337_v15 = vadd.f32 %v4291_v50, %v4257_v40  ;;  %v3620_v38 = vadd.f32 %v3619_v30, %v3618_v34  ;;  %v3994_v23 = vadd.f32 %v3993_v2, %v3992_v47  ;;  %5056 = vrot.lane.b32.xlu0 %v8863_v29, %s6695_s28  ;;  %v11262_v2 = vld [vmem:[#allocation51_spill] sm:$0xff] }
 0x414   :  { %v5598_v42 = vrot.slane %v9187_v19, 2  ;;  %v3247_v34 = vrot.slane %v3246_v55, 1  ;;  %5058 = vrot.lane.b32.xlu1 %v8859_v53, %s6695_s28 }
 0x415   :  { %v4352_v24 = vmul.f32 %v4336_v1, %v11256_v17  ;;  %v4353_v57 = vmul.f32 %v4337_v15, %v11257_v54  ;;  %v4632_v4 = vmul.f32 %v4336_v1, %v11259_v3  ;;  %v4633_v52 = vmul.f32 %v4337_v15, %v11261_v49  ;;  %v11263_v15 = vld [vmem:[#allocation50_spill] sm:$0xff]  ;;  %v11264_v54 = vld [vmem:[#allocation164_spill] sm:$0xff]  ;;  %v5043_v49 = vpop.permute.xlu1 %5042 }
 0x416   :  { %v3621_v39 = vrot.slane %v3620_v38, 2  ;;  %v3995_v14 = vrot.slane %v3994_v23, 4  ;;  %v3248_v48 = vadd.f32 %v3247_v34, %v3246_v55  ;;  %v5041_v12 = vpop.permute.xlu0 %5040 }
 0x417   :  { %v4368_v0 = vsel %vm123_vm0, %v4352_v24, 0.0  ;;  %v4369_v40 = vsel %vm123_vm0, %v4353_v57, 0.0  ;;  %v4712_v46 = vadd.f32 %v4665_v59, %v4632_v4  ;;  %v4713_v30 = vadd.f32 %v4667_v28, %v4633_v52  ;;  %v11266_v57 = vld [vmem:[#allocation165_spill] sm:$0xff]  ;;  %5432 = vrot.lane.b32.xlu0 %v8886_v10, %s6695_s28 }
 0x418   :  { %v3622_v33 = vadd.f32 %v3621_v39, %v3620_v38  ;;  %v3996_v50 = vadd.f32 %v3995_v14, %v3994_v23  ;;  %v4370_v47 = vadd.f32 %v4369_v40, %v4368_v0  ;;  %v11265_v24 = vsub.f32 1.0, %v11264_v54  ;;  %5434 = vrot.lane.b32.xlu1 %v8882_v32, %s6695_s28 }
 0x419   :  { %v4728_v1 = vmul.f32 %v4712_v46, %v11262_v2  ;;  %v4729_v17 = vmul.f32 %v4713_v30, %v11263_v15  ;;  %v11267_v3 = vsub.f32 1.0, %v11266_v57  ;;  %v9217_v55 = vsel %vm2937_vm3, %v9151_v22, %v3248_v48  ;;  %v11268_v22 = vld [vmem:[#allocation53_spill] sm:$0xff]  ;;  %v11272_v15 = vld [vmem:[#allocation168_spill] sm:$0xff] }
 0x41a   :  { %v5008_v60 = vmul.f32 %v4712_v46, %v11265_v24  ;;  %v3623_v38 = vrot.slane %v3622_v33, 1  ;;  %v3997_v23 = vrot.slane %v3996_v50, 2  ;;  %v4371_v29 = vrot.slane %v4370_v47, 4  ;;  %v11269_v46 = vld [vmem:[#allocation52_spill] sm:$0xff]  ;;  %v11270_v48 = vld [vmem:[#allocation169_spill] sm:$0xff]  ;;  %v5417_v24 = vpop.permute.xlu0 %5416 }
 0x41b   :  { %v5009_v4 = vmul.f32 %v4713_v30, %v11267_v3  ;;  %v4744_v52 = vsel %vm123_vm0, %v4728_v1, 0.0  ;;  %v4745_v34 = vsel %vm123_vm0, %v4729_v17, 0.0  ;;  %v11271_v2 = vsub.f32 1.0, %v11270_v48  ;;  %3188 = vrot.lane.b32.xlu0 %v8903_v18, %s6695_s28 }
 0x41c   :  { %v5088_v53 = vadd.f32 %v5041_v12, %v5008_v60  ;;  %v3624_v14 = vadd.f32 %v3623_v38, %v3622_v33  ;;  %v3998_v59 = vadd.f32 %v3997_v23, %v3996_v50  ;;  %v4372_v28 = vadd.f32 %v4371_v29, %v4370_v47  ;;  %v5419_v60 = vpop.permute.xlu1 %5418  ;;  %3190 = vrot.lane.b32.xlu1 %v8899_v6, %s6695_s28 }
 0x41d   :  { %v5089_v39 = vadd.f32 %v5043_v49, %v5009_v4  ;;  %v4746_v0 = vadd.f32 %v4745_v34, %v4744_v52  ;;  %v11273_v17 = vsub.f32 1.0, %v11272_v15  ;;  %v9245_v49 = vadd.f32 %v5598_v42, %v9187_v19  ;;  %v11274_v52 = vld [vmem:[#allocation55_spill] sm:$0xff]  ;;  %v11276_v42 = vld [vmem:[#allocation85_spill] sm:$0xff] }
 0x41e   :  { %v5104_v40 = vmul.f32 %v5088_v53, %v11268_v22  ;;  %v5384_v1 = vmul.f32 %v5088_v53, %v11271_v2  ;;  %v9233_v33 = vsel %vm2937_vm3, %v9155_v11, %v3624_v14  ;;  %v3999_v50 = vrot.slane %v3998_v59, 1  ;;  %v11275_v53 = vld [vmem:[#allocation56_spill] sm:$0xff]  ;;  %v11279_v15 = vld [vmem:[#allocation59_spill] sm:$0xff] }
 0x41f   :  { %v5105_v30 = vmul.f32 %v5089_v39, %v11269_v46  ;;  %v5385_v54 = vmul.f32 %v5089_v39, %v11273_v17  ;;  %v4373_v47 = vrot.slane %v4372_v28, 2  ;;  %v4747_v10 = vrot.slane %v4746_v0, 4  ;;  %3564 = vrot.lane.b32.xlu0 %v8917_v37, %s6695_s28 }
 0x420   :  { %v5120_v57 = vsel %vm123_vm0, %v5104_v40, 0.0  ;;  %v5464_v32 = vadd.f32 %v5417_v24, %v5384_v1  ;;  %v4000_v38 = vadd.f32 %v3999_v50, %v3998_v59  ;;  %v9242_v11 = vadd.f32 %v5136_v61, %v9173_v21  ;;  %v3175_v21 = vpop.permute.xlu1 %3174  ;;  %v11277_v40 = vld [vmem:[#allocation180_spill] sm:$0xff]  ;;  %3566 = vrot.lane.b32.xlu1 %v8913_v44, %s6695_s28 }
 0x421   :  { %v5121_v3 = vsel %vm123_vm0, %v5105_v30, 0.0  ;;  %v5465_v4 = vadd.f32 %v5419_v60, %v5385_v54  ;;  %v4374_v23 = vadd.f32 %v4373_v47, %v4372_v28  ;;  %v4748_v29 = vadd.f32 %v4747_v10, %v4746_v0  ;;  %v3173_v0 = vpop.permute.xlu0 %3172  ;;  %v11280_v54 = vld [vmem:[#allocation93_spill] sm:$0xff]  ;;  %v11282_v10 = vld [vmem:[#allocation92_spill] sm:$0xff] }
 0x422   :  { %v5122_v12 = vadd.f32 %v5121_v3, %v5120_v57  ;;  %v5568_v34 = vmul.f32 %v11274_v52, %v5464_v32  ;;  %v9253_v14 = vsel %vm2937_vm3, %v9167_v20, %v4000_v38  ;;  %v3214_v22 = vadd.f32 %v3173_v0, %v11276_v42  ;;  %v11278_v20 = vld [vmem:[#allocation60_spill] sm:$0xff]  ;;  %v11286_v0 = vld [vmem:[#allocation94_spill] sm:$0xff] }
 0x423   :  { %v5569_v39 = vmul.f32 %v11275_v53, %v5465_v4  ;;  %v4375_v18 = vrot.slane %v4374_v23, 1  ;;  %v4749_v59 = vrot.slane %v4748_v29, 2  ;;  %v3215_v46 = vadd.f32 %v3175_v21, %v11277_v40  ;;  %3940 = vrot.lane.b32.xlu0 %v8943_v13, %s6695_s28 }
 0x424   :  { %v5123_v28 = vrot.slane %v5122_v12, 4  ;;  %v5584_v61 = vsel %vm123_vm0, %v5568_v34, 0.0  ;;  %v3230_v1 = vmul.f32 %v3214_v22, %v11278_v20  ;;  %v11281_v50 = vsub.f32 1.0, %v11280_v54  ;;  %v3551_v38 = vpop.permute.xlu1 %3550  ;;  %3942 = vrot.lane.b32.xlu1 %v8939_v36, %s6695_s28 }
 0x425   :  { %v5585_v19 = vsel %vm123_vm0, %v5569_v39, 0.0  ;;  %v4376_v30 = vadd.f32 %v4375_v18, %v4374_v23  ;;  %v4750_v48 = vadd.f32 %v4749_v59, %v4748_v29  ;;  %v3231_v17 = vmul.f32 %v3215_v46, %v11279_v15  ;;  %v3549_v4 = vpop.permute.xlu0 %3548  ;;  %v11285_v59 = vld [vmem:[#allocation61_spill] sm:$0xff] }
 0x426   :  { %v5124_v6 = vadd.f32 %v5123_v28, %v5122_v12  ;;  %v5586_v2 = vadd.f32 %v5585_v19, %v5584_v61  ;;  %v3510_v47 = vmul.f32 %v3214_v22, %v11281_v50  ;;  %v11283_v24 = vsub.f32 1.0, %v11282_v10  ;;  %v11288_v19 = vld [vmem:[#allocation84_spill] sm:$0xff]  ;;  %v11291_v10 = vld [vmem:[#allocation63_spill] sm:$0xff] }
 0x427   :  { %v9271_v57 = vsel %vm2937_vm3, %v9171_v35, %v4376_v30  ;;  %v4751_v3 = vrot.slane %v4750_v48, 1  ;;  %v3267_v23 = vsel %vm123_vm0, %v3230_v1, 0.0  ;;  %v3268_v29 = vsel %vm123_vm0, %v3231_v17, 0.0  ;;  %v11284_v35 = vld [vmem:[#allocation62_spill] sm:$0xff]  ;;  %4316 = vrot.lane.b32.xlu0 %v8953_v45, %s6695_s28 }
 0x428   :  { %v3511_v60 = vmul.f32 %v3215_v46, %v11283_v24  ;;  %v5125_v32 = vrot.slane %v5124_v6, 2  ;;  %v5587_v37 = vrot.slane %v5586_v2, 4  ;;  %v3590_v44 = vadd.f32 %v3549_v4, %v3510_v47  ;;  %4318 = vrot.lane.b32.xlu1 %v8949_v43, %s6695_s28 }
 0x429   :  { %v4752_v52 = vadd.f32 %v4751_v3, %v4750_v48  ;;  %v3269_v39 = vadd.f32 %v3268_v29, %v3267_v23  ;;  %v11287_v21 = vsub.f32 1.0, %v11286_v0  ;;  %v11289_v42 = vsub.f32 1.0, %v11288_v19  ;;  %v3925_v48 = vpop.permute.xlu0 %3924  ;;  %v11298_v19 = vld [vmem:[#allocation97_spill] sm:$0xff] }
 0x42a   :  { %v3591_v12 = vadd.f32 %v3551_v38, %v3511_v60  ;;  %v5126_v34 = vadd.f32 %v5125_v32, %v5124_v6  ;;  %v5588_v53 = vadd.f32 %v5587_v37, %v5586_v2  ;;  %v3606_v18 = vmul.f32 %v3590_v44, %v11284_v35  ;;  %v3927_v6 = vpop.permute.xlu1 %3926  ;;  %v11292_v60 = vld [vmem:[#allocation96_spill] sm:$0xff]  ;;  %v11294_v37 = vld [vmem:[#allocation185_spill] sm:$0xff] }
 0x42b   :  { %v3886_v61 = vmul.f32 %v3590_v44, %v11287_v21  ;;  %v9287_v40 = vsel %vm2937_vm3, %v9185_v31, %v4752_v52  ;;  %v3270_v13 = vrot.slane %v3269_v39, 4  ;;  %v5600_v15 = vrot.slane %v9245_v49, 1  ;;  %v11290_v31 = vld [vmem:[#allocation64_spill] sm:$0xff]  ;;  %4692 = vrot.lane.b32.xlu0 %v8972_v63, %s6695_s28  ;;  %v11297_v21 = vld [vmem:[#allocation65_spill] sm:$0xff] }
 0x42c   :  { %v3607_v28 = vmul.f32 %v3591_v12, %v11285_v59  ;;  %v3887_v22 = vmul.f32 %v3591_v12, %v11289_v42  ;;  %v5127_v46 = vrot.slane %v5126_v34, 1  ;;  %v5589_v30 = vrot.slane %v5588_v53, 2  ;;  %4694 = vrot.lane.b32.xlu1 %v8965_v41, %s6695_s28 }
 0x42d   :  { %v3643_v2 = vsel %vm123_vm0, %v3606_v18, 0.0  ;;  %v3966_v36 = vadd.f32 %v3925_v48, %v3886_v61  ;;  %v11293_v3 = vsub.f32 1.0, %v11292_v60  ;;  %v11295_v4 = vsub.f32 1.0, %v11294_v37  ;;  %v4301_v12 = vpop.permute.xlu0 %4300  ;;  %v11307_v37 = vld [vmem:[#allocation192_spill] sm:$0xff] }
 0x42e   :  { %v3644_v20 = vsel %vm123_vm0, %v3607_v28, 0.0  ;;  %v3967_v1 = vadd.f32 %v3927_v6, %v3887_v22  ;;  %v5128_v17 = vadd.f32 %v5127_v46, %v5126_v34  ;;  %v5590_v54 = vadd.f32 %v5589_v30, %v5588_v53  ;;  %v4303_v52 = vpop.permute.xlu1 %4302  ;;  %v11300_v46 = vld [vmem:[#allocation186_spill] sm:$0xff] }
 0x42f   :  { %v3645_v50 = vadd.f32 %v3644_v20, %v3643_v2  ;;  %v3982_v47 = vmul.f32 %v3966_v36, %v11290_v31  ;;  %v4262_v32 = vmul.f32 %v3966_v36, %v11293_v3  ;;  %v3271_v44 = vadd.f32 %v3270_v13, %v3269_v39  ;;  %v11296_v39 = vld [vmem:[#allocation66_spill] sm:$0xff]  ;;  %v11304_v31 = vld [vmem:[#allocation148_spill] sm:$0xff]  ;;  %5068 = vrot.lane.b32.xlu0 %v8999_v51, %s6695_s28 }
 0x430   :  { %v3983_v24 = vmul.f32 %v3967_v1, %v11291_v10  ;;  %v4263_v38 = vmul.f32 %v3967_v1, %v11295_v4  ;;  %v9304_v23 = vsel %vm2937_vm3, %v9242_v11, %v5128_v17  ;;  %v5591_v29 = vrot.slane %v5590_v54, 1  ;;  %v11303_v17 = vld [vmem:[#allocation219_spill] sm:$0xff]  ;;  %v11306_v3 = vld [vmem:[#allocation72_spill] sm:$0xff]  ;;  %5070 = vrot.lane.b32.xlu1 %v8995_v8, %s6695_s28 }
 0x431   :  { %v3646_v45 = vrot.slane %v3645_v50, 4  ;;  %v4019_v34 = vsel %vm123_vm0, %v3982_v47, 0.0  ;;  %v4342_v43 = vadd.f32 %v4301_v12, %v4262_v32  ;;  %v9310_v18 = vmul.f32 %v11233_v5, %v8665_v9  ;;  %v4677_v63 = vpop.permute.xlu0 %4676 }
 0x432   :  { %v4020_v53 = vsel %vm123_vm0, %v3983_v24, 0.0  ;;  %v4343_v35 = vadd.f32 %v4303_v52, %v4263_v38  ;;  %v5601_v59 = vadd.f32 %v5600_v15, %v9245_v49  ;;  %v5592_v28 = vadd.f32 %v5591_v29, %v5590_v54  ;;  %v4679_v2 = vpop.permute.xlu1 %4678  ;;  %v11302_v15 = vld [vmem:[#allocation149_spill] sm:$0xff]  ;;  %v11309_v29 = vld [vmem:[#allocation191_spill] sm:$0xff] }
 0x433   :  { %v4021_v11 = vadd.f32 %v4020_v53, %v4019_v34  ;;  %v4358_v0 = vmul.f32 %v4342_v43, %v11296_v39  ;;  %v11299_v42 = vsub.f32 1.0, %v11298_v19  ;;  %v11301_v5 = vsub.f32 1.0, %v11300_v46  ;;  %5444 = vrot.lane.b32.xlu0 %v9031_v16, %s6695_s28  ;;  %v11314_v46 = vld [vmem:[#allocation75_spill] sm:$0xff] }
 0x434   :  { %v4359_v61 = vmul.f32 %v4343_v35, %v11297_v21  ;;  %v9324_v49 = vsel %vm2937_vm3, %v5601_v59, %v5592_v28  ;;  %v3272_v13 = vrot.slane %v3271_v44, 2  ;;  %v3647_v48 = vadd.f32 %v3646_v45, %v3645_v50  ;;  %v11305_v50 = vld [vmem:[#allocation73_spill] sm:$0xff]  ;;  %5446 = vrot.lane.b32.xlu1 %v9027_v56, %s6695_s28 }
 0x435   :  { %v4638_v22 = vmul.f32 %v4342_v43, %v11299_v42  ;;  %v4639_v30 = vmul.f32 %v4343_v35, %v11301_v5  ;;  %v4022_v6 = vrot.slane %v4021_v11, 4  ;;  %v4395_v20 = vsel %vm123_vm0, %v4358_v0, 0.0  ;;  %v5053_v53 = vpop.permute.xlu0 %5052  ;;  %v11311_v59 = vld [vmem:[#allocation225_spill] sm:$0xff]  ;;  %v11313_v0 = vld [vmem:[#allocation220_spill] sm:$0xff] }
 0x436   :  { %v4396_v36 = vsel %vm123_vm0, %v4359_v61, 0.0  ;;  %v9330_v54 = vmul.f32 %v11303_v17, %v11302_v15  ;;  %v9334_v47 = vmul.f32 %v11303_v17, %v11304_v31  ;;  %v11308_v4 = vsub.f32 1.0, %v11307_v37  ;;  %v5055_v43 = vpop.permute.xlu1 %5054  ;;  %v11317_v17 = vld [vmem:[#allocation234_spill] sm:$0xff] }
 0x437   :  { %v4718_v1 = vadd.f32 %v4677_v63, %v4638_v22  ;;  %v4719_v41 = vadd.f32 %v4679_v2, %v4639_v30  ;;  %v4023_v10 = vadd.f32 %v4022_v6, %v4021_v11  ;;  %v4397_v24 = vadd.f32 %v4396_v36, %v4395_v20  ;;  %3184 = vrot.lane.b32.xlu0 %v9057_v25, %s6695_s28  ;;  %v11331_v30 = vld [vmem:[#allocation206_spill] sm:$0xff] }
 0x438   :  { %v11310_v45 = vsub.f32 1.0, %v11309_v29  ;;  %v3648_v52 = vrot.slane %v3647_v48, 2  ;;  %v9350_v28 = vmul.f32 %v11311_v59, %v8751_v27  ;;  %v3273_v11 = vadd.f32 %v3272_v13, %v3271_v44  ;;  %v11315_v13 = vld [vmem:[#allocation226_spill] sm:$0xff] }
 0x439   :  { %v4734_v60 = vmul.f32 %v4718_v1, %v11305_v50  ;;  %v4735_v32 = vmul.f32 %v4719_v41, %v11306_v3  ;;  %v5014_v38 = vmul.f32 %v4718_v1, %v11308_v4  ;;  %v4398_v34 = vrot.slane %v4397_v24, 4  ;;  %v5429_v20 = vpop.permute.xlu0 %5428  ;;  %v11319_v4 = vld [vmem:[#allocation76_spill] sm:$0xff] }
 0x43a   :  { %v5015_v12 = vmul.f32 %v4719_v41, %v11310_v45  ;;  %11312 = vst [vmem:[#allocation200_spill] sm:$0xff] %v9350_v28  ;;  %v9356_v21 = vmul.f32 %v11313_v0, %v11302_v15  ;;  %v4024_v61 = vrot.slane %v4023_v10, 2  ;;  %v9362_v22 = vmul.f32 %v11313_v0, %v11304_v31  ;;  %v5431_v36 = vpop.permute.xlu1 %5430  ;;  %v11316_v41 = vld [vmem:[#allocation247_spill] sm:$0xff]  ;;  %v11322_v45 = vld [vmem:[#allocation117_spill] sm:$0xff] }
 0x43b   :  { %v4771_v8 = vsel %vm123_vm0, %v4734_v60, 0.0  ;;  %v4772_v39 = vsel %vm123_vm0, %v4735_v32, 0.0  ;;  %v5094_v19 = vadd.f32 %v5053_v53, %v5014_v38  ;;  %v9366_v44 = vmul.f32 %v11311_v59, %v11314_v46  ;;  %v11318_v32 = vld [vmem:[#allocation77_spill] sm:$0xff]  ;;  %v11324_v53 = vld [vmem:[#allocation174_spill] sm:$0xff]  ;;  %3560 = vrot.lane.b32.xlu0 %v9087_v7, %s6695_s28 }
 0x43c   :  { %v5095_v42 = vadd.f32 %v5055_v43, %v5015_v12  ;;  %v9374_v6 = vmul.f32 %v11315_v13, %v11314_v46  ;;  %v3649_v16 = vadd.f32 %v3648_v52, %v3647_v48  ;;  %v4399_v63 = vadd.f32 %v4398_v34, %v4397_v24  ;;  %v11320_v24 = vld [vmem:[#allocation197_spill] sm:$0xff]  ;;  %v11323_v52 = vld [vmem:[#allocation248_spill] sm:$0xff]  ;;  %v11325_v43 = vld [vmem:[#allocation231_spill] sm:$0xff] }
 0x43d   :  { %v4773_v2 = vadd.f32 %v4772_v39, %v4771_v8  ;;  %v9378_v1 = vmul.f32 %v11315_v13, %v8751_v27  ;;  %v9382_v56 = vmul.f32 %v11317_v17, %v11316_v41  ;;  %v3274_v50 = vrot.slane %v3273_v11, 1  ;;  %v11326_v8 = vld [vmem:[#allocation198_spill] sm:$0xff] }
 0x43e   :  { %v4025_v3 = vadd.f32 %v4024_v61, %v4023_v10  ;;  %v5110_v37 = vmul.f32 %v5094_v19, %v11318_v32  ;;  %v5111_v48 = vmul.f32 %v5095_v42, %v11319_v4  ;;  %v11321_v38 = vsub.f32 1.0, %v11320_v24  ;;  %3186 = vrot.lane.b32.xlu1 %v11326_v8, %s6695_s28  ;;  %v11327_v61 = vld [vmem:[#allocation196_spill] sm:$0xff]  ;;  %v3169_v32 = vpop.permute.xlu0 %3168  ;;  %v11329_v4 = vld [vmem:[#allocation249_spill] sm:$0xff] }
 0x43f   :  { %v9393_v12 = vmul.f32 %v11322_v45, %v11316_v41  ;;  %v9397_v34 = vmul.f32 %v11317_v17, %v11323_v52  ;;  %v9401_v10 = vmul.f32 %v11322_v45, %v11323_v52  ;;  %v9405_v59 = vmul.f32 %v11325_v43, %v11324_v53  ;;  %v3171_v17 = vpop.permute.xlu1 %3170  ;;  %v11330_v45 = vld [vmem:[#allocation205_spill] sm:$0xff]  ;;  %3936 = vrot.lane.b32.xlu0 %v9310_v18, %s6695_s28 }
 0x440   :  { %v5390_v29 = vmul.f32 %v5094_v19, %v11321_v38  ;;  %v3650_v25 = vrot.slane %v3649_v16, 1  ;;  %v4400_v39 = vrot.slane %v4399_v63, 2  ;;  %v4774_v0 = vrot.slane %v4773_v2, 4 }
 0x441   :  { %v11328_v19 = vsub.f32 1.0, %v11327_v61  ;;  %v9413_v24 = vmul.f32 %v11325_v43, %v11329_v4  ;;  %v9415_v38 = vadd.f32 %v3274_v50, %v3273_v11  ;;  %v3212_v60 = vadd.f32 %v3169_v32, %v11330_v45  ;;  %v11334_v11 = vld [vmem:[#allocation28_spill] sm:$0xff]  ;;  %v11335_v50 = vld [vmem:[#allocation109_spill] sm:$0xff] }
 0x442   :  { %v3213_v5 = vadd.f32 %v3171_v17, %v11331_v30  ;;  %v4026_v51 = vrot.slane %v4025_v3, 1  ;;  %v5147_v8 = vsel %vm123_vm0, %v5110_v37, 0.0  ;;  %v5148_v35 = vsel %vm123_vm0, %v5111_v48, 0.0  ;;  %3562 = vrot.lane.b32.xlu1 %v11334_v11, %s6695_s28  ;;  %v11337_v30 = vld [vmem:[#allocation105_spill] sm:$0xff]  ;;  %v3545_v7 = vpop.permute.xlu0 %3544 }
 0x443   :  { %v5391_v13 = vmul.f32 %v5095_v42, %v11328_v19  ;;  %v5470_v41 = vadd.f32 %v5429_v20, %v5390_v29  ;;  %v11332_v42 = vld [vmem:[#allocation91_spill] sm:$0xff]  ;;  %v11333_v19 = vld [vmem:[#allocation90_spill] sm:$0xff]  ;;  %v11336_v32 = vsub.f32 1.0, %v11335_v50  ;;  %v11338_v17 = vsub.f32 1.0, %v11337_v30  ;;  %v3547_v28 = vpop.permute.xlu1 %3546  ;;  %4312 = vrot.lane.b32.xlu0 %v9362_v22, %s6695_s28 }
 0x444   :  { %v3228_v61 = vmul.f32 %v3212_v60, %v11332_v42  ;;  %v3229_v43 = vmul.f32 %v3213_v5, %v11333_v19  ;;  %v9431_v37 = vadd.f32 %v3650_v25, %v3649_v16  ;;  %v9433_v48 = vadd.f32 %v4400_v39, %v4399_v63  ;;  %v11339_v50 = vld [vmem:[#allocation78_spill] sm:$0xff]  ;;  %v11340_v16 = vld [vmem:[#allocation100_spill] sm:$0xff]  ;;  %v11342_v25 = vld [vmem:[#allocation211_spill] sm:$0xff] }
 0x445   :  { %v3508_v45 = vmul.f32 %v3212_v60, %v11336_v32  ;;  %v3509_v52 = vmul.f32 %v3213_v5, %v11338_v17  ;;  %v4775_v20 = vadd.f32 %v4774_v0, %v4773_v2  ;;  %v5471_v29 = vadd.f32 %v5431_v36, %v5391_v13  ;;  %v11341_v2 = vld [vmem:[#allocation99_spill] sm:$0xff] }
 0x446   :  { %v3258_v42 = vsel %vm123_vm0, %v3228_v61, 0.0  ;;  %v3259_v19 = vsel %vm123_vm0, %v3229_v43, 0.0  ;;  %v9437_v27 = vadd.f32 %v4026_v51, %v4025_v3  ;;  %v5149_v60 = vadd.f32 %v5148_v35, %v5147_v8  ;;  %3938 = vrot.lane.b32.xlu1 %v9127_v58, %s6695_s28  ;;  %v3921_v18 = vpop.permute.xlu0 %3920 }
 0x447   :  { %v3588_v46 = vadd.f32 %v3545_v7, %v3508_v45  ;;  %v3589_v11 = vadd.f32 %v3547_v28, %v3509_v52  ;;  %v5574_v32 = vmul.f32 %v11339_v50, %v5470_v41  ;;  %v3260_v5 = vadd.f32 %v3259_v19, %v3258_v42  ;;  %v11344_v28 = vld [vmem:[#allocation210_spill] sm:$0xff]  ;;  %v11346_v52 = vld [vmem:[#allocation79_spill] sm:$0xff]  ;;  %v3923_v61 = vpop.permute.xlu1 %3922  ;;  %4688 = vrot.lane.b32.xlu0 %v9378_v1, %s6695_s28 }
 0x448   :  { %v11343_v39 = vsub.f32 1.0, %v11342_v25  ;;  %v11345_v51 = vsub.f32 1.0, %v11344_v28  ;;  %v4402_v35 = vrot.slane %v9433_v48, 1  ;;  %v4776_v41 = vrot.slane %v4775_v20, 2  ;;  %v11347_v19 = vld [vmem:[#allocation103_spill] sm:$0xff] }
 0x449   :  { %v3604_v63 = vmul.f32 %v3588_v46, %v11340_v16  ;;  %v3605_v36 = vmul.f32 %v3589_v11, %v11341_v2  ;;  %v5575_v13 = vmul.f32 %v11346_v52, %v5471_v29  ;;  %v3261_v8 = vrot.slane %v3260_v5, 4  ;;  %v11348_v29 = vld [vmem:[#allocation102_spill] sm:$0xff] }
 0x44a   :  { %v3884_v0 = vmul.f32 %v3588_v46, %v11343_v39  ;;  %v3885_v3 = vmul.f32 %v3589_v11, %v11345_v51  ;;  %v5150_v17 = vrot.slane %v5149_v60, 4  ;;  %v5611_v46 = vsel %vm123_vm0, %v5574_v32, 0.0  ;;  %4314 = vrot.lane.b32.xlu1 %v9356_v21, %s6695_s28  ;;  %v11349_v16 = vld [vmem:[#allocation218_spill] sm:$0xff]  ;;  %v4297_v22 = vpop.permute.xlu0 %4296 }
 0x44b   :  { %v3634_v43 = vsel %vm123_vm0, %v3604_v63, 0.0  ;;  %v3635_v45 = vsel %vm123_vm0, %v3605_v36, 0.0  ;;  %v3262_v7 = vadd.f32 %v3261_v8, %v3260_v5  ;;  %v11350_v63 = vsub.f32 1.0, %v11349_v16  ;;  %v11351_v36 = vld [vmem:[#allocation213_spill] sm:$0xff]  ;;  %v4299_v51 = vpop.permute.xlu1 %4298  ;;  %5064 = vrot.lane.b32.xlu0 %v9401_v10, %s6695_s28 }
 0x44c   :  { %v3964_v30 = vadd.f32 %v3921_v18, %v3884_v0  ;;  %v3965_v58 = vadd.f32 %v3923_v61, %v3885_v3  ;;  %v3636_v42 = vadd.f32 %v3635_v45, %v3634_v43  ;;  %v11352_v25 = vsub.f32 1.0, %v11351_v36 }
 0x44d   :  { %v9465_v0 = vadd.f32 %v4776_v41, %v4775_v20  ;;  %v5612_v32 = vsel %vm123_vm0, %v5575_v13, 0.0  ;;  %v3263_v5 = vrot.slane %v3262_v7, 2  ;;  %v9470_v18 = vadd.f32 %v5150_v17, %v5149_v60  ;;  %v11353_v20 = vld [vmem:[#allocation108_spill] sm:$0xff]  ;;  %v11354_v13 = vld [vmem:[#allocation107_spill] sm:$0xff] }
 0x44e   :  { %v3980_v11 = vmul.f32 %v3964_v30, %v11347_v19  ;;  %v3981_v50 = vmul.f32 %v3965_v58, %v11348_v29  ;;  %v4260_v2 = vmul.f32 %v3964_v30, %v11350_v63  ;;  %v4261_v39 = vmul.f32 %v3965_v58, %v11352_v25  ;;  %4690 = vrot.lane.b32.xlu1 %v9374_v6, %s6695_s28  ;;  %v11355_v58 = vld [vmem:[#allocation222_spill] sm:$0xff]  ;;  %v11357_v29 = vld [vmem:[#allocation221_spill] sm:$0xff]  ;;  %v4673_v63 = vpop.permute.xlu0 %4672 }
 0x44f   :  { %v3637_v28 = vrot.slane %v3636_v42, 4  ;;  %v3264_v61 = vadd.f32 %v3263_v5, %v3262_v7  ;;  %v11356_v19 = vsub.f32 1.0, %v11355_v58  ;;  %v9482_v17 = vadd.f32 %v5612_v32, %v5611_v46  ;;  %v4675_v1 = vpop.permute.xlu1 %4674  ;;  %v11359_v46 = vld [vmem:[#allocation112_spill] sm:$0xff]  ;;  %5440 = vrot.lane.b32.xlu0 %v9413_v24, %s6695_s28 }
 0x450   :  { %v4010_v3 = vsel %vm123_vm0, %v3980_v11, 0.0  ;;  %v4011_v52 = vsel %vm123_vm0, %v3981_v50, 0.0  ;;  %v4340_v8 = vadd.f32 %v4297_v22, %v4260_v2  ;;  %v4341_v21 = vadd.f32 %v4299_v51, %v4261_v39  ;;  %v11360_v51 = vld [vmem:[#allocation111_spill] sm:$0xff] }
 0x451   :  { %v3638_v43 = vadd.f32 %v3637_v28, %v3636_v42  ;;  %v4012_v45 = vadd.f32 %v4011_v52, %v4010_v3  ;;  %v11358_v50 = vsub.f32 1.0, %v11357_v29  ;;  %v3265_v7 = vrot.slane %v3264_v61, 1  ;;  %v11361_v52 = vld [vmem:[#allocation116_spill] sm:$0xff] }
 0x452   :  { %v4356_v41 = vmul.f32 %v4340_v8, %v11353_v20  ;;  %v4357_v30 = vmul.f32 %v4341_v21, %v11354_v13  ;;  %v4636_v11 = vmul.f32 %v4340_v8, %v11356_v19  ;;  %5066 = vrot.lane.b32.xlu1 %v9393_v12, %s6695_s28  ;;  %v11362_v8 = vsub.f32 1.0, %v11361_v52  ;;  %v11363_v20 = vld [vmem:[#allocation115_spill] sm:$0xff]  ;;  %v5049_v10 = vpop.permute.xlu0 %5048 }
 0x453   :  { %v4637_v60 = vmul.f32 %v4341_v21, %v11358_v50  ;;  %v3639_v42 = vrot.slane %v3638_v43, 2  ;;  %v4013_v16 = vrot.slane %v4012_v45, 4  ;;  %v3266_v6 = vadd.f32 %v3265_v7, %v3264_v61  ;;  %v5051_v58 = vpop.permute.xlu1 %5050 }
 0x454   :  { %v4386_v2 = vsel %vm123_vm0, %v4356_v41, 0.0  ;;  %v4387_v36 = vsel %vm123_vm0, %v4357_v30, 0.0  ;;  %v4716_v25 = vadd.f32 %v4673_v63, %v4636_v11  ;;  %v11364_v41 = vsub.f32 1.0, %v11363_v20  ;;  %v11366_v63 = vld [vmem:[#allocation113_spill] sm:$0xff] }
 0x455   :  { %v4717_v39 = vadd.f32 %v4675_v1, %v4637_v60  ;;  %v3640_v5 = vadd.f32 %v3639_v42, %v3638_v43  ;;  %v4014_v28 = vadd.f32 %v4013_v16, %v4012_v45  ;;  %v4388_v22 = vadd.f32 %v4387_v36, %v4386_v2  ;;  %v11365_v16 = vld [vmem:[#allocation114_spill] sm:$0xff] }
 0x456   :  { %v4732_v32 = vmul.f32 %v4716_v25, %v11359_v46  ;;  %v5012_v21 = vmul.f32 %v4716_v25, %v11362_v8  ;;  %v3321_v61 = vsel %vm2939_vm4, %v3266_v6, %v9217_v55  ;;  %5442 = vrot.lane.b32.xlu1 %v9405_v59, %s6695_s28  ;;  %v11367_v2 = vld [vmem:[#allocation118_spill] sm:$0xff]  ;;  %v5152_v20 = vrot.slane %v9470_v18, 2 }
 0x457   :  { %v4733_v3 = vmul.f32 %v4717_v39, %v11360_v51  ;;  %v5013_v13 = vmul.f32 %v4717_v39, %v11364_v41  ;;  %v3641_v43 = vrot.slane %v3640_v5, 1  ;;  %v4015_v45 = vrot.slane %v4014_v28, 2  ;;  %v11369_v39 = vld [vmem:[#allocation230_spill] sm:$0xff]  ;;  %v5427_v51 = vpop.permute.xlu1 %5426 }
 0x458   :  { %v4389_v30 = vrot.slane %v4388_v22, 4  ;;  %v4762_v19 = vsel %vm123_vm0, %v4732_v32, 0.0  ;;  %v5092_v29 = vadd.f32 %v5049_v10, %v5012_v21  ;;  %v11368_v36 = vsub.f32 1.0, %v11367_v2  ;;  %v5425_v32 = vpop.permute.xlu0 %5424 }
 0x459   :  { %v4763_v11 = vsel %vm123_vm0, %v4733_v3, 0.0  ;;  %v5093_v12 = vadd.f32 %v5051_v58, %v5013_v13  ;;  %v3642_v50 = vadd.f32 %v3641_v43, %v3640_v5  ;;  %v4016_v60 = vadd.f32 %v4015_v45, %v4014_v28  ;;  %v11371_v43 = vld [vmem:[#allocation27_spill] sm:$0xff] }
 0x45a   :  { %v4390_v7 = vadd.f32 %v4389_v30, %v4388_v22  ;;  %v4764_v42 = vadd.f32 %v4763_v11, %v4762_v19  ;;  %v5108_v55 = vmul.f32 %v5092_v29, %v11365_v16  ;;  %v5388_v25 = vmul.f32 %v5092_v29, %v11368_v36  ;;  %5562 = vbcast.lane.b32.xlu0 %v11371_v43, 256  ;;  %v11372_v30 = vld [vmem:[#allocation121_spill] sm:$0xff]  ;;  %v11375_v36 = vld [vmem:[#allocation238_spill] sm:$0xff] }
 0x45b   :  { %v5109_v1 = vmul.f32 %v5093_v12, %v11366_v63  ;;  %v11370_v6 = vsub.f32 1.0, %v11369_v39  ;;  %v4017_v5 = vrot.slane %v4016_v60, 1  ;;  %v9512_v24 = vsel %vm2941_vm5, %v9415_v38, %v3321_v61  ;;  %v11373_v38 = vld [vmem:[#allocation122_spill] sm:$0xff]  ;;  %5566 = vbcast.lane.b32.xlu1 %v11371_v43, 264  ;;  %v3183_v16 = vpop.permute.xlu1 %3182 }
 0x45c   :  { %v4391_v28 = vrot.slane %v4390_v7, 2  ;;  %v4765_v22 = vrot.slane %v4764_v42, 4  ;;  %v5138_v3 = vsel %vm123_vm0, %v5108_v55, 0.0  ;;  %v5468_v59 = vadd.f32 %v5425_v32, %v5388_v25 }
 0x45d   :  { %v5389_v46 = vmul.f32 %v5093_v12, %v11370_v6  ;;  %v5139_v52 = vsel %vm123_vm0, %v5109_v1, 0.0  ;;  %v4778_v21 = vrot.slane %v9465_v0, 1  ;;  %v5614_v41 = vrot.slane %v9482_v17, 4  ;;  %v3181_v12 = vpop.permute.xlu0 %3180  ;;  %v11374_v1 = vld [vmem:[#allocation237_spill] sm:$0xff]  ;;  %v11376_v6 = vld [vmem:[#allocation235_spill] sm:$0xff] }
 0x45e   :  { %v5140_v13 = vadd.f32 %v5139_v52, %v5138_v3  ;;  %v4392_v45 = vadd.f32 %v4391_v28, %v4390_v7  ;;  %v5572_v10 = vmul.f32 %v11372_v30, %v5468_v59  ;;  %v3697_v58 = vsel %vm2939_vm4, %v3642_v50, %v9233_v33  ;;  %v11378_v28 = vld [vmem:[#allocation123_spill] sm:$0xff] }
 0x45f   :  { %v5469_v8 = vadd.f32 %v5427_v51, %v5389_v46  ;;  %v4018_v19 = vadd.f32 %v4017_v5, %v4016_v60  ;;  %v4766_v11 = vadd.f32 %v4765_v22, %v4764_v42  ;;  %v9527_v55 = vsel %vm2941_vm5, %v9431_v37, %v3697_v58  ;;  %v3559_v59 = vpop.permute.xlu1 %3558 }
 0x460   :  { %v5141_v29 = vrot.slane %v5140_v13, 4  ;;  %v5602_v7 = vsel %vm123_vm0, %v5572_v10, 0.0  ;;  %v3218_v2 = vadd.f32 %v3181_v12, %v11374_v1  ;;  %v3219_v25 = vadd.f32 %v3183_v16, %v11375_v36  ;;  %v11384_v16 = vld [vmem:[#allocation134_spill] sm:$0xff] }
 0x461   :  { %v5573_v61 = vmul.f32 %v11373_v38, %v5469_v8  ;;  %v5153_v39 = vadd.f32 %v5152_v20, %v9470_v18  ;;  %v5615_v33 = vadd.f32 %v5614_v41, %v9482_v17  ;;  %v9538_v42 = vadd.f32 %v4402_v35, %v9433_v48  ;;  %v3557_v18 = vpop.permute.xlu0 %3556  ;;  %v11380_v8 = vld [vmem:[#allocation131_spill] sm:$0xff]  ;;  %v11381_v41 = vld [vmem:[#allocation130_spill] sm:$0xff] }
 0x462   :  { %v5142_v50 = vadd.f32 %v5141_v29, %v5140_v13  ;;  %v4393_v37 = vrot.slane %v4392_v45, 1  ;;  %v11377_v46 = vsub.f32 1.0, %v11376_v6  ;;  %v11379_v22 = vsub.f32 1.0, %v11378_v28  ;;  %v11383_v29 = vld [vmem:[#allocation137_spill] sm:$0xff] }
 0x463   :  { %v5603_v63 = vsel %vm123_vm0, %v5573_v61, 0.0  ;;  %v4767_v51 = vrot.slane %v4766_v11, 2  ;;  %v4073_v17 = vsel %vm2939_vm4, %v4018_v19, %v9253_v14  ;;  %v3234_v20 = vmul.f32 %v3218_v2, %v11380_v8  ;;  %v11382_v61 = vld [vmem:[#allocation138_spill] sm:$0xff]  ;;  %v11386_v14 = vld [vmem:[#allocation236_spill] sm:$0xff] }
 0x464   :  { %v5604_v60 = vadd.f32 %v5603_v63, %v5602_v7  ;;  %v3514_v5 = vmul.f32 %v3218_v2, %v11377_v46  ;;  %v3515_v32 = vmul.f32 %v3219_v25, %v11379_v22  ;;  %v5143_v3 = vrot.slane %v5142_v50, 2  ;;  %v3935_v46 = vpop.permute.xlu1 %3934 }
 0x465   :  { %v3235_v48 = vmul.f32 %v3219_v25, %v11381_v41  ;;  %v9549_v43 = vadd.f32 %v4778_v21, %v9465_v0  ;;  %v5154_v30 = vrot.slane %v5153_v39, 1  ;;  %v5616_v10 = vrot.slane %v5615_v33, 2  ;;  %v3933_v6 = vpop.permute.xlu0 %3932 }
 0x466   :  { %v5605_v52 = vrot.slane %v5604_v60, 4  ;;  %v3594_v35 = vadd.f32 %v3557_v18, %v3514_v5  ;;  %v3595_v13 = vadd.f32 %v3559_v59, %v3515_v32  ;;  %v11385_v7 = vsub.f32 1.0, %v11384_v16  ;;  %v11392_v59 = vld [vmem:[#allocation136_spill] sm:$0xff] }
 0x467   :  { %v11387_v19 = vsub.f32 1.0, %v11386_v14  ;;  %v4394_v2 = vadd.f32 %v4393_v37, %v4392_v45  ;;  %v4768_v36 = vadd.f32 %v4767_v51, %v4766_v11  ;;  %v5144_v25 = vadd.f32 %v5143_v3, %v5142_v50  ;;  %v11388_v11 = vld [vmem:[#allocation142_spill] sm:$0xff]  ;;  %v11390_v3 = vld [vmem:[#allocation139_spill] sm:$0xff] }
 0x468   :  { %v5606_v38 = vadd.f32 %v5605_v52, %v5604_v60  ;;  %v3610_v58 = vmul.f32 %v3594_v35, %v11382_v61  ;;  %v3611_v12 = vmul.f32 %v3595_v13, %v11383_v29  ;;  %v3890_v63 = vmul.f32 %v3594_v35, %v11385_v7  ;;  %v11389_v37 = vld [vmem:[#allocation70_spill] sm:$0xff]  ;;  %v4311_v35 = vpop.permute.xlu1 %4310 }
 0x469   :  { %v3891_v1 = vmul.f32 %v3595_v13, %v11387_v19  ;;  %v9559_v0 = vsel %vm2941_vm5, %v9437_v27, %v4073_v17  ;;  %v3285_v21 = vsel %vm123_vm0, %v3234_v20, 0.0  ;;  %v3286_v60 = vsel %vm123_vm0, %v3235_v48, 0.0  ;;  %v11394_v14 = vld [vmem:[#allocation146_spill] sm:$0xff] }
 0x46a   :  { %v3970_v5 = vadd.f32 %v3933_v6, %v3890_v63  ;;  %v9563_v22 = vadd.f32 %v5154_v30, %v5153_v39  ;;  %v5607_v32 = vrot.slane %v5606_v38, 2  ;;  %v3661_v52 = vsel %vm123_vm0, %v3610_v58, 0.0  ;;  %v4309_v39 = vpop.permute.xlu0 %4308 }
 0x46b   :  { %v3971_v28 = vadd.f32 %v3935_v46, %v3891_v1  ;;  %v3662_v45 = vsel %vm123_vm0, %v3611_v12, 0.0  ;;  %v11391_v27 = vsub.f32 1.0, %v11390_v3  ;;  %v11393_v17 = vsub.f32 1.0, %v11392_v59  ;;  %v11395_v1 = vld [vmem:[#allocation69_spill] sm:$0xff]  ;;  %v11396_v46 = vld [vmem:[#allocation140_spill] sm:$0xff] }
 0x46c   :  { %v3986_v50 = vmul.f32 %v3970_v5, %v11388_v11  ;;  %v4769_v20 = vrot.slane %v4768_v36, 1  ;;  %v5145_v41 = vrot.slane %v5144_v25, 1  ;;  %v3287_v48 = vadd.f32 %v3286_v60, %v3285_v21  ;;  %v11400_v59 = vld [vmem:[#allocation152_spill] sm:$0xff] }
 0x46d   :  { %v3987_v51 = vmul.f32 %v3971_v28, %v11389_v37  ;;  %v4266_v18 = vmul.f32 %v3970_v5, %v11391_v27  ;;  %v4267_v8 = vmul.f32 %v3971_v28, %v11393_v17  ;;  %v4449_v13 = vsel %vm2939_vm4, %v4394_v2, %v9271_v57  ;;  %v11398_v5 = vld [vmem:[#allocation144_spill] sm:$0xff] }
 0x46e   :  { %v4037_v30 = vsel %vm123_vm0, %v3986_v50, 0.0  ;;  %v5617_v12 = vadd.f32 %v5616_v10, %v5615_v33  ;;  %v5608_v16 = vadd.f32 %v5607_v32, %v5606_v38  ;;  %v3663_v7 = vadd.f32 %v3662_v45, %v3661_v52  ;;  %v4685_v37 = vpop.permute.xlu0 %4684 }
 0x46f   :  { %v4038_v61 = vsel %vm123_vm0, %v3987_v51, 0.0  ;;  %v4346_v58 = vadd.f32 %v4309_v39, %v4266_v18  ;;  %v4347_v29 = vadd.f32 %v4311_v35, %v4267_v8  ;;  %v11397_v21 = vsub.f32 1.0, %v11396_v46  ;;  %v4687_v51 = vpop.permute.xlu1 %4686  ;;  %v11402_v8 = vld [vmem:[#allocation241_spill] sm:$0xff]  ;;  %v11404_v39 = vld [vmem:[#allocation147_spill] sm:$0xff] }
 0x470   :  { %v4039_v63 = vadd.f32 %v4038_v61, %v4037_v30  ;;  %v11399_v28 = vsub.f32 1.0, %v11398_v5  ;;  %v4770_v2 = vadd.f32 %v4769_v20, %v4768_v36  ;;  %v5146_v11 = vadd.f32 %v5145_v41, %v5144_v25  ;;  %v11401_v25 = vld [vmem:[#allocation71_spill] sm:$0xff] }
 0x471   :  { %v4362_v19 = vmul.f32 %v4346_v58, %v11394_v14  ;;  %v4363_v6 = vmul.f32 %v4347_v29, %v11395_v1  ;;  %v4642_v60 = vmul.f32 %v4346_v58, %v11397_v21  ;;  %v3288_v50 = vrot.slane %v3287_v48, 4 }
 0x472   :  { %v4643_v57 = vmul.f32 %v4347_v29, %v11399_v28  ;;  %v9585_v33 = vsel %vm2941_vm5, %v9538_v42, %v4449_v13  ;;  %v5609_v45 = vrot.slane %v5608_v16, 1  ;;  %v3664_v3 = vrot.slane %v3663_v7, 4  ;;  %v5061_v58 = vpop.permute.xlu0 %5060 }
 0x473   :  { %v4413_v10 = vsel %vm123_vm0, %v4362_v19, 0.0  ;;  %v4414_v38 = vsel %vm123_vm0, %v4363_v6, 0.0  ;;  %v4722_v32 = vadd.f32 %v4685_v37, %v4642_v60  ;;  %v4040_v27 = vrot.slane %v4039_v63, 4  ;;  %v5063_v6 = vpop.permute.xlu1 %5062 }
 0x474   :  { %v4723_v52 = vadd.f32 %v4687_v51, %v4643_v57  ;;  %v4415_v18 = vadd.f32 %v4414_v38, %v4413_v10  ;;  %v11403_v20 = vsub.f32 1.0, %v11402_v8  ;;  %v11405_v42 = vsub.f32 1.0, %v11404_v39  ;;  %v11406_v57 = vld [vmem:[#allocation156_spill] sm:$0xff]  ;;  %v11407_v38 = vld [vmem:[#allocation157_spill] sm:$0xff] }
 0x475   :  { %v4738_v36 = vmul.f32 %v4722_v32, %v11400_v59  ;;  %v5618_v13 = vrot.slane %v5617_v12, 1  ;;  %v3289_v30 = vadd.f32 %v3288_v50, %v3287_v48  ;;  %v4825_v29 = vsel %vm2939_vm4, %v4770_v2, %v9287_v40 }
 0x476   :  { %v4739_v17 = vmul.f32 %v4723_v52, %v11401_v25  ;;  %v5018_v41 = vmul.f32 %v4722_v32, %v11403_v20  ;;  %v5019_v35 = vmul.f32 %v4723_v52, %v11405_v42  ;;  %v4416_v61 = vrot.slane %v4415_v18, 4  ;;  %v5437_v10 = vpop.permute.xlu0 %5436 }
 0x477   :  { %v4789_v14 = vsel %vm123_vm0, %v4738_v36, 0.0  ;;  %v9601_v46 = vsel %vm2941_vm5, %v9549_v43, %v4825_v29  ;;  %v5610_v21 = vadd.f32 %v5609_v45, %v5608_v16  ;;  %v3665_v60 = vadd.f32 %v3664_v3, %v3663_v7  ;;  %v11410_v3 = vld [vmem:[#allocation143_spill] sm:$0xff]  ;;  %v5439_v59 = vpop.permute.xlu1 %5438 }
 0x478   :  { %v4790_v19 = vsel %vm123_vm0, %v4739_v17, 0.0  ;;  %v5098_v1 = vadd.f32 %v5061_v58, %v5018_v41  ;;  %v4041_v5 = vadd.f32 %v4040_v27, %v4039_v63  ;;  %v4417_v48 = vadd.f32 %v4416_v61, %v4415_v18  ;;  %v11409_v63 = vld [vmem:[#allocation80_spill] sm:$0xff] }
 0x479   :  { %v4791_v28 = vadd.f32 %v4790_v19, %v4789_v14  ;;  %v5099_v37 = vadd.f32 %v5063_v6, %v5019_v35  ;;  %v5201_v40 = vsel %vm2939_vm4, %v5146_v11, %v9304_v23  ;;  %v5619_v2 = vadd.f32 %v5618_v13, %v5617_v12  ;;  %v11412_v13 = vld [vmem:[#allocation229_spill] sm:$0xff] }
 0x47a   :  { %v5114_v50 = vmul.f32 %v5098_v1, %v11406_v57  ;;  %v11408_v32 = vsub.f32 1.0, %v11407_v38  ;;  %v9610_v43 = vsel %vm2941_vm5, %v9563_v22, %v5201_v40  ;;  %v3290_v16 = vrot.slane %v3289_v30, 2  ;;  %v3177_v42 = vpop.permute.xlu0 %3176  ;;  %v11415_v40 = vld [vmem:[#allocation166_spill] sm:$0xff] }
 0x47b   :  { %v4792_v51 = vrot.slane %v4791_v28, 4  ;;  %v5115_v45 = vmul.f32 %v5099_v37, %v11409_v63  ;;  %v11411_v27 = vsub.f32 1.0, %v11410_v3  ;;  %v3666_v23 = vrot.slane %v3665_v60, 2  ;;  %v3179_v14 = vpop.permute.xlu1 %3178 }
 0x47c   :  { %v5394_v52 = vmul.f32 %v5098_v1, %v11408_v32  ;;  %v5165_v7 = vsel %vm123_vm0, %v5114_v50, 0.0  ;;  %v4042_v12 = vrot.slane %v4041_v5, 2  ;;  %v5665_v36 = vsel %vm2939_vm4, %v5610_v21, %v9324_v49  ;;  %v11413_v49 = vld [vmem:[#allocation243_spill] sm:$0xff]  ;;  %v11418_v32 = vld [vmem:[#allocation57_spill] sm:$0xff] }
 0x47d   :  { %v5395_v18 = vmul.f32 %v5099_v37, %v11411_v27  ;;  %v4793_v11 = vadd.f32 %v4792_v51, %v4791_v28  ;;  %v4418_v25 = vrot.slane %v4417_v48, 2  ;;  %v5166_v17 = vsel %vm123_vm0, %v5115_v45, 0.0  ;;  %v11414_v28 = vld [vmem:[#allocation245_spill] sm:$0xff]  ;;  %v11416_v51 = vld [vmem:[#allocation150_spill] sm:$0xff] }
 0x47e   :  { %v2048_v22 = vsub.f32 1.0, %v9366_v44  ;;  %v9621_v8 = vsel %vm2941_vm5, %v5619_v2, %v5665_v36  ;;  %v5167_v20 = vadd.f32 %v5166_v17, %v5165_v7  ;;  %v5474_v41 = vadd.f32 %v5437_v10, %v5394_v52  ;;  %v3553_v63 = vpop.permute.xlu0 %3552 }
 0x47f   :  { %v5475_v39 = vadd.f32 %v5439_v59, %v5395_v18  ;;  %v2049_v35 = vsub.f32 1.0, %v9397_v34  ;;  %v9626_v61 = vmul.f32 %v11412_v13, %v11324_v53  ;;  %v3291_v58 = vadd.f32 %v3290_v16, %v3289_v30  ;;  %v11419_v16 = vld [vmem:[#allocation58_spill] sm:$0xff] }
 0x480   :  { %v3216_v29 = vadd.f32 %v3177_v42, %v11413_v49  ;;  %v2050_v19 = vsub.f32 1.0, %v9382_v56  ;;  %v3667_v1 = vadd.f32 %v3666_v23, %v3665_v60  ;;  %v4043_v6 = vadd.f32 %v4042_v12, %v4041_v5  ;;  %v11420_v60 = vld [vmem:[#allocation87_spill] sm:$0xff]  ;;  %v11421_v18 = vld [vmem:[#allocation158_spill] sm:$0xff]  ;;  %v3555_v23 = vpop.permute.xlu1 %3554  ;;  %v11424_v49 = vld [vmem:[#allocation160_spill] sm:$0xff] }
 0x481   :  { %v4794_v21 = vrot.slane %v4793_v11, 2  ;;  %v3217_v57 = vadd.f32 %v3179_v14, %v11414_v28  ;;  %v9633_v50 = vmul.f32 %v11412_v13, %v11329_v4  ;;  %v4419_v37 = vadd.f32 %v4418_v25, %v4417_v48 }
 0x482   :  { %v3232_v2 = vmul.f32 %v3216_v29, %v11415_v40  ;;  %v11417_v10 = vsub.f32 1.0, %v11416_v51  ;;  %v5168_v38 = vrot.slane %v5167_v20, 4  ;;  %v5578_v52 = vmul.f32 %v11418_v32, %v5474_v41  ;;  %v11423_v41 = vld [vmem:[#allocation171_spill] sm:$0xff] }
 0x483   :  { %v5579_v7 = vmul.f32 %v11419_v16, %v5475_v39  ;;  %v3233_v5 = vmul.f32 %v3217_v57, %v11420_v60  ;;  %v3292_v45 = vrot.slane %v3291_v58, 1  ;;  %v11422_v59 = vsub.f32 1.0, %v11421_v18 }
 0x484   :  { %v3512_v30 = vmul.f32 %v3216_v29, %v11417_v10  ;;  %v3276_v3 = vsel %vm123_vm0, %v3232_v2, 0.0  ;;  %v3668_v12 = vrot.slane %v3667_v1, 1  ;;  %v4044_v36 = vrot.slane %v4043_v6, 1  ;;  %v3931_v16 = vpop.permute.xlu1 %3930 }
 0x485   :  { %v3513_v48 = vmul.f32 %v3217_v57, %v11422_v59  ;;  %v4795_v25 = vadd.f32 %v4794_v21, %v4793_v11  ;;  %v3277_v17 = vsel %vm123_vm0, %v3233_v5, 0.0  ;;  %v11425_v29 = vsub.f32 1.0, %v11424_v49  ;;  %v3929_v57 = vpop.permute.xlu0 %3928  ;;  %v11426_v11 = vld [vmem:[#allocation88_spill] sm:$0xff]  ;;  %v11430_v59 = vld [vmem:[#allocation246_spill] sm:$0xff] }
 0x486   :  { %v3592_v27 = vadd.f32 %v3553_v63, %v3512_v30  ;;  %v3278_v42 = vadd.f32 %v3277_v17, %v3276_v3  ;;  %v4420_v28 = vrot.slane %v4419_v37, 1  ;;  %v5169_v40 = vadd.f32 %v5168_v38, %v5167_v20  ;;  %v11427_v3 = vld [vmem:[#allocation244_spill] sm:$0xff] }
 0x487   :  { %v3593_v39 = vadd.f32 %v3555_v23, %v3513_v48  ;;  %v5629_v2 = vsel %vm123_vm0, %v5578_v52, 0.0  ;;  %v5630_v51 = vsel %vm123_vm0, %v5579_v7, 0.0  ;;  %v9652_v60 = vadd.f32 %v3292_v45, %v3291_v58  ;;  %v11429_v7 = vld [vmem:[#allocation176_spill] sm:$0xff] }
 0x488   :  { %v3608_v13 = vmul.f32 %v3592_v27, %v11423_v41  ;;  %v3888_v14 = vmul.f32 %v3592_v27, %v11425_v29  ;;  %v3279_v10 = vrot.slane %v3278_v42, 4  ;;  %v9654_v5 = vadd.f32 %v3668_v12, %v3667_v1 }
 0x489   :  { %v3609_v21 = vmul.f32 %v3593_v39, %v11426_v11  ;;  %v4796_v63 = vrot.slane %v4795_v25, 1  ;;  %v11428_v27 = vsub.f32 1.0, %v11427_v3  ;;  %v11431_v48 = vsub.f32 1.0, %v11430_v59  ;;  %v4305_v45 = vpop.permute.xlu0 %4304  ;;  %v11433_v11 = vld [vmem:[#allocation162_spill] sm:$0xff] }
 0x48a   :  { %v3652_v30 = vsel %vm123_vm0, %v3608_v13, 0.0  ;;  %v3968_v32 = vadd.f32 %v3929_v57, %v3888_v14  ;;  %v3280_v38 = vadd.f32 %v3279_v10, %v3278_v42  ;;  %v9662_v17 = vadd.f32 %v4044_v36, %v4043_v6  ;;  %v11432_v57 = vld [vmem:[#allocation175_spill] sm:$0xff] }
 0x48b   :  { %v3889_v20 = vmul.f32 %v3593_v39, %v11428_v27  ;;  %v3653_v52 = vsel %vm123_vm0, %v3609_v21, 0.0  ;;  %v5631_v41 = vadd.f32 %v5630_v51, %v5629_v2  ;;  %v9664_v1 = vadd.f32 %v4420_v28, %v4419_v37  ;;  %v4307_v39 = vpop.permute.xlu1 %4306  ;;  %v11435_v2 = vld [vmem:[#allocation179_spill] sm:$0xff] }
 0x48c   :  { %v3984_v18 = vmul.f32 %v3968_v32, %v11429_v7  ;;  %v4264_v23 = vmul.f32 %v3968_v32, %v11431_v48  ;;  %v3654_v13 = vadd.f32 %v3653_v52, %v3652_v30  ;;  %v5170_v12 = vrot.slane %v5169_v40, 2  ;;  %v11436_v30 = vld [vmem:[#allocation170_spill] sm:$0xff] }
 0x48d   :  { %v3969_v58 = vadd.f32 %v3931_v16, %v3889_v20  ;;  %v3281_v49 = vrot.slane %v3280_v38, 2  ;;  %v11434_v21 = vsub.f32 1.0, %v11433_v11  ;;  %v9670_v6 = vadd.f32 %v4796_v63, %v4795_v25  ;;  %v4681_v52 = vpop.permute.xlu0 %4680 }
 0x48e   :  { %v4344_v29 = vadd.f32 %v4305_v45, %v4264_v23  ;;  %v3655_v42 = vrot.slane %v3654_v13, 4  ;;  %v4028_v14 = vsel %vm123_vm0, %v3984_v18, 0.0  ;;  %v11437_v37 = vsub.f32 1.0, %v11436_v30  ;;  %v11439_v45 = vld [vmem:[#allocation83_spill] sm:$0xff] }
 0x48f   :  { %v3985_v10 = vmul.f32 %v3969_v58, %v11432_v57  ;;  %v4265_v32 = vmul.f32 %v3969_v58, %v11434_v21  ;;  %v3282_v36 = vadd.f32 %v3281_v49, %v3280_v38  ;;  %v5632_v16 = vrot.slane %v5631_v41, 4  ;;  %v4683_v23 = vpop.permute.xlu1 %4682  ;;  %v11438_v38 = vld [vmem:[#allocation178_spill] sm:$0xff] }
 0x490   :  { %v4360_v51 = vmul.f32 %v4344_v29, %v11435_v2  ;;  %v4640_v28 = vmul.f32 %v4344_v29, %v11437_v37  ;;  %v3656_v3 = vadd.f32 %v3655_v42, %v3654_v13  ;;  %v9676_v7 = vadd.f32 %v5170_v12, %v5169_v40  ;;  %v11441_v42 = vld [vmem:[#allocation183_spill] sm:$0xff] }
 0x491   :  { %v4029_v27 = vsel %vm123_vm0, %v3985_v10, 0.0  ;;  %v4345_v20 = vadd.f32 %v4307_v39, %v4265_v32  ;;  %v3283_v18 = vrot.slane %v3282_v36, 1  ;;  %v11440_v49 = vsub.f32 1.0, %v11439_v45  ;;  %v11442_v39 = vld [vmem:[#allocation163_spill] sm:$0xff]  ;;  %v5057_v2 = vpop.permute.xlu0 %5056 }
 0x492   :  { %v4030_v59 = vadd.f32 %v4029_v27, %v4028_v14  ;;  %v4720_v48 = vadd.f32 %v4681_v52, %v4640_v28  ;;  %v3657_v25 = vrot.slane %v3656_v3, 2  ;;  %v4404_v63 = vsel %vm123_vm0, %v4360_v51, 0.0 }
 0x493   :  { %v4361_v58 = vmul.f32 %v4345_v20, %v11438_v38  ;;  %v4641_v29 = vmul.f32 %v4345_v20, %v11440_v49  ;;  %v3284_v57 = vadd.f32 %v3283_v18, %v3282_v36  ;;  %v11443_v11 = vsub.f32 1.0, %v11442_v39  ;;  %v5059_v27 = vpop.permute.xlu1 %5058  ;;  %v11444_v20 = vld [vmem:[#allocation182_spill] sm:$0xff]  ;;  %v11445_v18 = vld [vmem:[#allocation172_spill] sm:$0xff] }
 0x494   :  { %v4031_v13 = vrot.slane %v4030_v59, 4  ;;  %v4736_v10 = vmul.f32 %v4720_v48, %v11441_v42  ;;  %v9685_v12 = vadd.f32 %v5632_v16, %v5631_v41  ;;  %v3658_v14 = vadd.f32 %v3657_v25, %v3656_v3  ;;  %v11448_v25 = vld [vmem:[#allocation167_spill] sm:$0xff] }
 0x495   :  { %v5016_v40 = vmul.f32 %v4720_v48, %v11443_v11  ;;  %v4405_v21 = vsel %vm123_vm0, %v4361_v58, 0.0  ;;  %v4721_v32 = vadd.f32 %v4683_v23, %v4641_v29  ;;  %v11446_v38 = vsub.f32 1.0, %v11445_v18  ;;  %v11447_v48 = vld [vmem:[#allocation188_spill] sm:$0xff] }
 0x496   :  { %v4032_v51 = vadd.f32 %v4031_v13, %v4030_v59  ;;  %v4406_v30 = vadd.f32 %v4405_v21, %v4404_v63  ;;  %v4780_v37 = vsel %vm123_vm0, %v4736_v10, 0.0  ;;  %v3659_v36 = vrot.slane %v3658_v14, 1  ;;  %v5433_v13 = vpop.permute.xlu0 %5432 }
 0x497   :  { %v5096_v28 = vadd.f32 %v5057_v2, %v5016_v40  ;;  %v4737_v52 = vmul.f32 %v4721_v32, %v11444_v20  ;;  %v5017_v45 = vmul.f32 %v4721_v32, %v11446_v38  ;;  %v3323_v41 = vsel %vm2943_vm6, %v3284_v57, %v9512_v24  ;;  %v5435_v57 = vpop.permute.xlu1 %5434  ;;  %v11450_v40 = vld [vmem:[#allocation98_spill] sm:$0xff]  ;;  %v11451_v2 = vld [vmem:[#allocation181_spill] sm:$0xff] }
 0x498   :  { %v4033_v16 = vrot.slane %v4032_v51, 2  ;;  %v4407_v3 = vrot.slane %v4406_v30, 4  ;;  %v11449_v59 = vsub.f32 1.0, %v11448_v25  ;;  %v3660_v58 = vadd.f32 %v3659_v36, %v3658_v14  ;;  %v11454_v25 = vld [vmem:[#allocation193_spill] sm:$0xff] }
 0x499   :  { %v5112_v23 = vmul.f32 %v5096_v28, %v11447_v48  ;;  %v4781_v49 = vsel %vm123_vm0, %v4737_v52, 0.0  ;;  %v5097_v29 = vadd.f32 %v5059_v27, %v5017_v45  ;;  %v9700_v42 = vsel %vm2945_vm7, %v9652_v60, %v3323_v41 }
 0x49a   :  { %v5392_v63 = vmul.f32 %v5096_v28, %v11449_v59  ;;  %v4034_v10 = vadd.f32 %v4033_v16, %v4032_v51  ;;  %v4408_v39 = vadd.f32 %v4407_v3, %v4406_v30  ;;  %v4782_v11 = vadd.f32 %v4781_v49, %v4780_v37  ;;  %v11453_v37 = vld [vmem:[#allocation101_spill] sm:$0xff]  ;;  %v3189_v45 = vpop.permute.xlu0 %3188 }
 0x49b   :  { %v5156_v24 = vsel %vm123_vm0, %v5112_v23, 0.0  ;;  %v5113_v21 = vmul.f32 %v5097_v29, %v11450_v40  ;;  %v11452_v28 = vsub.f32 1.0, %v11451_v2  ;;  %v3699_v27 = vsel %vm2943_vm6, %v3660_v58, %v9527_v55  ;;  %v3191_v55 = vpop.permute.xlu1 %3190  ;;  %v11456_v58 = vld [vmem:[#allocation253_spill] sm:$0xff]  ;;  %v11459_v2 = vld [vmem:[#allocation95_spill] sm:$0xff] }
 0x49c   :  { %v5472_v32 = vadd.f32 %v5433_v13, %v5392_v63  ;;  %v4035_v36 = vrot.slane %v4034_v10, 1  ;;  %v4409_v20 = vrot.slane %v4408_v39, 2  ;;  %v4783_v52 = vrot.slane %v4782_v11, 4  ;;  %v11455_v63 = vld [vmem:[#allocation251_spill] sm:$0xff] }
 0x49d   :  { %v5393_v14 = vmul.f32 %v5097_v29, %v11452_v28  ;;  %v9710_v60 = vsel %vm2945_vm7, %v9654_v5, %v3699_v27  ;;  %v5172_v51 = vrot.slane %v9676_v7, 1  ;;  %v5157_v30 = vsel %vm123_vm0, %v5113_v21, 0.0 }
 0x49e   :  { %v5576_v18 = vmul.f32 %v11453_v37, %v5472_v32  ;;  %v4036_v41 = vadd.f32 %v4035_v36, %v4034_v10  ;;  %v4410_v16 = vadd.f32 %v4409_v20, %v4408_v39  ;;  %v4784_v3 = vadd.f32 %v4783_v52, %v4782_v11  ;;  %v11457_v39 = vld [vmem:[#allocation203_spill] sm:$0xff]  ;;  %v3565_v32 = vpop.permute.xlu0 %3564 }
 0x49f   :  { %v5473_v38 = vadd.f32 %v5435_v57, %v5393_v14  ;;  %v5158_v48 = vadd.f32 %v5157_v30, %v5156_v24  ;;  %v3222_v5 = vadd.f32 %v3189_v45, %v11455_v63  ;;  %v3223_v49 = vadd.f32 %v3191_v55, %v11456_v58  ;;  %v11458_v24 = vld [vmem:[#allocation202_spill] sm:$0xff]  ;;  %v3567_v30 = vpop.permute.xlu1 %3566  ;;  %v11463_v58 = vld [vmem:[#allocation208_spill] sm:$0xff] }
 0x4a0   :  { %v5620_v23 = vsel %vm123_vm0, %v5576_v18, 0.0  ;;  %v4411_v29 = vrot.slane %v4410_v16, 1  ;;  %v4785_v13 = vrot.slane %v4784_v3, 2  ;;  %v4075_v57 = vsel %vm2943_vm6, %v4036_v41, %v9559_v0 }
 0x4a1   :  { %v5577_v59 = vmul.f32 %v11454_v25, %v5473_v38  ;;  %v5159_v40 = vrot.slane %v5158_v48, 4  ;;  %v3238_v11 = vmul.f32 %v3222_v5, %v11457_v39  ;;  %v3239_v21 = vmul.f32 %v3223_v49, %v11458_v24  ;;  %v11461_v38 = vld [vmem:[#allocation173_spill] sm:$0xff] }
 0x4a2   :  { %v11460_v28 = vsub.f32 1.0, %v11459_v2  ;;  %v5634_v27 = vrot.slane %v9685_v12, 2  ;;  %v4412_v36 = vadd.f32 %v4411_v29, %v4410_v16  ;;  %v11462_v45 = vsub.f32 1.0, %v11461_v38  ;;  %v3941_v24 = vpop.permute.xlu0 %3940  ;;  %v11464_v16 = vld [vmem:[#allocation187_spill] sm:$0xff]  ;;  %v11470_v38 = vld [vmem:[#allocation184_spill] sm:$0xff] }
 0x4a3   :  { %v5621_v10 = vsel %vm123_vm0, %v5577_v59, 0.0  ;;  %v5160_v20 = vadd.f32 %v5159_v40, %v5158_v48  ;;  %v3303_v37 = vsel %vm123_vm0, %v3238_v11, 0.0  ;;  %v3304_v0 = vsel %vm123_vm0, %v3239_v21, 0.0  ;;  %v11466_v21 = vld [vmem:[#allocation207_spill] sm:$0xff] }
 0x4a4   :  { %v3518_v14 = vmul.f32 %v3222_v5, %v11460_v28  ;;  %v5622_v52 = vadd.f32 %v5621_v10, %v5620_v23  ;;  %v3519_v41 = vmul.f32 %v3223_v49, %v11462_v45  ;;  %v4786_v55 = vadd.f32 %v4785_v13, %v4784_v3  ;;  %v3943_v13 = vpop.permute.xlu1 %3942  ;;  %v11467_v28 = vld [vmem:[#allocation89_spill] sm:$0xff] }
 0x4a5   :  { %v5161_v25 = vrot.slane %v5160_v20, 2  ;;  %v3305_v63 = vadd.f32 %v3304_v0, %v3303_v37  ;;  %v11465_v48 = vsub.f32 1.0, %v11464_v16  ;;  %v9736_v29 = vsel %vm2945_vm7, %v9662_v17, %v4075_v57  ;;  %v11469_v57 = vld [vmem:[#allocation215_spill] sm:$0xff] }
 0x4a6   :  { %v3598_v18 = vadd.f32 %v3565_v32, %v3518_v14  ;;  %v5623_v59 = vrot.slane %v5622_v52, 4  ;;  %v3599_v39 = vadd.f32 %v3567_v30, %v3519_v41  ;;  %v9739_v40 = vadd.f32 %v5634_v27, %v9685_v12 }
 0x4a7   :  { %v5162_v10 = vadd.f32 %v5161_v25, %v5160_v20  ;;  %v3306_v3 = vrot.slane %v3305_v63, 4  ;;  %v11468_v14 = vsub.f32 1.0, %v11467_v28  ;;  %v4787_v37 = vrot.slane %v4786_v55, 1 }
 0x4a8   :  { %v3614_v5 = vmul.f32 %v3598_v18, %v11463_v58  ;;  %v3894_v23 = vmul.f32 %v3598_v18, %v11465_v48  ;;  %v5624_v49 = vadd.f32 %v5623_v59, %v5622_v52  ;;  %v3615_v32 = vmul.f32 %v3599_v39, %v11466_v21  ;;  %v4317_v52 = vpop.permute.xlu0 %4316 }
 0x4a9   :  { %v3895_v30 = vmul.f32 %v3599_v39, %v11468_v14  ;;  %v3307_v18 = vadd.f32 %v3306_v3, %v3305_v63  ;;  %v4451_v17 = vsel %vm2943_vm6, %v4412_v36, %v9585_v33  ;;  %v11471_v45 = vsub.f32 1.0, %v11470_v38  ;;  %v4319_v39 = vpop.permute.xlu1 %4318  ;;  %v11473_v36 = vld [vmem:[#allocation252_spill] sm:$0xff]  ;;  %v11478_v38 = vld [vmem:[#allocation223_spill] sm:$0xff] }
 0x4aa   :  { %v3679_v11 = vsel %vm123_vm0, %v3614_v5, 0.0  ;;  %v3974_v2 = vadd.f32 %v3941_v24, %v3894_v23  ;;  %v5625_v0 = vrot.slane %v5624_v49, 2  ;;  %v3680_v12 = vsel %vm123_vm0, %v3615_v32, 0.0  ;;  %v11472_v24 = vld [vmem:[#allocation214_spill] sm:$0xff] }
 0x4ab   :  { %v3975_v20 = vadd.f32 %v3943_v13, %v3895_v30  ;;  %v5636_v25 = vrot.slane %v9739_v40, 1  ;;  %v5163_v59 = vrot.slane %v5162_v10, 1  ;;  %v3681_v5 = vadd.f32 %v3680_v12, %v3679_v11  ;;  %v11476_v30 = vld [vmem:[#allocation190_spill] sm:$0xff] }
 0x4ac   :  { %v3990_v27 = vmul.f32 %v3974_v2, %v11469_v57  ;;  %v4270_v41 = vmul.f32 %v3974_v2, %v11471_v45  ;;  %v5626_v58 = vadd.f32 %v5625_v0, %v5624_v49  ;;  %v11474_v48 = vsub.f32 1.0, %v11473_v36  ;;  %v11475_v49 = vld [vmem:[#allocation224_spill] sm:$0xff]  ;;  %v4693_v14 = vpop.permute.xlu0 %4692 }
 0x4ad   :  { %v3991_v16 = vmul.f32 %v3975_v20, %v11472_v24  ;;  %v4788_v3 = vadd.f32 %v4787_v37, %v4786_v55  ;;  %v3308_v13 = vrot.slane %v3307_v18, 2  ;;  %v3682_v21 = vrot.slane %v3681_v5, 4  ;;  %v4695_v55 = vpop.permute.xlu1 %4694 }
 0x4ae   :  { %v4055_v63 = vsel %vm123_vm0, %v3990_v27, 0.0  ;;  %v4350_v33 = vadd.f32 %v4317_v52, %v4270_v41  ;;  %v4271_v23 = vmul.f32 %v3975_v20, %v11474_v48  ;;  %v9758_v32 = vsel %vm2945_vm7, %v9664_v1, %v4451_v17  ;;  %v11479_v17 = vld [vmem:[#allocation189_spill] sm:$0xff] }
 0x4af   :  { %v4056_v2 = vsel %vm123_vm0, %v3991_v16, 0.0  ;;  %v11477_v0 = vsub.f32 1.0, %v11476_v30  ;;  %v5164_v57 = vadd.f32 %v5163_v59, %v5162_v10  ;;  %v5627_v27 = vrot.slane %v5626_v58, 1  ;;  %v11481_v59 = vld [vmem:[#allocation228_spill] sm:$0xff] }
 0x4b0   :  { %v4366_v11 = vmul.f32 %v4350_v33, %v11475_v49  ;;  %v4351_v28 = vadd.f32 %v4319_v39, %v4271_v23  ;;  %v3683_v52 = vadd.f32 %v3682_v21, %v3681_v5  ;;  %v4057_v20 = vadd.f32 %v4056_v2, %v4055_v63  ;;  %v11482_v23 = vld [vmem:[#allocation195_spill] sm:$0xff] }
 0x4b1   :  { %v4646_v12 = vmul.f32 %v4350_v33, %v11477_v0  ;;  %v11480_v41 = vsub.f32 1.0, %v11479_v17  ;;  %v3309_v16 = vadd.f32 %v3308_v13, %v3307_v18  ;;  %v4827_v48 = vsel %vm2943_vm6, %v4788_v3, %v9601_v46  ;;  %v5069_v33 = vpop.permute.xlu0 %5068  ;;  %v5071_v30 = vpop.permute.xlu1 %5070  ;;  %v11484_v46 = vld [vmem:[#allocation227_spill] sm:$0xff]  ;;  %v11485_v0 = vld [vmem:[#allocation194_spill] sm:$0xff] }
 0x4b2   :  { %v4431_v37 = vsel %vm123_vm0, %v4366_v11, 0.0  ;;  %v4367_v45 = vmul.f32 %v4351_v28, %v11478_v38  ;;  %v3684_v36 = vrot.slane %v3683_v52, 2  ;;  %v4058_v39 = vrot.slane %v4057_v20, 4 }
 0x4b3   :  { %v4726_v1 = vadd.f32 %v4693_v14, %v4646_v12  ;;  %v4647_v24 = vmul.f32 %v4351_v28, %v11480_v41  ;;  %v11483_v21 = vsub.f32 1.0, %v11482_v23  ;;  %v9776_v18 = vsel %vm2945_vm7, %v9670_v6, %v4827_v48 }
 0x4b4   :  { %v4432_v10 = vsel %vm123_vm0, %v4367_v45, 0.0  ;;  %v3685_v49 = vadd.f32 %v3684_v36, %v3683_v52  ;;  %v4059_v11 = vadd.f32 %v4058_v39, %v4057_v20  ;;  %v11486_v12 = vsub.f32 1.0, %v11485_v0 }
 0x4b5   :  { %v4742_v5 = vmul.f32 %v4726_v1, %v11481_v59  ;;  %v4727_v63 = vadd.f32 %v4695_v55, %v4647_v24  ;;  %v5022_v2 = vmul.f32 %v4726_v1, %v11483_v21  ;;  %v4433_v14 = vadd.f32 %v4432_v10, %v4431_v37  ;;  %v11487_v1 = vld [vmem:[#allocation233_spill] sm:$0xff]  ;;  %v5445_v24 = vpop.permute.xlu0 %5444  ;;  %v5447_v48 = vpop.permute.xlu1 %5446  ;;  %v11489_v59 = vld [vmem:[#allocation127_spill] sm:$0xff] }
 0x4b6   :  { %v5628_v38 = vadd.f32 %v5627_v27, %v5626_v58  ;;  %v3310_v45 = vrot.slane %v3309_v16, 1  ;;  %v5203_v52 = vsel %vm2943_vm6, %v5164_v57, %v9610_v43  ;;  %v4060_v20 = vrot.slane %v4059_v11, 2  ;;  %v11488_v43 = vld [vmem:[#allocation232_spill] sm:$0xff] }
 0x4b7   :  { %v4807_v13 = vsel %vm123_vm0, %v4742_v5, 0.0  ;;  %v4743_v3 = vmul.f32 %v4727_v63, %v11484_v46  ;;  %v5102_v28 = vadd.f32 %v5069_v33, %v5022_v2  ;;  %v5023_v55 = vmul.f32 %v4727_v63, %v11486_v12  ;;  %v11491_v12 = vld [vmem:[#allocation126_spill] sm:$0xff] }
 0x4b8   :  { %v4434_v17 = vrot.slane %v4433_v14, 4  ;;  %v5173_v36 = vadd.f32 %v5172_v51, %v9676_v7  ;;  %v2051_v58 = vsub.f32 1.0, %v9633_v50  ;;  %v2052_v27 = vsub.f32 1.0, %v9626_v61 }
 0x4b9   :  { %v4808_v37 = vsel %vm123_vm0, %v4743_v3, 0.0  ;;  %v5118_v6 = vmul.f32 %v5102_v28, %v11487_v1  ;;  %v5103_v41 = vadd.f32 %v5071_v30, %v5023_v55  ;;  %v11490_v5 = vsub.f32 1.0, %v11489_v59  ;;  %v3185_v46 = vpop.permute.xlu0 %3184 }
 0x4ba   :  { %v4809_v39 = vadd.f32 %v4808_v37, %v4807_v13  ;;  %v3686_v33 = vrot.slane %v3685_v49, 1  ;;  %v5637_v23 = vadd.f32 %v5636_v25, %v9739_v40  ;;  %v4435_v21 = vadd.f32 %v4434_v17, %v4433_v14  ;;  %v11493_v40 = vld [vmem:[#allocation119_spill] sm:$0xff]  ;;  %v3187_v14 = vpop.permute.xlu1 %3186 }
 0x4bb   :  { %v5183_v10 = vsel %vm123_vm0, %v5118_v6, 0.0  ;;  %v5119_v57 = vmul.f32 %v5103_v41, %v11488_v43  ;;  %v5398_v63 = vmul.f32 %v5102_v28, %v11490_v5  ;;  %v9799_v51 = vsel %vm2945_vm7, %v5173_v36, %v5203_v52  ;;  %v11494_v52 = vld [vmem:[#allocation199_spill] sm:$0xff]  ;;  %v9818_v6 = vpop.f32.mrb[8].mxu0  ;;  %v11496_v36 = vld [vmem:[#allocation120_spill] sm:$0xff] }
 0x4bc   :  { %v4810_v7 = vrot.slane %v4809_v39, 4  ;;  %v9801_v2 = vadd.f32 %v3310_v45, %v3309_v16  ;;  %v4061_v30 = vadd.f32 %v4060_v20, %v4059_v11  ;;  %v5667_v3 = vsel %vm2943_vm6, %v5628_v38, %v9621_v8  ;;  %v11495_v8 = vld [vmem:[#allocation240_spill] sm:$0xff]  ;;  %3031 = vrot.lane.b32.xlu1 %v9818_v6, %s6690_s27 }
 0x4bd   :  { %v5184_v13 = vsel %vm123_vm0, %v5119_v57, 0.0  ;;  %v11492_v55 = vsub.f32 1.0, %v11491_v12  ;;  %v3220_v25 = vadd.f32 %v3185_v46, %v11493_v40  ;;  %v9809_v17 = vadd.f32 %v5445_v24, %v5398_v63  ;;  %v6110_v24 = vpop.f32.mrb[9].mxu0  ;;  %v11499_v57 = vld [vmem:[#allocation29_spill] sm:$0xff] }
 0x4be   :  { %v4811_v28 = vadd.f32 %v4810_v7, %v4809_v39  ;;  %v5185_v0 = vadd.f32 %v5184_v13, %v5183_v10  ;;  %v3221_v16 = vadd.f32 %v3187_v14, %v11494_v52  ;;  %v9812_v45 = vadd.f32 %v3686_v33, %v3685_v49  ;;  %v11498_v10 = vld [vmem:[#allocation239_spill] sm:$0xff]  ;;  %v3561_v49 = vpop.permute.xlu0 %3560 }
 0x4bf   :  { %v5399_v37 = vmul.f32 %v5103_v41, %v11492_v55  ;;  %v9815_v11 = vsel %vm2945_vm7, %v5637_v23, %v5667_v3  ;;  %v4436_v20 = vrot.slane %v4435_v21, 2  ;;  %v3236_v38 = vmul.f32 %v3220_v25, %v11495_v8  ;;  %v3563_v3 = vpop.permute.xlu1 %3562 }
 0x4c0   :  { %v5186_v1 = vrot.slane %v5185_v0, 4  ;;  %v11497_v41 = vsub.f32 1.0, %v11496_v36  ;;  %v3237_v43 = vmul.f32 %v3221_v16, %v11498_v10  ;;  %v11500_v59 = vsub.f32 1.0, %v11499_v57 }
 0x4c1   :  { %v3024_v63 = vrot.slane %v9818_v6, 1  ;;  %v4062_v33 = vrot.slane %v4061_v30, 1  ;;  %v4812_v23 = vrot.slane %v4811_v28, 2  ;;  %v9828_v7 = vadd.f32 %v5447_v48, %v5399_v37  ;;  %v11502_v37 = vld [vmem:[#allocation242_spill] sm:$0xff] }
 0x4c2   :  { %v3516_v39 = vmul.f32 %v3220_v25, %v11497_v41  ;;  %v3517_v5 = vmul.f32 %v3221_v16, %v11500_v59  ;;  %v3294_v13 = vsel %vm123_vm0, %v3236_v38, 0.0  ;;  %v5187_v12 = vadd.f32 %v5186_v1, %v5185_v0  ;;  %v3937_v38 = vpop.permute.xlu0 %3936 }
 0x4c3   :  { %v3295_v55 = vsel %vm123_vm0, %v3237_v43, 0.0  ;;  %3033 = vrot.lane.b32.xlu0 %v3024_v63, %s6690_s27  ;;  %v3025_v25 = vrot.slane %v9818_v6, 2  ;;  %v4437_v14 = vadd.f32 %v4436_v20, %v4435_v21  ;;  %v11501_v8 = vsub.f32 1.0, %v9139_v26  ;;  %v3939_v26 = vpop.permute.xlu1 %3938 }
 0x4c4   :  { %v3596_v46 = vadd.f32 %v3561_v49, %v3516_v39  ;;  %v3597_v40 = vadd.f32 %v3563_v3, %v3517_v5  ;;  %v3296_v52 = vadd.f32 %v3295_v55, %v3294_v13  ;;  %v11503_v0 = vsub.f32 1.0, %v9123_v62 }
 0x4c5   :  { %3035 = vrot.lane.b32.xlu1 %v3025_v25, %s6690_s27  ;;  %v3026_v41 = vrot.slane %v9818_v6, 3  ;;  %v9842_v39 = vadd.f32 %v4062_v33, %v4061_v30  ;;  %v9844_v10 = vadd.f32 %v4812_v23, %v4811_v28  ;;  %v5188_v43 = vrot.slane %v5187_v12, 2 }
 0x4c6   :  { %v3612_v16 = vmul.f32 %v3596_v46, %v8665_v9  ;;  %v3892_v48 = vmul.f32 %v3596_v46, %v11501_v8  ;;  %v3613_v36 = vmul.f32 %v3597_v40, %v11502_v37  ;;  %v3893_v1 = vmul.f32 %v3597_v40, %v11503_v0  ;;  %v4313_v33 = vpop.permute.xlu0 %4312  ;;  %v11507_v0 = vld [vmem:[#allocation75_spill] sm:$0xff] }
 0x4c7   :  { %v3297_v21 = vrot.slane %v3296_v52, 4  ;;  %3037 = vrot.lane.b32.xlu0 %v3026_v41, %s6690_s27  ;;  %v3027_v62 = vrot.slane %v9818_v6, 4  ;;  %v11504_v28 = vsub.f32 1.0, %v9334_v47  ;;  %v11505_v23 = vsub.f32 1.0, %v9330_v54 }
 0x4c8   :  { %v3670_v9 = vsel %vm123_vm0, %v3612_v16, 0.0  ;;  %v3972_v20 = vadd.f32 %v3937_v38, %v3892_v48  ;;  %v3671_v24 = vsel %vm123_vm0, %v3613_v36, 0.0  ;;  %v3973_v49 = vadd.f32 %v3939_v26, %v3893_v1  ;;  %v11506_v36 = vld [vmem:[#allocation159_spill] sm:$0xff] }
 0x4c9   :  { %v3298_v57 = vadd.f32 %v3297_v21, %v3296_v52  ;;  %v3672_v59 = vadd.f32 %v3671_v24, %v3670_v9  ;;  %3039 = vrot.lane.b32.xlu1 %v3027_v62, %s6690_s27  ;;  %v3028_v46 = vrot.slane %v9818_v6, 5  ;;  %v3029_v3 = vrot.slane %v9818_v6, 6  ;;  %v4315_v52 = vpop.permute.xlu1 %4314  ;;  %v11508_v21 = vld [vmem:[#allocation200_spill] sm:$0xff] }
 0x4ca   :  { %v3988_v30 = vmul.f32 %v3972_v20, %v11304_v31  ;;  %v4268_v5 = vmul.f32 %v3972_v20, %v11504_v28  ;;  %v3989_v63 = vmul.f32 %v3973_v49, %v11302_v15  ;;  %v4269_v13 = vmul.f32 %v3973_v49, %v11505_v23  ;;  %v4689_v41 = vpop.permute.xlu0 %4688  ;;  %v11510_v23 = vld [vmem:[#allocation248_spill] sm:$0xff] }
 0x4cb   :  { %v3299_v55 = vrot.slane %v3298_v57, 2  ;;  %v3673_v40 = vrot.slane %v3672_v59, 4  ;;  %v9860_v47 = vadd.f32 %v5188_v43, %v5187_v12  ;;  %3041 = vrot.lane.b32.xlu0 %v3028_v46, %s6690_s27  ;;  %v4438_v8 = vrot.slane %v4437_v14, 1 }
 0x4cc   :  { %v4046_v25 = vsel %vm123_vm0, %v3988_v30, 0.0  ;;  %v4348_v31 = vadd.f32 %v4313_v33, %v4268_v5  ;;  %v4047_v15 = vsel %vm123_vm0, %v3989_v63, 0.0  ;;  %v4349_v16 = vadd.f32 %v4315_v52, %v4269_v13  ;;  %v11511_v13 = vld [vmem:[#allocation247_spill] sm:$0xff] }
 0x4cd   :  { %v3300_v54 = vadd.f32 %v3299_v55, %v3298_v57  ;;  %v3674_v48 = vadd.f32 %v3673_v40, %v3672_v59  ;;  %v4048_v37 = vadd.f32 %v4047_v15, %v4046_v25  ;;  %3043 = vrot.lane.b32.xlu1 %v3029_v3, %s6690_s27  ;;  %v11509_v9 = vsub.f32 1.0, %v11508_v21  ;;  %v4691_v57 = vpop.permute.xlu1 %4690 }
 0x4ce   :  { %v4364_v38 = vmul.f32 %v4348_v31, %v11506_v36  ;;  %v4365_v1 = vmul.f32 %v4349_v16, %v11507_v0  ;;  %v4645_v20 = vmul.f32 %v4349_v16, %v2048_v22  ;;  %v3030_v26 = vrot.slane %v9818_v6, 7  ;;  %v5065_v3 = vpop.permute.xlu0 %5064 }
 0x4cf   :  { %v4644_v12 = vmul.f32 %v4348_v31, %v11509_v9  ;;  %v3301_v43 = vrot.slane %v3300_v54, 1  ;;  %v3675_v24 = vrot.slane %v3674_v48, 2  ;;  %v4049_v49 = vrot.slane %v4048_v37, 4  ;;  %v11512_v9 = vld [vmem:[#allocation104_spill] sm:$0xff] }
 0x4d0   :  { %v4422_v62 = vsel %vm123_vm0, %v4364_v38, 0.0  ;;  %v4423_v59 = vsel %vm123_vm0, %v4365_v1, 0.0  ;;  %v4725_v28 = vadd.f32 %v4691_v57, %v4645_v20  ;;  %3045 = vrot.lane.b32.xlu0 %v3030_v26, %s6690_s27  ;;  %v9875_v5 = vadd.f32 %v4438_v8, %v4437_v14  ;;  %v11516_v57 = vld [vmem:[#allocation250_spill] sm:$0xff] }
 0x4d1   :  { %v4724_v30 = vadd.f32 %v4689_v41, %v4644_v12  ;;  %v3302_v63 = vadd.f32 %v3301_v43, %v3300_v54  ;;  %v3676_v33 = vadd.f32 %v3675_v24, %v3674_v48  ;;  %v4050_v44 = vadd.f32 %v4049_v49, %v4048_v37  ;;  %v5067_v14 = vpop.permute.xlu1 %5066  ;;  %v11515_v49 = vld [vmem:[#allocation177_spill] sm:$0xff] }
 0x4d2   :  { %v4424_v22 = vadd.f32 %v4423_v59, %v4422_v62  ;;  %v4741_v46 = vmul.f32 %v4725_v28, %v11511_v13  ;;  %v5021_v40 = vmul.f32 %v4725_v28, %v2050_v19  ;;  %v5441_v38 = vpop.permute.xlu0 %5440  ;;  %v11513_v20 = vmov 0.0  }
 0x4d3   :  { %v4740_v6 = vmul.f32 %v4724_v30, %v11510_v23  ;;  %v5020_v55 = vmul.f32 %v4724_v30, %v2049_v35  ;;  %v3677_v25 = vrot.slane %v3676_v33, 1  ;;  %v4051_v31 = vrot.slane %v4050_v44, 2  ;;  %v11517_v23 = vld [vmem:[#allocation106_spill] sm:$0xff] }
 0x4d4   :  { %v4425_v52 = vrot.slane %v4424_v22, 4  ;;  %v3325_v15 = vsel %vm2947_vm8, %v3302_v63, %v9700_v42  ;;  %v4799_v8 = vsel %vm123_vm0, %v4741_v46, 0.0  ;;  %v5101_v48 = vadd.f32 %v5067_v14, %v5021_v40 }
 0x4d5   :  { %v4798_v16 = vsel %vm123_vm0, %v4740_v6, 0.0  ;;  %v5100_v54 = vadd.f32 %v5065_v3, %v5020_v55  ;;  %v4052_v37 = vadd.f32 %v4051_v31, %v4050_v44  ;;  %v3326_v56 = vsel %vm2949_vm9, %v9801_v2, %v3325_v15  ;;  %v5443_v12 = vpop.permute.xlu1 %5442 }
 0x4d6   :  { %v4426_v36 = vadd.f32 %v4425_v52, %v4424_v22  ;;  %v4800_v34 = vadd.f32 %v4799_v8, %v4798_v16  ;;  %v5117_v19 = vmul.f32 %v5101_v48, %v11324_v53  ;;  %6120 = vmatmul.mubr.msk.f32.vlgmr.msra.gmra.mrb[8].mxu1 %vm123_vm0, %v3326_v56  ;;  %v5397_v0 = vmul.f32 %v5101_v48, %v2052_v27  ;;  %v5563_v28 = vpop.permute.xlu0 %5562 }
 0x4d7   :  { %v5116_v35 = vmul.f32 %v5100_v54, %v11329_v4  ;;  %v5396_v42 = vmul.f32 %v5100_v54, %v2051_v58  ;;  %v4053_v1 = vrot.slane %v4052_v37, 1  ;;  %6224 = vmatpush3.bf16.msra.mxu1 %v11512_v9  ;;  %v3678_v2 = vadd.f32 %v3677_v25, %v3676_v33  ;;  %6141 = vmatprep.mubr.msk.f32.mxu1 %vm6693_vm2, %v11513_v20 }
 0x4d8   :  { %v4427_v41 = vrot.slane %v4426_v36, 2  ;;  %v4801_v21 = vrot.slane %v4800_v34, 4  ;;  %v5175_v4 = vsel %vm123_vm0, %v5117_v19, 0.0  ;;  %v5477_v50 = vadd.f32 %v5443_v12, %v5397_v0 }
 0x4d9   :  { %v5174_v53 = vsel %vm123_vm0, %v5116_v35, 0.0  ;;  %v5476_v26 = vadd.f32 %v5441_v38, %v5396_v42  ;;  %v11514_v58 = vmov 0.0|0.0   ;;  %v3701_v24 = vsel %vm2947_vm8, %v3678_v2, %v9710_v60  ;;  %v5567_v13 = vpop.permute.xlu1 %5566 }
 0x4da   :  { %6225 = vmatprep.subr.bf16.mxu1 %v11514_v58  ;;  %v4428_v61 = vadd.f32 %v4427_v41, %v4426_v36  ;;  %v4802_v27 = vadd.f32 %v4801_v21, %v4800_v34  ;;  %v5176_v43 = vadd.f32 %v5175_v4, %v5174_v53  ;;  %v5581_v59 = vmul.f32 %v11516_v57, %v5477_v50 }
 0x4db   :  { %v5580_v62 = vmul.f32 %v11515_v49, %v5476_v26  ;;  %v3702_v30 = vsel %vm2949_vm9, %v9812_v45, %v3701_v24  ;;  %v4054_v63 = vadd.f32 %v4053_v1, %v4052_v37  ;;  %6227 = vmatpush3.bf16.msra.mxu1 %v11517_v23  ;;  %v5582_v6 = vmul.f32 %v5563_v28, %v9809_v17 }
 0x4dc   :  { %v4429_v33 = vrot.slane %v4428_v61, 1  ;;  %v4803_v44 = vrot.slane %v4802_v27, 2  ;;  %v5177_v22 = vrot.slane %v5176_v43, 4  ;;  %6131 = vmatmul.mubr.msk.f32.vlgmr.msra.gmra.mrb[10].mxu0 %vm123_vm0, %v3702_v30  ;;  %v5639_v46 = vsel %vm123_vm0, %v5581_v59, 0.0  ;;  %6234 = vmatprep.subr.bf16.mxu1 %v11514_v58 }
 0x4dd   :  { %v5638_v60 = vsel %vm123_vm0, %v5580_v62, 0.0  ;;  %6230 = vmatpush3.bf16.msra.mxu0 %v11512_v9  ;;  %v5583_v45 = vmul.f32 %v5567_v13, %v9828_v7  ;;  %v4077_v3 = vsel %vm2947_vm8, %v4054_v63, %v9736_v29  ;;  %v5647_v31 = vsel %vm123_vm0, %v5582_v6, 0.0  ;;  %6152 = vmatprep.mubr.msk.f32.mxu0 %vm6693_vm2, %v11513_v20 }
 0x4de   :  { %v4804_v55 = vadd.f32 %v4803_v44, %v4802_v27  ;;  %v5178_v40 = vadd.f32 %v5177_v22, %v5176_v43  ;;  %v5640_v25 = vadd.f32 %v5639_v46, %v5638_v60  ;;  %6231 = vmatprep.subr.bf16.mxu0 %v11514_v58  ;;  %v4078_v7 = vsel %vm2949_vm9, %v9842_v39, %v4077_v3 }
 0x4df   :  { %v5648_v17 = vsel %vm123_vm0, %v5583_v45, 0.0  ;;  %v4430_v52 = vadd.f32 %v4429_v33, %v4428_v61  ;;  %v4814_v29 = vrot.slane %v9844_v10, 1  ;;  %6142 = vmatmul.mubr.msk.f32.vlgmr.msra.gmra.mrb[10].mxu1 %vm123_vm0, %v4078_v7  ;;  %v5190_v56 = vrot.slane %v9860_v47, 1 }
 0x4e0   :  { %v4805_v14 = vrot.slane %v4804_v55, 1  ;;  %v5179_v15 = vrot.slane %v5178_v40, 2  ;;  %v5641_v16 = vrot.slane %v5640_v25, 4  ;;  %v5649_v8 = vadd.f32 %v5648_v17, %v5647_v31  ;;  %6236 = vmatpush3.bf16.msra.mxu1 %v11512_v9  ;;  %6163 = vmatprep.mubr.msk.f32.mxu1 %vm6693_vm2, %v11513_v20 }
 0x4e1   :  { %6233 = vmatpush3.bf16.msra.mxu0 %v11517_v23  ;;  %v4453_v54 = vsel %vm2947_vm8, %v4430_v52, %v9758_v32  ;;  %6237 = vmatprep.subr.bf16.mxu1 %v11514_v58  ;;  %v4815_v32 = vadd.f32 %v4814_v29, %v9844_v10  ;;  %v5191_v10 = vadd.f32 %v5190_v56, %v9860_v47  ;;  %v11518_v52 = vld [vmem:[#allocation26_spill] sm:$0xff]  ;;  %v11519_v29 = vld [vmem:[#allocation17_spill] sm:$0xff] }
 0x4e2   :  { %v5180_v48 = vadd.f32 %v5179_v15, %v5178_v40  ;;  %v5642_v37 = vadd.f32 %v5641_v16, %v5640_v25  ;;  %v5650_v36 = vrot.slane %v5649_v8, 4  ;;  %v4454_v39 = vsel %vm2949_vm9, %v9875_v5, %v4453_v54  ;;  %6240 = vmatprep.subr.bf16.mxu0 %v11514_v58 }
 0x4e3   :  { %v4806_v34 = vadd.f32 %v4805_v14, %v4804_v55  ;;  %v9999_v14 = vadd.f32 %v11519_v29, %v11518_v52 }
 0x4e4   :  { %v5181_v35 = vrot.slane %v5180_v48, 1  ;;  %v5643_v19 = vrot.slane %v5642_v37, 2  ;;  %v5651_v38 = vadd.f32 %v5650_v36, %v5649_v8  ;;  %6153 = vmatmul.mubr.msk.f32.vlgmr.msra.gmra.mrb[12].mxu0 %vm123_vm0, %v4454_v39  ;;  %6239 = vmatpush3.bf16.msra.mxu1 %v11517_v23  ;;  %v11521_v39 = vld [vmem:[#allocation18_spill] sm:$0xff] }
 0x4e5   :  { %6242 = vmatpush3.bf16.msra.mxu0 %v11512_v9  ;;  %v4829_v5 = vsel %vm2947_vm8, %v4806_v34, %v9776_v18  ;;  %6246 = vmatprep.subr.bf16.mxu1 %v11514_v58  ;;  %v10013_v34 = vadd.f32 %v11518_v52, %v11521_v39 }
 0x4e6   :  { %v5644_v42 = vadd.f32 %v5643_v19, %v5642_v37  ;;  %v5652_v0 = vrot.slane %v5651_v38, 2  ;;  %v4830_v1 = vsel %vm2949_vm9, %v4815_v32, %v4829_v5  ;;  %6243 = vmatprep.subr.bf16.mxu0 %v11514_v58  ;;  %v5182_v41 = vadd.f32 %v5181_v35, %v5180_v48  ;;  %6174 = vmatprep.mubr.msk.f32.mxu0 %vm6693_vm2, %v11513_v20  ;;  %v11520_v48 = vld [vmem:[#allocation20_spill] sm:$0xff] }
 0x4e7   :  { %6164 = vmatmul.mubr.msk.f32.vlgmr.msra.gmra.mrb[12].mxu1 %vm123_vm0, %v4830_v1  ;;  %v10007_v37 = vadd.f32 %v11518_v52, %v11520_v48  ;;  %v11523_v1 = vld [vmem:[#allocation22_spill] sm:$0xff] }
 0x4e8   :  { %v5645_v21 = vrot.slane %v5644_v42, 1  ;;  %v5653_v12 = vadd.f32 %v5652_v0, %v5651_v38  ;;  %v5205_v18 = vsel %vm2947_vm8, %v5182_v41, %v9799_v51  ;;  %6248 = vmatpush3.bf16.msra.mxu1 %v11512_v9  ;;  %6185 = vmatprep.mubr.msk.f32.mxu1 %vm6693_vm2, %v11513_v20  ;;  %v11522_v38 = vld [vmem:[#allocation19_spill] sm:$0xff]  ;;  %v10027_v41 = vadd.f32 %v11518_v52, %v11523_v1 }
 0x4e9   :  { %6245 = vmatpush3.bf16.msra.mxu0 %v11517_v23  ;;  %v5206_v2 = vsel %vm2949_vm9, %v5191_v10, %v5205_v18  ;;  %6249 = vmatprep.subr.bf16.mxu1 %v11514_v58  ;;  %v10019_v32 = vadd.f32 %v11522_v38, %v11518_v52  ;;  %v11524_v18 = vld [vmem:[#allocation21_spill] sm:$0xff]  ;;  %vm4990_vm2 = vcmask 258048  }
 0x4ea   :  { %v5654_v53 = vrot.slane %v5653_v12, 1  ;;  %v5646_v47 = vadd.f32 %v5645_v21, %v5644_v42 }
 0x4ec   :  { %6175 = vmatmul.mubr.msk.f32.vlgmr.msra.gmra.mrb[14].mxu0 %vm123_vm0, %v5206_v2  ;;  %v5655_v4 = vadd.f32 %v5654_v53, %v5653_v12  ;;  %v5669_v26 = vsel %vm2947_vm8, %v5646_v47, %v9815_v11  ;;  %6251 = vmatpush3.bf16.msra.mxu1 %v11517_v23  ;;  %v10036_v2 = vadd.f32 %v11524_v18, %v11518_v52 }
 0x4ee   :  { %v5670_v51 = vsel %vm2949_vm9, %v5655_v4, %v5669_v26 }
 0x4ef   :  { %6186 = vmatmul.mubr.msk.f32.vlgmr.msra.gmra.mrb[14].mxu1 %vm123_vm0, %v5670_v51  ;;  %v11525_v51 = vld [vmem:[#allocation24_spill] sm:$0xff] }
 0x52e   :  { %v3032_v31 = vpop.permute.xlu1 %3031 }
 0x52f   :  { %v3055_v5 = vadd.f32 %v3032_v31, %v10013_v34 }
 0x535   :  { %v3034_v7 = vpop.permute.xlu0 %3033 }
 0x536   :  { %v3056_v8 = vadd.f32 %v3034_v7, %v9999_v14 }
 0x537   :  { %v3036_v54 = vpop.permute.xlu1 %3035 }
 0x538   :  { %v3057_v56 = vadd.f32 %v3036_v54, %v10007_v37  ;;  %6354 = vtanh.f32 %v3056_v8 }
 0x539   :  { %v3038_v35 = vpop.permute.xlu0 %3037 }
 0x53a   :  { %v3058_v42 = vadd.f32 %v3038_v35, %v10019_v32  ;;  %6356 = vtanh.f32 %v3057_v56 }
 0x53b   :  { %v3040_v0 = vpop.permute.xlu1 %3039  ;;  %6358 = vtanh.f32 %v3055_v5 }
 0x53c   :  { %v3059_v21 = vadd.f32 %v3040_v0, %v10027_v41  ;;  %6360 = vtanh.f32 %v3058_v42 }
 0x53d   :  { %v3042_v12 = vpop.permute.xlu0 %3041 }
 0x53e   :  { %v3060_v4 = vadd.f32 %v3042_v12, %v10036_v2  ;;  %6362 = vtanh.f32 %v3059_v21 }
 0x53f   :  { %v3044_v26 = vpop.permute.xlu1 %3043 }
 0x540   :  { %6364 = vtanh.f32 %v3060_v4 }
 0x5a9   :  { %v3395_v9 = vpop.f32.mrb[8].mxu1 }
 0x5aa   :  { %3409 = vrot.lane.b32.xlu0 %v3395_v9, %s6690_s27  ;;  %v6121_v50 = vpop.f32.mrb[9].mxu1  ;;  %v3400_v58 = vrot.slane %v3395_v9, 7  ;;  %v3401_v27 = vrot.slane %v3395_v9, 1  ;;  %v3402_v49 = vrot.slane %v3395_v9, 2  ;;  %v3403_v30 = vrot.slane %v3395_v9, 3 }
 0x5ab   :  { %v3404_v44 = vrot.slane %v3395_v9, 4  ;;  %v3405_v13 = vrot.slane %v3395_v9, 5  ;;  %v3406_v3 = vrot.slane %v3395_v9, 6  ;;  %v10044_v9 = vadd.f32 %v11518_v52, %v11525_v51  ;;  %v6355_v50 = vpop.eup %6354 }
 0x5ae   :  { %3407 = vrot.lane.b32.xlu0 %v3400_v58, %s6690_s27 }
 0x5af   :  { %v3771_v61 = vpop.f32.mrb[10].mxu0 }
 0x5b0   :  { %3787 = vrot.lane.b32.xlu1 %v3771_v61, %s6690_s27  ;;  %v6132_v20 = vpop.f32.mrb[11].mxu0  ;;  %v3777_v43 = vrot.slane %v3771_v61, 7  ;;  %v3776_v62 = vrot.slane %v3771_v61, 6  ;;  %v3778_v28 = vrot.slane %v3771_v61, 1  ;;  %v3780_v22 = vrot.slane %v3771_v61, 3 }
 0x5b1   :  { %v3781_v60 = vrot.slane %v3771_v61, 4  ;;  %v3782_v55 = vrot.slane %v3771_v61, 5  ;;  %v3779_v40 = vrot.slane %v3771_v61, 2  ;;  %v3061_v61 = vadd.f32 %v3044_v26, %v10044_v9  ;;  %v3046_v20 = vpop.permute.xlu0 %3045 }
 0x5b2   :  { %v9968_v11 = vpop.f32.mrb[10].mxu1  ;;  %3411 = vrot.lane.b32.xlu0 %v3401_v27, %s6690_s27 }
 0x5b3   :  { %v6143_v24 = vpop.f32.mrb[11].mxu1  ;;  %v4153_v25 = vrot.slane %v9968_v11, 6  ;;  %v4154_v17 = vrot.slane %v9968_v11, 7  ;;  %v4157_v15 = vrot.slane %v9968_v11, 3  ;;  %v4152_v16 = vrot.slane %v9968_v11, 5 }
 0x5b4   :  { %3785 = vrot.lane.b32.xlu1 %v3777_v43, %s6690_s27  ;;  %v4155_v36 = vrot.slane %v9968_v11, 1  ;;  %v4156_v19 = vrot.slane %v9968_v11, 2  ;;  %v4158_v10 = vrot.slane %v9968_v11, 4  ;;  %v11526_v43 = vld [vmem:[#allocation23_spill] sm:$0xff]  ;;  %v6357_v24 = vpop.eup %6356  ;;  %6366 = vtanh.f32 %v3061_v61 }
 0x5b6   :  { %3413 = vrot.lane.b32.xlu0 %v3402_v49, %s6690_s27  ;;  %v11527_v49 = vld [vmem:[#allocation25_spill] sm:$0xff] }
 0x5b7   :  { %v9972_v57 = vpop.f32.mrb[12].mxu0 }
 0x5b8   :  { %3783 = vrot.lane.b32.xlu1 %v3776_v62, %s6690_s27  ;;  %v6154_v59 = vpop.f32.mrb[13].mxu0  ;;  %v4530_v53 = vrot.slane %v9972_v57, 6  ;;  %v4529_v47 = vrot.slane %v9972_v57, 5  ;;  %v4531_v58 = vrot.slane %v9972_v57, 7  ;;  %v4532_v27 = vrot.slane %v9972_v57, 1 }
 0x5b9   :  { %v3080_v62 = vmul.f32 %v6355_v50, %v11527_v49 }
 0x5ba   :  { %v9976_v63 = vpop.f32.mrb[12].mxu1  ;;  %3415 = vrot.lane.b32.xlu0 %v3403_v30, %s6690_s27  ;;  %v6359_v30 = vpop.eup %6358 }
 0x5bb   :  { %v6165_v33 = vpop.f32.mrb[13].mxu1  ;;  %v4906_v54 = vrot.slane %v9976_v63, 5  ;;  %v4908_v48 = vrot.slane %v9976_v63, 7  ;;  %v4904_v35 = vrot.slane %v9976_v63, 3  ;;  %v4909_v38 = vrot.slane %v9976_v63, 1 }
 0x5bc   :  { %3789 = vrot.lane.b32.xlu1 %v3778_v28, %s6690_s27  ;;  %v4533_v28 = vrot.slane %v9972_v57, 2  ;;  %v6361_v33 = vpop.eup %6360  ;;  %v4910_v1 = vrot.slane %v9976_v63, 2 }
 0x5be   :  { %3417 = vrot.lane.b32.xlu0 %v3404_v44, %s6690_s27  ;;  %v3081_v44 = vmul.f32 %v6357_v24, %v11527_v49 }
 0x5bf   :  { %v9980_v23 = vpop.f32.mrb[14].mxu0 }
 0x5c0   :  { %3793 = vrot.lane.b32.xlu1 %v3780_v22, %s6690_s27  ;;  %v6176_v6 = vpop.f32.mrb[15].mxu0  ;;  %v3095_v22 = vrot.slane %v3080_v62, 7  ;;  %v5283_v12 = vrot.slane %v9980_v23, 5  ;;  %v5281_v4 = vrot.slane %v9980_v23, 3  ;;  %v5286_v26 = vrot.slane %v9980_v23, 1 }
 0x5c1   :  { %v4907_v6 = vrot.slane %v9976_v63, 6 }
 0x5c2   :  { %3419 = vrot.lane.b32.xlu0 %v3405_v13, %s6690_s27  ;;  %v9985_v46 = vpop.f32.mrb[14].mxu1  ;;  %v6363_v13 = vpop.eup %6362 }
 0x5c3   :  { %v6187_v45 = vpop.f32.mrb[15].mxu1  ;;  %v3083_v31 = vmul.f32 %v6363_v13, %v11527_v49  ;;  %v5746_v51 = vrot.slane %v9985_v46, 3  ;;  %v5745_v50 = vrot.slane %v9985_v46, 2  ;;  %v5747_v61 = vrot.slane %v9985_v46, 4 }
 0x5c4   :  { %3795 = vrot.lane.b32.xlu1 %v3781_v60, %s6690_s27  ;;  %v3079_v60 = vmul.f32 %v6359_v30, %v11527_v49  ;;  %v3082_v45 = vmul.f32 %v6361_v33, %v11527_v49 }
 0x5c5   :  { %v3101_v8 = vrot.slane %v3083_v31, 4 }
 0x5c6   :  { %3421 = vrot.lane.b32.xlu0 %v3406_v3, %s6690_s27  ;;  %v4528_v3 = vrot.slane %v9972_v57, 4  ;;  %v3099_v7 = vrot.slane %v3082_v45, 5 }
 0x5c8   :  { %3797 = vrot.lane.b32.xlu1 %v3782_v55, %s6690_s27  ;;  %v3097_v55 = vrot.slane %v3081_v44, 6 }
 0x5ca   :  { %3791 = vrot.lane.b32.xlu0 %v3779_v40, %s6690_s27  ;;  %v3096_v40 = vsel %vm2937_vm3, %v3095_v22, %v3079_v60 }
 0x5cb   :  { %v3098_v29 = vsel %vm2939_vm4, %v3097_v55, %v3096_v40 }
 0x5cc   :  { %4161 = vrot.lane.b32.xlu1 %v4153_v25, %s6690_s27  ;;  %v6365_v25 = vpop.eup %6364 }
 0x5ce   :  { %4165 = vrot.lane.b32.xlu0 %v9968_v11, %s6690_s27  ;;  %v10052_v11 = vadd.f32 %v11526_v43, %v11518_v52  ;;  %v4534_v52 = vrot.slane %v9972_v57, 3  ;;  %v5750_v43 = vrot.slane %v9985_v46, 7 }
 0x5d0   :  { %4163 = vrot.lane.b32.xlu1 %v4154_v17, %s6690_s27  ;;  %v3062_v59 = vadd.f32 %v3046_v20, %v10052_v11  ;;  %v4905_v17 = vrot.slane %v9976_v63, 4  ;;  %v5748_v20 = vrot.slane %v9985_v46, 5 }
 0x5d2   :  { %4171 = vrot.lane.b32.xlu0 %v4157_v15, %s6690_s27  ;;  %6368 = vtanh.f32 %v3062_v59  ;;  %v6367_v15 = vpop.eup %6366 }
 0x5d4   :  { %4159 = vrot.lane.b32.xlu1 %v4152_v16, %s6690_s27  ;;  %v3084_v16 = vmul.f32 %v6365_v25, %v11527_v49 }
 0x5d6   :  { %4167 = vrot.lane.b32.xlu0 %v4155_v36, %s6690_s27  ;;  %v3100_v36 = vsel %vm2941_vm5, %v3099_v7, %v3098_v29  ;;  %v3103_v56 = vrot.slane %v3084_v16, 3 }
 0x5d8   :  { %4169 = vrot.lane.b32.xlu1 %v4156_v19, %s6690_s27  ;;  %v3102_v19 = vsel %vm2943_vm6, %v3101_v8, %v3100_v36 }
 0x5d9   :  { %v3104_v0 = vsel %vm2945_vm7, %v3103_v56, %v3102_v19 }
 0x5da   :  { %4543 = vrot.lane.b32.xlu0 %v9972_v57, %s6690_s27  ;;  %v3085_v57 = vmul.f32 %v6367_v15, %v11527_v49 }
 0x5dc   :  { %4173 = vrot.lane.b32.xlu1 %v4158_v10, %s6690_s27  ;;  %v6369_v39 = vpop.eup %6368  ;;  %v3105_v42 = vrot.slane %v3085_v57, 2 }
 0x5dd   :  { %v3086_v5 = vmul.f32 %v6369_v39, %v11527_v49 }
 0x5de   :  { %4539 = vrot.lane.b32.xlu0 %v4530_v53, %s6690_s27  ;;  %v3106_v21 = vsel %vm2947_vm8, %v3105_v42, %v3104_v0  ;;  %v5282_v53 = vrot.slane %v9980_v23, 4 }
 0x5df   :  { %v3107_v10 = vrot.slane %v3086_v5, 1 }
 0x5e0   :  { %4537 = vrot.lane.b32.xlu1 %v4529_v47, %s6690_s27  ;;  %v5285_v47 = vrot.slane %v9980_v23, 7 }
 0x5e1   :  { %v3108_v18 = vsel %vm2949_vm9, %v3107_v10, %v3106_v21 }
 0x5e2   :  { %4541 = vrot.lane.b32.xlu0 %v4531_v58, %s6690_s27  ;;  %v5280_v58 = vrot.slane %v9980_v23, 2 }
 0x5e4   :  { %4545 = vrot.lane.b32.xlu1 %v4532_v27, %s6690_s27  ;;  %v5749_v27 = vrot.slane %v9985_v46, 6 }
 0x5e6   :  { %4921 = vrot.lane.b32.xlu0 %v9976_v63, %s6690_s27  ;;  %v5284_v63 = vrot.slane %v9980_v23, 6 }
 0x5e8   :  { %4547 = vrot.lane.b32.xlu1 %v4533_v28, %s6690_s27 }
 0x5ea   :  { %4917 = vrot.lane.b32.xlu0 %v4907_v6, %s6690_s27 }
 0x5ec   :  { %4535 = vrot.lane.b32.xlu1 %v4528_v3, %s6690_s27 }
 0x5ee   :  { %4913 = vrot.lane.b32.xlu0 %v4905_v17, %s6690_s27 }
 0x5f0   :  { %4549 = vrot.lane.b32.xlu1 %v4534_v52, %s6690_s27 }
 0x5f2   :  { %4915 = vrot.lane.b32.xlu0 %v4906_v54, %s6690_s27 }
 0x5f4   :  { %4919 = vrot.lane.b32.xlu1 %v4908_v48, %s6690_s27 }
 0x5f6   :  { %4911 = vrot.lane.b32.xlu0 %v4904_v35, %s6690_s27 }
 0x5f8   :  { %4923 = vrot.lane.b32.xlu1 %v4909_v38, %s6690_s27 }
 0x5fa   :  { %5299 = vrot.lane.b32.xlu0 %v9980_v23, %s6690_s27  ;;  %v5744_v23 = vrot.slane %v9985_v46, 1 }
 0x5fc   :  { %4925 = vrot.lane.b32.xlu1 %v4910_v1, %s6690_s27 }
 0x5fe   :  { %3109 = vrot.lane.b32.xlu0 %v3108_v18, %s6696_s8 }
 0x600   :  { %5293 = vrot.lane.b32.xlu1 %v5283_v12, %s6690_s27 }
 0x602   :  { %5291 = vrot.lane.b32.xlu0 %v5282_v53, %s6690_s27 }
 0x604   :  { %5295 = vrot.lane.b32.xlu1 %v5284_v63, %s6690_s27 }
 0x606   :  { %5297 = vrot.lane.b32.xlu0 %v5285_v47, %s6690_s27 }
 0x608   :  { %5289 = vrot.lane.b32.xlu1 %v5281_v4, %s6690_s27 }
 0x60a   :  { %5301 = vrot.lane.b32.xlu0 %v5286_v26, %s6690_s27 }
 0x60c   :  { %5755 = vrot.lane.b32.xlu1 %v5746_v51, %s6690_s27 }
 0x60e   :  { %5753 = vrot.lane.b32.xlu0 %v5745_v50, %s6690_s27 }
 0x610   :  { %5287 = vrot.lane.b32.xlu1 %v5280_v58, %s6690_s27 }
 0x612   :  { %5757 = vrot.lane.b32.xlu0 %v5747_v61, %s6690_s27 }
 0x614   :  { %5759 = vrot.lane.b32.xlu1 %v5748_v20, %s6690_s27 }
 0x616   :  { %5765 = vrot.lane.b32.xlu0 %v9985_v46, %s6690_s27 }
 0x618   :  { %5761 = vrot.lane.b32.xlu1 %v5749_v27, %s6690_s27 }
 0x61a   :  { %5751 = vrot.lane.b32.xlu0 %v5744_v23, %s6690_s27 }
 0x61c   :  { %5763 = vrot.lane.b32.xlu1 %v5750_v43, %s6690_s27  ;;  %v3410_v24 = vpop.permute.xlu0 %3409 }
 0x61d   :  { %v3432_v44 = vadd.f32 %v3410_v24, %v9999_v14 }
 0x620   :  { %v3408_v62 = vpop.permute.xlu0 %3407 }
 0x621   :  { %v3431_v6 = vadd.f32 %v3408_v62, %v10013_v34 }
 0x622   :  { %v3788_v59 = vpop.permute.xlu1 %3787 }
 0x623   :  { %v3809_v30 = vadd.f32 %v3788_v59, %v10007_v37 }
 0x624   :  { %v3412_v28 = vpop.permute.xlu0 %3411 }
 0x625   :  { %6370 = vtanh.f32 %v3809_v30  ;;  %v3433_v13 = vadd.f32 %v3412_v28, %v10007_v37 }
 0x626   :  { %v3786_v33 = vpop.permute.xlu1 %3785 }
 0x627   :  { %v3808_v22 = vadd.f32 %v3786_v33, %v9999_v14 }
 0x628   :  { %v3414_v46 = vpop.permute.xlu0 %3413 }
 0x629   :  { %6372 = vtanh.f32 %v3808_v22  ;;  %v3434_v45 = vadd.f32 %v3414_v46, %v10019_v32 }
 0x62a   :  { %v3784_v60 = vpop.permute.xlu1 %3783  ;;  %6374 = vtanh.f32 %v3432_v44 }
 0x62b   :  { %v3807_v3 = vadd.f32 %v3784_v60, %v10013_v34  ;;  %6376 = vtanh.f32 %v3431_v6 }
 0x62c   :  { %v3416_v55 = vpop.permute.xlu0 %3415 }
 0x62d   :  { %6378 = vtanh.f32 %v3807_v3  ;;  %v3435_v40 = vadd.f32 %v3416_v55, %v10027_v41 }
 0x62e   :  { %6380 = vtanh.f32 %v3433_v13  ;;  %v3790_v25 = vpop.permute.xlu1 %3789 }
 0x62f   :  { %6382 = vtanh.f32 %v3434_v45  ;;  %v3810_v31 = vadd.f32 %v3790_v25, %v10019_v32  ;;  %v6371_v7 = vpop.eup %6370 }
 0x630   :  { %6384 = vtanh.f32 %v3435_v40  ;;  %v3418_v17 = vpop.permute.xlu0 %3417  ;;  %v3825_v54 = vmul.f32 %v6371_v7, %v11527_v49 }
 0x631   :  { %6386 = vtanh.f32 %v3810_v31  ;;  %v3436_v52 = vadd.f32 %v3418_v17, %v10036_v2 }
 0x632   :  { %v10137_v29 = vpop.permute.xlu1 %3793  ;;  %v3841_v0 = vrot.slane %v3825_v54, 6 }
 0x633   :  { %v6373_v15 = vpop.eup %6372  ;;  %6388 = vtanh.f32 %v3436_v52 }
 0x634   :  { %v3824_v16 = vmul.f32 %v6373_v15, %v11527_v49  ;;  %v6375_v8 = vpop.eup %6374  ;;  %v3420_v48 = vpop.permute.xlu0 %3419 }
 0x635   :  { %v6377_v36 = vpop.eup %6376  ;;  %v3437_v39 = vadd.f32 %v3420_v48, %v10044_v9  ;;  %v3448_v26 = vmul.f32 %v6375_v8, %v11527_v49 }
 0x636   :  { %v3796_v57 = vpop.permute.xlu1 %3795  ;;  %v3839_v38 = vrot.slane %v3824_v16, 7  ;;  %v3447_v27 = vmul.f32 %v6377_v36, %v11527_v49 }
 0x637   :  { %v6379_v56 = vpop.eup %6378  ;;  %v3813_v35 = vadd.f32 %v3796_v57, %v10044_v9  ;;  %6390 = vtanh.f32 %v3437_v39  ;;  %v3463_v59 = vrot.slane %v3448_v26, 7 }
 0x638   :  { %v6381_v19 = vpop.eup %6380  ;;  %v3823_v5 = vmul.f32 %v6379_v56, %v11527_v49  ;;  %v3422_v1 = vpop.permute.xlu0 %3421 }
 0x639   :  { %v6383_v42 = vpop.eup %6382  ;;  %6392 = vtanh.f32 %v3813_v35  ;;  %v3438_v21 = vadd.f32 %v3422_v1, %v10052_v11  ;;  %v3449_v63 = vmul.f32 %v6381_v19, %v11527_v49  ;;  %v3464_v46 = vsel %vm2939_vm4, %v3463_v59, %v3447_v27 }
 0x63a   :  { %v6385_v10 = vpop.eup %6384  ;;  %v3798_v12 = vpop.permute.xlu1 %3797  ;;  %v3840_v18 = vsel %vm2941_vm5, %v3839_v38, %v3823_v5  ;;  %v3450_v51 = vmul.f32 %v6383_v42, %v11527_v49 }
 0x63b   :  { %v6387_v53 = vpop.eup %6386  ;;  %v3814_v47 = vadd.f32 %v3798_v12, %v10052_v11  ;;  %v3842_v4 = vsel %vm2943_vm6, %v3841_v0, %v3840_v18  ;;  %6394 = vtanh.f32 %v3438_v21  ;;  %v3451_v58 = vmul.f32 %v6385_v10, %v11527_v49 }
 0x63c   :  { %v3826_v50 = vmul.f32 %v6387_v53, %v11527_v49  ;;  %v10153_v61 = vpop.permute.xlu0 %3791  ;;  %v3465_v24 = vrot.slane %v3449_v63, 6  ;;  %v3467_v30 = vrot.slane %v3450_v51, 5 }
 0x63d   :  { %6396 = vtanh.f32 %v3814_v47  ;;  %v6389_v20 = vpop.eup %6388  ;;  %v3469_v44 = vrot.slane %v3451_v58, 4 }
 0x63e   :  { %v10156_v23 = vpop.permute.xlu1 %4161  ;;  %v3843_v43 = vrot.slane %v3826_v50, 5  ;;  %v3452_v62 = vmul.f32 %v6389_v20, %v11527_v49  ;;  %v3466_v3 = vsel %vm2941_vm5, %v3465_v24, %v3464_v46 }
 0x63f   :  { %v3468_v55 = vsel %vm2943_vm6, %v3467_v30, %v3466_v3  ;;  %v4184_v3 = vadd.f32 %v10156_v23, %v9999_v14 }
 0x640   :  { %v10160_v28 = vsel %vm2945_vm7, %v3843_v43, %v3842_v4  ;;  %v10162_v33 = vpop.permute.xlu0 %4165  ;;  %v3471_v13 = vrot.slane %v3452_v62, 3  ;;  %v3470_v25 = vsel %vm2945_vm7, %v3469_v44, %v3468_v55 }
 0x641   :  { %v6391_v22 = vpop.eup %6390 }
 0x642   :  { %v10164_v6 = vpop.permute.xlu1 %4163  ;;  %v3453_v45 = vmul.f32 %v6391_v22, %v11527_v49  ;;  %v3472_v52 = vsel %vm2947_vm8, %v3471_v13, %v3470_v25  ;;  %v3812_v22 = vadd.f32 %v10137_v29, %v10036_v2  ;;  %v3811_v13 = vadd.f32 %v10153_v61, %v10027_v41 }
 0x643   :  { %v6393_v60 = vpop.eup %6392  ;;  %v4186_v61 = vadd.f32 %v10162_v33, %v10019_v32 }
 0x644   :  { %v4172_v40 = vpop.permute.xlu0 %4171  ;;  %v3473_v31 = vrot.slane %v3453_v45, 2  ;;  %v3829_v15 = vmul.f32 %v6393_v60, %v11527_v49 }
 0x645   :  { %v6395_v17 = vpop.eup %6394  ;;  %v4189_v48 = vadd.f32 %v4172_v40, %v10044_v9 }
 0x646   :  { %v4160_v7 = vpop.permute.xlu1 %4159  ;;  %v3474_v8 = vsel %vm2949_vm9, %v3473_v31, %v3472_v52  ;;  %v3454_v54 = vmul.f32 %v6395_v17, %v11527_v49  ;;  %v3849_v35 = vrot.slane %v3829_v15, 2 }
 0x647   :  { %v6397_v16 = vpop.eup %6396  ;;  %3476 = vrot.lane.b32.xlu0 %v3474_v8, %s6696_s8  ;;  %6398 = vtanh.f32 %v4189_v48  ;;  %v4183_v40 = vadd.f32 %v4160_v7, %v10013_v34  ;;  %v4185_v7 = vadd.f32 %v10164_v6, %v10007_v37 }
 0x648   :  { %v3830_v36 = vmul.f32 %v6397_v16, %v11527_v49  ;;  %v10178_v39 = vpop.permute.xlu0 %4167  ;;  %v3475_v57 = vrot.slane %v3454_v54, 1 }
 0x649   :  { %v4187_v48 = vadd.f32 %v10178_v39, %v10027_v41 }
 0x64a   :  { %v4170_v56 = vpop.permute.xlu1 %4169  ;;  %v3850_v19 = vrot.slane %v3830_v36, 1  ;;  %3478 = vrot.lane.b32.xlu1 %v3475_v57, %s6696_s8 }
 0x64b   :  { %v4188_v38 = vadd.f32 %v4170_v56, %v10036_v2 }
 0x64c   :  { %v3851_v5 = vsel %vm2937_vm3, %v3850_v19, %v3849_v35  ;;  %v4544_v42 = vpop.permute.xlu0 %4543 }
 0x64d   :  { %6400 = vtanh.f32 %v4188_v38  ;;  %3854 = vrot.lane.b32.xlu0 %v3851_v5, %s6696_s8  ;;  %v4563_v20 = vadd.f32 %v4544_v42, %v10027_v41 }
 0x64e   :  { %v4174_v0 = vpop.permute.xlu1 %4173 }
 0x64f   :  { %v4190_v1 = vadd.f32 %v4174_v0, %v10052_v11 }
 0x650   :  { %v4540_v10 = vpop.permute.xlu0 %4539 }
 0x651   :  { %6402 = vtanh.f32 %v4190_v1  ;;  %v6399_v18 = vpop.eup %6398  ;;  %v4561_v57 = vadd.f32 %v4540_v10, %v10007_v37 }
 0x652   :  { %v4538_v21 = vpop.permute.xlu1 %4537  ;;  %v4205_v51 = vmul.f32 %v6399_v18, %v11527_v49 }
 0x653   :  { %v4560_v19 = vadd.f32 %v4538_v21, %v9999_v14 }
 0x654   :  { %v10185_v12 = vpop.permute.xlu0 %4541  ;;  %v4224_v59 = vrot.slane %v4205_v51, 2 }
 0x655   :  { %v4562_v10 = vadd.f32 %v10185_v12, %v10019_v32 }
 0x656   :  { %v4546_v53 = vpop.permute.xlu1 %4545 }
 0x657   :  { %v6401_v63 = vpop.eup %6400  ;;  %v4564_v4 = vadd.f32 %v4546_v53, %v10036_v2 }
 0x658   :  { %v4204_v47 = vmul.f32 %v6401_v63, %v11527_v49  ;;  %v4922_v26 = vpop.permute.xlu0 %4921 }
 0x659   :  { %6404 = vtanh.f32 %v4564_v4  ;;  %v4940_v23 = vadd.f32 %v4922_v26, %v10036_v2 }
 0x65a   :  { %v4548_v50 = vpop.permute.xlu1 %4547  ;;  %v4223_v43 = vrot.slane %v4204_v47, 3 }
 0x65b   :  { %v6403_v58 = vpop.eup %6402  ;;  %v4565_v27 = vadd.f32 %v4548_v50, %v10044_v9 }
 0x65c   :  { %v4206_v24 = vmul.f32 %v6403_v58, %v11527_v49  ;;  %v4918_v62 = vpop.permute.xlu0 %4917  ;;  %v4225_v46 = vsel %vm2937_vm3, %v4224_v59, %v4223_v43 }
 0x65d   :  { %6406 = vtanh.f32 %v4565_v27  ;;  %v4938_v25 = vadd.f32 %v4918_v62, %v10019_v32 }
 0x65e   :  { %v4536_v30 = vpop.permute.xlu1 %4535  ;;  %v4226_v44 = vrot.slane %v4206_v24, 1  ;;  %6408 = vtanh.f32 %v4563_v20 }
 0x65f   :  { %6410 = vtanh.f32 %v3812_v22  ;;  %v4559_v47 = vadd.f32 %v4536_v30, %v10013_v34 }
 0x660   :  { %v4227_v60 = vsel %vm2939_vm4, %v4226_v44, %v4225_v46  ;;  %v4914_v45 = vpop.permute.xlu0 %4913  ;;  %6412 = vtanh.f32 %v3811_v13 }
 0x661   :  { %4230 = vrot.lane.b32.xlu0 %v4227_v60, %s6696_s8  ;;  %v4936_v58 = vadd.f32 %v4914_v45, %v9999_v14 }
 0x662   :  { %v4550_v55 = vpop.permute.xlu1 %4549 }
 0x663   :  { %v4566_v29 = vadd.f32 %v4550_v55, %v10052_v11  ;;  %v6405_v52 = vpop.eup %6404 }
 0x664   :  { %v4916_v31 = vpop.permute.xlu0 %4915  ;;  %v4580_v33 = vmul.f32 %v6405_v52, %v11527_v49 }
 0x665   :  { %6414 = vtanh.f32 %v4566_v29  ;;  %v4937_v62 = vadd.f32 %v4916_v31, %v10007_v37 }
 0x666   :  { %6416 = vtanh.f32 %v4184_v3  ;;  %v4920_v17 = vpop.permute.xlu1 %4919  ;;  %v4598_v0 = vrot.slane %v4580_v33, 3 }
 0x667   :  { %6418 = vtanh.f32 %v4183_v40  ;;  %v4939_v15 = vadd.f32 %v4920_v17, %v10027_v41  ;;  %v6407_v16 = vpop.eup %6406 }
 0x668   :  { %6420 = vtanh.f32 %v4938_v25  ;;  %v6409_v8 = vpop.eup %6408  ;;  %v4912_v54 = vpop.permute.xlu0 %4911  ;;  %v4581_v35 = vmul.f32 %v6407_v16, %v11527_v49 }
 0x669   :  { %6422 = vtanh.f32 %v4939_v15  ;;  %v4579_v6 = vmul.f32 %v6409_v8, %v11527_v49  ;;  %v6411_v38 = vpop.eup %6410  ;;  %v4935_v31 = vadd.f32 %v4912_v54, %v10013_v34 }
 0x66a   :  { %6424 = vtanh.f32 %v4186_v61  ;;  %v4924_v36 = vpop.permute.xlu1 %4923  ;;  %v6413_v42 = vpop.eup %6412  ;;  %v4600_v53 = vrot.slane %v4581_v35, 2  ;;  %v10237_v40 = vmul.f32 %v6411_v38, %v11527_v49 }
 0x66b   :  { %6426 = vtanh.f32 %v4940_v23  ;;  %v4941_v56 = vadd.f32 %v4924_v36, %v10044_v9  ;;  %v4597_v4 = vrot.slane %v4579_v6, 4  ;;  %v3827_v55 = vmul.f32 %v6413_v42, %v11527_v49 }
 0x66c   :  { %6428 = vtanh.f32 %v4185_v7  ;;  %v5300_v5 = vpop.permute.xlu0 %5299 }
 0x66d   :  { %6430 = vtanh.f32 %v4941_v56  ;;  %v4599_v12 = vsel %vm2937_vm3, %v4598_v0, %v4597_v4  ;;  %v5317_v15 = vadd.f32 %v5300_v5, %v10044_v9  ;;  %v3845_v35 = vrot.slane %v3827_v55, 4 }
 0x66e   :  { %6432 = vtanh.f32 %v4187_v48  ;;  %v4926_v39 = vpop.permute.xlu1 %4925  ;;  %v4601_v30 = vsel %vm2939_vm4, %v4600_v53, %v4599_v12  ;;  %v3847_v4 = vrot.slane %v10237_v40, 3 }
 0x66f   :  { %v6415_v1 = vpop.eup %6414  ;;  %6434 = vtanh.f32 %v4561_v57  ;;  %v4942_v18 = vadd.f32 %v4926_v39, %v10052_v11  ;;  %v3846_v12 = vsel %vm2947_vm8, %v3845_v35, %v10160_v28 }
 0x670   :  { %v6417_v63 = vpop.eup %6416  ;;  %6436 = vtanh.f32 %v4560_v19  ;;  %v4582_v21 = vmul.f32 %v6415_v1, %v11527_v49  ;;  %v3110_v51 = vpop.permute.xlu0 %3109 }
 0x671   :  { %v6419_v26 = vpop.eup %6418  ;;  %6438 = vtanh.f32 %v4942_v18  ;;  %v3112_v27 = vsel %vm123_vm0, %v3110_v51, 0.0  ;;  %v4200_v22 = vmul.f32 %v6417_v63, %v11527_v49  ;;  %vm4614_vm0 = vcmask 257024  }
 0x672   :  { %v6421_v50 = vpop.eup %6420  ;;  %v5294_v20 = vpop.permute.xlu1 %5293  ;;  %v4602_v43 = vrot.slane %v4582_v21, 1  ;;  %6440 = vtanh.f32 %v4562_v10  ;;  %3113 = vadd.xlane.f32.xlu1 %v3112_v27  ;;  %v4199_v25 = vmul.f32 %v6419_v26, %v11527_v49 }
 0x673   :  { %v6423_v24 = vpop.eup %6422  ;;  %v5314_v59 = vadd.f32 %v5294_v20, %v10019_v32  ;;  %6442 = vtanh.f32 %v4559_v47  ;;  %v4954_v45 = vmul.f32 %v6421_v50, %v11527_v49  ;;  %v4215_v8 = vrot.slane %v4200_v22, 7 }
 0x674   :  { %v6425_v44 = vpop.eup %6424  ;;  %v4955_v46 = vmul.f32 %v6423_v24, %v11527_v49  ;;  %v4603_v13 = vsel %vm2941_vm5, %v4602_v43, %v4601_v30  ;;  %v5292_v3 = vpop.permute.xlu0 %5291 }
 0x675   :  { %v6427_v60 = vpop.eup %6426  ;;  %6444 = vtanh.f32 %v5314_v59  ;;  %4606 = vrot.lane.b32.xlu0 %v4603_v13, %s6696_s8  ;;  %v5313_v17 = vadd.f32 %v5292_v3, %v10007_v37  ;;  %v4971_v57 = vrot.slane %v4954_v45, 5  ;;  %v4202_v5 = vmul.f32 %v6425_v44, %v11527_v49 }
 0x676   :  { %v6429_v29 = vpop.eup %6428  ;;  %6446 = vtanh.f32 %v4936_v58  ;;  %v5296_v61 = vpop.permute.xlu1 %5295  ;;  %v4972_v23 = vrot.slane %v4955_v46, 4  ;;  %v4956_v48 = vmul.f32 %v6427_v60, %v11527_v49  ;;  %v4216_v42 = vsel %vm2943_vm6, %v4215_v8, %v4199_v25 }
 0x677   :  { %v6431_v52 = vpop.eup %6430  ;;  %6448 = vtanh.f32 %v4937_v62  ;;  %v5315_v16 = vadd.f32 %v5296_v61, %v10027_v41  ;;  %v4201_v54 = vmul.f32 %v6429_v29, %v11527_v49  ;;  %v4219_v22 = vrot.slane %v4202_v5, 5 }
 0x678   :  { %v6433_v7 = vpop.eup %6432  ;;  %6450 = vtanh.f32 %v5313_v17  ;;  %v4957_v33 = vmul.f32 %v6431_v52, %v11527_v49  ;;  %v5298_v56 = vpop.permute.xlu0 %5297  ;;  %v4973_v1 = vsel %vm2937_vm3, %v4972_v23, %v4971_v57  ;;  %v4974_v53 = vrot.slane %v4956_v48, 3 }
 0x679   :  { %v6435_v36 = vpop.eup %6434  ;;  %6452 = vtanh.f32 %v5315_v16  ;;  %v5316_v38 = vadd.f32 %v5298_v56, %v10036_v2  ;;  %v4203_v63 = vmul.f32 %v6433_v7, %v11527_v49  ;;  %v4217_v26 = vrot.slane %v4201_v54, 6 }
 0x67a   :  { %v6437_v6 = vpop.eup %6436  ;;  %6454 = vtanh.f32 %v4935_v31  ;;  %v5290_v19 = vpop.permute.xlu1 %5289  ;;  %v4976_v10 = vrot.slane %v4957_v33, 2  ;;  %v4975_v20 = vsel %vm2939_vm4, %v4974_v53, %v4973_v1  ;;  %v3848_v29 = vsel %vm2949_vm9, %v3847_v4, %v3846_v12 }
 0x67b   :  { %v6439_v39 = vpop.eup %6438  ;;  %6456 = vtanh.f32 %v5317_v15  ;;  %v5312_v0 = vadd.f32 %v5290_v19, %v9999_v14  ;;  %v4576_v24 = vmul.f32 %v6437_v6, %v11527_v49  ;;  %v4218_v59 = vsel %vm2945_vm7, %v4217_v26, %v4216_v42 }
 0x67c   :  { %6458 = vtanh.f32 %v5316_v38  ;;  %v4958_v18 = vmul.f32 %v6439_v39, %v11527_v49  ;;  %v6441_v47 = vpop.eup %6440  ;;  %v5302_v21 = vpop.permute.xlu0 %5301  ;;  %v4977_v62 = vsel %vm2941_vm5, %v4976_v10, %v4975_v20  ;;  %v4221_v46 = vrot.slane %v4203_v63, 4 }
 0x67d   :  { %v6443_v51 = vpop.eup %6442  ;;  %v5318_v58 = vadd.f32 %v5302_v21, %v10052_v11  ;;  %6460 = vtanh.f32 %v5312_v0  ;;  %v4220_v25 = vsel %vm2947_vm8, %v4219_v22, %v4218_v59  ;;  %v4577_v31 = vmul.f32 %v6435_v36, %v11527_v49 }
 0x67e   :  { %v5756_v50 = vpop.permute.xlu1 %5755  ;;  %v4978_v27 = vrot.slane %v4958_v18, 1  ;;  %v4575_v60 = vmul.f32 %v6443_v51, %v11527_v49  ;;  %v4591_v15 = vrot.slane %v4576_v24, 7  ;;  %v4578_v8 = vmul.f32 %v6441_v47, %v11527_v49 }
 0x67f   :  { %v6445_v43 = vpop.eup %6444  ;;  %6462 = vtanh.f32 %v5318_v58  ;;  %v5777_v52 = vadd.f32 %v5756_v50, %v10007_v37  ;;  %v4593_v19 = vrot.slane %v4577_v31, 6 }
 0x680   :  { %v6447_v30 = vpop.eup %6446  ;;  %v4979_v44 = vsel %vm2943_vm6, %v4978_v27, %v4977_v62  ;;  %v5330_v45 = vmul.f32 %v6445_v43, %v11527_v49  ;;  %v5754_v28 = vpop.permute.xlu0 %5753  ;;  %v4592_v37 = vsel %vm2945_vm7, %v4591_v15, %v4575_v60  ;;  %v4595_v53 = vrot.slane %v4578_v8, 5 }
 0x681   :  { %v6449_v13 = vpop.eup %6448  ;;  %4982 = vrot.lane.b32.xlu0 %v4979_v44, %s6696_s8  ;;  %v5776_v40 = vadd.f32 %v5754_v28, %v9999_v14  ;;  %v4222_v14 = vsel %vm2949_vm9, %v4221_v46, %v4220_v25  ;;  %v4952_v38 = vmul.f32 %v6447_v30, %v11527_v49  ;;  %v4594_v0 = vsel %vm2947_vm8, %v4593_v19, %v4592_v37 }
 0x682   :  { %v6451_v3 = vpop.eup %6450  ;;  %v5288_v55 = vpop.permute.xlu1 %5287  ;;  %v5346_v33 = vrot.slane %v5330_v45, 5  ;;  %v4953_v63 = vmul.f32 %v6449_v13, %v11527_v49  ;;  %v4596_v58 = vsel %vm2949_vm9, %v4595_v53, %v4594_v0 }
 0x683   :  { %v6453_v61 = vpop.eup %6452  ;;  %v5329_v17 = vmul.f32 %v6451_v3, %v11527_v49  ;;  %v5311_v23 = vadd.f32 %v5288_v55, %v10013_v34  ;;  %6464 = vtanh.f32 %v5776_v40  ;;  %3852 = vrot.lane.b32.xlu1 %v3848_v29, %s6696_s8  ;;  %v4967_v26 = vrot.slane %v4952_v38, 7 }
 0x684   :  { %v6455_v16 = vpop.eup %6454  ;;  %v5331_v7 = vmul.f32 %v6453_v61, %v11527_v49  ;;  %v5758_v54 = vpop.permute.xlu0 %5757  ;;  %v4969_v62 = vrot.slane %v4953_v63, 6 }
 0x685   :  { %v6457_v48 = vpop.eup %6456  ;;  %v5345_v36 = vrot.slane %v5329_v17, 6  ;;  %6466 = vtanh.f32 %v5311_v23  ;;  %v5778_v6 = vadd.f32 %v5758_v54, %v10019_v32  ;;  %v4951_v1 = vmul.f32 %v6455_v16, %v11527_v49 }
 0x686   :  { %v6459_v57 = vpop.eup %6458  ;;  %v5348_v56 = vrot.slane %v5331_v7, 4  ;;  %v5760_v35 = vpop.permute.xlu1 %5759  ;;  %6468 = vtanh.f32 %v5777_v52  ;;  %v5333_v10 = vmul.f32 %v6457_v48, %v11527_v49 }
 0x687   :  { %v5332_v5 = vmul.f32 %v6459_v57, %v11527_v49  ;;  %v5779_v42 = vadd.f32 %v5760_v35, %v10027_v41  ;;  %v5347_v39 = vsel %vm2937_vm3, %v5346_v33, %v5345_v36  ;;  %6470 = vtanh.f32 %v5778_v6  ;;  %4228 = vrot.lane.b32.xlu1 %v4222_v14, %s6696_s8  ;;  %v6461_v32 = vpop.eup %6460 }
 0x688   :  { %v5766_v18 = vpop.permute.xlu0 %5765  ;;  %v5349_v51 = vsel %vm2939_vm4, %v5348_v56, %v5347_v39  ;;  %v4968_v12 = vsel %vm2947_vm8, %v4967_v26, %v4951_v1  ;;  %v5352_v43 = vrot.slane %v5333_v10, 2  ;;  %v5328_v59 = vmul.f32 %v6461_v32, %v11527_v49 }
 0x689   :  { %6472 = vtanh.f32 %v5779_v42  ;;  %v5350_v47 = vrot.slane %v5332_v5, 3  ;;  %v6463_v21 = vpop.eup %6462  ;;  %v5782_v4 = vadd.f32 %v5766_v18, %v10052_v11  ;;  %v4970_v60 = vsel %vm2949_vm9, %v4969_v62, %v4968_v12 }
 0x68a   :  { %v5762_v41 = vpop.permute.xlu1 %5761  ;;  %v5334_v20 = vmul.f32 %v6463_v21, %v11527_v49  ;;  %v5343_v55 = vrot.slane %v5328_v59, 7 }
 0x68b   :  { %v5780_v50 = vadd.f32 %v5762_v41, %v10036_v2  ;;  %v5351_v27 = vsel %vm2941_vm5, %v5350_v47, %v5349_v51  ;;  %4604 = vrot.lane.b32.xlu1 %v4596_v58, %s6696_s8 }
 0x68c   :  { %v5752_v24 = vpop.permute.xlu0 %5751  ;;  %v5354_v11 = vrot.slane %v5334_v20, 1  ;;  %v5353_v22 = vsel %vm2943_vm6, %v5352_v43, %v5351_v27 }
 0x68d   :  { %6474 = vtanh.f32 %v5780_v50  ;;  %v6465_v30 = vpop.eup %6464  ;;  %v5775_v44 = vadd.f32 %v5752_v24, %v10013_v34 }
 0x68e   :  { %6476 = vtanh.f32 %v5782_v4  ;;  %v5764_v2 = vpop.permute.xlu1 %5763  ;;  %v5355_v45 = vsel %vm2945_vm7, %v5354_v11, %v5353_v22  ;;  %v5792_v40 = vmul.f32 %v6465_v30, %v11527_v49 }
 0x68f   :  { %v6467_v46 = vpop.eup %6466  ;;  %v5781_v13 = vadd.f32 %v5764_v2, %v10044_v9  ;;  %6478 = vtanh.f32 %v5775_v44  ;;  %4980 = vrot.lane.b32.xlu1 %v4970_v60, %s6696_s8  ;;  %5358 = vrot.lane.b32.xlu0 %v5355_v45, %s6696_s8 }
 0x690   :  { %v5327_v28 = vmul.f32 %v6467_v46, %v11527_v49  ;;  %v6469_v3 = vpop.eup %6468  ;;  %v5807_v61 = vrot.slane %v5792_v40, 7  ;;  %v10325_v46 = vld [vmem:[#allocation2] ss:$0 sm:$0xff] }
 0x691   :  { %6480 = vtanh.f32 %v5781_v13  ;;  %v6471_v34 = vpop.eup %6470  ;;  %v5793_v31 = vmul.f32 %v6469_v3, %v11527_v49 }
 0x692   :  { %v5794_v9 = vmul.f32 %v6471_v34, %v11527_v49  ;;  %v5344_v25 = vsel %vm2949_vm9, %v5343_v55, %v5327_v28  ;;  %vm5859_vm9 = vcmask 1045504  }
 0x693   :  { %v6473_v29 = vpop.eup %6472  ;;  %5356 = vrot.lane.b32.xlu1 %v5344_v25, %s6696_s8  ;;  %v5808_v16 = vrot.slane %v5793_v31, 6 }
 0x694   :  { %v5795_v17 = vmul.f32 %v6473_v29, %v11527_v49  ;;  %v5810_v23 = vrot.slane %v5794_v9, 5 }
 0x695   :  { %v5809_v48 = vsel %vm2937_vm3, %v5808_v16, %v5807_v61  ;;  %vm4986_vm3 = vcmask 261125  }
 0x696   :  { %v5812_v8 = vrot.slane %v5795_v17, 4  ;;  %v5811_v37 = vsel %vm2939_vm4, %v5810_v23, %v5809_v48  ;;  %vm5366_vm4 = vcmask 259072  }
 0x697   :  { %v6475_v52 = vpop.eup %6474 }
 0x698   :  { %v6477_v15 = vpop.eup %6476  ;;  %v5796_v7 = vmul.f32 %v6475_v52, %v11527_v49  ;;  %v5813_v35 = vsel %vm2941_vm5, %v5812_v8, %v5811_v37  ;;  %vm5362_vm5 = vcmask 261126  }
 0x699   :  { %v6479_v14 = vpop.eup %6478  ;;  %v5798_v54 = vmul.f32 %v6477_v15, %v11527_v49 }
 0x69a   :  { %v5791_v36 = vmul.f32 %v6479_v14, %v11527_v49  ;;  %v5814_v57 = vrot.slane %v5796_v7, 3 }
 0x69b   :  { %v6481_v33 = vpop.eup %6480  ;;  %v5818_v38 = vrot.slane %v5798_v54, 1 }
 0x69c   :  { %v5797_v56 = vmul.f32 %v6481_v33, %v11527_v49  ;;  %5820 = vrot.lane.b32.xlu1 %v5791_v36, %s6696_s8  ;;  %v5815_v19 = vsel %vm2943_vm6, %v5814_v57, %v5813_v35  ;;  %vm5830_vm6 = vcmask 260096  }
 0x69e   :  { %v5816_v6 = vrot.slane %v5797_v56, 2 }
 0x6a0   :  { %v5817_v5 = vsel %vm2945_vm7, %v5816_v6, %v5815_v19  ;;  %vm5826_vm7 = vcmask 261127  }
 0x6a1   :  { %v5819_v42 = vsel %vm2947_vm8, %v5818_v38, %v5817_v5  ;;  %vm5850_vm8 = vcmask 1046528  }
 0x6a2   :  { %5822 = vrot.lane.b32.xlu0 %v5819_v42, %s6696_s8 }
 0x6b9   :  { %v3477_v39 = vpop.permute.xlu0 %3476 }
 0x6ba   :  { %v3483_v1 = vsel %vm3482_vm10, %v3477_v39, 0.0  ;;  %vm5868_vm10 = vcmask 1044480  }
 0x6bc   :  { %v3479_v0 = vpop.permute.xlu1 %3478 }
 0x6bd   :  { %v3487_v49 = vsel %vm3486_vm11, %v3479_v0, 0.0  ;;  %vm5877_vm11 = vcmask 1043456  }
 0x6bf   :  { %v3855_v10 = vpop.permute.xlu0 %3854 }
 0x6c0   :  { %3488 = vadd.xlane.f32.xlu1 %v3487_v49  ;;  %v3863_v32 = vsel %vm3862_vm12, %v3855_v10, 0.0  ;;  %vm5886_vm12 = vcmask 1042432  }
 0x6c1   :  { %3484 = vadd.xlane.f32.xlu0 %v3483_v1 }
 0x6c5   :  { %3864 = vadd.xlane.f32.xlu0 %v3863_v32 }
 0x6d3   :  { %v4231_v47 = vpop.permute.xlu0 %4230 }
 0x6d4   :  { %v4239_v41 = vsel %vm4238_vm14, %v4231_v47, 0.0  ;;  %vm5904_vm14 = vcmask 1040384  }
 0x6e7   :  { %v4607_v26 = vpop.permute.xlu0 %4606 }
 0x6e8   :  { %v4615_v50 = vsel %vm4614_vm0, %v4607_v26, 0.0  ;;  %vm5913_vm0 = vcmask 15360  }
 0x6f3   :  { %v4983_v20 = vpop.permute.xlu0 %4982 }
 0x6f4   :  { %v4991_v12 = vsel %vm4990_vm2, %v4983_v20, 0.0  ;;  %vm5917_vm2 = vcmask 31744  }
 0x6ff   :  { %v10323_v18 = vpop.xlane.xlu1 %3113 }
 0x701   :  { %v5359_v24 = vpop.permute.xlu0 %5358 }
 0x702   :  { %v5367_v11 = vsel %vm5366_vm4, %v5359_v24, 0.0  ;;  %vm5921_vm4 = vcmask 48128  }
 0x703   :  { %v3853_v53 = vpop.permute.xlu1 %3852 }
 0x704   :  { %v3859_v63 = vsel %vm3858_vm13, %v3853_v53, 0.0  ;;  %vm5895_vm13 = vcmask 1041408  }
 0x705   :  { %3860 = vadd.xlane.f32.xlu0 %v3859_v63 }
 0x707   :  { %v4229_v21 = vpop.permute.xlu1 %4228 }
 0x708   :  { %v4235_v4 = vsel %vm4234_vm15, %v4229_v21, 0.0  ;;  %vm5911_vm15 = vcmask 7168  }
 0x709   :  { %4236 = vadd.xlane.f32.xlu1 %v4235_v4  ;;  %4240 = vadd.xlane.f32.xlu0 %v4239_v41 }
 0x70b   :  { %v4605_v51 = vpop.permute.xlu1 %4604 }
 0x70c   :  { %v4611_v58 = vsel %vm4610_vm1, %v4605_v51, 0.0  ;;  %vm5915_vm1 = vcmask 23552  }
 0x70d   :  { %4612 = vadd.xlane.f32.xlu1 %v4611_v58  ;;  %4616 = vadd.xlane.f32.xlu0 %v4615_v50 }
 0x70f   :  { %v4981_v27 = vpop.permute.xlu1 %4980 }
 0x710   :  { %v4987_v43 = vsel %vm4986_vm3, %v4981_v27, 0.0  ;;  %vm5919_vm3 = vcmask 39936  }
 0x711   :  { %4988 = vadd.xlane.f32.xlu1 %v4987_v43  ;;  %4992 = vadd.xlane.f32.xlu0 %v4991_v12 }
 0x713   :  { %v5357_v62 = vpop.permute.xlu1 %5356 }
 0x714   :  { %v5363_v59 = vsel %vm5362_vm5, %v5357_v62, 0.0  ;;  %v5823_v30 = vpop.permute.xlu0 %5822  ;;  %vm5923_vm5 = vcmask 56320  }
 0x715   :  { %5364 = vadd.xlane.f32.xlu1 %v5363_v59  ;;  %5368 = vadd.xlane.f32.xlu0 %v5367_v11  ;;  %v5831_v44 = vsel %vm5830_vm6, %v5823_v30, 0.0  ;;  %vm5925_vm6 = vcmask 64512  }
 0x717   :  { %v5821_v2 = vpop.permute.xlu1 %5820 }
 0x718   :  { %v5827_v22 = vsel %vm5826_vm7, %v5821_v2, 0.0 }
 0x719   :  { %5828 = vadd.xlane.f32.xlu1 %v5827_v22  ;;  %5832 = vadd.xlane.f32.xlu0 %v5831_v44 }
 0x74d   :  { %v3489_v60 = vpop.xlane.xlu1 %3488 }
 0x74e   :  { %v3485_v13 = vpop.xlane.xlu0 %3484  ;;  %v3491_v28 = vadd.f32 %v10325_v46, %v3489_v60 }
 0x74f   :  { %v3490_v45 = vadd.f32 %v10325_v46, %v3485_v13 }
 0x750   :  { %v5977_v55 = vmul.f32 -1.442695, %v3491_v28 }
 0x751   :  { %v5976_v3 = vmul.f32 -1.442695, %v3490_v45 }
 0x752   :  { %v3865_v23 = vpop.xlane.xlu0 %3864 }
 0x753   :  { %6482 = vpow2.f32 %v5976_v3  ;;  %v3867_v15 = vadd.f32 %v10325_v46, %v3865_v23 }
 0x754   :  { %6484 = vpow2.f32 %v5977_v55 }
 0x755   :  { %v5980_v16 = vmul.f32 -1.442695, %v3867_v15 }
 0x75d   :  { %v6483_v34 = vpop.eup %6482 }
 0x75e   :  { %v6485_v40 = vpop.eup %6484  ;;  %v3498_v29 = vadd.f32 1.0, %v6483_v34 }
 0x75f   :  { %v3499_v9 = vadd.f32 1.0, %v6485_v40 }
 0x760   :  { %6486 = vrcp.f32 %v3498_v29 }
 0x761   :  { %6488 = vrcp.f32 %v3499_v9 }
 0x762   :  { %6490 = vpow2.f32 %v5980_v16 }
 0x76a   :  { %v6487_v25 = vpop.eup %6486 }
 0x76b   :  { %v6489_v31 = vpop.eup %6488  ;;  %v5851_v61 = vrot.slane %v6487_v25, 1 }
 0x76c   :  { %v5852_v17 = vrot.slane %v6489_v31, 1  ;;  %v6491_v6 = vpop.eup %6490 }
 0x76d   :  { %v3875_v39 = vadd.f32 1.0, %v6491_v6 }
 0x76e   :  { %v5853_v52 = vsel %vm5850_vm8, %v5851_v61, %v5852_v17 }
 0x76f   :  { %5854 = vrot.lane.b32.xlu1 %v5853_v52, %s6697_s10 }
 0x792   :  { %v3861_v7 = vpop.xlane.xlu0 %3860 }
 0x793   :  { %v3866_v14 = vadd.f32 %v10325_v46, %v3861_v7 }
 0x795   :  { %v5979_v8 = vmul.f32 -1.442695, %v3866_v14 }
 0x796   :  { %v4237_v48 = vpop.xlane.xlu1 %4236  ;;  %v4241_v33 = vpop.xlane.xlu0 %4240 }
 0x797   :  { %6492 = vpow2.f32 %v5979_v8  ;;  %v4242_v36 = vadd.f32 %v10325_v46, %v4237_v48  ;;  %v4243_v54 = vadd.f32 %v10325_v46, %v4241_v33 }
 0x799   :  { %v5982_v37 = vmul.f32 -1.442695, %v4242_v36  ;;  %v5983_v57 = vmul.f32 -1.442695, %v4243_v54 }
 0x79a   :  { %v4613_v56 = vpop.xlane.xlu1 %4612  ;;  %v4617_v35 = vpop.xlane.xlu0 %4616 }
 0x79b   :  { %6494 = vpow2.f32 %v5982_v37  ;;  %v4618_v19 = vadd.f32 %v10325_v46, %v4613_v56  ;;  %v4619_v38 = vadd.f32 %v10325_v46, %v4617_v35 }
 0x79c   :  { %6496 = vpow2.f32 %v5983_v57 }
 0x79d   :  { %v5985_v5 = vmul.f32 -1.442695, %v4618_v19  ;;  %v5986_v42 = vmul.f32 -1.442695, %v4619_v38 }
 0x79e   :  { %v4989_v0 = vpop.xlane.xlu1 %4988  ;;  %v4993_v1 = vpop.xlane.xlu0 %4992 }
 0x79f   :  { %6498 = vpow2.f32 %v5985_v5  ;;  %v4994_v49 = vadd.f32 %v10325_v46, %v4989_v0  ;;  %v4995_v10 = vadd.f32 %v10325_v46, %v4993_v1 }
 0x7a0   :  { %6500 = vpow2.f32 %v5986_v42 }
 0x7a1   :  { %v6493_v32 = vpop.eup %6492  ;;  %v5988_v53 = vmul.f32 -1.442695, %v4994_v49  ;;  %v5989_v63 = vmul.f32 -1.442695, %v4995_v10  ;;  %6502 = vrcp.f32 %v3875_v39 }
 0x7a2   :  { %v3874_v47 = vadd.f32 1.0, %v6493_v32  ;;  %v5365_v21 = vpop.xlane.xlu1 %5364  ;;  %v5369_v41 = vpop.xlane.xlu0 %5368 }
 0x7a3   :  { %6504 = vpow2.f32 %v5988_v53  ;;  %v5370_v4 = vadd.f32 %v10325_v46, %v5365_v21  ;;  %v5371_v26 = vadd.f32 %v10325_v46, %v5369_v41  ;;  %v3121_v21 = vadd.f32 %v10325_v46, %v10323_v18 }
 0x7a4   :  { %6506 = vrcp.f32 %v3874_v47 }
 0x7a5   :  { %v6495_v51 = vpop.eup %6494  ;;  %6508 = vpow2.f32 %v5989_v63  ;;  %v5991_v50 = vmul.f32 -1.442695, %v5370_v4  ;;  %v5992_v27 = vmul.f32 -1.442695, %v5371_v26  ;;  %v5974_v41 = vmul.f32 -1.442695, %v3121_v21 }
 0x7a6   :  { %v6497_v58 = vpop.eup %6496  ;;  %v4250_v20 = vadd.f32 1.0, %v6495_v51  ;;  %v5829_v12 = vpop.xlane.xlu1 %5828 }
 0x7a7   :  { %v5833_v43 = vpop.xlane.xlu0 %5832  ;;  %v4251_v24 = vadd.f32 1.0, %v6497_v58  ;;  %6510 = vpow2.f32 %v5991_v50  ;;  %v5834_v62 = vadd.f32 %v10325_v46, %v5829_v12 }
 0x7a8   :  { %v5835_v11 = vadd.f32 %v10325_v46, %v5833_v43  ;;  %6512 = vrcp.f32 %v4250_v20 }
 0x7a9   :  { %v6499_v59 = vpop.eup %6498  ;;  %6514 = vrcp.f32 %v4251_v24  ;;  %v5994_v30 = vmul.f32 -1.442695, %v5834_v62 }
 0x7aa   :  { %v6501_v2 = vpop.eup %6500  ;;  %v4626_v44 = vadd.f32 1.0, %v6499_v59  ;;  %6516 = vpow2.f32 %v5992_v27  ;;  %v5995_v22 = vmul.f32 -1.442695, %v5835_v11 }
 0x7ab   :  { %v4627_v13 = vadd.f32 1.0, %v6501_v2  ;;  %6518 = vpow2.f32 %v5994_v30  ;;  %v6503_v60 = vpop.eup %6502 }
 0x7ac   :  { %6520 = vrcp.f32 %v4626_v44  ;;  %v5861_v34 = vrot.slane %v6503_v60, 2 }
 0x7ad   :  { %v6505_v45 = vpop.eup %6504  ;;  %6522 = vrcp.f32 %v4627_v13 }
 0x7ae   :  { %v6507_v28 = vpop.eup %6506  ;;  %v5002_v3 = vadd.f32 1.0, %v6505_v45  ;;  %6524 = vpow2.f32 %v5995_v22 }
 0x7af   :  { %v6509_v55 = vpop.eup %6508  ;;  %v5860_v40 = vrot.slane %v6507_v28, 2 }
 0x7b0   :  { %6526 = vrcp.f32 %v5002_v3  ;;  %v5003_v29 = vadd.f32 1.0, %v6509_v55 }
 0x7b1   :  { %v6511_v9 = vpop.eup %6510  ;;  %v5862_v25 = vsel %vm5859_vm9, %v5860_v40, %v5861_v34 }
 0x7b2   :  { %v6513_v31 = vpop.eup %6512  ;;  %6528 = vrcp.f32 %v5003_v29  ;;  %v5378_v61 = vadd.f32 1.0, %v6511_v9  ;;  %5863 = vrot.lane.b32.xlu0 %v5862_v25, %s6698_s11 }
 0x7b3   :  { %v6515_v17 = vpop.eup %6514  ;;  %v5869_v52 = vrot.slane %v6513_v31, 3 }
 0x7b4   :  { %v6517_v23 = vpop.eup %6516  ;;  %v5870_v15 = vrot.slane %v6515_v17, 3  ;;  %6530 = vrcp.f32 %v5378_v61 }
 0x7b5   :  { %v6519_v16 = vpop.eup %6518  ;;  %v5379_v7 = vadd.f32 1.0, %v6517_v23 }
 0x7b6   :  { %v6521_v14 = vpop.eup %6520  ;;  %v5842_v8 = vadd.f32 1.0, %v6519_v16  ;;  %v5871_v48 = vsel %vm5868_vm10, %v5869_v52, %v5870_v15 }
 0x7b7   :  { %v6523_v33 = vpop.eup %6522  ;;  %v5878_v36 = vrot.slane %v6521_v14, 4  ;;  %6532 = vrcp.f32 %v5379_v7  ;;  %5872 = vrot.lane.b32.xlu1 %v5871_v48, %s6699_s13 }
 0x7b8   :  { %v6525_v54 = vpop.eup %6524  ;;  %v5879_v37 = vrot.slane %v6523_v33, 4  ;;  %6534 = vrcp.f32 %v5842_v8 }
 0x7b9   :  { %v5843_v57 = vadd.f32 1.0, %v6525_v54 }
 0x7ba   :  { %v6527_v56 = vpop.eup %6526  ;;  %v5880_v35 = vsel %vm5877_vm11, %v5878_v36, %v5879_v37 }
 0x7bb   :  { %v5887_v6 = vrot.slane %v6527_v56, 5  ;;  %6536 = vrcp.f32 %v5843_v57  ;;  %5881 = vrot.lane.b32.xlu1 %v5880_v35, %s6700_s1 }
 0x7bc   :  { %v6529_v19 = vpop.eup %6528  ;;  %6538 = vpow2.f32 %v5974_v41 }
 0x7bd   :  { %v5888_v38 = vrot.slane %v6529_v19, 5 }
 0x7be   :  { %v6531_v5 = vpop.eup %6530 }
 0x7bf   :  { %v5889_v42 = vsel %vm5886_vm12, %v5887_v6, %v5888_v38  ;;  %v5896_v39 = vrot.slane %v6531_v5, 6 }
 0x7c0   :  { %5890 = vrot.lane.b32.xlu0 %v5889_v42, %s6701_s12 }
 0x7c1   :  { %v6533_v0 = vpop.eup %6532 }
 0x7c2   :  { %v6535_v1 = vpop.eup %6534  ;;  %v5897_v49 = vrot.slane %v6533_v0, 6 }
 0x7c3   :  { %v5905_v10 = vrot.slane %v6535_v1, 7 }
 0x7c4   :  { %v5898_v32 = vsel %vm5895_vm13, %v5896_v39, %v5897_v49 }
 0x7c5   :  { %v6537_v53 = vpop.eup %6536  ;;  %5899 = vrot.lane.b32.xlu1 %v5898_v32, %s6702_s0 }
 0x7c6   :  { %v5906_v63 = vrot.slane %v6537_v53, 7  ;;  %v6539_v4 = vpop.eup %6538 }
 0x7c7   :  { %v3125_v26 = vadd.f32 1.0, %v6539_v4 }
 0x7c8   :  { %v5907_v47 = vsel %vm5904_vm14, %v5905_v10, %v5906_v63 }
 0x7c9   :  { %5908 = vrot.lane.b32.xlu0 %v5907_v47, %s6703_s15  ;;  %6540 = vrcp.f32 %v3125_v26 }
 0x7d3   :  { %v6541_v27 = vpop.eup %6540 }
 0x7e1   :  { %v5855_v51 = vpop.permute.xlu1 %5854 }
 0x7e2   :  { %v5912_v12 = vsel %vm5911_vm15, %v6541_v27, %v5855_v51 }
 0x824   :  { %v5864_v58 = vpop.permute.xlu0 %5863 }
 0x825   :  { %v5914_v43 = vsel %vm5913_vm0, %v5912_v12, %v5864_v58 }
 0x829   :  { %v5873_v50 = vpop.permute.xlu1 %5872 }
 0x82a   :  { %v5916_v62 = vsel %vm5915_vm1, %v5914_v43, %v5873_v50 }
 0x82d   :  { %v5882_v20 = vpop.permute.xlu1 %5881 }
 0x82e   :  { %v5918_v46 = vsel %vm5917_vm2, %v5916_v62, %v5882_v20 }
 0x832   :  { %v5891_v24 = vpop.permute.xlu0 %5890 }
 0x833   :  { %v5920_v11 = vsel %vm5919_vm3, %v5918_v46, %v5891_v24 }
 0x837   :  { %v5900_v18 = vpop.permute.xlu1 %5899 }
 0x838   :  { %v5922_v59 = vsel %vm5921_vm4, %v5920_v11, %v5900_v18 }
 0x83b   :  { %v5909_v30 = vpop.permute.xlu0 %5908 }
 0x83c   :  { %v5924_v2 = vsel %vm5923_vm5, %v5922_v59, %v5909_v30 }
 0x83d   :  { %v5926_v44 = vsel %vm5925_vm6, %v5924_v2, 0.0 }
 0x83e   :  { %5927 = vst [vmem:[#allocation12] sm:$0xff] %v5926_v44 }
 0x83f   :  { %6664 = shalt.err (!%p6661_p2)
}
 0x840   :  { %s6665_s21 = scalar_lea.hbm %s10364_s9, 128 }
 0x841   :  { %p6666_p3 = scmp.ne.s32.totalorder %s10364_s9, %s6665_s21  ;;  %p6669_p4 = scmp.lt.u32.totalorder %s6665_s21, %s10364_s9 }
 0x843   :  { %p6671_p5 = pnand %p6669_p4, %p6666_p3 }
 0x845   :  { %6674 = shalt.err (!%p6671_p5)
}
 0x846   :  { %5937 = dma.vmem_to_hbm [thread:$0]  %s5935_s17, 128, %s10364_s9, [#allocation5]  }
 0x847   :  { %6681 = dma.done.wait [#allocation5], 128  }
 0x848   :  { %6682 = vsyncadd [#allocation5], 4294967168 }
 0x849   :  { %5941 = vsyncpa [#allocation4], 1 }
 0x84a   :  { %5942 = vsyncpa [#allocation7], 1 }
 0x84b   :  { %5943 = vsyncpa [#allocation10], 1 }
 0x84c   :  { %5944 = vsyncpa [#allocation5], 1 }

</bundles_post_ra>
